<compile_context>
chip_gen: v5e
topology: v5e:2x2
jax: 0.10.0
libtpu: 0.0.40
codegen_flags: <defaults>
</compile_context>

<pallas_src>
import functools

import jax
import jax.numpy as jnp
import numpy as np
from jax import lax
from jax.experimental import pallas as pl
from jax.experimental.pallas import tpu as pltpu  # noqa: F401  (TPU backend)

EPS = 1e-5


# ----------------------------------------------------------------------------
# Pallas kernels (single full-array block; everything resident in VMEM)
# ----------------------------------------------------------------------------
def _matmul_bn_relu_kernel(x_ref, w_ref, red_ref, brd_ref, g_ref, b_ref,
                           rf_ref, cf_ref, o_ref, *, count):
    """out = relu(BN(x @ w)) with train-mode BN stats computed in-kernel.

      x_ref  : (M, K)  activation / patch slab (cast to bf16 for the MXU)
      w_ref  : (K, L)  bf16 weight matrix
      red_ref: (L, C)  0/1: per-column sums -> per-channel sums
      brd_ref: (C, L)  0/1: per-channel values -> per-column broadcast
      g_ref  : (1, L)  gamma per output column
      b_ref  : (1, L)  beta  per output column
      rf_ref : (M, 4)  row factors of the validity mask
      cf_ref : (4, L)  col factors; mask = prod_k max(rf[:,k], cf[k,:])
    Invalid entries (the crop ring of the stride-2 deconv) are excluded from
    the statistics and written as zeros, so the pixel-shuffled output plane
    is directly the next layer's zero-padded input.
    """
    x = x_ref[...].astype(jnp.bfloat16)
    y = jnp.dot(x, w_ref[...], preferred_element_type=jnp.float32)       # (M,L)

    rf = rf_ref[...]
    cf = cf_ref[...]
    mask = jnp.maximum(rf[:, 0:1], cf[0:1, :])
    for k in range(1, 4):
        mask = mask * jnp.maximum(rf[:, k:k + 1], cf[k:k + 1, :])

    ym = y * mask
    s = jnp.sum(ym, axis=0, keepdims=True)                               # (1,L)
    ss = jnp.sum(ym * ym, axis=0, keepdims=True)                         # (1,L)
    stats = jnp.concatenate([s, ss], axis=0)                             # (2,L)
    per_c = jnp.dot(stats, red_ref[...], preferred_element_type=jnp.float32)
    tot = jnp.dot(per_c, brd_ref[...], preferred_element_type=jnp.float32)
    inv = 1.0 / count
    mean = tot[0:1, :] * inv
    var = tot[1:2, :] * inv - mean * mean                                # biased
    scale = g_ref[...] * lax.rsqrt(var + EPS)
    shift = b_ref[...] - mean * scale

    out = jnp.maximum(y * scale + shift, 0.0) * mask
    o_ref[...] = out.astype(o_ref.dtype)


def _matmul_tanh_kernel(x_ref, w_ref, o_ref):
    x = x_ref[...].astype(jnp.bfloat16)
    y = jnp.dot(x, w_ref[...], preferred_element_type=jnp.float32)
    o_ref[...] = jnp.tanh(y)


def fused_matmul_bn_relu(x, w, red, brd, gam, bet, rf, cf, count):
    M, L = x.shape[0], w.shape[1]
    # Single grid step: all operands fit VMEM with >10x headroom, and one
    # block minimises launch/pipeline overhead (v5e/v6e are single-TC).
    # TODO(synk): on v7x (2 TensorCores) split the M axis across 2 parallel
    # grid blocks with a two-pass BN-stat exchange to use both cores.
    return pl.pallas_call(
        functools.partial(_matmul_bn_relu_kernel, count=float(count)),
        out_shape=jax.ShapeDtypeStruct((M, L), jnp.bfloat16),
    )(x, w, red, brd, gam, bet, rf, cf)


def fused_matmul_tanh(x, w):
    M, L = x.shape[0], w.shape[1]
    return pl.pallas_call(
        _matmul_tanh_kernel,
        out_shape=jax.ShapeDtypeStruct((M, L), jnp.float32),
    )(x, w)


# ----------------------------------------------------------------------------
# Thin XLA glue: patch gather and pixel shuffle between fused layer kernels
# ----------------------------------------------------------------------------
def _patches_from_plane(plane):
    """(N, H+2, W+2, C) zero-ring padded plane -> (N*(H+1)*(W+1), 4*C) 2x2
    patch slab, column order (dh, dw, c)."""
    N, Hp2, Wp2, C = plane.shape
    H, W = Hp2 - 2, Wp2 - 2
    cols = [plane[:, dh:dh + H + 1, dw:dw + W + 1, :]
            for dh in (0, 1) for dw in (0, 1)]
    p = jnp.stack(cols, axis=3)                      # (N, H+1, W+1, 4, C)
    return p.reshape(N * (H + 1) * (W + 1), 4 * C)


def _pixel_shuffle(y, N, HP, WP, C):
    """(N*HP*WP, 4*C) with column order (rh, rw, c) -> (N, 2*HP, 2*WP, C)."""
    y = y.reshape(N, HP, WP, 2, 2, C)
    y = jnp.transpose(y, (0, 1, 3, 2, 4, 5))
    return y.reshape(N, 2 * HP, 2 * WP, C)


def generator_forward(prep, noise, labels):
    """noise: (N,nz,1,1), labels: (N,label_dim,1,1) NCHW -> (N,3,64,64)."""
    N = noise.shape[0]
    C2 = prep["gam0"].shape[1] // 16                 # 2 * ngf*4

    # Stage 0: both 1x1-input projection convs as one block-diagonal matmul,
    # fused with BN(train stats)+ReLU.  F.interpolate(size=(4,4), 'nearest')
    # is the identity on a 4x4 map; per-branch BN == BN of the concat.
    x0 = jnp.concatenate([noise.reshape(N, -1), labels.reshape(N, -1)], axis=1)
    y0 = fused_matmul_bn_relu(x0, prep["wm0"], prep["red0"], prep["brd0"],
                              prep["gam0"], prep["bet0"],
                              prep["rf0"], prep["cf0"], count=N * 16)
    plane = jnp.pad(y0.reshape(N, 4, 4, C2), ((0, 0), (1, 1), (1, 1), (0, 0)))

    # Three stride-2 deconv + BN + ReLU layers (sub-pixel matmul formulation).
    for idx in (1, 2, 3):
        H = plane.shape[1] - 2
        patches = _patches_from_plane(plane)
        Cout = prep[f"wm{idx}"].shape[1] // 4
        y = fused_matmul_bn_relu(
            patches, prep[f"wm{idx}"], prep[f"red{idx}"], prep[f"brd{idx}"],
            prep[f"gam{idx}"], prep[f"bet{idx}"],
            prep[f"rf{idx}"], prep[f"cf{idx}"],
            count=N * (2 * H) * (2 * H))
        # Uncropped pixel-shuffled plane; crop ring already zero, so it is
        # directly the next layer's padded input (crop+pad pair eliminated).
        plane = _pixel_shuffle(y, N, H + 1, H + 1, Cout)

    # Final stride-2 deconv + tanh (no BN).
    H = plane.shape[1] - 2
    patches = _patches_from_plane(plane)
    y = fused_matmul_tanh(patches, prep["wm4"])
    out = _pixel_shuffle(y, N, H + 1, H + 1, prep["wm4"].shape[1] // 4)
    out = out[:, 1:2 * H + 1, 1:2 * H + 1, :]
    # TODO(synk): pixel-shuffle / patch-gather repacking between layers is
    # still XLA glue; an in-kernel gather (pltpu.roll-based) would remove the
    # remaining inter-layer dispatches.
    return jnp.transpose(out, (0, 3, 1, 2))          # NHWC -> NCHW


# ----------------------------------------------------------------------------
# One-time weight / constant preprocessing (hoisted out of the hot path)
# ----------------------------------------------------------------------------
def _subpixel_mat(w):
    """ConvTranspose2d(k=4,s=2,p=1) weight (Cin,Cout,4,4) -> (4*Cin, 4*Cout)
    sub-kernel matrix; rows ordered (dh,dw,cin), cols ordered (rh,rw,cout)."""
    Cin, Cout = w.shape[0], w.shape[1]
    wt = jnp.transpose(w, (2, 3, 0, 1))            # (KH, KW, Cin, Cout)
    kidx = jnp.array([[2, 3], [0, 1]], jnp.int32)  # [d, r] -> kernel tap
    sub = wt[kidx]                                 # (dh, rh, KW, Cin, Cout)
    sub = sub[:, :, kidx]                          # (dh, rh, dw, rw, Cin, Cout)
    sub = jnp.transpose(sub, (0, 2, 4, 1, 3, 5))   # (dh, dw, Cin, rh, rw, Cout)
    return sub.reshape(4 * Cin, 4 * Cout).astype(jnp.bfloat16)


def _stage0_matrix(w_noise, w_label):
    """Block-diagonal projection for the two 1x1-input deconvs; output columns
    ordered (h, w, cc) with cc = [noise channels | label channels]."""
    nz, C1 = w_noise.shape[0], w_noise.shape[1]
    ld = w_label.shape[0]
    Wz = jnp.transpose(w_noise, (0, 2, 3, 1))      # (nz, 4, 4, C1)
    Wl = jnp.transpose(w_label, (0, 2, 3, 1))      # (ld, 4, 4, C1)
    W0 = jnp.zeros((nz + ld, 4, 4, 2 * C1), jnp.float32)
    W0 = W0.at[:nz, :, :, :C1].set(Wz)
    W0 = W0.at[nz:, :, :, C1:].set(Wl)
    return W0.reshape(nz + ld, 16 * 2 * C1).astype(jnp.bfloat16)


def _combiners(L, C):
    """0/1 matrices reducing per-column sums to per-channel (col % C) totals
    and broadcasting them back per column."""
    col = np.arange(L)
    red = (col[:, None] % C == np.arange(C)[None, :]).astype(np.float32)
    return jnp.asarray(red), jnp.asarray(np.ascontiguousarray(red.T))


def _crop_mask_factors(N, H, W, Cout):
    """Row/col factors of the validity mask for the uncropped sub-pixel output.
    Rows iterate (n,i,j) over the (H+1)x(W+1) patch grid; columns iterate
    (rh,rw,c).  Entry valid iff uncropped position (2i+rh, 2j+rw) survives the
    [1:2H+1, 1:2W+1] crop."""
    ii = np.broadcast_to(np.arange(H + 1)[:, None], (H + 1, W + 1))
    jj = np.broadcast_to(np.arange(W + 1)[None, :], (H + 1, W + 1))
    rf = np.stack([ii != 0, ii != H, jj != 0, jj != W], axis=-1)
    rf = np.tile(rf.reshape(1, -1, 4), (N, 1, 1)).reshape(-1, 4).astype(np.float32)
    L = 4 * Cout
    col = np.arange(L)
    rh = col // (2 * Cout)
    rw = (col // Cout) % 2
    cf = np.stack([rh != 0, rh != 1, rw != 0, rw != 1], axis=0).astype(np.float32)
    return jnp.asarray(rf), jnp.asarray(cf)


def preprocess_params(params, batch):
    N = batch
    C1 = params["w_noise"].shape[1]                  # ngf*4
    prep = {}
    # Stage 0
    L0 = 16 * 2 * C1
    prep["wm0"] = _stage0_matrix(params["w_noise"], params["w_label"])
    prep["red0"], prep["brd0"] = _combiners(L0, 2 * C1)
    g0 = jnp.concatenate([params["g_z"], params["g_l"]])
    b0 = jnp.concatenate([params["b_z"], params["b_l"]])
    prep["gam0"] = jnp.tile(g0, 16).reshape(1, L0).astype(jnp.float32)
    prep["bet0"] = jnp.tile(b0, 16).reshape(1, L0).astype(jnp.float32)
    prep["rf0"] = jnp.ones((N, 4), jnp.float32)      # no crop mask at stage 0
    prep["cf0"] = jnp.ones((4, L0), jnp.float32)
    # Deconv layers; input spatial sizes are fixed by the architecture.
    spatial = {1: 4, 2: 8, 3: 16, 4: 32}
    for idx in (1, 2, 3, 4):
        w = params[f"w{idx}"]
        Cout = w.shape[1]
        prep[f"wm{idx}"] = _subpixel_mat(w)
        if idx < 4:                                  # layer 4 has no BN
            L = 4 * Cout
            prep[f"red{idx}"], prep[f"brd{idx}"] = _combiners(L, Cout)
            prep[f"gam{idx}"] = jnp.tile(params[f"g{idx}"], 4).reshape(1, L).astype(jnp.float32)
            prep[f"bet{idx}"] = jnp.tile(params[f"b{idx}"], 4).reshape(1, L).astype(jnp.float32)
            rf, cf = _crop_mask_factors(N, spatial[idx], spatial[idx], Cout)
            prep[f"rf{idx}"], prep[f"cf{idx}"] = rf, cf
    return prep


# ----------------------------------------------------------------------------
# Pure NumPy reference (PyTorch ConvTranspose2d / BatchNorm2d semantics)
# ----------------------------------------------------------------------------
def _ref_conv_transpose(x, w, stride, pad):
    N, Cin, H, W = x.shape
    Cout, k = w.shape[1], w.shape[2]
    OH = (H - 1) * stride - 2 * pad + k
    OW = (W - 1) * stride - 2 * pad + k
    out = np.zeros((N, Cout, OH, OW), np.float64)
    for kh in range(k):
        for kw in range(k):
            oh = np.arange(H) * stride + kh - pad
            ow = np.arange(W) * stride + kw - pad
            hv = (oh >= 0) & (oh < OH)
            wv = (ow >= 0) & (ow < OW)
            contrib = np.einsum("nchw,cd->ndhw", x, w[:, :, kh, kw])
            out[:, :, oh[hv][:, None], ow[wv][None, :]] += \
                contrib[:, :, hv][:, :, :, wv]
    return out


def _ref_bn(x, gamma, beta):
    mean = x.mean(axis=(0, 2, 3), keepdims=True)
    var = x.var(axis=(0, 2, 3), keepdims=True)
    return ((x - mean) / np.sqrt(var + EPS) * gamma.reshape(1, -1, 1, 1)
            + beta.reshape(1, -1, 1, 1))


def ref_forward(p, noise, labels):
    relu = lambda v: np.maximum(v, 0.0)
    z = relu(_ref_bn(_ref_conv_transpose(noise, p["w_noise"], 1, 0), p["g_z"], p["b_z"]))
    l = relu(_ref_bn(_ref_conv_transpose(labels, p["w_label"], 1, 0), p["g_l"], p["b_l"]))
    x = np.concatenate([z, l], axis=1)
    x = relu(_ref_bn(_ref_conv_transpose(x, p["w1"], 2, 1), p["g1"], p["b1"]))
    x = relu(_ref_bn(_ref_conv_transpose(x, p["w2"], 2, 1), p["g2"], p["b2"]))
    x = relu(_ref_bn(_ref_conv_transpose(x, p["w3"], 2, 1), p["g3"], p["b3"]))
    return np.tanh(_ref_conv_transpose(x, p["w4"], 2, 1))


# ----------------------------------------------------------------------------
# Parameter init + driver
# ----------------------------------------------------------------------------
def init_params(key, nz, ngf, label_dim):
    ks = jax.random.split(key, 16)
    w = lambda k, shp: 0.05 * jax.random.normal(k, shp, jnp.float32)
    g = lambda k, c: 1.0 + 0.1 * jax.random.normal(k, (c,), jnp.float32)
    b = lambda k, c: 0.1 * jax.random.normal(k, (c,), jnp.float32)
    return {
        "w_noise": w(ks[0], (nz, ngf * 4, 4, 4)),
        "w_label": w(ks[1], (label_dim, ngf * 4, 4, 4)),
        "w1": w(ks[2], (ngf * 8, ngf * 4, 4, 4)),
        "w2": w(ks[3], (ngf * 4, ngf * 2, 4, 4)),
        "w3": w(ks[4], (ngf * 2, ngf, 4, 4)),
        "w4": w(ks[5], (ngf, 3, 4, 4)),
        "g_z": g(ks[6], ngf * 4), "b_z": b(ks[7], ngf * 4),
        "g_l": g(ks[8], ngf * 4), "b_l": b(ks[9], ngf * 4),
        "g1": g(ks[10], ngf * 4), "b1": b(ks[11], ngf * 4),
        "g2": g(ks[12], ngf * 2), "b2": b(ks[13], ngf * 2),
        "g3": g(ks[14], ngf), "b3": b(ks[15], ngf),
    }


if __name__ == "__main__":
    nz, ngf, label_dim, batch = 16, 8, 10, 2

    key = jax.random.PRNGKey(0)
    k_par, k_noise, k_lab = jax.random.split(key, 3)
    params = init_params(k_par, nz, ngf, label_dim)
    noise = jax.random.normal(k_noise, (batch, nz, 1, 1), jnp.float32)
    labels = jax.random.normal(k_lab, (batch, label_dim, 1, 1), jnp.float32)

    prep = preprocess_params(params, batch)          # hoisted, runs once
    fwd = jax.jit(generator_forward)
    out = jax.block_until_ready(fwd(prep, noise, labels))
    assert out.shape == (batch, 3, 64, 64), out.shape

    # Correctness vs. f64 NumPy reference of the PyTorch module semantics.
    # Tolerance is loose because the MXU matmuls take bf16 inputs
    # (f32 accumulation) and intermediate activations are stored as bf16.
    p_np = {k: np.asarray(v, np.float64) for k, v in params.items()}
    ref = ref_forward(p_np, np.asarray(noise, np.float64),
                      np.asarray(labels, np.float64))
    max_err = float(np.max(np.abs(np.asarray(out, np.float64) - ref)))
    assert max_err < 1e-1, f"max abs error too large: {max_err}"

    print("KERNEL_OK")
</pallas_src>

<mosaic_0001>
module attributes {stable_mosaic.version = 11 : i64} {
  func.func @_matmul_bn_relu_kernel(%arg0: memref<2x26xf32, #tpu.memory_space<vmem>>, %arg1: memref<26x1024xbf16, #tpu.memory_space<vmem>>, %arg2: memref<1024x64xf32, #tpu.memory_space<vmem>>, %arg3: memref<64x1024xf32, #tpu.memory_space<vmem>>, %arg4: memref<1x1024xf32, #tpu.memory_space<vmem>>, %arg5: memref<1x1024xf32, #tpu.memory_space<vmem>>, %arg6: memref<2x4xf32, #tpu.memory_space<vmem>>, %arg7: memref<4x1024xf32, #tpu.memory_space<vmem>>, %arg8: memref<2x1024xbf16, #tpu.memory_space<vmem>>) attributes {dimension_semantics = [], scalar_prefetch = 0 : i64, scratch_operands = 0 : i64, tpu.core_type = #tpu.core_type<tc>} {
    %c0 = arith.constant 0 : index
    %c0_0 = arith.constant 0 : index
    %0 = vector.load %arg0[%c0, %c0_0] : memref<2x26xf32, #tpu.memory_space<vmem>>, vector<2x26xf32>
    %1 = arith.truncf %0 : vector<2x26xf32> to vector<2x26xbf16>
    %c0_1 = arith.constant 0 : index
    %c0_2 = arith.constant 0 : index
    %2 = vector.load %arg1[%c0_1, %c0_2] : memref<26x1024xbf16, #tpu.memory_space<vmem>>, vector<26x1024xbf16>
    %cst = arith.constant dense<0.000000e+00> : vector<2x1024xf32>
    %3 = tpu.matmul %1, %2, %cst {dimension_numbers = #tpu.dot_dimension_numbers<[1], [0], [0], [1], [0, 0, 1, 1], [], []>} : vector<2x26xbf16>, vector<26x1024xbf16>, vector<2x1024xf32> -> vector<2x1024xf32>
    %c0_3 = arith.constant 0 : index
    %c0_4 = arith.constant 0 : index
    %4 = vector.load %arg6[%c0_3, %c0_4] : memref<2x4xf32, #tpu.memory_space<vmem>>, vector<2x4xf32>
    %c0_5 = arith.constant 0 : index
    %c0_6 = arith.constant 0 : index
    %5 = vector.load %arg7[%c0_5, %c0_6] : memref<4x1024xf32, #tpu.memory_space<vmem>>, vector<4x1024xf32>
    %6 = vector.extract_strided_slice %4 {offsets = [0, 0], sizes = [2, 1], strides = [1, 1]} : vector<2x4xf32> to vector<2x1xf32>
    %7 = vector.extract_strided_slice %5 {offsets = [0, 0], sizes = [1, 1024], strides = [1, 1]} : vector<4x1024xf32> to vector<1x1024xf32>
    %8 = vector.broadcast %6 : vector<2x1xf32> to vector<2x1024xf32>
    %9 = vector.broadcast %7 : vector<1x1024xf32> to vector<2x1024xf32>
    %10 = arith.maximumf %8, %9 : vector<2x1024xf32>
    %11 = vector.extract_strided_slice %4 {offsets = [0, 1], sizes = [2, 1], strides = [1, 1]} : vector<2x4xf32> to vector<2x1xf32>
    %12 = vector.extract_strided_slice %5 {offsets = [1, 0], sizes = [1, 1024], strides = [1, 1]} : vector<4x1024xf32> to vector<1x1024xf32>
    %13 = vector.broadcast %11 : vector<2x1xf32> to vector<2x1024xf32>
    %14 = vector.broadcast %12 : vector<1x1024xf32> to vector<2x1024xf32>
    %15 = arith.maximumf %13, %14 : vector<2x1024xf32>
    %16 = arith.mulf %10, %15 : vector<2x1024xf32>
    %17 = vector.extract_strided_slice %4 {offsets = [0, 2], sizes = [2, 1], strides = [1, 1]} : vector<2x4xf32> to vector<2x1xf32>
    %18 = vector.extract_strided_slice %5 {offsets = [2, 0], sizes = [1, 1024], strides = [1, 1]} : vector<4x1024xf32> to vector<1x1024xf32>
    %19 = vector.broadcast %17 : vector<2x1xf32> to vector<2x1024xf32>
    %20 = vector.broadcast %18 : vector<1x1024xf32> to vector<2x1024xf32>
    %21 = arith.maximumf %19, %20 : vector<2x1024xf32>
    %22 = arith.mulf %16, %21 : vector<2x1024xf32>
    %23 = vector.extract_strided_slice %4 {offsets = [0, 3], sizes = [2, 1], strides = [1, 1]} : vector<2x4xf32> to vector<2x1xf32>
    %24 = vector.extract_strided_slice %5 {offsets = [3, 0], sizes = [1, 1024], strides = [1, 1]} : vector<4x1024xf32> to vector<1x1024xf32>
    %25 = vector.broadcast %23 : vector<2x1xf32> to vector<2x1024xf32>
    %26 = vector.broadcast %24 : vector<1x1024xf32> to vector<2x1024xf32>
    %27 = arith.maximumf %25, %26 : vector<2x1024xf32>
    %28 = arith.mulf %22, %27 : vector<2x1024xf32>
    %29 = arith.mulf %3, %28 : vector<2x1024xf32>
    %cst_7 = arith.constant dense<0.000000e+00> : vector<1024xf32>
    %30 = vector.multi_reduction <add>, %29, %cst_7 [0] : vector<2x1024xf32> to vector<1024xf32>
    %31 = vector.shape_cast %30 : vector<1024xf32> to vector<1x1024xf32>
    %32 = arith.mulf %29, %29 : vector<2x1024xf32>
    %cst_8 = arith.constant dense<0.000000e+00> : vector<1024xf32>
    %33 = vector.multi_reduction <add>, %32, %cst_8 [0] : vector<2x1024xf32> to vector<1024xf32>
    %34 = vector.shape_cast %33 : vector<1024xf32> to vector<1x1024xf32>
    %35 = tpu.concatenate %31, %34 in 0 : vector<1x1024xf32>, vector<1x1024xf32> -> vector<2x1024xf32>
    %c0_9 = arith.constant 0 : index
    %c0_10 = arith.constant 0 : index
    %36 = vector.load %arg2[%c0_9, %c0_10] : memref<1024x64xf32, #tpu.memory_space<vmem>>, vector<1024x64xf32>
    %cst_11 = arith.constant dense<0.000000e+00> : vector<2x64xf32>
    %37 = tpu.matmul %35, %36, %cst_11 {dimension_numbers = #tpu.dot_dimension_numbers<[1], [0], [0], [1], [0, 0, 1, 1], [], []>} : vector<2x1024xf32>, vector<1024x64xf32>, vector<2x64xf32> -> vector<2x64xf32>
    %c0_12 = arith.constant 0 : index
    %c0_13 = arith.constant 0 : index
    %38 = vector.load %arg3[%c0_12, %c0_13] : memref<64x1024xf32, #tpu.memory_space<vmem>>, vector<64x1024xf32>
    %cst_14 = arith.constant dense<0.000000e+00> : vector<2x1024xf32>
    %39 = tpu.matmul %37, %38, %cst_14 {dimension_numbers = #tpu.dot_dimension_numbers<[1], [0], [0], [1], [0, 0, 1, 1], [], []>} : vector<2x64xf32>, vector<64x1024xf32>, vector<2x1024xf32> -> vector<2x1024xf32>
    %40 = vector.extract_strided_slice %39 {offsets = [0, 0], sizes = [1, 1024], strides = [1, 1]} : vector<2x1024xf32> to vector<1x1024xf32>
    %cst_15 = arith.constant 3.125000e-02 : f32
    %41 = vector.broadcast %cst_15 : f32 to vector<1x1024xf32>
    %42 = arith.mulf %40, %41 : vector<1x1024xf32>
    %43 = vector.extract_strided_slice %39 {offsets = [1, 0], sizes = [1, 1024], strides = [1, 1]} : vector<2x1024xf32> to vector<1x1024xf32>
    %cst_16 = arith.constant 3.125000e-02 : f32
    %44 = vector.broadcast %cst_16 : f32 to vector<1x1024xf32>
    %45 = arith.mulf %43, %44 : vector<1x1024xf32>
    %46 = arith.mulf %42, %42 : vector<1x1024xf32>
    %47 = arith.subf %45, %46 : vector<1x1024xf32>
    %c0_17 = arith.constant 0 : index
    %c0_18 = arith.constant 0 : index
    %48 = vector.load %arg4[%c0_17, %c0_18] : memref<1x1024xf32, #tpu.memory_space<vmem>>, vector<1x1024xf32>
    %cst_19 = arith.constant 9.99999974E-6 : f32
    %49 = vector.broadcast %cst_19 : f32 to vector<1x1024xf32>
    %50 = arith.addf %47, %49 : vector<1x1024xf32>
    %51 = math.rsqrt %50 : vector<1x1024xf32>
    %52 = arith.mulf %48, %51 : vector<1x1024xf32>
    %c0_20 = arith.constant 0 : index
    %c0_21 = arith.constant 0 : index
    %53 = vector.load %arg5[%c0_20, %c0_21] : memref<1x1024xf32, #tpu.memory_space<vmem>>, vector<1x1024xf32>
    %54 = arith.mulf %42, %52 : vector<1x1024xf32>
    %55 = arith.subf %53, %54 : vector<1x1024xf32>
    %56 = vector.broadcast %52 : vector<1x1024xf32> to vector<2x1024xf32>
    %57 = arith.mulf %3, %56 : vector<2x1024xf32>
    %58 = vector.broadcast %55 : vector<1x1024xf32> to vector<2x1024xf32>
    %59 = arith.addf %57, %58 : vector<2x1024xf32>
    %cst_22 = arith.constant 0.000000e+00 : f32
    %60 = vector.broadcast %cst_22 : f32 to vector<2x1024xf32>
    %61 = arith.maximumf %59, %60 : vector<2x1024xf32>
    %62 = arith.mulf %61, %28 : vector<2x1024xf32>
    %63 = arith.truncf %62 : vector<2x1024xf32> to vector<2x1024xbf16>
    %c0_23 = arith.constant 0 : index
    %c0_24 = arith.constant 0 : index
    %64 = vector.load %arg8[%c0_23, %c0_24] : memref<2x1024xbf16, #tpu.memory_space<vmem>>, vector<2x1024xbf16>
    tpu.vector_store %arg8[%c0_23, %c0_24], %63 {strides = array<i32>} : memref<2x1024xbf16, #tpu.memory_space<vmem>>, vector<2x1024xbf16>,
    return
  }
}

module attributes {stable_mosaic.version = 11 : i64} {
  func.func @_matmul_bn_relu_kernel(%arg0: memref<50x256xbf16, #tpu.memory_space<vmem>>, %arg1: memref<256x128xbf16, #tpu.memory_space<vmem>>, %arg2: memref<128x32xf32, #tpu.memory_space<vmem>>, %arg3: memref<32x128xf32, #tpu.memory_space<vmem>>, %arg4: memref<1x128xf32, #tpu.memory_space<vmem>>, %arg5: memref<1x128xf32, #tpu.memory_space<vmem>>, %arg6: memref<50x4xf32, #tpu.memory_space<vmem>>, %arg7: memref<4x128xf32, #tpu.memory_space<vmem>>, %arg8: memref<50x128xbf16, #tpu.memory_space<vmem>>) attributes {dimension_semantics = [], scalar_prefetch = 0 : i64, scratch_operands = 0 : i64, tpu.core_type = #tpu.core_type<tc>} {
    %c0 = arith.constant 0 : index
    %c0_0 = arith.constant 0 : index
    %0 = vector.load %arg0[%c0, %c0_0] : memref<50x256xbf16, #tpu.memory_space<vmem>>, vector<50x256xbf16>
    %c0_1 = arith.constant 0 : index
    %c0_2 = arith.constant 0 : index
    %1 = vector.load %arg1[%c0_1, %c0_2] : memref<256x128xbf16, #tpu.memory_space<vmem>>, vector<256x128xbf16>
    %cst = arith.constant dense<0.000000e+00> : vector<50x128xf32>
    %2 = tpu.matmul %0, %1, %cst {dimension_numbers = #tpu.dot_dimension_numbers<[1], [0], [0], [1], [0, 0, 1, 1], [], []>} : vector<50x256xbf16>, vector<256x128xbf16>, vector<50x128xf32> -> vector<50x128xf32>
    %c0_3 = arith.constant 0 : index
    %c0_4 = arith.constant 0 : index
    %3 = vector.load %arg6[%c0_3, %c0_4] : memref<50x4xf32, #tpu.memory_space<vmem>>, vector<50x4xf32>
    %c0_5 = arith.constant 0 : index
    %c0_6 = arith.constant 0 : index
    %4 = vector.load %arg7[%c0_5, %c0_6] : memref<4x128xf32, #tpu.memory_space<vmem>>, vector<4x128xf32>
    %5 = vector.extract_strided_slice %3 {offsets = [0, 0], sizes = [50, 1], strides = [1, 1]} : vector<50x4xf32> to vector<50x1xf32>
    %6 = vector.extract_strided_slice %4 {offsets = [0, 0], sizes = [1, 128], strides = [1, 1]} : vector<4x128xf32> to vector<1x128xf32>
    %7 = vector.broadcast %5 : vector<50x1xf32> to vector<50x128xf32>
    %8 = vector.broadcast %6 : vector<1x128xf32> to vector<50x128xf32>
    %9 = arith.maximumf %7, %8 : vector<50x128xf32>
    %10 = vector.extract_strided_slice %3 {offsets = [0, 1], sizes = [50, 1], strides = [1, 1]} : vector<50x4xf32> to vector<50x1xf32>
    %11 = vector.extract_strided_slice %4 {offsets = [1, 0], sizes = [1, 128], strides = [1, 1]} : vector<4x128xf32> to vector<1x128xf32>
    %12 = vector.broadcast %10 : vector<50x1xf32> to vector<50x128xf32>
    %13 = vector.broadcast %11 : vector<1x128xf32> to vector<50x128xf32>
    %14 = arith.maximumf %12, %13 : vector<50x128xf32>
    %15 = arith.mulf %9, %14 : vector<50x128xf32>
    %16 = vector.extract_strided_slice %3 {offsets = [0, 2], sizes = [50, 1], strides = [1, 1]} : vector<50x4xf32> to vector<50x1xf32>
    %17 = vector.extract_strided_slice %4 {offsets = [2, 0], sizes = [1, 128], strides = [1, 1]} : vector<4x128xf32> to vector<1x128xf32>
    %18 = vector.broadcast %16 : vector<50x1xf32> to vector<50x128xf32>
    %19 = vector.broadcast %17 : vector<1x128xf32> to vector<50x128xf32>
    %20 = arith.maximumf %18, %19 : vector<50x128xf32>
    %21 = arith.mulf %15, %20 : vector<50x128xf32>
    %22 = vector.extract_strided_slice %3 {offsets = [0, 3], sizes = [50, 1], strides = [1, 1]} : vector<50x4xf32> to vector<50x1xf32>
    %23 = vector.extract_strided_slice %4 {offsets = [3, 0], sizes = [1, 128], strides = [1, 1]} : vector<4x128xf32> to vector<1x128xf32>
    %24 = vector.broadcast %22 : vector<50x1xf32> to vector<50x128xf32>
    %25 = vector.broadcast %23 : vector<1x128xf32> to vector<50x128xf32>
    %26 = arith.maximumf %24, %25 : vector<50x128xf32>
    %27 = arith.mulf %21, %26 : vector<50x128xf32>
    %28 = arith.mulf %2, %27 : vector<50x128xf32>
    %cst_7 = arith.constant dense<0.000000e+00> : vector<128xf32>
    %29 = vector.multi_reduction <add>, %28, %cst_7 [0] : vector<50x128xf32> to vector<128xf32>
    %30 = vector.shape_cast %29 : vector<128xf32> to vector<1x128xf32>
    %31 = arith.mulf %28, %28 : vector<50x128xf32>
    %cst_8 = arith.constant dense<0.000000e+00> : vector<128xf32>
    %32 = vector.multi_reduction <add>, %31, %cst_8 [0] : vector<50x128xf32> to vector<128xf32>
    %33 = vector.shape_cast %32 : vector<128xf32> to vector<1x128xf32>
    %34 = tpu.concatenate %30, %33 in 0 : vector<1x128xf32>, vector<1x128xf32> -> vector<2x128xf32>
    %c0_9 = arith.constant 0 : index
    %c0_10 = arith.constant 0 : index
    %35 = vector.load %arg2[%c0_9, %c0_10] : memref<128x32xf32, #tpu.memory_space<vmem>>, vector<128x32xf32>
    %cst_11 = arith.constant dense<0.000000e+00> : vector<2x32xf32>
    %36 = tpu.matmul %34, %35, %cst_11 {dimension_numbers = #tpu.dot_dimension_numbers<[1], [0], [0], [1], [0, 0, 1, 1], [], []>} : vector<2x128xf32>, vector<128x32xf32>, vector<2x32xf32> -> vector<2x32xf32>
    %c0_12 = arith.constant 0 : index
    %c0_13 = arith.constant 0 : index
    %37 = vector.load %arg3[%c0_12, %c0_13] : memref<32x128xf32, #tpu.memory_space<vmem>>, vector<32x128xf32>
    %cst_14 = arith.constant dense<0.000000e+00> : vector<2x128xf32>
    %38 = tpu.matmul %36, %37, %cst_14 {dimension_numbers = #tpu.dot_dimension_numbers<[1], [0], [0], [1], [0, 0, 1, 1], [], []>} : vector<2x32xf32>, vector<32x128xf32>, vector<2x128xf32> -> vector<2x128xf32>
    %39 = vector.extract_strided_slice %38 {offsets = [0, 0], sizes = [1, 128], strides = [1, 1]} : vector<2x128xf32> to vector<1x128xf32>
    %cst_15 = arith.constant 7.812500e-03 : f32
    %40 = vector.broadcast %cst_15 : f32 to vector<1x128xf32>
    %41 = arith.mulf %39, %40 : vector<1x128xf32>
    %42 = vector.extract_strided_slice %38 {offsets = [1, 0], sizes = [1, 128], strides = [1, 1]} : vector<2x128xf32> to vector<1x128xf32>
    %cst_16 = arith.constant 7.812500e-03 : f32
    %43 = vector.broadcast %cst_16 : f32 to vector<1x128xf32>
    %44 = arith.mulf %42, %43 : vector<1x128xf32>
    %45 = arith.mulf %41, %41 : vector<1x128xf32>
    %46 = arith.subf %44, %45 : vector<1x128xf32>
    %c0_17 = arith.constant 0 : index
    %c0_18 = arith.constant 0 : index
    %47 = vector.load %arg4[%c0_17, %c0_18] : memref<1x128xf32, #tpu.memory_space<vmem>>, vector<1x128xf32>
    %cst_19 = arith.constant 9.99999974E-6 : f32
    %48 = vector.broadcast %cst_19 : f32 to vector<1x128xf32>
    %49 = arith.addf %46, %48 : vector<1x128xf32>
    %50 = math.rsqrt %49 : vector<1x128xf32>
    %51 = arith.mulf %47, %50 : vector<1x128xf32>
    %c0_20 = arith.constant 0 : index
    %c0_21 = arith.constant 0 : index
    %52 = vector.load %arg5[%c0_20, %c0_21] : memref<1x128xf32, #tpu.memory_space<vmem>>, vector<1x128xf32>
    %53 = arith.mulf %41, %51 : vector<1x128xf32>
    %54 = arith.subf %52, %53 : vector<1x128xf32>
    %55 = vector.broadcast %51 : vector<1x128xf32> to vector<50x128xf32>
    %56 = arith.mulf %2, %55 : vector<50x128xf32>
    %57 = vector.broadcast %54 : vector<1x128xf32> to vector<50x128xf32>
    %58 = arith.addf %56, %57 : vector<50x128xf32>
    %cst_22 = arith.constant 0.000000e+00 : f32
    %59 = vector.broadcast %cst_22 : f32 to vector<50x128xf32>
    %60 = arith.maximumf %58, %59 : vector<50x128xf32>
    %61 = arith.mulf %60, %27 : vector<50x128xf32>
    %62 = arith.truncf %61 : vector<50x128xf32> to vector<50x128xbf16>
    %c0_23 = arith.constant 0 : index
    %c0_24 = arith.constant 0 : index
    %63 = vector.load %arg8[%c0_23, %c0_24] : memref<50x128xbf16, #tpu.memory_space<vmem>>, vector<50x128xbf16>
    tpu.vector_store %arg8[%c0_23, %c0_24], %62 {strides = array<i32>} : memref<50x128xbf16, #tpu.memory_space<vmem>>, vector<50x128xbf16>,
    return
  }
}

module attributes {stable_mosaic.version = 11 : i64} {
  func.func @_matmul_bn_relu_kernel(%arg0: memref<162x128xbf16, #tpu.memory_space<vmem>>, %arg1: memref<128x64xbf16, #tpu.memory_space<vmem>>, %arg2: memref<64x16xf32, #tpu.memory_space<vmem>>, %arg3: memref<16x64xf32, #tpu.memory_space<vmem>>, %arg4: memref<1x64xf32, #tpu.memory_space<vmem>>, %arg5: memref<1x64xf32, #tpu.memory_space<vmem>>, %arg6: memref<162x4xf32, #tpu.memory_space<vmem>>, %arg7: memref<4x64xf32, #tpu.memory_space<vmem>>, %arg8: memref<162x64xbf16, #tpu.memory_space<vmem>>) attributes {dimension_semantics = [], scalar_prefetch = 0 : i64, scratch_operands = 0 : i64, tpu.core_type = #tpu.core_type<tc>} {
    %c0 = arith.constant 0 : index
    %c0_0 = arith.constant 0 : index
    %0 = vector.load %arg0[%c0, %c0_0] : memref<162x128xbf16, #tpu.memory_space<vmem>>, vector<162x128xbf16>
    %c0_1 = arith.constant 0 : index
    %c0_2 = arith.constant 0 : index
    %1 = vector.load %arg1[%c0_1, %c0_2] : memref<128x64xbf16, #tpu.memory_space<vmem>>, vector<128x64xbf16>
    %cst = arith.constant dense<0.000000e+00> : vector<162x64xf32>
    %2 = tpu.matmul %0, %1, %cst {dimension_numbers = #tpu.dot_dimension_numbers<[1], [0], [0], [1], [0, 0, 1, 1], [], []>} : vector<162x128xbf16>, vector<128x64xbf16>, vector<162x64xf32> -> vector<162x64xf32>
    %c0_3 = arith.constant 0 : index
    %c0_4 = arith.constant 0 : index
    %3 = vector.load %arg6[%c0_3, %c0_4] : memref<162x4xf32, #tpu.memory_space<vmem>>, vector<162x4xf32>
    %c0_5 = arith.constant 0 : index
    %c0_6 = arith.constant 0 : index
    %4 = vector.load %arg7[%c0_5, %c0_6] : memref<4x64xf32, #tpu.memory_space<vmem>>, vector<4x64xf32>
    %5 = vector.extract_strided_slice %3 {offsets = [0, 0], sizes = [162, 1], strides = [1, 1]} : vector<162x4xf32> to vector<162x1xf32>
    %6 = vector.extract_strided_slice %4 {offsets = [0, 0], sizes = [1, 64], strides = [1, 1]} : vector<4x64xf32> to vector<1x64xf32>
    %7 = vector.broadcast %5 : vector<162x1xf32> to vector<162x64xf32>
    %8 = vector.broadcast %6 : vector<1x64xf32> to vector<162x64xf32>
    %9 = arith.maximumf %7, %8 : vector<162x64xf32>
    %10 = vector.extract_strided_slice %3 {offsets = [0, 1], sizes = [162, 1], strides = [1, 1]} : vector<162x4xf32> to vector<162x1xf32>
    %11 = vector.extract_strided_slice %4 {offsets = [1, 0], sizes = [1, 64], strides = [1, 1]} : vector<4x64xf32> to vector<1x64xf32>
    %12 = vector.broadcast %10 : vector<162x1xf32> to vector<162x64xf32>
    %13 = vector.broadcast %11 : vector<1x64xf32> to vector<162x64xf32>
    %14 = arith.maximumf %12, %13 : vector<162x64xf32>
    %15 = arith.mulf %9, %14 : vector<162x64xf32>
    %16 = vector.extract_strided_slice %3 {offsets = [0, 2], sizes = [162, 1], strides = [1, 1]} : vector<162x4xf32> to vector<162x1xf32>
    %17 = vector.extract_strided_slice %4 {offsets = [2, 0], sizes = [1, 64], strides = [1, 1]} : vector<4x64xf32> to vector<1x64xf32>
    %18 = vector.broadcast %16 : vector<162x1xf32> to vector<162x64xf32>
    %19 = vector.broadcast %17 : vector<1x64xf32> to vector<162x64xf32>
    %20 = arith.maximumf %18, %19 : vector<162x64xf32>
    %21 = arith.mulf %15, %20 : vector<162x64xf32>
    %22 = vector.extract_strided_slice %3 {offsets = [0, 3], sizes = [162, 1], strides = [1, 1]} : vector<162x4xf32> to vector<162x1xf32>
    %23 = vector.extract_strided_slice %4 {offsets = [3, 0], sizes = [1, 64], strides = [1, 1]} : vector<4x64xf32> to vector<1x64xf32>
    %24 = vector.broadcast %22 : vector<162x1xf32> to vector<162x64xf32>
    %25 = vector.broadcast %23 : vector<1x64xf32> to vector<162x64xf32>
    %26 = arith.maximumf %24, %25 : vector<162x64xf32>
    %27 = arith.mulf %21, %26 : vector<162x64xf32>
    %28 = arith.mulf %2, %27 : vector<162x64xf32>
    %cst_7 = arith.constant dense<0.000000e+00> : vector<64xf32>
    %29 = vector.multi_reduction <add>, %28, %cst_7 [0] : vector<162x64xf32> to vector<64xf32>
    %30 = vector.shape_cast %29 : vector<64xf32> to vector<1x64xf32>
    %31 = arith.mulf %28, %28 : vector<162x64xf32>
    %cst_8 = arith.constant dense<0.000000e+00> : vector<64xf32>
    %32 = vector.multi_reduction <add>, %31, %cst_8 [0] : vector<162x64xf32> to vector<64xf32>
    %33 = vector.shape_cast %32 : vector<64xf32> to vector<1x64xf32>
    %34 = tpu.concatenate %30, %33 in 0 : vector<1x64xf32>, vector<1x64xf32> -> vector<2x64xf32>
    %c0_9 = arith.constant 0 : index
    %c0_10 = arith.constant 0 : index
    %35 = vector.load %arg2[%c0_9, %c0_10] : memref<64x16xf32, #tpu.memory_space<vmem>>, vector<64x16xf32>
    %cst_11 = arith.constant dense<0.000000e+00> : vector<2x16xf32>
    %36 = tpu.matmul %34, %35, %cst_11 {dimension_numbers = #tpu.dot_dimension_numbers<[1], [0], [0], [1], [0, 0, 1, 1], [], []>} : vector<2x64xf32>, vector<64x16xf32>, vector<2x16xf32> -> vector<2x16xf32>
    %c0_12 = arith.constant 0 : index
    %c0_13 = arith.constant 0 : index
    %37 = vector.load %arg3[%c0_12, %c0_13] : memref<16x64xf32, #tpu.memory_space<vmem>>, vector<16x64xf32>
    %cst_14 = arith.constant dense<0.000000e+00> : vector<2x64xf32>
    %38 = tpu.matmul %36, %37, %cst_14 {dimension_numbers = #tpu.dot_dimension_numbers<[1], [0], [0], [1], [0, 0, 1, 1], [], []>} : vector<2x16xf32>, vector<16x64xf32>, vector<2x64xf32> -> vector<2x64xf32>
    %39 = vector.extract_strided_slice %38 {offsets = [0, 0], sizes = [1, 64], strides = [1, 1]} : vector<2x64xf32> to vector<1x64xf32>
    %cst_15 = arith.constant 0.001953125 : f32
    %40 = vector.broadcast %cst_15 : f32 to vector<1x64xf32>
    %41 = arith.mulf %39, %40 : vector<1x64xf32>
    %42 = vector.extract_strided_slice %38 {offsets = [1, 0], sizes = [1, 64], strides = [1, 1]} : vector<2x64xf32> to vector<1x64xf32>
    %cst_16 = arith.constant 0.001953125 : f32
    %43 = vector.broadcast %cst_16 : f32 to vector<1x64xf32>
    %44 = arith.mulf %42, %43 : vector<1x64xf32>
    %45 = arith.mulf %41, %41 : vector<1x64xf32>
    %46 = arith.subf %44, %45 : vector<1x64xf32>
    %c0_17 = arith.constant 0 : index
    %c0_18 = arith.constant 0 : index
    %47 = vector.load %arg4[%c0_17, %c0_18] : memref<1x64xf32, #tpu.memory_space<vmem>>, vector<1x64xf32>
    %cst_19 = arith.constant 9.99999974E-6 : f32
    %48 = vector.broadcast %cst_19 : f32 to vector<1x64xf32>
    %49 = arith.addf %46, %48 : vector<1x64xf32>
    %50 = math.rsqrt %49 : vector<1x64xf32>
    %51 = arith.mulf %47, %50 : vector<1x64xf32>
    %c0_20 = arith.constant 0 : index
    %c0_21 = arith.constant 0 : index
    %52 = vector.load %arg5[%c0_20, %c0_21] : memref<1x64xf32, #tpu.memory_space<vmem>>, vector<1x64xf32>
    %53 = arith.mulf %41, %51 : vector<1x64xf32>
    %54 = arith.subf %52, %53 : vector<1x64xf32>
    %55 = vector.broadcast %51 : vector<1x64xf32> to vector<162x64xf32>
    %56 = arith.mulf %2, %55 : vector<162x64xf32>
    %57 = vector.broadcast %54 : vector<1x64xf32> to vector<162x64xf32>
    %58 = arith.addf %56, %57 : vector<162x64xf32>
    %cst_22 = arith.constant 0.000000e+00 : f32
    %59 = vector.broadcast %cst_22 : f32 to vector<162x64xf32>
    %60 = arith.maximumf %58, %59 : vector<162x64xf32>
    %61 = arith.mulf %60, %27 : vector<162x64xf32>
    %62 = arith.truncf %61 : vector<162x64xf32> to vector<162x64xbf16>
    %c0_23 = arith.constant 0 : index
    %c0_24 = arith.constant 0 : index
    %63 = vector.load %arg8[%c0_23, %c0_24] : memref<162x64xbf16, #tpu.memory_space<vmem>>, vector<162x64xbf16>
    tpu.vector_store %arg8[%c0_23, %c0_24], %62 {strides = array<i32>} : memref<162x64xbf16, #tpu.memory_space<vmem>>, vector<162x64xbf16>,
    return
  }
}

module attributes {stable_mosaic.version = 11 : i64} {
  func.func @_matmul_bn_relu_kernel(%arg0: memref<578x64xbf16, #tpu.memory_space<vmem>>, %arg1: memref<64x32xbf16, #tpu.memory_space<vmem>>, %arg2: memref<32x8xf32, #tpu.memory_space<vmem>>, %arg3: memref<8x32xf32, #tpu.memory_space<vmem>>, %arg4: memref<1x32xf32, #tpu.memory_space<vmem>>, %arg5: memref<1x32xf32, #tpu.memory_space<vmem>>, %arg6: memref<578x4xf32, #tpu.memory_space<vmem>>, %arg7: memref<4x32xf32, #tpu.memory_space<vmem>>, %arg8: memref<578x32xbf16, #tpu.memory_space<vmem>>) attributes {dimension_semantics = [], scalar_prefetch = 0 : i64, scratch_operands = 0 : i64, tpu.core_type = #tpu.core_type<tc>} {
    %c0 = arith.constant 0 : index
    %c0_0 = arith.constant 0 : index
    %0 = vector.load %arg0[%c0, %c0_0] : memref<578x64xbf16, #tpu.memory_space<vmem>>, vector<578x64xbf16>
    %c0_1 = arith.constant 0 : index
    %c0_2 = arith.constant 0 : index
    %1 = vector.load %arg1[%c0_1, %c0_2] : memref<64x32xbf16, #tpu.memory_space<vmem>>, vector<64x32xbf16>
    %cst = arith.constant dense<0.000000e+00> : vector<578x32xf32>
    %2 = tpu.matmul %0, %1, %cst {dimension_numbers = #tpu.dot_dimension_numbers<[1], [0], [0], [1], [0, 0, 1, 1], [], []>} : vector<578x64xbf16>, vector<64x32xbf16>, vector<578x32xf32> -> vector<578x32xf32>
    %c0_3 = arith.constant 0 : index
    %c0_4 = arith.constant 0 : index
    %3 = vector.load %arg6[%c0_3, %c0_4] : memref<578x4xf32, #tpu.memory_space<vmem>>, vector<578x4xf32>
    %c0_5 = arith.constant 0 : index
    %c0_6 = arith.constant 0 : index
    %4 = vector.load %arg7[%c0_5, %c0_6] : memref<4x32xf32, #tpu.memory_space<vmem>>, vector<4x32xf32>
    %5 = vector.extract_strided_slice %3 {offsets = [0, 0], sizes = [578, 1], strides = [1, 1]} : vector<578x4xf32> to vector<578x1xf32>
    %6 = vector.extract_strided_slice %4 {offsets = [0, 0], sizes = [1, 32], strides = [1, 1]} : vector<4x32xf32> to vector<1x32xf32>
    %7 = vector.broadcast %5 : vector<578x1xf32> to vector<578x32xf32>
    %8 = vector.broadcast %6 : vector<1x32xf32> to vector<578x32xf32>
    %9 = arith.maximumf %7, %8 : vector<578x32xf32>
    %10 = vector.extract_strided_slice %3 {offsets = [0, 1], sizes = [578, 1], strides = [1, 1]} : vector<578x4xf32> to vector<578x1xf32>
    %11 = vector.extract_strided_slice %4 {offsets = [1, 0], sizes = [1, 32], strides = [1, 1]} : vector<4x32xf32> to vector<1x32xf32>
    %12 = vector.broadcast %10 : vector<578x1xf32> to vector<578x32xf32>
    %13 = vector.broadcast %11 : vector<1x32xf32> to vector<578x32xf32>
    %14 = arith.maximumf %12, %13 : vector<578x32xf32>
    %15 = arith.mulf %9, %14 : vector<578x32xf32>
    %16 = vector.extract_strided_slice %3 {offsets = [0, 2], sizes = [578, 1], strides = [1, 1]} : vector<578x4xf32> to vector<578x1xf32>
    %17 = vector.extract_strided_slice %4 {offsets = [2, 0], sizes = [1, 32], strides = [1, 1]} : vector<4x32xf32> to vector<1x32xf32>
    %18 = vector.broadcast %16 : vector<578x1xf32> to vector<578x32xf32>
    %19 = vector.broadcast %17 : vector<1x32xf32> to vector<578x32xf32>
    %20 = arith.maximumf %18, %19 : vector<578x32xf32>
    %21 = arith.mulf %15, %20 : vector<578x32xf32>
    %22 = vector.extract_strided_slice %3 {offsets = [0, 3], sizes = [578, 1], strides = [1, 1]} : vector<578x4xf32> to vector<578x1xf32>
    %23 = vector.extract_strided_slice %4 {offsets = [3, 0], sizes = [1, 32], strides = [1, 1]} : vector<4x32xf32> to vector<1x32xf32>
    %24 = vector.broadcast %22 : vector<578x1xf32> to vector<578x32xf32>
    %25 = vector.broadcast %23 : vector<1x32xf32> to vector<578x32xf32>
    %26 = arith.maximumf %24, %25 : vector<578x32xf32>
    %27 = arith.mulf %21, %26 : vector<578x32xf32>
    %28 = arith.mulf %2, %27 : vector<578x32xf32>
    %cst_7 = arith.constant dense<0.000000e+00> : vector<32xf32>
    %29 = vector.multi_reduction <add>, %28, %cst_7 [0] : vector<578x32xf32> to vector<32xf32>
    %30 = vector.shape_cast %29 : vector<32xf32> to vector<1x32xf32>
    %31 = arith.mulf %28, %28 : vector<578x32xf32>
    %cst_8 = arith.constant dense<0.000000e+00> : vector<32xf32>
    %32 = vector.multi_reduction <add>, %31, %cst_8 [0] : vector<578x32xf32> to vector<32xf32>
    %33 = vector.shape_cast %32 : vector<32xf32> to vector<1x32xf32>
    %34 = tpu.concatenate %30, %33 in 0 : vector<1x32xf32>, vector<1x32xf32> -> vector<2x32xf32>
    %c0_9 = arith.constant 0 : index
    %c0_10 = arith.constant 0 : index
    %35 = vector.load %arg2[%c0_9, %c0_10] : memref<32x8xf32, #tpu.memory_space<vmem>>, vector<32x8xf32>
    %cst_11 = arith.constant dense<0.000000e+00> : vector<2x8xf32>
    %36 = tpu.matmul %34, %35, %cst_11 {dimension_numbers = #tpu.dot_dimension_numbers<[1], [0], [0], [1], [0, 0, 1, 1], [], []>} : vector<2x32xf32>, vector<32x8xf32>, vector<2x8xf32> -> vector<2x8xf32>
    %c0_12 = arith.constant 0 : index
    %c0_13 = arith.constant 0 : index
    %37 = vector.load %arg3[%c0_12, %c0_13] : memref<8x32xf32, #tpu.memory_space<vmem>>, vector<8x32xf32>
    %cst_14 = arith.constant dense<0.000000e+00> : vector<2x32xf32>
    %38 = tpu.matmul %36, %37, %cst_14 {dimension_numbers = #tpu.dot_dimension_numbers<[1], [0], [0], [1], [0, 0, 1, 1], [], []>} : vector<2x8xf32>, vector<8x32xf32>, vector<2x32xf32> -> vector<2x32xf32>
    %39 = vector.extract_strided_slice %38 {offsets = [0, 0], sizes = [1, 32], strides = [1, 1]} : vector<2x32xf32> to vector<1x32xf32>
    %cst_15 = arith.constant 4.8828125E-4 : f32
    %40 = vector.broadcast %cst_15 : f32 to vector<1x32xf32>
    %41 = arith.mulf %39, %40 : vector<1x32xf32>
    %42 = vector.extract_strided_slice %38 {offsets = [1, 0], sizes = [1, 32], strides = [1, 1]} : vector<2x32xf32> to vector<1x32xf32>
    %cst_16 = arith.constant 4.8828125E-4 : f32
    %43 = vector.broadcast %cst_16 : f32 to vector<1x32xf32>
    %44 = arith.mulf %42, %43 : vector<1x32xf32>
    %45 = arith.mulf %41, %41 : vector<1x32xf32>
    %46 = arith.subf %44, %45 : vector<1x32xf32>
    %c0_17 = arith.constant 0 : index
    %c0_18 = arith.constant 0 : index
    %47 = vector.load %arg4[%c0_17, %c0_18] : memref<1x32xf32, #tpu.memory_space<vmem>>, vector<1x32xf32>
    %cst_19 = arith.constant 9.99999974E-6 : f32
    %48 = vector.broadcast %cst_19 : f32 to vector<1x32xf32>
    %49 = arith.addf %46, %48 : vector<1x32xf32>
    %50 = math.rsqrt %49 : vector<1x32xf32>
    %51 = arith.mulf %47, %50 : vector<1x32xf32>
    %c0_20 = arith.constant 0 : index
    %c0_21 = arith.constant 0 : index
    %52 = vector.load %arg5[%c0_20, %c0_21] : memref<1x32xf32, #tpu.memory_space<vmem>>, vector<1x32xf32>
    %53 = arith.mulf %41, %51 : vector<1x32xf32>
    %54 = arith.subf %52, %53 : vector<1x32xf32>
    %55 = vector.broadcast %51 : vector<1x32xf32> to vector<578x32xf32>
    %56 = arith.mulf %2, %55 : vector<578x32xf32>
    %57 = vector.broadcast %54 : vector<1x32xf32> to vector<578x32xf32>
    %58 = arith.addf %56, %57 : vector<578x32xf32>
    %cst_22 = arith.constant 0.000000e+00 : f32
    %59 = vector.broadcast %cst_22 : f32 to vector<578x32xf32>
    %60 = arith.maximumf %58, %59 : vector<578x32xf32>
    %61 = arith.mulf %60, %27 : vector<578x32xf32>
    %62 = arith.truncf %61 : vector<578x32xf32> to vector<578x32xbf16>
    %c0_23 = arith.constant 0 : index
    %c0_24 = arith.constant 0 : index
    %63 = vector.load %arg8[%c0_23, %c0_24] : memref<578x32xbf16, #tpu.memory_space<vmem>>, vector<578x32xbf16>
    tpu.vector_store %arg8[%c0_23, %c0_24], %62 {strides = array<i32>} : memref<578x32xbf16, #tpu.memory_space<vmem>>, vector<578x32xbf16>,
    return
  }
}

module attributes {stable_mosaic.version = 11 : i64} {
  func.func @_matmul_tanh_kernel(%arg0: memref<2178x32xbf16, #tpu.memory_space<vmem>>, %arg1: memref<32x12xbf16, #tpu.memory_space<vmem>>, %arg2: memref<2178x12xf32, #tpu.memory_space<vmem>>) attributes {dimension_semantics = [], scalar_prefetch = 0 : i64, scratch_operands = 0 : i64, tpu.core_type = #tpu.core_type<tc>} {
    %c0 = arith.constant 0 : index
    %c0_0 = arith.constant 0 : index
    %0 = vector.load %arg0[%c0, %c0_0] : memref<2178x32xbf16, #tpu.memory_space<vmem>>, vector<2178x32xbf16>
    %c0_1 = arith.constant 0 : index
    %c0_2 = arith.constant 0 : index
    %1 = vector.load %arg1[%c0_1, %c0_2] : memref<32x12xbf16, #tpu.memory_space<vmem>>, vector<32x12xbf16>
    %cst = arith.constant dense<0.000000e+00> : vector<2178x12xf32>
    %2 = tpu.matmul %0, %1, %cst {dimension_numbers = #tpu.dot_dimension_numbers<[1], [0], [0], [1], [0, 0, 1, 1], [], []>} : vector<2178x32xbf16>, vector<32x12xbf16>, vector<2178x12xf32> -> vector<2178x12xf32>
    %3 = math.tanh %2 : vector<2178x12xf32>
    %c0_3 = arith.constant 0 : index
    %c0_4 = arith.constant 0 : index
    %4 = vector.load %arg2[%c0_3, %c0_4] : memref<2178x12xf32, #tpu.memory_space<vmem>>, vector<2178x12xf32>
    tpu.vector_store %arg2[%c0_3, %c0_4], %3 {strides = array<i32>} : memref<2178x12xf32, #tpu.memory_space<vmem>>, vector<2178x12xf32>,
    return
  }
}

</mosaic_0001>

<bundles_post_ra>
// kernel: generator_forward.6
= control target key start
LH: loop header
LB: loop body
LE: loop exit
PB: predicated region body
PF: predicated region fallthrough
CT: control target
= control target key end

     0   :  { %13 = vsyncpa [#allocation3], 0  ;;  %s1435_s0 = inlined_call_operand.vmem [shape: bf16[50,256], index: 0, kind: input, shape index: {}]   ;;  %s1436_s1 = inlined_call_operand.hbm [shape: bf16[256,128], index: 1, kind: input, shape index: {}]   ;;  %s1437_s2 = inlined_call_operand.vmem [shape: f32[128,32], index: 2, kind: input, shape index: {}]   ;;  %s1438_s3 = inlined_call_operand.hbm [shape: f32[32,128], index: 3, kind: input, shape index: {}]   ;;  %s1439_s4 = inlined_call_operand.hbm [shape: f32[1,128], index: 4, kind: input, shape index: {}]   ;;  %s1440_s5 = inlined_call_operand.hbm [shape: f32[1,128], index: 5, kind: input, shape index: {}]   ;;  %s1441_s6 = inlined_call_operand.vmem [shape: f32[50,4], index: 6, kind: input, shape index: {}]   ;;  %s1442_s7 = inlined_call_operand.hbm [shape: f32[4,128], index: 7, kind: input, shape index: {}]   ;;  %s1443_s8 = inlined_call_operand.vmem [shape: bf16[50,128], index: 8, kind: output, shape index: {}]  }
   0x1   :  { %14 = vsyncpa [#allocation5], 0  ;;  %s37_s29 = sshll.u32 %s1438_s3, 4  ;;  %s38_s29 = int_to_ptr.hbm [resolvable:$true] %s37_s29 }
   0x2   :  { %15 = vsyncpa [#allocation8], 0  ;;  %s1006_s30 = smov [#allocation4]   ;;  %s62_s12 = sshll.u32 %s1440_s5, 4  ;;  %s63_s12 = int_to_ptr.hbm [resolvable:$true] %s62_s12 }
   0x3   :  { %s39_s9 = sshll.u32 %s1006_s30, 4  ;;  %s1007_s13 = smov 128   ;;  %s40_s9 = int_to_ptr.vmem [resolvable:$true] %s39_s9 }
   0x4   :  { %s1008_s14 = smov 8   ;;  %s1009_s15 = smov [#allocation7]  }
   0x5   :  { %45 = dma.hbm_to_vmem [thread:$0]  %s38_s29, 512, %s40_s9, [#allocation5], %s1007_s13, %s1007_s13, %s1008_s14  }
   0x6   :  { %s64_s16 = sshll.u32 %s1009_s15, 4  ;;  %s22_s19 = sshll.u32 %s1436_s1, 4  ;;  %s65_s16 = int_to_ptr.vmem [resolvable:$true] %s64_s16  ;;  %s23_s19 = int_to_ptr.hbm [resolvable:$true] %s22_s19 }
   0x7   :  { %67 = dma.hbm_to_vmem [thread:$0]  %s63_s12, 16, %s65_s16, [#allocation8]  }
   0x8   :  { %s1010_s3 = smov [#allocation2]   ;;  %s51_s5 = sshll.u32 %s1439_s4, 4  ;;  %s52_s5 = int_to_ptr.hbm [resolvable:$true] %s51_s5 }
   0x9   :  { %s24_s20 = sshll.u32 %s1010_s3, 4  ;;  %s1011_s23 = smov 64   ;;  %s25_s20 = int_to_ptr.vmem [resolvable:$true] %s24_s20 }
   0xa   :  { %s1012_s24 = smov 4   ;;  %s1013_s25 = smov [#allocation6]  }
   0xb   :  { %30 = dma.hbm_to_vmem [thread:$0]  %s23_s19, 2048, %s25_s20, [#allocation3], %s1011_s23, %s1011_s23, %s1012_s24  }
   0xc   :  { %s53_s26 = sshll.u32 %s1013_s25, 4  ;;  %s75_s1 = sshll.u32 %s1442_s7, 4  ;;  %s54_s26 = int_to_ptr.vmem [resolvable:$true] %s53_s26  ;;  %s76_s1 = int_to_ptr.hbm [resolvable:$true] %s75_s1 }
   0xd   :  { %56 = dma.hbm_to_vmem [thread:$0]  %s52_s5, 16, %s54_s26, [#allocation5]  }
   0xe   :  { %s1014_s29 = smov [#allocation9]  }
   0xf   :  { %s77_s30 = sshll.u32 %s1014_s29, 4  ;;  %s78_s30 = int_to_ptr.vmem [resolvable:$true] %s77_s30 }
  0x10   :  { %80 = dma.hbm_to_vmem [thread:$0]  %s76_s1, 64, %s78_s30, [#allocation8]  }
  0x11   :  { %1000 = dma.done.wait [#allocation3], 2048  }
  0x12   :  { %1001 = vsyncadd [#allocation3], 4294965248 }
  0x13   :  { %1002 = dma.done.wait [#allocation5], 528  }
  0x14   :  { %1003 = vsyncadd [#allocation5], 4294966768 }
  0x15   :  { %1004 = dma.done.wait [#allocation8], 80  }
  0x16   :  { %1005 = vsyncadd [#allocation8], 4294967216  ;;  %v1015_v0 = vmov 1   ;;  %v1016_v1 = vmov 0   ;;  %v1085_v2 = vld [vmem:[%s1441_s6 + $0x10] sm:$0xff]  ;;  %v1090_v3 = vld [vmem:[%s1441_s6] sm:$0xff] }
  0x17   :  { %856 = vset.pattern.permute.xlu1 %v1015_v0  ;;  %857 = vset.pattern.permute.xlu2 %v1016_v1  ;;  %v800_v4 = vld [vmem:[#allocation2 + $0x38] sm:$0xff]  ;;  %v799_v6 = vld [vmem:[#allocation2 + $0x30] sm:$0xff]  ;;  %v1098_v8 = vld [vmem:[%s1441_s6 + $0x8] sm:$0xff]  ;;  %v1017_v14 = vmov 2   ;;  %v1018_v33 = vmov 3   ;;  %vm521_vm0 = vcmask 1041408  }
  0x18   :  { %855 = vset.pattern.permute.xlu0 %v1016_v1  ;;  %349 = vperm.xlu2 %857, %v1085_v2   ;;  %v808_v5 = vld [vmem:[#allocation2 + $0x78] sm:$0xff]  ;;  %v807_v7 = vld [vmem:[#allocation2 + $0x70] sm:$0xff]  ;;  %v798_v9 = vld [vmem:[#allocation2 + $0x28] sm:$0xff]  ;;  %vm550_vm1 = vcmask 1040384   ;;  %vm592_vm2 = vcmask 261120  }
  0x19   :  { %381 = vperm.xlu1 %856, %v1090_v3   ;;  %339 = vperm.xlu0 %855, %v1090_v3   ;;  %v806_v10 = vld [vmem:[#allocation2 + $0x68] sm:$0xff]  ;;  %v797_v11 = vld [vmem:[#allocation2 + $0x20] sm:$0xff]  ;;  %v796_v13 = vld [vmem:[#allocation2 + $0x18] sm:$0xff] }
  0x1a   :  { %273 = vmatpush.bf16.msra.mxu0 %v800_v4  ;;  %301 = vmatpush.bf16.msra.mxu1 %v808_v5  ;;  %v805_v12 = vld [vmem:[#allocation2 + $0x60] sm:$0xff]  ;;  %v1108_v15 = vld [vmem:[%s1441_s6 + $0x18] sm:$0xff]  ;;  %v804_v16 = vld [vmem:[#allocation2 + $0x58] sm:$0xff] }
  0x1b   :  { %834 = vmatpush.bf16.msra.mxu2 %v808_v5  ;;  %826 = vmatpush.bf16.msra.mxu3 %v800_v4  ;;  %v795_v17 = vld [vmem:[#allocation2 + $0x10] sm:$0xff]  ;;  %v333_v19 = vld [vmem:[%s1441_s6 + $0x20] sm:$0xff]  ;;  %v794_v20 = vld [vmem:[#allocation2 + $0x8] sm:$0xff] }
  0x1c   :  { %v803_v18 = vld [vmem:[#allocation2 + $0x50] sm:$0xff]  ;;  %v802_v21 = vld [vmem:[#allocation2 + $0x48] sm:$0xff]  ;;  %v793_v22 = vld [vmem:[#allocation2] sm:$0xff] }
  0x1d   :  { %v801_v23 = vld [vmem:[#allocation2 + $0x40] sm:$0xff]  ;;  %v700_v24 = vld [vmem:[%s1435_s0] sm:$0xf]  ;;  %v787_v26 = vld [vmem:[%s1435_s0 + $0x4] sm:$0xf] }
  0x1e   :  { %274 = vmatpush.bf16.msra.mxu0 %v799_v6  ;;  %302 = vmatpush.bf16.msra.mxu1 %v807_v7  ;;  %v788_v25 = vld [vmem:[%s1435_s0 + $0x4] sm:$0xf0]  ;;  %v702_v27 = vld [vmem:[%s1435_s0 + $0x8] sm:$0xf0]  ;;  %v791_v30 = vld [vmem:[%s1435_s0 + $0x24] sm:$0xf] }
  0x1f   :  { %835 = vmatpush.bf16.msra.mxu2 %v807_v7  ;;  %827 = vmatpush.bf16.msra.mxu3 %v799_v6  ;;  %v701_v28 = vor.u32 %v788_v25, %v700_v24  ;;  %v705_v29 = vor.u32 %v787_v26, %v702_v27  ;;  %v718_v31 = vld [vmem:[%s1435_s0 + $0x28] sm:$0xf0]  ;;  %v107_v32 = vld [vmem:[%s1435_s0 + $0x30] sm:$0x11]  ;;  %v790_v38 = vld [vmem:[%s1435_s0 + $0x14] sm:$0xf0] }
  0x20   :  { %858 = vset.pattern.permute.xlu2 %v1015_v0  ;;  %v721_v34 = vor.u32 %v791_v30, %v718_v31  ;;  %v159_v35 = vunpack.c.l.b16 %v107_v32  ;;  %v708_v37 = vld [vmem:[%s1435_s0 + $0x10] sm:$0xf]  ;;  %v789_v39 = vld [vmem:[%s1435_s0 + $0x14] sm:$0xf]  ;;  %v710_v40 = vld [vmem:[%s1435_s0 + $0x18] sm:$0xf0]  ;;  %v160_v41 = vunpack.c.h.b16 %v107_v32 }
  0x21   :  { %385 = vperm.xlu1 %856, %v1098_v8   ;;  %344 = vperm.xlu0 %855, %v1098_v8   ;;  %v709_v42 = vor.u32 %v790_v38, %v708_v37  ;;  %v713_v43 = vor.u32 %v789_v39, %v710_v40  ;;  %v334_v45 = vld [vmem:[%s1441_s6 + $0x28] sm:$0xff]  ;;  %v716_v46 = vld [vmem:[%s1435_s0 + $0x20] sm:$0xf]  ;;  %v335_v48 = vld [vmem:[%s1441_s6 + $0x30] sm:$0x3] }
  0x22   :  { %389 = vperm.xlu2 %858, %v1085_v2   ;;  %275 = vmatpush.bf16.msra.mxu0 %v798_v9  ;;  %v167_v36 = vpack.c.b16 %v159_v35, %v159_v35  ;;  %v168_v44 = vpack.c.b16 %v160_v41, %v160_v41  ;;  %v792_v47 = vld [vmem:[%s1435_s0 + $0x24] sm:$0xf0]  ;;  %v567_v5 = vld [vmem:[%s1437_s2 + $0x78] sm:$0xff]  ;;  %v560_v24 = vld [vmem:[%s1437_s2 + $0x40] sm:$0xff] }
  0x23   :  { %303 = vmatpush.bf16.msra.mxu1 %v806_v10  ;;  %836 = vmatpush.bf16.msra.mxu2 %v806_v10  ;;  %v717_v49 = vor.u32 %v792_v47, %v716_v46  ;;  %v566_v10 = vld [vmem:[%s1437_s2 + $0x70] sm:$0xff]  ;;  %v559_v30 = vld [vmem:[%s1437_s2 + $0x38] sm:$0xff]  ;;  %v557_v38 = vld [vmem:[%s1437_s2 + $0x28] sm:$0xff] }
  0x24   :  { %828 = vmatpush.bf16.msra.mxu3 %v798_v9  ;;  %v556_v47 = vld [vmem:[%s1437_s2 + $0x20] sm:$0xff] }
  0x26   :  { %276 = vmatpush.bf16.msra.mxu0 %v797_v11 }
  0x27   :  { %304 = vmatpush.bf16.msra.mxu1 %v805_v12  ;;  %837 = vmatpush.bf16.msra.mxu2 %v805_v12 }
  0x28   :  { %829 = vmatpush.bf16.msra.mxu3 %v797_v11  ;;  %v565_v11 = vld [vmem:[%s1437_s2 + $0x68] sm:$0xff] }
  0x29   :  { %860 = vset.pattern.permute.xlu1 %v1017_v14  ;;  %859 = vset.pattern.permute.xlu0 %v1017_v14 }
  0x2a   :  { %861 = vset.pattern.permute.xlu2 %v1016_v1  ;;  %428 = vperm.xlu1 %860, %v1098_v8  }
  0x2b   :  { %424 = vperm.xlu0 %859, %v1090_v3   ;;  %354 = vperm.xlu2 %861, %v1108_v15  }
  0x2c   :  { %277 = vmatpush.bf16.msra.mxu0 %v796_v13  ;;  %305 = vmatpush.bf16.msra.mxu1 %v804_v16 }
  0x2d   :  { %838 = vmatpush.bf16.msra.mxu2 %v804_v16  ;;  %830 = vmatpush.bf16.msra.mxu3 %v796_v13 }
  0x30   :  { %278 = vmatpush.bf16.msra.mxu0 %v795_v17  ;;  %306 = vmatpush.bf16.msra.mxu1 %v803_v18 }
  0x31   :  { %839 = vmatpush.bf16.msra.mxu2 %v803_v18  ;;  %831 = vmatpush.bf16.msra.mxu3 %v795_v17  ;;  %v563_v17 = vld [vmem:[%s1437_s2 + $0x58] sm:$0xff] }
  0x32   :  { %862 = vset.pattern.permute.xlu1 %v1015_v0 }
  0x33   :  { %440 = vperm.xlu0 %859, %v333_v19   ;;  %863 = vset.pattern.permute.xlu2 %v1017_v14 }
  0x34   :  { %393 = vperm.xlu1 %862, %v1108_v15   ;;  %279 = vmatpush.bf16.msra.mxu0 %v794_v20 }
  0x35   :  { %307 = vmatpush.bf16.msra.mxu1 %v802_v21  ;;  %432 = vperm.xlu2 %863, %v1085_v2  }
  0x36   :  { %840 = vmatpush.bf16.msra.mxu2 %v802_v21  ;;  %832 = vmatpush.bf16.msra.mxu3 %v794_v20  ;;  %v562_v20 = vld [vmem:[%s1437_s2 + $0x50] sm:$0xff] }
  0x38   :  { %280 = vmatpush.bf16.msra.mxu0 %v793_v22 }
  0x39   :  { %308 = vmatpush.bf16.msra.mxu1 %v801_v23 }
  0x3a   :  { %841 = vmatpush.bf16.msra.mxu2 %v801_v23  ;;  %833 = vmatpush.bf16.msra.mxu3 %v793_v22  ;;  %v336_v22 = vld [vmem:[#allocation9] sm:$0xf] }
  0x3b   :  { %870 = vset.pattern.permute.xlu0 %v1018_v33  ;;  %281 = vmatmul.bf16.vlgmr.msra.gmra.mxu0 %v701_v28  ;;  %v561_v23 = vld [vmem:[%s1437_s2 + $0x48] sm:$0xff]  ;;  %v1263_v25 = vperm.slane %v336_v22, 0  ;;  %v1265_v26 = vperm.slane %v336_v22, 1 }
  0x3c   :  { %309 = vmatmul.bf16.vlgmr.msra.gmra.mxu1 %v705_v29  ;;  %864 = vset.pattern.permute.xlu1 %v1018_v33 }
  0x3d   :  { %467 = vperm.xlu0 %870, %v1090_v3   ;;  %865 = vset.pattern.permute.xlu2 %v1016_v1 }
  0x3e   :  { %471 = vperm.xlu1 %864, %v1098_v8   ;;  %359 = vperm.xlu2 %865, %v333_v19  }
  0x3f   :  { %319 = vmatmul.bf16.vlgmr.msra.gmra.mxu2 %v721_v34  ;;  %296 = vmatmul.bf16.vlgmr.msra.gmra.mxu3 %v167_v36  ;;  %v558_v34 = vld [vmem:[%s1437_s2 + $0x30] sm:$0xff]  ;;  %v1285_v36 = vperm.slane %v336_v22, 2 }
  0x40   :  { %568 = vmatpush.msrb.mxu2 %v567_v5 }
  0x42   :  { %569 = vmatpush.msrb.mxu2 %v566_v10 }
  0x44   :  { %570 = vmatpush.msrb.mxu2 %v565_v11 }
  0x45   :  { %475 = vperm.xlu0 %870, %v1085_v2  }
  0x46   :  { %866 = vset.pattern.permute.xlu1 %v1015_v0  ;;  %867 = vset.pattern.permute.xlu2 %v1017_v14 }
  0x47   :  { %397 = vperm.xlu1 %866, %v333_v19   ;;  %436 = vperm.xlu2 %867, %v1108_v15  }
  0x4b   :  { %286 = vmatmul.bf16.gmra.mxu0 %v709_v42  ;;  %v1298_v42 = vperm.slane %v336_v22, 3  ;;  %v553_v22 = vld [vmem:[%s1437_s2 + $0x8] sm:$0xff] }
  0x4c   :  { %314 = vmatmul.bf16.gmra.mxu1 %v713_v43 }
  0x4d   :  { %483 = vperm.xlu0 %870, %v333_v19  }
  0x4f   :  { %868 = vset.pattern.permute.xlu1 %v1016_v1  ;;  %324 = vmatmul.bf16.gmra.mxu2 %v168_v44 }
  0x50   :  { %869 = vset.pattern.permute.xlu2 %v1015_v0  ;;  %364 = vperm.xlu1 %868, %v334_v45  }
  0x51   :  { %401 = vperm.xlu2 %869, %v334_v45  }
  0x58   :  { %871 = vset.pattern.permute.xlu1 %v1018_v33 }
  0x59   :  { %872 = vset.pattern.permute.xlu2 %v1016_v1  ;;  %479 = vperm.xlu1 %871, %v1108_v15  }
  0x5a   :  { %369 = vperm.xlu2 %872, %v335_v48  }
  0x5b   :  { %291 = vmatmul.bf16.gmra.mxu0 %v717_v49 }
  0x61   :  { %873 = vset.pattern.permute.xlu1 %v1015_v0 }
  0x62   :  { %874 = vset.pattern.permute.xlu2 %v1017_v14  ;;  %405 = vperm.xlu1 %873, %v335_v48  }
  0x63   :  { %444 = vperm.xlu2 %874, %v334_v45  }
  0x6a   :  { %875 = vset.pattern.permute.xlu1 %v1017_v14  ;;  %v564_v14 = vld [vmem:[%s1437_s2 + $0x60] sm:$0xff] }
  0x6b   :  { %876 = vset.pattern.permute.xlu2 %v1018_v33  ;;  %448 = vperm.xlu1 %875, %v335_v48  }
  0x6c   :  { %487 = vperm.xlu2 %876, %v334_v45   ;;  %571 = vmatpush.msrb.mxu2 %v564_v14 }
  0x6e   :  { %572 = vmatpush.msrb.mxu2 %v563_v17 }
  0x70   :  { %573 = vmatpush.msrb.mxu2 %v562_v20 }
  0x72   :  { %v1181_v50 = vpop.permute.xlu2 %349  ;;  %574 = vmatpush.msrb.mxu2 %v561_v23 }
  0x73   :  { %877 = vset.pattern.permute.xlu1 %v1018_v33  ;;  %v375_v35 = vmax.f32 %v1181_v50, %v1263_v25 }
  0x74   :  { %491 = vperm.xlu1 %877, %v335_v48   ;;  %575 = vmatpush.msrb.mxu2 %v560_v24 }
  0x76   :  { %576 = vmatpush.msrb.mxu2 %v559_v30 }
  0x78   :  { %577 = vmatpush.msrb.mxu2 %v558_v34 }
  0x7a   :  { %578 = vmatpush.msrb.mxu2 %v557_v38 }
  0x7c   :  { %v1185_v52 = vpop.permute.xlu2 %389  ;;  %579 = vmatpush.msrb.mxu2 %v556_v47 }
  0x7d   :  { %v411_v39 = vmax.f32 %v1185_v52, %v1265_v26 }
  0x85   :  { %v1189_v54 = vpop.permute.xlu2 %354 }
  0x86   :  { %v376_v44 = vmax.f32 %v1189_v54, %v1263_v25  ;;  %v555_v54 = vld [vmem:[%s1437_s2 + $0x18] sm:$0xff] }
  0x87   :  { %580 = vmatpush.msrb.mxu2 %v555_v54  ;;  %v588_v54 = vld [vmem:[#allocation4] sm:$0xff] }
  0x8b   :  { %v1183_v51 = vpop.permute.xlu1 %381  ;;  %v1193_v56 = vpop.permute.xlu0 %339 }
  0x8c   :  { %v409_v40 = vmax.f32 %v1183_v51, %v1265_v26  ;;  %v373_v41 = vmax.f32 %v1193_v56, %v1263_v25 }
  0x8e   :  { %v416_v56 = vmul.f32 %v409_v40, %v373_v41  ;;  %v590_v40 = vld [vmem:[#allocation4 + $0x10] sm:$0xff] }
  0x8f   :  { %v1195_v57 = vpop.permute.xlu2 %432 }
  0x93   :  { %v1187_v53 = vpop.permute.xlu1 %385  ;;  %v1199_v59 = vpop.permute.xlu0 %344 }
  0x94   :  { %v410_v31 = vmax.f32 %v1187_v53, %v1265_v26  ;;  %v374_v32 = vmax.f32 %v1199_v59, %v1263_v25 }
  0x96   :  { %v417_v48 = vmul.f32 %v410_v31, %v374_v32  ;;  %v552_v31 = vld [vmem:[%s1437_s2] sm:$0xff] }
  0x98   :  { %v1201_v60 = vpop.permute.xlu2 %359 }
  0x99   :  { %v377_v50 = vmax.f32 %v1201_v60, %v1263_v25 }
  0x9c   :  { %v1191_v55 = vpop.permute.xlu1 %428 }
  0x9d   :  { %v1205_v62 = vpop.permute.xlu0 %424  ;;  %v453_v45 = vmax.f32 %v1191_v55, %v1285_v36  ;;  %v418_v55 = vmul.f32 %v411_v39, %v375_v35  ;;  %v591_v39 = vld [vmem:[#allocation4 + $0x18] sm:$0xff] }
  0x9e   :  { %v452_v49 = vmax.f32 %v1205_v62, %v1285_v36  ;;  %608 = vmatpush.msrb.mxu3 %v591_v39 }
  0x9f   :  { %v460_v60 = vmul.f32 %v453_v45, %v417_v48  ;;  %v589_v48 = vld [vmem:[#allocation4 + $0x8] sm:$0xff] }
  0xa0   :  { %v459_v10 = vmul.f32 %v452_v49, %v416_v56  ;;  %609 = vmatpush.msrb.mxu3 %v590_v40 }
  0xa1   :  { %v1207_v63 = vpop.permute.xlu2 %436 }
  0xa2   :  { %v455_v62 = vmax.f32 %v1207_v63, %v1285_v36  ;;  %610 = vmatpush.msrb.mxu3 %v589_v48 }
  0xa4   :  { %611 = vmatpush.msrb.mxu3 %v588_v54 }
  0xa5   :  { %v1213_v2 = vpop.permute.xlu0 %440 }
  0xa6   :  { %v1197_v58 = vpop.permute.xlu1 %393 }
  0xa7   :  { %v412_v46 = vmax.f32 %v1197_v58, %v1265_v26  ;;  %v454_v58 = vmax.f32 %v1195_v57, %v1285_v36  ;;  %v456_v57 = vmax.f32 %v1213_v2, %v1285_v36 }
  0xa9   :  { %v461_v23 = vmul.f32 %v454_v58, %v418_v55 }
  0xab   :  { %v1217_v4 = vpop.permute.xlu2 %401 }
  0xac   :  { %v414_v51 = vmax.f32 %v1217_v4, %v1265_v26 }
  0xaf   :  { %v1236_v12 = vpop.permute.xlu0 %467 }
  0xb0   :  { %v1203_v61 = vpop.permute.xlu1 %471  ;;  %v495_v4 = vmax.f32 %v1236_v12, %v1298_v42 }
  0xb1   :  { %v496_v59 = vmax.f32 %v1203_v61, %v1298_v42 }
  0xb3   :  { %v1352_v24 = vmul.f32 %v496_v59, %v460_v60 }
  0xb4   :  { %v1243_v15 = vpop.permute.xlu2 %369 }
  0xb7   :  { %v1267_v27 = vpop.permute.xlu0 %475 }
  0xb8   :  { %v1211_v1 = vpop.f32.mrf.mxu0  ;;  %v497_v61 = vmax.f32 %v1267_v27, %v1298_v42 }
  0xb9   :  { %v1209_v0 = vpop.permute.xlu1 %397  ;;  %v1215_v3 = vpop.f32.mrf.mxu1 }
  0xba   :  { %v413_v52 = vmax.f32 %v1209_v0, %v1265_v26  ;;  %v419_v0 = vmul.f32 %v412_v46, %v376_v44  ;;  %v1345_v12 = vadd.f32 %v1215_v3, %v1211_v1  ;;  %v1359_v3 = vmul.f32 %v495_v4, %v459_v10 }
  0xbb   :  { %v1364_v32 = vmul.f32 %v497_v61, %v461_v23 }
  0xbc   :  { %v420_v14 = vmul.f32 %v413_v52, %v377_v50  ;;  %v462_v27 = vmul.f32 %v455_v62, %v419_v0 }
  0xbd   :  { %v1278_v33 = vpop.permute.xlu2 %444 }
  0xbe   :  { %v457_v17 = vmax.f32 %v1278_v33, %v1285_v36  ;;  %v463_v34 = vmul.f32 %v456_v57, %v420_v14 }
  0xbf   :  { %v484_v11 = vpop.permute.xlu0 %483 }
  0xc0   :  { %v1222_v6 = vpop.f32.mrf.mxu0  ;;  %v499_v33 = vmax.f32 %v484_v11, %v1298_v42 }
  0xc1   :  { %v1238_v13 = vpop.f32.mrf.mxu1 }
  0xc2   :  { %v1224_v7 = vpop.permute.xlu1 %364  ;;  %v1226_v8 = vpop.f32.mrf.mxu2  ;;  %v1341_v63 = vadd.f32 %v1238_v13, %v1222_v6  ;;  %v1386_v49 = vmul.f32 %v499_v33, %v463_v34 }
  0xc3   :  { %v1228_v9 = vpop.f32.mrf.mxu3  ;;  %v378_v53 = vmax.f32 %v1224_v7, %v1263_v25  ;;  %v554_v7 = vld [vmem:[%s1437_s2 + $0x10] sm:$0xff] }
  0xc4   :  { %581 = vmatpush.msrb.mxu2 %v554_v7 }
  0xc5   :  { %v421_v20 = vmul.f32 %v414_v51, %v378_v53 }
  0xc6   :  { %v488_v6 = vpop.permute.xlu2 %487  ;;  %582 = vmatpush.msrb.mxu2 %v553_v22 }
  0xc7   :  { %v464_v35 = vmul.f32 %v457_v17, %v421_v20  ;;  %v500_v38 = vmax.f32 %v488_v6, %v1298_v42 }
  0xc8   :  { %v1245_v16 = vpop.f32.mrf.mxu0  ;;  %583 = vmatpush.msrb.mxu2 %v552_v31 }
  0xc9   :  { %v315_v28 = vpop.f32.mrf.mxu1 }
  0xca   :  { %v1252_v19 = vpop.f32.mrf.mxu2  ;;  %v1355_v13 = vadd.f32 %v315_v28, %v1245_v16  ;;  %v510_v16 = vmul.f32 %v1352_v24, %v1341_v63 }
  0xcb   :  { %v1250_v18 = vpop.permute.xlu1 %479  ;;  %v299_v21 = vpop.f32.mrf.mxu3 }
  0xcc   :  { %v498_v1 = vmax.f32 %v1250_v18, %v1298_v42  ;;  %v509_v18 = vmul.f32 %v1359_v3, %v1345_v12  ;;  %v511_v41 = vmul.f32 %v1364_v32, %v1355_v13  ;;  %v531_v50 = vmul.f32 %v510_v16, %v510_v16 }
  0xce   :  { %v1377_v44 = vmul.f32 %v498_v1, %v462_v27 }
  0xd0   :  { %v1269_v29 = vpop.f32.mrf.mxu0 }
  0xd1   :  { %v317_v21 = vpop.f32.mrf.mxu1 }
  0xd2   :  { %v1287_v37 = vpop.f32.mrf.mxu2  ;;  %v1370_v28 = vadd.f32 %v317_v21, %v1269_v29  ;;  %v379_v29 = vmax.f32 %v1243_v15, %v1263_v25  ;;  %v516_v15 = vadd.f32 %v510_v16, %v509_v18  ;;  %v1394_v25 = vmul.f32 %v500_v38, %v464_v35 }
  0xd4   :  { %v1300_v43 = vpop.permute.xlu1 %405  ;;  %v512_v51 = vmul.f32 %v1377_v44, %v1370_v28  ;;  %v517_v58 = vadd.f32 %v516_v15, %v511_v41 }
  0xd5   :  { %v415_v46 = vmax.f32 %v1300_v43, %v1265_v26  ;;  %v532_v26 = vmul.f32 %v511_v41, %v511_v41 }
  0xd6   :  { %v533_v59 = vmul.f32 %v512_v51, %v512_v51 }
  0xd7   :  { %v422_v55 = vmul.f32 %v415_v46, %v379_v29 }
  0xd8   :  { %v292_v5 = vpop.f32.mrf.mxu0 }
  0xd9   :  { %v1380_v45 = vadd.f32 %v1226_v8, %v292_v5  ;;  %v530_v8 = vmul.f32 %v509_v18, %v509_v18  ;;  %v518_v5 = vadd.f32 %v517_v58, %v512_v51 }
  0xda   :  { %v327_v2 = vpop.f32.mrf.mxu2 }
  0xdb   :  { %v513_v43 = vmul.f32 %v1386_v49, %v1380_v45  ;;  %v537_v56 = vadd.f32 %v531_v50, %v530_v8 }
  0xdd   :  { %v449_v30 = vpop.permute.xlu1 %448  ;;  %v538_v4 = vadd.f32 %v537_v56, %v532_v26  ;;  %v534_v7 = vmul.f32 %v513_v43, %v513_v43  ;;  %v519_v61 = vadd.f32 %v518_v5, %v513_v43 }
  0xde   :  { %v458_v53 = vmax.f32 %v449_v30, %v1285_v36  ;;  %v1402_v36 = vadd.f32 %v1287_v37, %v1228_v9 }
  0xdf   :  { %v539_v57 = vadd.f32 %v538_v4, %v533_v59  ;;  %v640_v59 = vld [vmem:[#allocation7] sm:$0x1] }
  0xe0   :  { %v294_v47 = vpop.f32.mrf.mxu0  ;;  %v465_v62 = vmul.f32 %v458_v53, %v422_v55  ;;  %v622_v55 = vld [vmem:[#allocation6] sm:$0x1] }
  0xe1   :  { %v1391_v52 = vadd.f32 %v1252_v19, %v294_v47  ;;  %v540_v17 = vadd.f32 %v539_v57, %v534_v7 }
  0xe3   :  { %v514_v19 = vmul.f32 %v1394_v25, %v1391_v52 }
  0xe5   :  { %v535_v11 = vmul.f32 %v514_v19, %v514_v19  ;;  %v520_v20 = vadd.f32 %v519_v61, %v514_v19 }
  0xe6   :  { %v492_v60 = vpop.permute.xlu1 %491 }
  0xe7   :  { %v501_v0 = vmax.f32 %v492_v60, %v1298_v42  ;;  %v541_v9 = vadd.f32 %v540_v17, %v535_v11 }
  0xe9   :  { %v1405_v10 = vmul.f32 %v501_v0, %v465_v62 }
  0xeb   :  { %v515_v14 = vmul.f32 %v1405_v10, %v1402_v36 }
  0xed   :  { %v522_v21 = vsel %vm521_vm0, %v515_v14, 0.0  ;;  %v536_v2 = vmul.f32 %v515_v14, %v515_v14 }
  0xee   :  { %v523_v37 = vadd.f32 %v522_v21, %v520_v20 }
  0xef   :  { %v542_v22 = vsel %vm521_vm0, %v536_v2, 0.0 }
  0xf0   :  { %v524_v42 = vrot.slane %v523_v37, 4  ;;  %v543_v23 = vadd.f32 %v542_v22, %v541_v9 }
  0xf2   :  { %v525_v6 = vadd.f32 %v524_v42, %v523_v37  ;;  %v544_v1 = vrot.slane %v543_v23, 4 }
  0xf4   :  { %v526_v27 = vrot.slane %v525_v6, 2  ;;  %v545_v30 = vadd.f32 %v544_v1, %v543_v23 }
  0xf6   :  { %v527_v31 = vadd.f32 %v526_v27, %v525_v6  ;;  %v546_v33 = vrot.slane %v545_v30, 2 }
  0xf8   :  { %v528_v16 = vrot.slane %v527_v31, 1  ;;  %v547_v18 = vadd.f32 %v546_v33, %v545_v30 }
  0xfa   :  { %v548_v34 = vrot.slane %v547_v18, 1  ;;  %v529_v35 = vadd.f32 %v528_v16, %v527_v31 }
  0xfc   :  { %v549_v38 = vadd.f32 %v548_v34, %v547_v18 }
  0xfe   :  { %v551_v39 = vsel %vm550_vm1, %v529_v35, %v549_v38 }
  0xff   :  { %584 = vmatmul.f32.vlgmr.msrb.gmra.mxu2 %v551_v39 }
 0x182   :  { %v585_v40 = vpop.f32.mrf.mxu2 }
 0x183   :  { %786 = vmatmul.msk.f32.vlgmr.msrb.gmra.mxu3 %vm592_vm2, %v585_v40 }
 0x206   :  { %v613_v41 = vpop.f32.mrf.mxu3 }
 0x207   :  { %v616_v29 = vmul.f32 0.0078125, %v613_v41 }
 0x209   :  { %v617_v46 = vmul.f32 %v616_v29, %v616_v29 }
 0x20b   :  { %v619_v47 = vrot.slane %v617_v46, 7 }
 0x20d   :  { %v621_v48 = vsub.f32 %v616_v29, %v619_v47 }
 0x20f   :  { %v623_v50 = vadd.f32 1e-05, %v621_v48 }
 0x211   :  { %878 = vrsqrt.f32 %v623_v50  ;;  %vm630_vm4 = vweird.f32 %v623_v50 }
 0x217   :  { %v879_v51 = vpop.eup %878 }
 0x218   :  { %v625_v8 = vmul.f32 %v879_v51, %v623_v50  ;;  %vm631_vm3 = vweird.f32 %v879_v51 }
 0x219   :  { %vm632_vm5 = vmor %vm630_vm4, %vm631_vm3 }
 0x21a   :  { %v626_v53 = vmul.f32 %v879_v51, %v625_v8 }
 0x21c   :  { %v627_v54 = vmul.f32 0.5, %v626_v53 }
 0x21e   :  { %v628_v15 = vsub.f32 1.5, %v627_v54 }
 0x220   :  { %v629_v26 = vmul.f32 %v879_v51, %v628_v15 }
 0x222   :  { %v633_v43 = vsel %vm632_vm5, %v879_v51, %v629_v26 }
 0x223   :  { %635 = vst [vmem:[#allocation1] sm:$0xff] %v633_v43 }
 0x22a   :  { %v637_v56 = vld [vmem:[#allocation1 + $0x1] ss:$9 sm:$0xff] }
 0x22b   :  { %v639_v58 = vmul.f32 %v637_v56, %v622_v55 }
 0x22d   :  { %v641_v19 = vmul.f32 %v639_v58, %v616_v29  ;;  %v644_v60 = vperm.slane %v639_v58, 0 }
 0x22f   :  { %v642_v62 = vsub.f32 %v640_v59, %v641_v19  ;;  %v646_v0 = vmul.f32 %v644_v60, %v1345_v12  ;;  %v647_v4 = vmul.f32 %v644_v60, %v1341_v63  ;;  %v648_v5 = vmul.f32 %v644_v60, %v1355_v13 }
 0x230   :  { %v649_v7 = vmul.f32 %v644_v60, %v1370_v28  ;;  %v650_v61 = vmul.f32 %v644_v60, %v1380_v45  ;;  %v651_v11 = vmul.f32 %v644_v60, %v1391_v52  ;;  %v652_v14 = vmul.f32 %v644_v60, %v1402_v36 }
 0x231   :  { %v654_v57 = vperm.slane %v642_v62, 0 }
 0x233   :  { %v656_v17 = vadd.f32 %v654_v57, %v646_v0  ;;  %v657_v20 = vadd.f32 %v654_v57, %v647_v4  ;;  %v658_v21 = vadd.f32 %v654_v57, %v648_v5  ;;  %v659_v2 = vadd.f32 %v654_v57, %v649_v7 }
 0x234   :  { %v660_v9 = vadd.f32 %v654_v57, %v650_v61  ;;  %v661_v37 = vadd.f32 %v654_v57, %v651_v11  ;;  %v662_v12 = vadd.f32 %v654_v57, %v652_v14 }
 0x235   :  { %v663_v22 = vmax.f32 %v656_v17, 0.0  ;;  %v664_v63 = vmax.f32 %v657_v20, 0.0  ;;  %v665_v42 = vmax.f32 %v658_v21, 0.0  ;;  %v666_v13 = vmax.f32 %v659_v2, 0.0 }
 0x236   :  { %v667_v23 = vmax.f32 %v660_v9, 0.0  ;;  %v668_v28 = vmax.f32 %v661_v37, 0.0  ;;  %v669_v6 = vmax.f32 %v662_v12, 0.0 }
 0x237   :  { %v670_v45 = vmul.f32 %v663_v22, %v1359_v3  ;;  %v671_v52 = vmul.f32 %v664_v63, %v1352_v24  ;;  %v672_v36 = vmul.f32 %v665_v42, %v1364_v32  ;;  %v673_v1 = vmul.f32 %v666_v13, %v1377_v44 }
 0x238   :  { %v674_v27 = vmul.f32 %v667_v23, %v1386_v49  ;;  %v675_v30 = vmul.f32 %v668_v28, %v1394_v25  ;;  %v676_v31 = vmul.f32 %v669_v6, %v1405_v10 }
 0x239   :  { %v812_v33 = vpack.c.bf16 %v671_v52, %v670_v45  ;;  %v817_v16 = vpack.c.bf16 %v673_v1, %v672_v36 }
 0x23a   :  { %v683_v18 = vpack.c.bf16 %v676_v31, %v676_v31  ;;  %v822_v34 = vpack.c.bf16 %v675_v30, %v674_v27 }
 0x23b   :  { %813 = vst [vmem:[%s1443_s8] sm:$0xff] %v812_v33  }
 0x23c   :  { %824 = vst [vmem:[%s1443_s8 + $0x8] sm:$0xff] %v817_v16  }
 0x23d   :  { %825 = vst [vmem:[%s1443_s8 + $0x10] sm:$0xff] %v822_v34  }
 0x23e   :  { %690 = vst [vmem:[%s1443_s8 + $0x18] sm:$0x1] %v683_v18 }
 0x23f   :  { %695 = vsyncpa [#allocation3], 1 }
 0x240   :  { %696 = vsyncpa [#allocation5], 1 }
 0x241   :  { %697 = vsyncpa [#allocation8], 1 }

// kernel: generator_forward.5
= control target key start
LH: loop header
LB: loop body
LE: loop exit
PB: predicated region body
PF: predicated region fallthrough
CT: control target
= control target key end

     0   :  { %13 = vsyncpa [#allocation3], 0  ;;  %s2607_s0 = inlined_call_operand.vmem [shape: f32[2,26], index: 0, kind: input, shape index: {}]   ;;  %s2608_s1 = inlined_call_operand.hbm [shape: bf16[26,1024], index: 1, kind: input, shape index: {}]   ;;  %s2609_s2 = inlined_call_operand.vmem [shape: f32[1024,64], index: 2, kind: input, shape index: {}]   ;;  %s2610_s3 = inlined_call_operand.hbm [shape: f32[64,1024], index: 3, kind: input, shape index: {}]   ;;  %s2611_s4 = inlined_call_operand.hbm [shape: f32[1,1024], index: 4, kind: input, shape index: {}]   ;;  %s2612_s5 = inlined_call_operand.hbm [shape: f32[1,1024], index: 5, kind: input, shape index: {}]   ;;  %s2613_s6 = inlined_call_operand.hbm [shape: f32[2,4], index: 6, kind: input, shape index: {}]   ;;  %s2614_s7 = inlined_call_operand.hbm [shape: f32[4,1024], index: 7, kind: input, shape index: {}]   ;;  %s2615_s8 = inlined_call_operand.vmem [shape: bf16[2,1024], index: 8, kind: output, shape index: {}]  }
   0x1   :  { %14 = vsyncpa [#allocation5], 0 }
   0x2   :  { %15 = vsyncpa [#allocation8], 0  ;;  %s38_s29 = sshll.u32 %s2610_s3, 4  ;;  %s39_s29 = int_to_ptr.hbm [resolvable:$true] %s38_s29 }
   0x3   :  { %16 = vsyncpa [#allocation11], 0  ;;  %s1755_s30 = smov [#allocation4]   ;;  %s63_s12 = sshll.u32 %s2612_s5, 4  ;;  %s64_s12 = int_to_ptr.hbm [resolvable:$true] %s63_s12 }
   0x4   :  { %s40_s9 = sshll.u32 %s1755_s30, 4  ;;  %s1756_s13 = smov 1024   ;;  %s41_s9 = int_to_ptr.vmem [resolvable:$true] %s40_s9 }
   0x5   :  { %s1757_s14 = smov 64   ;;  %s1758_s15 = smov [#allocation7]  }
   0x6   :  { %46 = dma.hbm_to_vmem [thread:$0]  %s39_s29, 8192, %s41_s9, [#allocation5], %s1756_s13, %s1756_s13, %s1757_s14  }
   0x7   :  { %s65_s16 = sshll.u32 %s1758_s15, 4  ;;  %s23_s19 = sshll.u32 %s2608_s1, 4  ;;  %s66_s16 = int_to_ptr.vmem [resolvable:$true] %s65_s16  ;;  %s24_s19 = int_to_ptr.hbm [resolvable:$true] %s23_s19 }
   0x8   :  { %68 = dma.hbm_to_vmem [thread:$0]  %s64_s12, 128, %s66_s16, [#allocation8]  }
   0x9   :  { %s1759_s3 = smov [#allocation2]   ;;  %s52_s5 = sshll.u32 %s2611_s4, 4  ;;  %s53_s5 = int_to_ptr.hbm [resolvable:$true] %s52_s5 }
   0xa   :  { %s25_s20 = sshll.u32 %s1759_s3, 4  ;;  %s1760_s23 = smov 512   ;;  %s26_s20 = int_to_ptr.vmem [resolvable:$true] %s25_s20 }
   0xb   :  { %s1761_s24 = smov 32   ;;  %s1762_s25 = smov [#allocation6]  }
   0xc   :  { %31 = dma.hbm_to_vmem [thread:$0]  %s24_s19, 2048, %s26_s20, [#allocation3], %s1760_s23, %s1760_s23, %s1761_s24  }
   0xd   :  { %s54_s26 = sshll.u32 %s1762_s25, 4  ;;  %s74_s1 = sshll.u32 %s2613_s6, 4  ;;  %s55_s26 = int_to_ptr.vmem [resolvable:$true] %s54_s26  ;;  %s75_s1 = int_to_ptr.hbm [resolvable:$true] %s74_s1 }
   0xe   :  { %57 = dma.hbm_to_vmem [thread:$0]  %s53_s5, 128, %s55_s26, [#allocation5]  }
   0xf   :  { %s85_s9 = sshll.u32 %s2614_s7, 4  ;;  %s1763_s10 = smov [#allocation9]   ;;  %s86_s9 = int_to_ptr.hbm [resolvable:$true] %s85_s9 }
  0x10   :  { %s76_s11 = sshll.u32 %s1763_s10, 4  ;;  %s1764_s4 = smov [#allocation10]   ;;  %s77_s11 = int_to_ptr.vmem [resolvable:$true] %s76_s11 }
  0x11   :  { %79 = dma.hbm_to_vmem [thread:$0]  %s75_s1, 32, %s77_s11, [#allocation8]  }
  0x12   :  { %s87_s12 = sshll.u32 %s1764_s4, 4  ;;  %s88_s12 = int_to_ptr.vmem [resolvable:$true] %s87_s12 }
  0x13   :  { %90 = dma.hbm_to_vmem [thread:$0]  %s86_s9, 512, %s88_s12, [#allocation11]  }
  0x14   :  { %1747 = dma.done.wait [#allocation3], 2048  }
  0x15   :  { %1748 = vsyncadd [#allocation3], 4294965248 }
  0x16   :  { %1749 = dma.done.wait [#allocation5], 8320  }
  0x17   :  { %1750 = vsyncadd [#allocation5], 4294958976 }
  0x18   :  { %1751 = dma.done.wait [#allocation8], 160  }
  0x19   :  { %1752 = vsyncadd [#allocation8], 4294967136 }
  0x1a   :  { %1753 = dma.done.wait [#allocation11], 512  }
  0x1b   :  { %1754 = vsyncadd [#allocation11], 4294966784  ;;  %v1765_v0 = vmov 0   ;;  %v1766_v1 = vmov 2   ;;  %vm210_vm0 = vcmask 1044480   ;;  %vm206_vm1 = vcmask 211968  }
  0x1c   :  { %1582 = vset.pattern.permute.xlu0 %v1765_v0  ;;  %1584 = vset.pattern.permute.xlu1 %v1766_v1  ;;  %v1506_v2 = vld [vmem:[#allocation2 + $0x40] sm:$0xf]  ;;  %v1560_v4 = vld [vmem:[#allocation2 + $0x44] sm:$0xf]  ;;  %v1514_v7 = vld [vmem:[#allocation2 + $0x48] sm:$0xf] }
  0x1d   :  { %v1564_v3 = vld [vmem:[#allocation2 + $0x5c] sm:$0x10]  ;;  %v1508_v6 = vld [vmem:[#allocation2 + $0x60] sm:$0x10]  ;;  %v1565_v8 = vld [vmem:[#allocation2 + $0x64] sm:$0x10] }
  0x1e   :  { %v1507_v5 = vor.u32 %v1564_v3, %v1506_v2  ;;  %v1511_v9 = vor.u32 %v1560_v4, %v1508_v6  ;;  %v1515_v10 = vor.u32 %v1565_v8, %v1514_v7  ;;  %v1561_v11 = vld [vmem:[#allocation2 + $0x4c] sm:$0xf]  ;;  %v1832_v13 = vld [vmem:[#allocation9] sm:$0x3]  ;;  %v1474_v16 = vld [vmem:[#allocation2] sm:$0xf] }
  0x1f   :  { %v1516_v12 = vld [vmem:[#allocation2 + $0x68] sm:$0x10]  ;;  %346 = vperm.xlu0 %1582, %v1832_v13   ;;  %v1556_v17 = vld [vmem:[#allocation2 + $0x1c] sm:$0xf0]  ;;  %430 = vperm.xlu1 %1584, %v1832_v13   ;;  %v1552_v21 = vld [vmem:[#allocation2 + $0x4] sm:$0xf] }
  0x20   :  { %v212_v14 = vsel %vm210_vm0, %v1507_v5, 0  ;;  %v1519_v15 = vor.u32 %v1561_v11, %v1516_v12  ;;  %v215_v18 = vsel %vm210_vm0, %v1511_v9, 0  ;;  %v218_v19 = vsel %vm210_vm0, %v1515_v10, 0  ;;  %v1476_v22 = vld [vmem:[#allocation2 + $0x20] sm:$0xf0]  ;;  %v702_v60 = vld [vmem:[%s2609_s2 + $0x178] sm:$0xff] }
  0x21   :  { %241 = vmatpush.bf16.msra.mxu0 %v212_v14  ;;  %v1475_v20 = vor.u32 %v1556_v17, %v1474_v16  ;;  %254 = vmatpush.bf16.msra.mxu1 %v215_v18  ;;  %v1479_v24 = vor.u32 %v1552_v21, %v1476_v22  ;;  %v1482_v25 = vld [vmem:[#allocation2 + $0x8] sm:$0xf]  ;;  %v1553_v28 = vld [vmem:[#allocation2 + $0xc] sm:$0xf]  ;;  %v116_v30 = vld [vmem:[%s2607_s0] sm:$0x3] }
  0x22   :  { %267 = vmatpush.bf16.msra.mxu2 %v218_v19  ;;  %v221_v23 = vsel %vm210_vm0, %v1519_v15, 0  ;;  %v1557_v26 = vld [vmem:[#allocation2 + $0x24] sm:$0xf0]  ;;  %v1484_v29 = vld [vmem:[#allocation2 + $0x28] sm:$0xf0]  ;;  %v1843_v32 = vpack.c.bf16 %v116_v30, %v116_v30  ;;  %v1767_v55 = vmov 1  }
  0x23   :  { %280 = vmatpush.bf16.msra.mxu3 %v221_v23  ;;  %v1483_v27 = vor.u32 %v1557_v26, %v1482_v25  ;;  %v1487_v31 = vor.u32 %v1553_v28, %v1484_v29  ;;  %v1530_v33 = vld [vmem:[#allocation2 + $0x58] sm:$0xf]  ;;  %v1563_v35 = vld [vmem:[#allocation2 + $0x5c] sm:$0xf]  ;;  %v1522_v38 = vld [vmem:[#allocation2 + $0x50] sm:$0xf] }
  0x24   :  { %v1567_v34 = vld [vmem:[#allocation2 + $0x74] sm:$0x10]  ;;  %v1532_v37 = vld [vmem:[#allocation2 + $0x78] sm:$0x10]  ;;  %v1566_v39 = vld [vmem:[#allocation2 + $0x6c] sm:$0x10] }
  0x25   :  { %242 = vmatpush.bf16.msra.mxu0 %v1475_v20  ;;  %v1531_v36 = vor.u32 %v1567_v34, %v1530_v33  ;;  %255 = vmatpush.bf16.msra.mxu1 %v1479_v24  ;;  %v1535_v40 = vor.u32 %v1563_v35, %v1532_v37  ;;  %v1523_v41 = vor.u32 %v1566_v39, %v1522_v38  ;;  %v1498_v42 = vld [vmem:[#allocation2 + $0x18] sm:$0xf]  ;;  %v1562_v44 = vld [vmem:[#allocation2 + $0x54] sm:$0xf]  ;;  %v1555_v49 = vld [vmem:[#allocation2 + $0x1c] sm:$0xf] }
  0x26   :  { %268 = vmatpush.bf16.msra.mxu2 %v1483_v27  ;;  %v1559_v43 = vld [vmem:[#allocation2 + $0x34] sm:$0xf0]  ;;  %v1524_v46 = vld [vmem:[#allocation2 + $0x70] sm:$0x10]  ;;  %v1500_v50 = vld [vmem:[#allocation2 + $0x38] sm:$0xf0] }
  0x27   :  { %281 = vmatpush.bf16.msra.mxu3 %v1487_v31  ;;  %v230_v45 = vsel %vm210_vm0, %v1531_v36, 0  ;;  %v233_v47 = vsel %vm210_vm0, %v1535_v40, 0  ;;  %v1527_v48 = vor.u32 %v1562_v44, %v1524_v46  ;;  %v224_v51 = vsel %vm210_vm0, %v1523_v41, 0  ;;  %v1490_v53 = vld [vmem:[#allocation2 + $0x10] sm:$0xf]  ;;  %1583 = vset.pattern.permute.xlu0 %v1767_v55  ;;  %v701_v2 = vld [vmem:[%s2609_s2 + $0x170] sm:$0xff] }
  0x28   :  { %1536 = vmatmul.msk.bf16.vlgmr.msra.gmra.mxu0 %vm206_vm1, %v1843_v32  ;;  %1537 = vmatmul.msk.bf16.vlgmr.msra.gmra.mxu1 %vm206_vm1, %v1843_v32  ;;  %v1499_v52 = vor.u32 %v1559_v43, %v1498_v42  ;;  %v1558_v54 = vld [vmem:[#allocation2 + $0x2c] sm:$0xf0]  ;;  %v1503_v57 = vor.u32 %v1555_v49, %v1500_v50  ;;  %v1554_v58 = vld [vmem:[#allocation2 + $0x14] sm:$0xf]  ;;  %v1768_v61 = vmov 3   ;;  %v717_v3 = vld [vmem:[%s2609_s2 + $0x1f0] sm:$0xff] }
  0x29   :  { %1538 = vmatmul.msk.bf16.vlgmr.msra.gmra.mxu2 %vm206_vm1, %v1843_v32  ;;  %386 = vperm.xlu0 %1583, %v1832_v13   ;;  %v227_v56 = vsel %vm210_vm0, %v1527_v48, 0  ;;  %v1492_v59 = vld [vmem:[#allocation2 + $0x30] sm:$0xf0]  ;;  %v1491_v62 = vor.u32 %v1558_v54, %v1490_v53  ;;  %v669_v5 = vld [vmem:[%s2609_s2 + $0x70] sm:$0xff]  ;;  %v700_v6 = vld [vmem:[%s2609_s2 + $0x168] sm:$0xff]  ;;  %vm525_vm2 = vcmask 1041408  }
  0x2a   :  { %319 = vmatpush.bf16.msrb.mxu2 %v230_v45  ;;  %1539 = vmatmul.msk.bf16.vlgmr.msra.gmra.mxu3 %vm206_vm1, %v1843_v32  ;;  %v718_v63 = vld [vmem:[%s2609_s2 + $0x1f8] sm:$0xff]  ;;  %v1495_v0 = vor.u32 %v1554_v58, %v1492_v59  ;;  %v716_v7 = vld [vmem:[%s2609_s2 + $0x1e8] sm:$0xff]  ;;  %v685_v8 = vld [vmem:[%s2609_s2 + $0xf0] sm:$0xff]  ;;  %vm646_vm3 = vcmask 1040384   ;;  %vm1007_vm4 = vcmask 523264  }
  0x2b   :  { %332 = vmatpush.bf16.msrb.mxu3 %v233_v47  ;;  %1585 = vset.pattern.permute.xlu1 %v1768_v61  ;;  %v670_v1 = vld [vmem:[%s2609_s2 + $0x78] sm:$0xff]  ;;  %v668_v9 = vld [vmem:[%s2609_s2 + $0x68] sm:$0xff]  ;;  %v667_v11 = vld [vmem:[%s2609_s2 + $0x60] sm:$0xff] }
  0x2c   :  { %293 = vmatpush.bf16.msrb.mxu0 %v224_v51  ;;  %474 = vperm.xlu1 %1585, %v1832_v13   ;;  %v686_v4 = vld [vmem:[%s2609_s2 + $0xf8] sm:$0xff]  ;;  %v684_v10 = vld [vmem:[%s2609_s2 + $0xe8] sm:$0xff]  ;;  %v683_v12 = vld [vmem:[%s2609_s2 + $0xe0] sm:$0xff] }
  0x2d   :  { %306 = vmatpush.bf16.msrb.mxu1 %v227_v56  ;;  %v666_v13 = vld [vmem:[%s2609_s2 + $0x58] sm:$0xff]  ;;  %v665_v15 = vld [vmem:[%s2609_s2 + $0x50] sm:$0xff]  ;;  %v664_v17 = vld [vmem:[%s2609_s2 + $0x48] sm:$0xff] }
  0x2e   :  { %320 = vmatpush.bf16.msrb.mxu2 %v1499_v52  ;;  %v682_v14 = vld [vmem:[%s2609_s2 + $0xd8] sm:$0xff]  ;;  %v681_v16 = vld [vmem:[%s2609_s2 + $0xd0] sm:$0xff]  ;;  %v680_v18 = vld [vmem:[%s2609_s2 + $0xc8] sm:$0xff] }
  0x2f   :  { %333 = vmatpush.bf16.msrb.mxu3 %v1503_v57  ;;  %v699_v19 = vld [vmem:[%s2609_s2 + $0x160] sm:$0xff]  ;;  %v698_v23 = vld [vmem:[%s2609_s2 + $0x158] sm:$0xff]  ;;  %v697_v27 = vld [vmem:[%s2609_s2 + $0x150] sm:$0xff] }
  0x30   :  { %294 = vmatpush.bf16.msrb.mxu0 %v1491_v62  ;;  %v715_v20 = vld [vmem:[%s2609_s2 + $0x1e0] sm:$0xff]  ;;  %v714_v24 = vld [vmem:[%s2609_s2 + $0x1d8] sm:$0xff]  ;;  %v713_v28 = vld [vmem:[%s2609_s2 + $0x1d0] sm:$0xff] }
  0x31   :  { %307 = vmatpush.bf16.msrb.mxu1 %v1495_v0  ;;  %1586 = vset.pattern.permute.xlu0 %v1768_v61  ;;  %v663_v21 = vld [vmem:[%s2609_s2 + $0x40] sm:$0xff]  ;;  %v662_v25 = vld [vmem:[%s2609_s2 + $0x38] sm:$0xff]  ;;  %v661_v29 = vld [vmem:[%s2609_s2 + $0x30] sm:$0xff] }
  0x32   :  { %823 = vmatpush.msra.mxu2 %v702_v60  ;;  %v679_v22 = vld [vmem:[%s2609_s2 + $0xc0] sm:$0xff]  ;;  %v678_v26 = vld [vmem:[%s2609_s2 + $0xb8] sm:$0xff]  ;;  %v677_v30 = vld [vmem:[%s2609_s2 + $0xb0] sm:$0xff] }
  0x33   :  { %843 = vmatpush.msra.mxu3 %v718_v63  ;;  %v696_v31 = vld [vmem:[%s2609_s2 + $0x148] sm:$0xff]  ;;  %v695_v35 = vld [vmem:[%s2609_s2 + $0x140] sm:$0xff]  ;;  %v694_v39 = vld [vmem:[%s2609_s2 + $0x138] sm:$0xff] }
  0x34   :  { %783 = vmatpush.msra.mxu0 %v670_v1  ;;  %824 = vmatpush.msra.mxu2 %v701_v2  ;;  %v660_v33 = vld [vmem:[%s2609_s2 + $0x28] sm:$0xff]  ;;  %v711_v36 = vld [vmem:[%s2609_s2 + $0x1c0] sm:$0xff]  ;;  %v710_v40 = vld [vmem:[%s2609_s2 + $0x1b8] sm:$0xff] }
  0x35   :  { %844 = vmatpush.msra.mxu3 %v717_v3  ;;  %803 = vmatpush.msra.mxu1 %v686_v4  ;;  %v676_v34 = vld [vmem:[%s2609_s2 + $0xa8] sm:$0xff]  ;;  %v659_v37 = vld [vmem:[%s2609_s2 + $0x20] sm:$0xff]  ;;  %v658_v41 = vld [vmem:[%s2609_s2 + $0x18] sm:$0xff] }
  0x36   :  { %784 = vmatpush.msra.mxu0 %v669_v5  ;;  %825 = vmatpush.msra.mxu2 %v700_v6  ;;  %v675_v38 = vld [vmem:[%s2609_s2 + $0xa0] sm:$0xff]  ;;  %v674_v42 = vld [vmem:[%s2609_s2 + $0x98] sm:$0xff]  ;;  %v693_v43 = vld [vmem:[%s2609_s2 + $0x130] sm:$0xff] }
  0x37   :  { %845 = vmatpush.msra.mxu3 %v716_v7  ;;  %804 = vmatpush.msra.mxu1 %v685_v8  ;;  %v709_v44 = vld [vmem:[%s2609_s2 + $0x1b0] sm:$0xff]  ;;  %v692_v47 = vld [vmem:[%s2609_s2 + $0x128] sm:$0xff]  ;;  %v340_v49 = vld [vmem:[#allocation10] sm:$0xff] }
  0x38   :  { %785 = vmatpush.msra.mxu0 %v668_v9  ;;  %1541 = vmatmul.msk.bf16.vlgmr.msrb.gmra.mxu1 %vm206_vm1, %v1843_v32  ;;  %v657_v45 = vld [vmem:[%s2609_s2 + $0x10] sm:$0xff]  ;;  %v708_v48 = vld [vmem:[%s2609_s2 + $0x1a8] sm:$0xff]  ;;  %v691_v52 = vld [vmem:[%s2609_s2 + $0x120] sm:$0xff]  ;;  %v353_v54 = vperm.slane %v340_v49, 0  ;;  %v389_v55 = vperm.slane %v340_v49, 1  ;;  %v354_v62 = vperm.slane %v340_v49, 4 }
  0x39   :  { %805 = vmatpush.msra.mxu1 %v684_v10  ;;  %1540 = vmatmul.msk.bf16.vlgmr.msrb.gmra.mxu0 %vm206_vm1, %v1843_v32  ;;  %v673_v46 = vld [vmem:[%s2609_s2 + $0x90] sm:$0xff]  ;;  %v656_v50 = vld [vmem:[%s2609_s2 + $0x8] sm:$0xff]  ;;  %v707_v53 = vld [vmem:[%s2609_s2 + $0x1a0] sm:$0xff]  ;;  %v390_v63 = vperm.slane %v340_v49, 5  ;;  %v433_v3 = vperm.slane %v340_v49, 2  ;;  %v477_v4 = vperm.slane %v340_v49, 3 }
  0x3a   :  { %786 = vmatpush.msra.mxu0 %v667_v11  ;;  %1542 = vmatmul.msk.bf16.vlgmr.msrb.gmra.mxu2 %vm206_vm1, %v1843_v32  ;;  %v672_v51 = vld [vmem:[%s2609_s2 + $0x88] sm:$0xff]  ;;  %v655_v56 = vld [vmem:[%s2609_s2] sm:$0xff]  ;;  %v690_v58 = vld [vmem:[%s2609_s2 + $0x118] sm:$0xff]  ;;  %v434_v5 = vperm.slane %v340_v49, 6  ;;  %v2055_v6 = vperm.slane %v353_v54, 0  ;;  %v2057_v7 = vperm.slane %v389_v55, 1 }
  0x3b   :  { %1543 = vmatmul.msk.bf16.vlgmr.msrb.gmra.mxu3 %vm206_vm1, %v1843_v32  ;;  %806 = vmatpush.msra.mxu1 %v683_v12  ;;  %v712_v32 = vld [vmem:[%s2609_s2 + $0x1c8] sm:$0xff]  ;;  %v671_v57 = vld [vmem:[%s2609_s2 + $0x80] sm:$0xff]  ;;  %v706_v59 = vld [vmem:[%s2609_s2 + $0x198] sm:$0xff]  ;;  %v478_v8 = vperm.slane %v340_v49, 7 }
  0x3c   :  { %787 = vmatpush.msra.mxu0 %v666_v13  ;;  %826 = vmatpush.msra.mxu2 %v699_v19  ;;  %v734_v60 = vld [vmem:[%s2609_s2 + $0x278] sm:$0xff]  ;;  %v689_v0 = vld [vmem:[%s2609_s2 + $0x110] sm:$0xff]  ;;  %v2053_v2 = vld [vmem:[#allocation10 + $0x8] sm:$0xff] }
  0x3d   :  { %807 = vmatpush.msra.mxu1 %v682_v14  ;;  %846 = vmatpush.msra.mxu3 %v715_v20  ;;  %v750_v61 = vld [vmem:[%s2609_s2 + $0x2f8] sm:$0xff]  ;;  %v705_v1 = vld [vmem:[%s2609_s2 + $0x190] sm:$0xff]  ;;  %v355_v9 = vperm.slane %v2053_v2, 0  ;;  %v391_v10 = vperm.slane %v2053_v2, 1  ;;  %v435_v11 = vperm.slane %v2053_v2, 2  ;;  %v356_v12 = vperm.slane %v2053_v2, 4 }
  0x3e   :  { %788 = vmatpush.msra.mxu0 %v665_v15  ;;  %827 = vmatpush.msra.mxu2 %v698_v23  ;;  %v2063_v13 = vld [vmem:[#allocation10 + $0x10] sm:$0xff]  ;;  %v2065_v14 = vperm.slane %v354_v62, 0  ;;  %v2067_v15 = vperm.slane %v390_v63, 1  ;;  %v2077_v20 = vperm.slane %v433_v3, 2  ;;  %v479_v23 = vperm.slane %v2053_v2, 3 }
  0x3f   :  { %808 = vmatpush.msra.mxu1 %v681_v16  ;;  %847 = vmatpush.msra.mxu3 %v714_v24  ;;  %v392_v16 = vperm.slane %v2053_v2, 5  ;;  %v749_v19 = vld [vmem:[%s2609_s2 + $0x2f0] sm:$0xff]  ;;  %v688_v24 = vld [vmem:[%s2609_s2 + $0x108] sm:$0xff]  ;;  %v358_v49 = vperm.slane %v2063_v13, 4  ;;  %v394_v55 = vperm.slane %v2063_v13, 5 }
  0x40   :  { %789 = vmatpush.msra.mxu0 %v664_v17  ;;  %828 = vmatpush.msra.mxu2 %v697_v27  ;;  %v436_v17 = vperm.slane %v2053_v2, 6  ;;  %v732_v27 = vld [vmem:[%s2609_s2 + $0x268] sm:$0xff]  ;;  %v729_v63 = vld [vmem:[%s2609_s2 + $0x250] sm:$0xff] }
  0x41   :  { %809 = vmatpush.msra.mxu1 %v680_v18  ;;  %848 = vmatpush.msra.mxu3 %v713_v28  ;;  %v733_v18 = vld [vmem:[%s2609_s2 + $0x270] sm:$0xff]  ;;  %v748_v28 = vld [vmem:[%s2609_s2 + $0x2e8] sm:$0xff] }
  0x42   :  { %790 = vmatpush.msra.mxu0 %v663_v21  ;;  %829 = vmatpush.msra.mxu2 %v696_v31  ;;  %v2079_v21 = vperm.slane %v477_v4, 3  ;;  %v2100_v31 = vld [vmem:[#allocation10 + $0x18] sm:$0xff]  ;;  %v780_v4 = vld [vmem:[%s2609_s2 + $0x3e8] sm:$0xff] }
  0x43   :  { %810 = vmatpush.msra.mxu1 %v679_v22  ;;  %849 = vmatpush.msra.mxu3 %v712_v32  ;;  %v2081_v22 = vperm.slane %v434_v5, 2  ;;  %v2102_v32 = vperm.slane %v355_v9, 0  ;;  %v483_v3 = vperm.slane %v2100_v31, 3  ;;  %v2183_v9 = vperm.slane %v358_v49, 0  ;;  %v742_v49 = vld [vmem:[%s2609_s2 + $0x2b8] sm:$0xff] }
  0x44   :  { %791 = vmatpush.msra.mxu0 %v662_v25  ;;  %830 = vmatpush.msra.mxu2 %v695_v35  ;;  %v704_v25 = vld [vmem:[%s2609_s2 + $0x188] sm:$0xff]  ;;  %v2108_v35 = vperm.slane %v356_v12, 0 }
  0x45   :  { %811 = vmatpush.msra.mxu1 %v678_v26  ;;  %850 = vmatpush.msra.mxu3 %v711_v36  ;;  %v2090_v26 = vperm.slane %v478_v8, 3  ;;  %v687_v36 = vld [vmem:[%s2609_s2 + $0x100] sm:$0xff] }
  0x46   :  { %792 = vmatpush.msra.mxu0 %v661_v29  ;;  %831 = vmatpush.msra.mxu2 %v694_v39  ;;  %v357_v29 = vperm.slane %v2063_v13, 0  ;;  %v2118_v39 = vperm.slane %v392_v16, 1  ;;  %v744_v16 = vld [vmem:[%s2609_s2 + $0x2c8] sm:$0xff] }
  0x47   :  { %812 = vmatpush.msra.mxu1 %v677_v30  ;;  %851 = vmatpush.msra.mxu3 %v710_v40  ;;  %v393_v30 = vperm.slane %v2063_v13, 1  ;;  %v2120_v40 = vperm.slane %v436_v17, 2  ;;  %v763_v17 = vld [vmem:[%s2609_s2 + $0x360] sm:$0xff] }
  0x48   :  { %793 = vmatpush.msra.mxu0 %v660_v33  ;;  %832 = vmatpush.msra.mxu2 %v693_v43  ;;  %v2104_v33 = vperm.slane %v391_v10, 1  ;;  %v747_v43 = vld [vmem:[%s2609_s2 + $0x2e0] sm:$0xff]  ;;  %v2151_v54 = vperm.slane %v357_v29, 0  ;;  %v360_v10 = vperm.slane %v2100_v31, 4 }
  0x49   :  { %813 = vmatpush.msra.mxu1 %v676_v34  ;;  %852 = vmatpush.msra.mxu3 %v709_v44  ;;  %v2106_v34 = vperm.slane %v435_v11, 2  ;;  %v766_v44 = vld [vmem:[%s2609_s2 + $0x378] sm:$0xff]  ;;  %v2186_v11 = vperm.slane %v394_v55, 1 }
  0x4a   :  { %794 = vmatpush.msra.mxu0 %v659_v37  ;;  %833 = vmatpush.msra.mxu2 %v692_v47  ;;  %v703_v37 = vld [vmem:[%s2609_s2 + $0x180] sm:$0xff]  ;;  %v437_v47 = vperm.slane %v2063_v13, 2 }
  0x4b   :  { %814 = vmatpush.msra.mxu1 %v675_v38  ;;  %853 = vmatpush.msra.mxu3 %v708_v48  ;;  %v481_v48 = vperm.slane %v2063_v13, 3 }
  0x4c   :  { %795 = vmatpush.msra.mxu0 %v658_v41  ;;  %834 = vmatpush.msra.mxu2 %v691_v52  ;;  %v480_v41 = vperm.slane %v2053_v2, 7  ;;  %v746_v52 = vld [vmem:[%s2609_s2 + $0x2d8] sm:$0xff]  ;;  %v439_v2 = vperm.slane %v2100_v31, 2  ;;  %v2179_v5 = vperm.slane %v437_v47, 2 }
  0x4d   :  { %815 = vmatpush.msra.mxu1 %v674_v42  ;;  %854 = vmatpush.msra.mxu3 %v707_v53  ;;  %v731_v42 = vld [vmem:[%s2609_s2 + $0x260] sm:$0xff]  ;;  %v765_v53 = vld [vmem:[%s2609_s2 + $0x370] sm:$0xff]  ;;  %v2181_v8 = vperm.slane %v481_v48, 3  ;;  %v726_v48 = vld [vmem:[%s2609_s2 + $0x238] sm:$0xff] }
  0x4e   :  { %796 = vmatpush.msra.mxu0 %v657_v45  ;;  %835 = vmatpush.msra.mxu2 %v690_v58  ;;  %v2132_v45 = vperm.slane %v479_v23, 3  ;;  %v2158_v58 = vperm.slane %v393_v30, 1  ;;  %v2163_v62 = vperm.slane %v480_v41, 3  ;;  %v779_v23 = vld [vmem:[%s2609_s2 + $0x3e0] sm:$0xff]  ;;  %v2223_v41 = vperm.slane %v439_v2, 2 }
  0x4f   :  { %816 = vmatpush.msra.mxu1 %v673_v46  ;;  %855 = vmatpush.msra.mxu3 %v706_v59  ;;  %v782_v46 = vld [vmem:[%s2609_s2 + $0x3f8] sm:$0xff]  ;;  %v482_v59 = vperm.slane %v2063_v13, 7  ;;  %v727_v30 = vld [vmem:[%s2609_s2 + $0x240] sm:$0xff]  ;;  %v484_v2 = vperm.slane %v2100_v31, 7 }
  0x50   :  { %797 = vmatpush.msra.mxu0 %v656_v50  ;;  %836 = vmatpush.msra.mxu2 %v689_v0  ;;  %v745_v0 = vld [vmem:[%s2609_s2 + $0x2d0] sm:$0xff] }
  0x51   :  { %817 = vmatpush.msra.mxu1 %v672_v51  ;;  %856 = vmatpush.msra.mxu3 %v705_v1  ;;  %v730_v51 = vld [vmem:[%s2609_s2 + $0x258] sm:$0xff]  ;;  %v764_v1 = vld [vmem:[%s2609_s2 + $0x368] sm:$0xff] }
  0x52   :  { %798 = vmatpush.msra.mxu0 %v655_v56  ;;  %837 = vmatpush.msra.mxu2 %v688_v24  ;;  %v438_v56 = vperm.slane %v2063_v13, 6  ;;  %v728_v13 = vld [vmem:[%s2609_s2 + $0x248] sm:$0xff] }
  0x53   :  { %818 = vmatpush.msra.mxu1 %v671_v57  ;;  %857 = vmatpush.msra.mxu3 %v704_v25  ;;  %v781_v57 = vld [vmem:[%s2609_s2 + $0x3f0] sm:$0xff] }
  0x54   :  { %863 = vmatpush.msrb.mxu0 %v734_v60  ;;  %838 = vmatpush.msra.mxu2 %v687_v36  ;;  %v359_v60 = vperm.slane %v2100_v31, 0  ;;  %v2188_v12 = vperm.slane %v438_v56, 2  ;;  %v743_v36 = vld [vmem:[%s2609_s2 + $0x2c0] sm:$0xff] }
  0x55   :  { %883 = vmatpush.msrb.mxu1 %v750_v61  ;;  %858 = vmatpush.msra.mxu3 %v703_v37  ;;  %v395_v61 = vperm.slane %v2100_v31, 1  ;;  %v762_v37 = vld [vmem:[%s2609_s2 + $0x358] sm:$0xff] }
  0x56   :  { %864 = vmatpush.msrb.mxu0 %v733_v18  ;;  %903 = vmatpush.msrb.mxu2 %v766_v44  ;;  %v396_v18 = vperm.slane %v2100_v31, 5  ;;  %v2205_v24 = vperm.slane %v359_v60, 0  ;;  %v778_v44 = vld [vmem:[%s2609_s2 + $0x3d8] sm:$0xff] }
  0x57   :  { %884 = vmatpush.msrb.mxu1 %v749_v19  ;;  %923 = vmatpush.msrb.mxu3 %v782_v46  ;;  %v2200_v19 = vperm.slane %v482_v59, 3  ;;  %v2207_v25 = vperm.slane %v395_v61, 1  ;;  %v2236_v46 = vperm.slane %v360_v10, 0  ;;  %v725_v61 = vld [vmem:[%s2609_s2 + $0x230] sm:$0xff] }
  0x58   :  { %865 = vmatpush.msrb.mxu0 %v732_v27  ;;  %904 = vmatpush.msrb.mxu2 %v765_v53  ;;  %v440_v27 = vperm.slane %v2100_v31, 6 }
  0x59   :  { %885 = vmatpush.msrb.mxu1 %v748_v28  ;;  %924 = vmatpush.msrb.mxu3 %v781_v57 }
  0x5a   :  { %866 = vmatpush.msrb.mxu0 %v731_v42  ;;  %905 = vmatpush.msrb.mxu2 %v764_v1 }
  0x5b   :  { %886 = vmatpush.msrb.mxu1 %v747_v43  ;;  %925 = vmatpush.msrb.mxu3 %v780_v4 }
  0x5c   :  { %867 = vmatpush.msrb.mxu0 %v730_v51  ;;  %906 = vmatpush.msrb.mxu2 %v763_v17  ;;  %v2252_v51 = vperm.slane %v396_v18, 1 }
  0x5d   :  { %887 = vmatpush.msrb.mxu1 %v746_v52  ;;  %926 = vmatpush.msrb.mxu3 %v779_v23  ;;  %v740_v23 = vld [vmem:[%s2609_s2 + $0x2a8] sm:$0xff] }
  0x5e   :  { %868 = vmatpush.msrb.mxu0 %v729_v63  ;;  %907 = vmatpush.msrb.mxu2 %v762_v37 }
  0x5f   :  { %888 = vmatpush.msrb.mxu1 %v745_v0  ;;  %927 = vmatpush.msrb.mxu3 %v778_v44 }
  0x60   :  { %869 = vmatpush.msrb.mxu0 %v728_v13 }
  0x61   :  { %889 = vmatpush.msrb.mxu1 %v744_v16 }
  0x62   :  { %870 = vmatpush.msrb.mxu0 %v727_v30  ;;  %v759_v30 = vld [vmem:[%s2609_s2 + $0x340] sm:$0xff] }
  0x63   :  { %890 = vmatpush.msrb.mxu1 %v743_v36  ;;  %v775_v36 = vld [vmem:[%s2609_s2 + $0x3c0] sm:$0xff] }
  0x64   :  { %871 = vmatpush.msrb.mxu0 %v726_v48 }
  0x65   :  { %891 = vmatpush.msrb.mxu1 %v742_v49 }
  0x66   :  { %872 = vmatpush.msrb.mxu0 %v725_v61 }
  0x91   :  { %v2116_v38 = vpop.permute.xlu0 %346  ;;  %v2140_v50 = vpop.permute.xlu1 %430 }
  0x92   :  { %v377_v28 = vmax.f32 %v2116_v38, %v2055_v6  ;;  %v457_v29 = vmax.f32 %v2140_v50, %v2077_v20  ;;  %v2225_v6 = vperm.slane %v483_v3, 3  ;;  %v378_v20 = vmax.f32 %v2116_v38, %v2065_v14 }
  0x93   :  { %v458_v42 = vmax.f32 %v2140_v50, %v2081_v22  ;;  %v379_v43 = vmax.f32 %v2116_v38, %v2102_v32  ;;  %v459_v14 = vmax.f32 %v2140_v50, %v2106_v34  ;;  %v380_v22 = vmax.f32 %v2116_v38, %v2108_v35 }
  0x94   :  { %v381_v32 = vmax.f32 %v2116_v38, %v2151_v54  ;;  %v761_v54 = vld [vmem:[%s2609_s2 + $0x350] sm:$0xff]  ;;  %v460_v1 = vmax.f32 %v2140_v50, %v2120_v40  ;;  %v760_v40 = vld [vmem:[%s2609_s2 + $0x348] sm:$0xff] }
  0x95   :  { %908 = vmatpush.msrb.mxu2 %v761_v54  ;;  %v739_v54 = vld [vmem:[%s2609_s2 + $0x2a0] sm:$0xff] }
  0x97   :  { %909 = vmatpush.msrb.mxu2 %v760_v40  ;;  %v737_v40 = vld [vmem:[%s2609_s2 + $0x290] sm:$0xff] }
  0x99   :  { %910 = vmatpush.msrb.mxu2 %v759_v30 }
  0x9b   :  { %v2238_v47 = vpop.permute.xlu0 %386 }
  0x9c   :  { %v413_v34 = vmax.f32 %v2238_v47, %v2057_v7  ;;  %v414_v35 = vmax.f32 %v2238_v47, %v2067_v15  ;;  %v415_v52 = vmax.f32 %v2238_v47, %v2104_v33  ;;  %v416_v53 = vmax.f32 %v2238_v47, %v2118_v39  ;;  %v777_v33 = vld [vmem:[%s2609_s2 + $0x3d0] sm:$0xff] }
  0x9d   :  { %v417_v56 = vmax.f32 %v2238_v47, %v2158_v58  ;;  %v382_v7 = vmax.f32 %v2116_v38, %v2183_v9  ;;  %v418_v15 = vmax.f32 %v2238_v47, %v2186_v11  ;;  %v2276_v39 = vperm.slane %v440_v27, 2  ;;  %928 = vmatpush.msrb.mxu3 %v777_v33 }
  0x9e   :  { %v2265_v55 = vpop.permute.xlu1 %474  ;;  %v421_v57 = vmul.f32 %v413_v34, %v377_v28  ;;  %v422_v60 = vmul.f32 %v414_v35, %v378_v20  ;;  %v423_v63 = vmul.f32 %v415_v52, %v379_v43  ;;  %v424_v0 = vmul.f32 %v416_v53, %v380_v22  ;;  %v723_v53 = vld [vmem:[%s2609_s2 + $0x220] sm:$0xff] }
  0x9f   :  { %v501_v59 = vmax.f32 %v2265_v55, %v2079_v21  ;;  %v502_v58 = vmax.f32 %v2265_v55, %v2090_v26  ;;  %v741_v21 = vld [vmem:[%s2609_s2 + $0x2b0] sm:$0xff]  ;;  %v461_v26 = vmax.f32 %v2140_v50, %v2179_v5  ;;  %v462_v9 = vmax.f32 %v2140_v50, %v2188_v12  ;;  %v776_v5 = vld [vmem:[%s2609_s2 + $0x3c8] sm:$0xff] }
  0xa0   :  { %v465_v3 = vmul.f32 %v457_v29, %v421_v57  ;;  %v466_v4 = vmul.f32 %v458_v42, %v422_v60  ;;  %v503_v31 = vmax.f32 %v2265_v55, %v2132_v45  ;;  %v425_v10 = vmul.f32 %v417_v56, %v381_v32  ;;  %892 = vmatpush.msrb.mxu1 %v741_v21  ;;  %v724_v45 = vld [vmem:[%s2609_s2 + $0x228] sm:$0xff]  ;;  %v758_v56 = vld [vmem:[%s2609_s2 + $0x338] sm:$0xff] }
  0xa1   :  { %v383_v11 = vmax.f32 %v2116_v38, %v2205_v24  ;;  %v419_v13 = vmax.f32 %v2238_v47, %v2207_v25  ;;  %v467_v17 = vmul.f32 %v459_v14, %v423_v63  ;;  %v426_v18 = vmul.f32 %v418_v15, %v382_v7  ;;  %929 = vmatpush.msrb.mxu3 %v776_v5 }
  0xa2   :  { %v2307_v12 = vmul.f32 %v501_v59, %v465_v3  ;;  %v2309_v16 = vmul.f32 %v502_v58, %v466_v4  ;;  %v468_v25 = vmul.f32 %v460_v1, %v424_v0  ;;  %v504_v27 = vmax.f32 %v2265_v55, %v2163_v62  ;;  %873 = vmatpush.msrb.mxu0 %v724_v45  ;;  %v774_v59 = vld [vmem:[%s2609_s2 + $0x3b8] sm:$0xff]  ;;  %v772_v45 = vld [vmem:[%s2609_s2 + $0x3a8] sm:$0xff] }
  0xa3   :  { %v463_v28 = vmax.f32 %v2140_v50, %v2223_v41  ;;  %v384_v29 = vmax.f32 %v2116_v38, %v2236_v46  ;;  %v505_v62 = vmax.f32 %v2265_v55, %v2181_v8  ;;  %v506_v41 = vmax.f32 %v2265_v55, %v2200_v19  ;;  %893 = vmatpush.msrb.mxu1 %v740_v23  ;;  %v722_v0 = vld [vmem:[%s2609_s2 + $0x218] sm:$0xff]  ;;  %v720_v23 = vld [vmem:[%s2609_s2 + $0x208] sm:$0xff]  ;;  %v719_v46 = vld [vmem:[%s2609_s2 + $0x200] sm:$0xff] }
  0xa4   :  { %v464_v42 = vmax.f32 %v2140_v50, %v2276_v39  ;;  %v469_v44 = vmul.f32 %v461_v26, %v425_v10  ;;  %v427_v14 = vmul.f32 %v419_v13, %v383_v11  ;;  %v2343_v22 = vperm.slane %v484_v2, 3  ;;  %930 = vmatpush.msrb.mxu3 %v775_v36  ;;  %874 = vmatpush.msrb.mxu0 %v723_v53  ;;  %v773_v26 = vld [vmem:[%s2609_s2 + $0x3b0] sm:$0xff]  ;;  %v768_v39 = vld [vmem:[%s2609_s2 + $0x388] sm:$0xff] }
  0xa5   :  { %v2317_v24 = vpop.f32.mrf.mxu0  ;;  %v2333_v20 = vpop.f32.mrf.mxu1  ;;  %v2346_v8 = vmul.f32 %v503_v31, %v467_v17  ;;  %v470_v49 = vmul.f32 %v462_v9, %v426_v18  ;;  %v2349_v52 = vmul.f32 %v504_v27, %v468_v25  ;;  %v507_v33 = vmax.f32 %v2265_v55, %v2225_v6  ;;  %894 = vmatpush.msrb.mxu1 %v739_v54  ;;  %v721_v9 = vld [vmem:[%s2609_s2 + $0x210] sm:$0xff]  ;;  %v756_v18 = vld [vmem:[%s2609_s2 + $0x328] sm:$0xff] }
  0xa6   :  { %v517_v37 = vmul.f32 %v2307_v12, %v2317_v24  ;;  %v518_v43 = vmul.f32 %v2309_v16, %v2333_v20  ;;  %v420_v57 = vmax.f32 %v2238_v47, %v2252_v51  ;;  %v2369_v63 = vmul.f32 %v505_v62, %v469_v44  ;;  %911 = vmatpush.msrb.mxu2 %v758_v56  ;;  %v738_v47 = vld [vmem:[%s2609_s2 + $0x298] sm:$0xff]  ;;  %v757_v51 = vld [vmem:[%s2609_s2 + $0x330] sm:$0xff]  ;;  %v755_v62 = vld [vmem:[%s2609_s2 + $0x320] sm:$0xff] }
  0xa7   :  { %931 = vmatpush.msrb.mxu3 %v774_v59  ;;  %v2382_v3 = vmul.f32 %v506_v41, %v470_v49  ;;  %v471_v4 = vmul.f32 %v463_v28, %v427_v14  ;;  %875 = vmatpush.msrb.mxu0 %v722_v0  ;;  %v508_v17 = vmax.f32 %v2265_v55, %v2343_v22  ;;  %v771_v41 = vld [vmem:[%s2609_s2 + $0x3a0] sm:$0xff] }
  0xa8   :  { %v526_v32 = vsel %vm525_vm2, %v517_v37, 0.0  ;;  %v582_v48 = vmul.f32 %v517_v37, %v517_v37  ;;  %v533_v34 = vsel %vm525_vm2, %v518_v43, 0.0  ;;  %v583_v35 = vmul.f32 %v518_v43, %v518_v43  ;;  %895 = vmatpush.msrb.mxu1 %v738_v47  ;;  %912 = vmatpush.msrb.mxu2 %v757_v51  ;;  %v736_v37 = vld [vmem:[%s2609_s2 + $0x288] sm:$0xff] }
  0xa9   :  { %v527_v19 = vrot.slane %v526_v32, 4  ;;  %v534_v15 = vrot.slane %v533_v34, 4  ;;  %932 = vmatpush.msrb.mxu3 %v773_v26  ;;  %v428_v36 = vmul.f32 %v420_v57, %v384_v29  ;;  %876 = vmatpush.msrb.mxu0 %v721_v9  ;;  %v735_v29 = vld [vmem:[%s2609_s2 + $0x280] sm:$0xff]  ;;  %v752_v9 = vld [vmem:[%s2609_s2 + $0x308] sm:$0xff] }
  0xaa   :  { %v590_v7 = vsel %vm525_vm2, %v582_v48, 0.0  ;;  %v597_v61 = vsel %vm525_vm2, %v583_v35, 0.0  ;;  %896 = vmatpush.msrb.mxu1 %v737_v40  ;;  %913 = vmatpush.msrb.mxu2 %v756_v18  ;;  %v770_v35 = vld [vmem:[%s2609_s2 + $0x398] sm:$0xff] }
  0xab   :  { %v528_v60 = vadd.f32 %v527_v19, %v526_v32  ;;  %v591_v58 = vrot.slane %v590_v7, 4  ;;  %v535_v1 = vadd.f32 %v534_v15, %v533_v34  ;;  %v598_v2 = vrot.slane %v597_v61, 4  ;;  %933 = vmatpush.msrb.mxu3 %v772_v45  ;;  %877 = vmatpush.msrb.mxu0 %v720_v23  ;;  %v754_v34 = vld [vmem:[%s2609_s2 + $0x318] sm:$0xff] }
  0xac   :  { %v2380_v21 = vpop.f32.mrf.mxu2  ;;  %897 = vmatpush.msrb.mxu1 %v736_v37  ;;  %914 = vmatpush.msrb.mxu2 %v755_v62  ;;  %v767_v62 = vld [vmem:[%s2609_s2 + $0x380] sm:$0xff] }
  0xad   :  { %v529_v31 = vrot.slane %v528_v60, 2  ;;  %v592_v10 = vadd.f32 %v591_v58, %v590_v7  ;;  %v519_v11 = vmul.f32 %v2346_v8, %v2380_v21  ;;  %v2395_v13 = vpop.f32.mrf.mxu3  ;;  %v246_v5 = vpop.f32.mrf.mxu0  ;;  %v536_v25 = vrot.slane %v535_v1, 2  ;;  %934 = vmatpush.msrb.mxu3 %v771_v41  ;;  %878 = vmatpush.msrb.mxu0 %v719_v46  ;;  %v753_v58 = vld [vmem:[%s2609_s2 + $0x310] sm:$0xff] }
  0xae   :  { %v599_v27 = vadd.f32 %v598_v2, %v597_v61  ;;  %v520_v28 = vmul.f32 %v2349_v52, %v2395_v13  ;;  %v259_v30 = vpop.f32.mrf.mxu1  ;;  %898 = vmatpush.msrb.mxu1 %v735_v29  ;;  %v769_v61 = vld [vmem:[%s2609_s2 + $0x390] sm:$0xff]  ;;  %915 = vmatpush.msrb.mxu2 %v754_v34 }
  0xaf   :  { %v530_v43 = vadd.f32 %v529_v31, %v528_v60  ;;  %v593_v44 = vrot.slane %v592_v10, 2  ;;  %v540_v14 = vsel %vm525_vm2, %v519_v11, 0.0  ;;  %v584_v38 = vmul.f32 %v519_v11, %v519_v11  ;;  %935 = vmatpush.msrb.mxu3 %v770_v35 }
  0xb0   :  { %v537_v32 = vadd.f32 %v536_v25, %v535_v1  ;;  %v600_v48 = vrot.slane %v599_v27, 2  ;;  %v541_v49 = vrot.slane %v540_v14, 4  ;;  %v547_v19 = vsel %vm525_vm2, %v520_v28, 0.0  ;;  %916 = vmatpush.msrb.mxu2 %v753_v58 }
  0xb1   :  { %v531_v53 = vrot.slane %v530_v43, 1  ;;  %v594_v54 = vadd.f32 %v593_v44, %v592_v10  ;;  %v604_v56 = vsel %vm525_vm2, %v584_v38, 0.0  ;;  %v548_v7 = vrot.slane %v547_v19, 4  ;;  %936 = vmatpush.msrb.mxu3 %v769_v61 }
  0xb2   :  { %v601_v15 = vadd.f32 %v600_v48, %v599_v27  ;;  %v542_v57 = vadd.f32 %v541_v49, %v540_v14  ;;  %v605_v59 = vrot.slane %v604_v56, 4  ;;  %v2440_v60 = vmul.f32 %v507_v33, %v471_v4  ;;  %v751_v27 = vld [vmem:[%s2609_s2 + $0x300] sm:$0xff]  ;;  %917 = vmatpush.msrb.mxu2 %v752_v9 }
  0xb3   :  { %v549_v0 = vadd.f32 %v548_v7, %v547_v19  ;;  %v585_v47 = vmul.f32 %v520_v28, %v520_v28  ;;  %v595_v51 = vrot.slane %v594_v54, 1  ;;  %v472_v1 = vmul.f32 %v464_v42, %v428_v36  ;;  %937 = vmatpush.msrb.mxu3 %v768_v39 }
  0xb4   :  { %v538_v6 = vrot.slane %v537_v32, 1  ;;  %v543_v33 = vrot.slane %v542_v57, 2  ;;  %v606_v2 = vadd.f32 %v605_v59, %v604_v56  ;;  %v272_v4 = vpop.f32.mrf.mxu2  ;;  %v602_v26 = vrot.slane %v601_v15, 1  ;;  %918 = vmatpush.msrb.mxu2 %v751_v27 }
  0xb5   :  { %v550_v40 = vrot.slane %v549_v0, 2  ;;  %v611_v31 = vsel %vm525_vm2, %v585_v47, 0.0  ;;  %v285_v10 = vpop.f32.mrf.mxu3  ;;  %v532_v5 = vadd.f32 %v531_v53, %v530_v43  ;;  %v596_v50 = vadd.f32 %v595_v51, %v594_v54  ;;  %938 = vmatpush.msrb.mxu3 %v767_v62 }
  0xb6   :  { %v2455_v11 = vpop.f32.mrf.mxu0  ;;  %v544_v42 = vadd.f32 %v543_v33, %v542_v57  ;;  %v607_v18 = vrot.slane %v606_v2, 2  ;;  %v612_v45 = vrot.slane %v611_v31, 4  ;;  %v2462_v25 = vpop.f32.mrf.mxu1  ;;  %v603_v37 = vadd.f32 %v602_v26, %v601_v15 }
  0xb7   :  { %v521_v23 = vmul.f32 %v2369_v63, %v2455_v11  ;;  %v2467_v28 = vadd.f32 %v550_v40, %v549_v0  ;;  %v522_v30 = vmul.f32 %v2382_v3, %v2462_v25  ;;  %v647_v36 = vsel %vm646_vm3, %v532_v5, %v596_v50 }
  0xb8   :  { %v608_v41 = vadd.f32 %v607_v18, %v606_v2  ;;  %v613_v43 = vadd.f32 %v612_v45, %v611_v31  ;;  %799 = vmatmul.f32.vlgmr.msra.gmra.mxu0 %v647_v36  ;;  %v539_v14 = vadd.f32 %v538_v6, %v537_v32  ;;  %v545_v38 = vrot.slane %v544_v42, 1 }
  0xb9   :  { %v554_v44 = vsel %vm525_vm2, %v521_v23, 0.0  ;;  %v586_v29 = vmul.f32 %v521_v23, %v521_v23  ;;  %v561_v48 = vsel %vm525_vm2, %v522_v30, 0.0  ;;  %v587_v19 = vmul.f32 %v522_v30, %v522_v30 }
  0xba   :  { %v555_v46 = vrot.slane %v554_v44, 4  ;;  %v562_v49 = vrot.slane %v561_v48, 4  ;;  %v648_v34 = vsel %vm646_vm3, %v539_v14, %v603_v37  ;;  %v2481_v35 = vmul.f32 %v508_v17, %v472_v1 }
  0xbb   :  { %v552_v53 = vrot.slane %v2467_v28, 1  ;;  %v618_v54 = vsel %vm525_vm2, %v586_v29, 0.0  ;;  %819 = vmatmul.f32.vlgmr.msra.gmra.mxu1 %v648_v34  ;;  %v609_v56 = vrot.slane %v608_v41, 1  ;;  %v614_v7 = vrot.slane %v613_v43, 2 }
  0xbc   :  { %v556_v32 = vadd.f32 %v555_v46, %v554_v44  ;;  %v619_v15 = vrot.slane %v618_v54, 4  ;;  %v563_v57 = vadd.f32 %v562_v49, %v561_v48  ;;  %v625_v59 = vsel %vm525_vm2, %v587_v19, 0.0 }
  0xbd   :  { %v2486_v58 = vpop.f32.mrf.mxu2  ;;  %v626_v0 = vrot.slane %v625_v59, 4  ;;  %v546_v47 = vadd.f32 %v545_v38, %v544_v42  ;;  %v610_v33 = vadd.f32 %v609_v56, %v608_v41  ;;  %v615_v31 = vadd.f32 %v614_v7, %v613_v43 }
  0xbe   :  { %v557_v61 = vrot.slane %v556_v32, 2  ;;  %v523_v55 = vmul.f32 %v2440_v60, %v2486_v58  ;;  %v2490_v22 = vpop.f32.mrf.mxu3  ;;  %v298_v17 = vpop.f32.mrf.mxu0  ;;  %v620_v51 = vadd.f32 %v619_v15, %v618_v54  ;;  %v564_v1 = vrot.slane %v563_v57, 2 }
  0xbf   :  { %v524_v6 = vmul.f32 %v2481_v35, %v2490_v22  ;;  %v311_v2 = vpop.f32.mrf.mxu1  ;;  %v627_v26 = vadd.f32 %v626_v0, %v625_v59  ;;  %v649_v44 = vsel %vm646_vm3, %v546_v47, %v610_v33  ;;  %v553_v38 = vadd.f32 %v552_v53, %v2467_v28 }
  0xc0   :  { %v558_v4 = vadd.f32 %v557_v61, %v556_v32  ;;  %v568_v9 = vsel %vm525_vm2, %v523_v55, 0.0  ;;  %v588_v40 = vmul.f32 %v523_v55, %v523_v55  ;;  %v621_v10 = vrot.slane %v620_v51, 2  ;;  %839 = vmatmul.f32.vlgmr.msra.gmra.mxu2 %v649_v44  ;;  %v985_v44 = vld [vmem:[#allocation4 + $0x150] sm:$0xff] }
  0xc1   :  { %v569_v5 = vrot.slane %v568_v9, 4  ;;  %v575_v50 = vsel %vm525_vm2, %v524_v6, 0.0  ;;  %v565_v39 = vadd.f32 %v564_v1, %v563_v57  ;;  %v628_v18 = vrot.slane %v627_v26, 2 }
  0xc2   :  { %v632_v42 = vsel %vm525_vm2, %v588_v40, 0.0  ;;  %v576_v45 = vrot.slane %v575_v50, 4  ;;  %v559_v23 = vrot.slane %v558_v4, 1  ;;  %v622_v27 = vadd.f32 %v621_v10, %v620_v51 }
  0xc3   :  { %v570_v30 = vadd.f32 %v569_v5, %v568_v9  ;;  %v633_v36 = vrot.slane %v632_v42, 4  ;;  %v629_v37 = vadd.f32 %v628_v18, %v627_v26  ;;  %v589_v41 = vmul.f32 %v524_v6, %v524_v6 }
  0xc4   :  { %v577_v62 = vadd.f32 %v576_v45, %v575_v50  ;;  %v616_v46 = vrot.slane %v615_v31, 1  ;;  %v566_v48 = vrot.slane %v565_v39, 1  ;;  %v623_v32 = vrot.slane %v622_v27, 1  ;;  %v1001_v45 = vld [vmem:[#allocation4 + $0x1d0] sm:$0xff] }
  0xc5   :  { %v571_v14 = vrot.slane %v570_v30, 2  ;;  %v634_v43 = vadd.f32 %v633_v36, %v632_v42  ;;  %v324_v29 = vpop.f32.mrf.mxu2  ;;  %v639_v19 = vsel %vm525_vm2, %v589_v41, 0.0  ;;  %v560_v59 = vadd.f32 %v559_v23, %v558_v4  ;;  %v1000_v42 = vld [vmem:[#allocation4 + $0x1c8] sm:$0xff]  ;;  %v1002_v23 = vld [vmem:[#allocation4 + $0x1d8] sm:$0xff]  ;;  %1059 = vmatpush.msra.mxu2 %v1001_v45  ;;  %v993_v36 = vld [vmem:[#allocation4 + $0x190] sm:$0xff] }
  0xc6   :  { %v578_v49 = vrot.slane %v577_v62, 2  ;;  %v337_v34 = vpop.f32.mrf.mxu3  ;;  %v640_v7 = vrot.slane %v639_v19, 4  ;;  %v617_v15 = vadd.f32 %v616_v46, %v615_v31  ;;  %v624_v61 = vadd.f32 %v623_v32, %v622_v27  ;;  %1039 = vmatpush.msra.mxu1 %v1000_v42  ;;  %v991_v27 = vld [vmem:[#allocation4 + $0x180] sm:$0xff]  ;;  %v984_v41 = vld [vmem:[#allocation4 + $0x148] sm:$0xff]  ;;  %v977_v46 = vld [vmem:[#allocation4 + $0x110] sm:$0xff] }
  0xc7   :  { %v572_v54 = vadd.f32 %v571_v14, %v570_v30  ;;  %v635_v56 = vrot.slane %v634_v43, 2  ;;  %v630_v0 = vrot.slane %v629_v37, 1  ;;  %v567_v51 = vadd.f32 %v566_v48, %v565_v39  ;;  %v999_v39 = vld [vmem:[#allocation4 + $0x1c0] sm:$0xff]  ;;  %v992_v30 = vld [vmem:[#allocation4 + $0x188] sm:$0xff]  ;;  %1060 = vmatpush.msra.mxu2 %v993_v36  ;;  %v986_v14 = vld [vmem:[#allocation4 + $0x158] sm:$0xff] }
  0xc8   :  { %v579_v57 = vadd.f32 %v578_v49, %v577_v62  ;;  %v641_v47 = vadd.f32 %v640_v7, %v639_v19  ;;  %v650_v28 = vsel %vm646_vm3, %v553_v38, %v617_v15  ;;  %v651_v53 = vsel %vm646_vm3, %v560_v59, %v624_v61  ;;  %1019 = vmatpush.msra.mxu0 %v999_v39  ;;  %v983_v62 = vld [vmem:[#allocation4 + $0x140] sm:$0xff]  ;;  %v976_v38 = vld [vmem:[#allocation4 + $0x108] sm:$0xff]  ;;  %v978_v29 = vld [vmem:[#allocation4 + $0x118] sm:$0xff] }
  0xc9   :  { %v573_v55 = vrot.slane %v572_v54, 1  ;;  %v636_v17 = vadd.f32 %v635_v56, %v634_v43  ;;  %859 = vmatmul.f32.vlgmr.msra.gmra.mxu3 %v650_v28  ;;  %v631_v1 = vadd.f32 %v630_v0, %v629_v37  ;;  %879 = vmatmul.f32.vlgmr.msrb.gmra.mxu0 %v651_v53  ;;  %v994_v37 = vld [vmem:[#allocation4 + $0x198] sm:$0xff]  ;;  %v975_v43 = vld [vmem:[#allocation4 + $0x100] sm:$0xff]  ;;  %v968_v49 = vld [vmem:[#allocation4 + $0xc8] sm:$0xff] }
  0xca   :  { %v642_v6 = vrot.slane %v641_v47, 2  ;;  %v580_v26 = vrot.slane %v579_v57, 1  ;;  %1079 = vmatpush.msra.mxu3 %v1002_v23  ;;  %1020 = vmatpush.msra.mxu0 %v991_v27  ;;  %v967_v48 = vld [vmem:[#allocation4 + $0xc0] sm:$0xff]  ;;  %v969_v19 = vld [vmem:[#allocation4 + $0xd0] sm:$0xff]  ;;  %v970_v34 = vld [vmem:[#allocation4 + $0xd8] sm:$0xff] }
  0xcb   :  { %v637_v33 = vrot.slane %v636_v17, 1  ;;  %v652_v2 = vsel %vm646_vm3, %v567_v51, %v631_v1  ;;  %v574_v4 = vadd.f32 %v573_v55, %v572_v54  ;;  %1040 = vmatpush.msra.mxu1 %v992_v30  ;;  %1061 = vmatpush.msra.mxu2 %v985_v44  ;;  %v959_v32 = vld [vmem:[#allocation4 + $0x80] sm:$0xff]  ;;  %v960_v54 = vld [vmem:[#allocation4 + $0x88] sm:$0xff]  ;;  %v961_v56 = vld [vmem:[#allocation4 + $0x90] sm:$0xff] }
  0xcc   :  { %v643_v9 = vadd.f32 %v642_v6, %v641_v47  ;;  %899 = vmatmul.f32.vlgmr.msrb.gmra.mxu1 %v652_v2  ;;  %v581_v5 = vadd.f32 %v580_v26, %v579_v57  ;;  %1080 = vmatpush.msra.mxu3 %v994_v37  ;;  %v962_v7 = vld [vmem:[#allocation4 + $0x98] sm:$0xff]  ;;  %v951_v15 = vld [vmem:[#allocation4 + $0x40] sm:$0xff]  ;;  %v952_v57 = vld [vmem:[#allocation4 + $0x48] sm:$0xff] }
  0xcd   :  { %v638_v40 = vadd.f32 %v637_v33, %v636_v17  ;;  %1021 = vmatpush.msra.mxu0 %v983_v62  ;;  %1041 = vmatpush.msra.mxu1 %v984_v41  ;;  %v953_v59 = vld [vmem:[#allocation4 + $0x50] sm:$0xff]  ;;  %v954_v61 = vld [vmem:[#allocation4 + $0x58] sm:$0xff]  ;;  %v943_v0 = vld [vmem:[#allocation4] sm:$0xff] }
  0xce   :  { %v644_v10 = vrot.slane %v643_v9, 1  ;;  %1081 = vmatpush.msra.mxu3 %v986_v14  ;;  %1062 = vmatpush.msra.mxu2 %v977_v46  ;;  %v944_v55 = vld [vmem:[#allocation4 + $0x8] sm:$0xff]  ;;  %v945_v17 = vld [vmem:[#allocation4 + $0x10] sm:$0xff]  ;;  %v946_v47 = vld [vmem:[#allocation4 + $0x18] sm:$0xff] }
  0xcf   :  { %v653_v31 = vsel %vm646_vm3, %v574_v4, %v638_v40  ;;  %1022 = vmatpush.msra.mxu0 %v975_v43  ;;  %1042 = vmatpush.msra.mxu1 %v976_v38  ;;  %v1003_v28 = vld [vmem:[#allocation4 + $0x1e0] sm:$0xff]  ;;  %v1004_v53 = vld [vmem:[#allocation4 + $0x1e8] sm:$0xff]  ;;  %v1005_v51 = vld [vmem:[#allocation4 + $0x1f0] sm:$0xff] }
  0xd0   :  { %919 = vmatmul.f32.vlgmr.msrb.gmra.mxu2 %v653_v31  ;;  %v645_v50 = vadd.f32 %v644_v10, %v643_v9  ;;  %1082 = vmatpush.msra.mxu3 %v978_v29  ;;  %v1006_v1 = vld [vmem:[#allocation4 + $0x1f8] sm:$0xff]  ;;  %v995_v6 = vld [vmem:[#allocation4 + $0x1a0] sm:$0xff]  ;;  %v996_v33 = vld [vmem:[#allocation4 + $0x1a8] sm:$0xff] }
  0xd1   :  { %1023 = vmatpush.msra.mxu0 %v967_v48  ;;  %1043 = vmatpush.msra.mxu1 %v968_v49  ;;  %v997_v2 = vld [vmem:[#allocation4 + $0x1b0] sm:$0xff]  ;;  %v998_v26 = vld [vmem:[#allocation4 + $0x1b8] sm:$0xff]  ;;  %v987_v9 = vld [vmem:[#allocation4 + $0x160] sm:$0xff] }
  0xd2   :  { %v654_v18 = vsel %vm646_vm3, %v581_v5, %v645_v50  ;;  %1063 = vmatpush.msra.mxu2 %v969_v19  ;;  %1083 = vmatpush.msra.mxu3 %v970_v34  ;;  %v988_v4 = vld [vmem:[#allocation4 + $0x168] sm:$0xff]  ;;  %v989_v40 = vld [vmem:[#allocation4 + $0x170] sm:$0xff]  ;;  %v990_v31 = vld [vmem:[#allocation4 + $0x178] sm:$0xff] }
  0xd3   :  { %939 = vmatmul.f32.vlgmr.msrb.gmra.mxu3 %v654_v18  ;;  %1024 = vmatpush.msra.mxu0 %v959_v32  ;;  %v979_v10 = vld [vmem:[#allocation4 + $0x120] sm:$0xff]  ;;  %v980_v5 = vld [vmem:[#allocation4 + $0x128] sm:$0xff]  ;;  %v981_v50 = vld [vmem:[#allocation4 + $0x130] sm:$0xff] }
  0xd4   :  { %1044 = vmatpush.msra.mxu1 %v960_v54  ;;  %1064 = vmatpush.msra.mxu2 %v961_v56  ;;  %v982_v18 = vld [vmem:[#allocation4 + $0x138] sm:$0xff]  ;;  %v971_v39 = vld [vmem:[#allocation4 + $0xe0] sm:$0xff]  ;;  %v972_v42 = vld [vmem:[#allocation4 + $0xe8] sm:$0xff] }
  0xd5   :  { %1084 = vmatpush.msra.mxu3 %v962_v7  ;;  %1025 = vmatpush.msra.mxu0 %v951_v15  ;;  %v973_v45 = vld [vmem:[#allocation4 + $0xf0] sm:$0xff]  ;;  %v974_v23 = vld [vmem:[#allocation4 + $0xf8] sm:$0xff]  ;;  %v963_v27 = vld [vmem:[#allocation4 + $0xa0] sm:$0xff] }
  0xd6   :  { %1045 = vmatpush.msra.mxu1 %v952_v57  ;;  %1065 = vmatpush.msra.mxu2 %v953_v59  ;;  %v964_v30 = vld [vmem:[#allocation4 + $0xa8] sm:$0xff]  ;;  %v965_v36 = vld [vmem:[#allocation4 + $0xb0] sm:$0xff]  ;;  %v966_v37 = vld [vmem:[#allocation4 + $0xb8] sm:$0xff] }
  0xd7   :  { %1085 = vmatpush.msra.mxu3 %v954_v61  ;;  %1026 = vmatpush.msra.mxu0 %v943_v0  ;;  %v955_v44 = vld [vmem:[#allocation4 + $0x60] sm:$0xff]  ;;  %v956_v14 = vld [vmem:[#allocation4 + $0x68] sm:$0xff]  ;;  %v957_v43 = vld [vmem:[#allocation4 + $0x70] sm:$0xff] }
  0xd8   :  { %1046 = vmatpush.msra.mxu1 %v944_v55  ;;  %1066 = vmatpush.msra.mxu2 %v945_v17  ;;  %v958_v38 = vld [vmem:[#allocation4 + $0x78] sm:$0xff]  ;;  %v947_v46 = vld [vmem:[#allocation4 + $0x20] sm:$0xff]  ;;  %v948_v29 = vld [vmem:[#allocation4 + $0x28] sm:$0xff] }
  0xd9   :  { %1086 = vmatpush.msra.mxu3 %v946_v47  ;;  %1099 = vmatpush.msrb.mxu0 %v1003_v28  ;;  %v949_v19 = vld [vmem:[#allocation4 + $0x30] sm:$0xff]  ;;  %v950_v34 = vld [vmem:[#allocation4 + $0x38] sm:$0xff] }
  0xda   :  { %1119 = vmatpush.msrb.mxu1 %v1004_v53  ;;  %1139 = vmatpush.msrb.mxu2 %v1005_v51 }
  0xdb   :  { %1159 = vmatpush.msrb.mxu3 %v1006_v1  ;;  %1100 = vmatpush.msrb.mxu0 %v995_v6 }
  0xdc   :  { %1120 = vmatpush.msrb.mxu1 %v996_v33  ;;  %1140 = vmatpush.msrb.mxu2 %v997_v2 }
  0xdd   :  { %1160 = vmatpush.msrb.mxu3 %v998_v26  ;;  %1101 = vmatpush.msrb.mxu0 %v987_v9 }
  0xde   :  { %1121 = vmatpush.msrb.mxu1 %v988_v4  ;;  %1141 = vmatpush.msrb.mxu2 %v989_v40 }
  0xdf   :  { %1161 = vmatpush.msrb.mxu3 %v990_v31  ;;  %1102 = vmatpush.msrb.mxu0 %v979_v10 }
  0xe0   :  { %1122 = vmatpush.msrb.mxu1 %v980_v5  ;;  %1142 = vmatpush.msrb.mxu2 %v981_v50 }
  0xe1   :  { %1162 = vmatpush.msrb.mxu3 %v982_v18  ;;  %1103 = vmatpush.msrb.mxu0 %v971_v39 }
  0xe2   :  { %1123 = vmatpush.msrb.mxu1 %v972_v42  ;;  %1143 = vmatpush.msrb.mxu2 %v973_v45 }
  0xe3   :  { %1163 = vmatpush.msrb.mxu3 %v974_v23  ;;  %1104 = vmatpush.msrb.mxu0 %v963_v27 }
  0xe4   :  { %1124 = vmatpush.msrb.mxu1 %v964_v30  ;;  %1144 = vmatpush.msrb.mxu2 %v965_v36 }
  0xe5   :  { %1164 = vmatpush.msrb.mxu3 %v966_v37  ;;  %1105 = vmatpush.msrb.mxu0 %v955_v44 }
  0xe6   :  { %1125 = vmatpush.msrb.mxu1 %v956_v14  ;;  %1145 = vmatpush.msrb.mxu2 %v957_v43 }
  0xe7   :  { %1165 = vmatpush.msrb.mxu3 %v958_v38  ;;  %1106 = vmatpush.msrb.mxu0 %v947_v46 }
  0xe8   :  { %1126 = vmatpush.msrb.mxu1 %v948_v29  ;;  %1146 = vmatpush.msrb.mxu2 %v949_v19 }
  0xe9   :  { %1166 = vmatpush.msrb.mxu3 %v950_v34 }
 0x135   :  { %v800_v62 = vpop.f32.mrf.mxu0 }
 0x138   :  { %v820_v41 = vpop.f32.mrf.mxu1 }
 0x139   :  { %v821_v48 = vadd.f32 %v820_v41, %v800_v62 }
 0x143   :  { %v840_v49 = vpop.f32.mrf.mxu2 }
 0x144   :  { %v841_v32 = vadd.f32 %v840_v49, %v821_v48 }
 0x146   :  { %v880_v56 = vpop.f32.mrf.mxu0 }
 0x149   :  { %v900_v57 = vpop.f32.mrf.mxu1 }
 0x14c   :  { %v860_v54 = vpop.f32.mrf.mxu3 }
 0x14d   :  { %v861_v7 = vadd.f32 %v860_v54, %v841_v32 }
 0x14f   :  { %v881_v15 = vadd.f32 %v880_v56, %v861_v7 }
 0x151   :  { %v901_v59 = vadd.f32 %v900_v57, %v881_v15 }
 0x153   :  { %v920_v61 = vpop.f32.mrf.mxu2 }
 0x154   :  { %v921_v0 = vadd.f32 %v920_v61, %v901_v59 }
 0x156   :  { %v940_v55 = vpop.f32.mrf.mxu3 }
 0x157   :  { %v941_v17 = vadd.f32 %v940_v55, %v921_v0 }
 0x159   :  { %1544 = vmatmul.msk.f32.vlgmr.msra.gmra.mxu0 %vm1007_vm4, %v941_v17  ;;  %1545 = vmatmul.msk.f32.vlgmr.msra.gmra.mxu1 %vm1007_vm4, %v941_v17 }
 0x15a   :  { %1546 = vmatmul.msk.f32.vlgmr.msra.gmra.mxu2 %vm1007_vm4, %v941_v17  ;;  %1547 = vmatmul.msk.f32.vlgmr.msra.gmra.mxu3 %vm1007_vm4, %v941_v17 }
 0x161   :  { %1548 = vmatmul.msk.f32.vlgmr.msrb.gmra.mxu0 %vm1007_vm4, %v941_v17  ;;  %1549 = vmatmul.msk.f32.vlgmr.msrb.gmra.mxu1 %vm1007_vm4, %v941_v17 }
 0x162   :  { %1550 = vmatmul.msk.f32.vlgmr.msrb.gmra.mxu2 %vm1007_vm4, %v941_v17  ;;  %1551 = vmatmul.msk.f32.vlgmr.msrb.gmra.mxu3 %vm1007_vm4, %v941_v17 }
 0x1d6   :  { %v1028_v47 = vpop.f32.mrf.mxu0  ;;  %v1048_v28 = vpop.f32.mrf.mxu1 }
 0x1d7   :  { %v2505_v53 = vmul.f32 0.03125, %v1028_v47  ;;  %v2507_v51 = vmul.f32 0.03125, %v1048_v28 }
 0x1d9   :  { %v1179_v1 = vmul.f32 %v2505_v53, %v2505_v53  ;;  %v1180_v6 = vmul.f32 %v2507_v51, %v2507_v51 }
 0x1db   :  { %v1195_v33 = vrot.slane %v1179_v1, 7  ;;  %v1196_v2 = vrot.slane %v1180_v6, 7 }
 0x1dd   :  { %v1211_v26 = vsub.f32 %v2505_v53, %v1195_v33  ;;  %v1212_v9 = vsub.f32 %v2507_v51, %v1196_v2  ;;  %v1068_v4 = vpop.f32.mrf.mxu2  ;;  %v1088_v40 = vpop.f32.mrf.mxu3 }
 0x1de   :  { %v2515_v31 = vmul.f32 0.03125, %v1068_v4  ;;  %v2517_v10 = vmul.f32 0.03125, %v1088_v40  ;;  %v1108_v5 = vpop.f32.mrf.mxu0  ;;  %v1128_v50 = vpop.f32.mrf.mxu1 }
 0x1df   :  { %v1220_v18 = vadd.f32 1e-05, %v1211_v26  ;;  %v1221_v39 = vadd.f32 1e-05, %v1212_v9  ;;  %v2519_v42 = vmul.f32 0.03125, %v1108_v5  ;;  %v2521_v45 = vmul.f32 0.03125, %v1128_v50 }
 0x1e0   :  { %v1181_v23 = vmul.f32 %v2515_v31, %v2515_v31  ;;  %v1182_v27 = vmul.f32 %v2517_v10, %v2517_v10 }
 0x1e1   :  { %1587 = vrsqrt.f32 %v1220_v18  ;;  %v1183_v30 = vmul.f32 %v2519_v42, %v2519_v42  ;;  %v1184_v62 = vmul.f32 %v2521_v45, %v2521_v45  ;;  %vm1234_vm7 = vweird.f32 %v1220_v18 }
 0x1e2   :  { %1589 = vrsqrt.f32 %v1221_v39  ;;  %v1197_v36 = vrot.slane %v1181_v23, 7  ;;  %v1198_v37 = vrot.slane %v1182_v27, 7  ;;  %vm1244_vm9 = vweird.f32 %v1221_v39 }
 0x1e3   :  { %v1199_v41 = vrot.slane %v1183_v30, 7  ;;  %v1200_v43 = vrot.slane %v1184_v62, 7 }
 0x1e4   :  { %v1213_v44 = vsub.f32 %v2515_v31, %v1197_v36  ;;  %v1214_v14 = vsub.f32 %v2517_v10, %v1198_v37 }
 0x1e5   :  { %v1215_v38 = vsub.f32 %v2519_v42, %v1199_v41  ;;  %v1148_v46 = vpop.f32.mrf.mxu2  ;;  %v1168_v29 = vpop.f32.mrf.mxu3  ;;  %v1216_v19 = vsub.f32 %v2521_v45, %v1200_v43 }
 0x1e6   :  { %v2534_v48 = vadd.f32 1e-05, %v1213_v44  ;;  %v2536_v49 = vadd.f32 1e-05, %v1214_v14  ;;  %v2541_v54 = vmul.f32 0.03125, %v1148_v46  ;;  %v2543_v56 = vmul.f32 0.03125, %v1168_v29 }
 0x1e7   :  { %v1588_v34 = vpop.eup %1587  ;;  %v2539_v32 = vadd.f32 1e-05, %v1215_v38  ;;  %v2548_v61 = vadd.f32 1e-05, %v1216_v19 }
 0x1e8   :  { %v1590_v7 = vpop.eup %1589  ;;  %v1229_v15 = vmul.f32 %v1588_v34, %v1220_v18  ;;  %1591 = vrsqrt.f32 %v2534_v48  ;;  %v1185_v55 = vmul.f32 %v2541_v54, %v2541_v54  ;;  %v1186_v17 = vmul.f32 %v2543_v56, %v2543_v56 }
 0x1e9   :  { %v1239_v57 = vmul.f32 %v1590_v7, %v1221_v39  ;;  %1593 = vrsqrt.f32 %v2536_v49  ;;  %vm1235_vm5 = vweird.f32 %v1588_v34  ;;  %vm1245_vm6 = vweird.f32 %v1590_v7 }
 0x1ea   :  { %v1230_v59 = vmul.f32 %v1588_v34, %v1229_v15  ;;  %1595 = vrsqrt.f32 %v2539_v32  ;;  %v1201_v1 = vrot.slane %v1185_v55, 7  ;;  %v1202_v6 = vrot.slane %v1186_v17, 7  ;;  %vm1236_vm8 = vmor %vm1234_vm7, %vm1235_vm5 }
 0x1eb   :  { %v1240_v0 = vmul.f32 %v1590_v7, %v1239_v57  ;;  %1597 = vrsqrt.f32 %v2548_v61  ;;  %vm1246_vm10 = vmor %vm1244_vm9, %vm1245_vm6  ;;  %vm1254_vm12 = vweird.f32 %v2534_v48  ;;  %vm1264_vm0 = vweird.f32 %v2536_v49 }
 0x1ec   :  { %v1231_v47 = vmul.f32 0.5, %v1230_v59  ;;  %v1217_v40 = vsub.f32 %v2541_v54, %v1201_v1  ;;  %v1218_v27 = vsub.f32 %v2543_v56, %v1202_v6  ;;  %vm1274_vm1 = vweird.f32 %v2539_v32 }
 0x1ed   :  { %v1241_v28 = vmul.f32 0.5, %v1240_v0  ;;  %vm1284_vm7 = vweird.f32 %v2548_v61 }
 0x1ee   :  { %v1592_v33 = vpop.eup %1591  ;;  %v1232_v2 = vsub.f32 1.5, %v1231_v47  ;;  %v1226_v14 = vadd.f32 1e-05, %v1217_v40  ;;  %v1227_v43 = vadd.f32 1e-05, %v1218_v27 }
 0x1ef   :  { %v1594_v26 = vpop.eup %1593  ;;  %v1242_v9 = vsub.f32 1.5, %v1241_v28  ;;  %v1249_v4 = vmul.f32 %v1592_v33, %v2534_v48  ;;  %vm1255_vm11 = vweird.f32 %v1592_v33 }
 0x1f0   :  { %v1596_v5 = vpop.eup %1595  ;;  %v1233_v50 = vmul.f32 %v1588_v34, %v1232_v2  ;;  %v1259_v23 = vmul.f32 %v1594_v26, %v2536_v49  ;;  %1599 = vrsqrt.f32 %v1226_v14  ;;  %vm1265_vm13 = vweird.f32 %v1594_v26  ;;  %vm1256_vm15 = vmor %vm1254_vm12, %vm1255_vm11 }
 0x1f1   :  { %v1243_v30 = vmul.f32 %v1590_v7, %v1242_v9  ;;  %v1250_v36 = vmul.f32 %v1592_v33, %v1249_v4  ;;  %v1269_v37 = vmul.f32 %v1596_v5, %v2539_v32  ;;  %v1598_v62 = vpop.eup %1597  ;;  %1601 = vrsqrt.f32 %v1227_v43  ;;  %vm1266_vm4 = vmor %vm1264_vm0, %vm1265_vm13 }
 0x1f2   :  { %v1237_v41 = vsel %vm1236_vm8, %v1588_v34, %v1233_v50  ;;  %v1260_v44 = vmul.f32 %v1594_v26, %v1259_v23  ;;  %v1279_v29 = vmul.f32 %v1598_v62, %v2548_v61  ;;  %vm1275_vm14 = vweird.f32 %v1596_v5 }
 0x1f3   :  { %1316 = vst [vmem:[#allocation1] sm:$0xff] %v1237_v41  ;;  %v1247_v38 = vsel %vm1246_vm10, %v1590_v7, %v1243_v30  ;;  %v1251_v18 = vmul.f32 0.5, %v1250_v36  ;;  %v1270_v46 = vmul.f32 %v1596_v5, %v1269_v37  ;;  %vm1285_vm5 = vweird.f32 %v1598_v62  ;;  %vm1276_vm6 = vmor %vm1274_vm1, %vm1275_vm14  ;;  %v1219_v37 = vld [vmem:[#allocation6] sm:$0xff] }
 0x1f4   :  { %1317 = vst [vmem:[#allocation1 + $0x9] sm:$0xff] %v1247_v38  ;;  %v1261_v19 = vmul.f32 0.5, %v1260_v44  ;;  %v1280_v57 = vmul.f32 %v1598_v62, %v1279_v29  ;;  %vm1286_vm8 = vmor %vm1284_vm7, %vm1285_vm5  ;;  %vm1294_vm11 = vweird.f32 %v1226_v14  ;;  %vm1304_vm13 = vweird.f32 %v1227_v43 }
 0x1f5   :  { %v1252_v39 = vsub.f32 1.5, %v1251_v18  ;;  %v1271_v15 = vmul.f32 0.5, %v1270_v46  ;;  %vm1373_vm0 = vcmask 1044484   ;;  %vm1375_vm1 = vcmask 1046534  }
 0x1f6   :  { %v1262_v34 = vsub.f32 1.5, %v1261_v19  ;;  %v1281_v7 = vmul.f32 0.5, %v1280_v57  ;;  %v1600_v1 = vpop.eup %1599  ;;  %vm1379_vm5 = vcmask 1043456  }
 0x1f7   :  { %v1253_v59 = vmul.f32 %v1592_v33, %v1252_v39  ;;  %v1272_v0 = vsub.f32 1.5, %v1271_v15  ;;  %v1602_v6 = vpop.eup %1601  ;;  %v1289_v4 = vmul.f32 %v1600_v1, %v1226_v14  ;;  %vm1295_vm9 = vweird.f32 %v1600_v1 }
 0x1f8   :  { %v1263_v55 = vmul.f32 %v1594_v26, %v1262_v34  ;;  %v1282_v28 = vsub.f32 1.5, %v1281_v7  ;;  %v1299_v49 = vmul.f32 %v1602_v6, %v1227_v43  ;;  %vm1305_vm10 = vweird.f32 %v1602_v6  ;;  %vm1296_vm12 = vmor %vm1294_vm11, %vm1295_vm9 }
 0x1f9   :  { %v1257_v17 = vsel %vm1256_vm15, %v1592_v33, %v1253_v59  ;;  %v1273_v47 = vmul.f32 %v1596_v5, %v1272_v0  ;;  %v1290_v33 = vmul.f32 %v1600_v1, %v1289_v4  ;;  %vm1306_vm14 = vmor %vm1304_vm13, %vm1305_vm10  ;;  %vm1370_vm15 = vcmask 1042434  }
 0x1fa   :  { %1318 = vst [vmem:[#allocation1 + $0x12] sm:$0xff] %v1257_v17  ;;  %v1267_v48 = vsel %vm1266_vm4, %v1594_v26, %v1263_v55  ;;  %v1283_v9 = vmul.f32 %v1598_v62, %v1282_v28  ;;  %v1300_v40 = vmul.f32 %v1602_v6, %v1299_v49  ;;  %vm1377_vm4 = vcmask 1045508  }
 0x1fb   :  { %1319 = vst [vmem:[#allocation1 + $0x1b] sm:$0xff] %v1267_v48  ;;  %v1277_v2 = vsel %vm1276_vm6, %v1596_v5, %v1273_v47  ;;  %v1291_v50 = vmul.f32 0.5, %v1290_v33 }
 0x1fc   :  { %1320 = vst [vmem:[#allocation1 + $0x24] sm:$0xff] %v1277_v2  ;;  %v1287_v32 = vsel %vm1286_vm8, %v1598_v62, %v1283_v9  ;;  %v1301_v23 = vmul.f32 0.5, %v1300_v40 }
 0x1fd   :  { %1321 = vst [vmem:[#allocation1 + $0x2d] sm:$0xff] %v1287_v32  ;;  %v1292_v27 = vsub.f32 1.5, %v1291_v50 }
 0x1fe   :  { %v1302_v26 = vsub.f32 1.5, %v1301_v23 }
 0x1ff   :  { %v1293_v30 = vmul.f32 %v1600_v1, %v1292_v27 }
 0x200   :  { %v1303_v5 = vmul.f32 %v1602_v6, %v1302_v26 }
 0x201   :  { %v1297_v61 = vsel %vm1296_vm12, %v1600_v1, %v1293_v30 }
 0x202   :  { %1322 = vst [vmem:[#allocation1 + $0x36] sm:$0xff] %v1297_v61  ;;  %v1307_v36 = vsel %vm1306_vm14, %v1602_v6, %v1303_v5 }
 0x203   :  { %1323 = vst [vmem:[#allocation1 + $0x3f] sm:$0xff] %v1307_v36 }
 0x20a   :  { %v1325_v62 = vld [vmem:[#allocation1 + $0x1] ss:$9 sm:$0xff] }
 0x20b   :  { %v1327_v41 = vmul.f32 %v1325_v62, %v1219_v37 }
 0x20d   :  { %v1330_v44 = vperm.slane %v1327_v41, 0  ;;  %v1331_v38 = vperm.slane %v1327_v41, 1  ;;  %v1332_v18 = vperm.slane %v1327_v41, 2  ;;  %v1333_v46 = vperm.slane %v1327_v41, 3 }
 0x20e   :  { %v1334_v29 = vperm.slane %v1327_v41, 4  ;;  %v1335_v14 = vperm.slane %v1327_v41, 5  ;;  %v1336_v19 = vperm.slane %v1327_v41, 6  ;;  %v1337_v39 = vperm.slane %v1327_v41, 7 }
 0x20f   :  { %v1347_v43 = vmul.f32 %v1331_v38, %v2507_v51  ;;  %v1348_v15 = vmul.f32 %v1332_v18, %v2515_v31  ;;  %v1349_v57 = vmul.f32 %v1333_v46, %v2517_v10  ;;  %v1346_v55 = vmul.f32 %v1330_v44, %v2505_v53 }
 0x210   :  { %v1350_v34 = vmul.f32 %v1334_v29, %v2519_v42  ;;  %v1351_v59 = vmul.f32 %v1335_v14, %v2521_v45  ;;  %v1352_v0 = vmul.f32 %v1336_v19, %v2541_v54  ;;  %v1353_v7 = vmul.f32 %v1337_v39, %v2543_v56  ;;  %v1328_v42 = vld [vmem:[#allocation7] sm:$0xff] }
 0x211   :  { %v1362_v17 = vrot.slane %v1347_v43, 7  ;;  %v1363_v47 = vrot.slane %v1348_v15, 6  ;;  %v1364_v28 = vrot.slane %v1349_v57, 5  ;;  %v1383_v9 = vmul.f32 %v1330_v44, %v2317_v24 }
 0x212   :  { %v1365_v1 = vrot.slane %v1350_v34, 4  ;;  %v1366_v51 = vrot.slane %v1351_v59, 3  ;;  %v1367_v48 = vrot.slane %v1352_v0, 2  ;;  %v1368_v31 = vrot.slane %v1353_v7, 1 }
 0x213   :  { %v1369_v10 = vsel %vm646_vm3, %v1346_v55, %v1362_v17  ;;  %v1371_v6 = vsel %vm1370_vm15, %v1363_v47, %v1364_v28  ;;  %v1384_v49 = vmul.f32 %v1331_v38, %v2333_v20  ;;  %v1385_v32 = vmul.f32 %v1332_v18, %v2380_v21 }
 0x214   :  { %v1372_v45 = vsel %vm525_vm2, %v1369_v10, %v1371_v6  ;;  %v1374_v54 = vsel %vm1373_vm0, %v1365_v1, %v1366_v51  ;;  %v1376_v56 = vsel %vm1375_vm1, %v1367_v48, %v1368_v31  ;;  %v1386_v33 = vmul.f32 %v1333_v46, %v2395_v13 }
 0x215   :  { %v1378_v53 = vsel %vm1377_vm4, %v1374_v54, %v1376_v56  ;;  %v1387_v40 = vmul.f32 %v1334_v29, %v2455_v11  ;;  %v1388_v50 = vmul.f32 %v1335_v14, %v2462_v25  ;;  %v1389_v23 = vmul.f32 %v1336_v19, %v2486_v58 }
 0x216   :  { %v1380_v2 = vsel %vm1379_vm5, %v1372_v45, %v1378_v53  ;;  %v1390_v27 = vmul.f32 %v1337_v39, %v2490_v22 }
 0x217   :  { %v1382_v4 = vsub.f32 %v1328_v42, %v1380_v2 }
 0x219   :  { %v1392_v26 = vperm.slane %v1382_v4, 0  ;;  %v1393_v30 = vperm.slane %v1382_v4, 1  ;;  %v1394_v5 = vperm.slane %v1382_v4, 2  ;;  %v1395_v61 = vperm.slane %v1382_v4, 3 }
 0x21a   :  { %v1396_v24 = vperm.slane %v1382_v4, 4  ;;  %v1397_v36 = vperm.slane %v1382_v4, 5  ;;  %v1398_v37 = vperm.slane %v1382_v4, 6  ;;  %v1399_v20 = vperm.slane %v1382_v4, 7 }
 0x21b   :  { %v1408_v62 = vadd.f32 %v1392_v26, %v1383_v9  ;;  %v1409_v21 = vadd.f32 %v1393_v30, %v1384_v49  ;;  %v1410_v41 = vadd.f32 %v1394_v5, %v1385_v32  ;;  %v1411_v13 = vadd.f32 %v1395_v61, %v1386_v33 }
 0x21c   :  { %v1412_v44 = vadd.f32 %v1396_v24, %v1387_v40  ;;  %v1413_v11 = vadd.f32 %v1397_v36, %v1388_v50  ;;  %v1414_v38 = vadd.f32 %v1398_v37, %v1389_v23  ;;  %v1415_v25 = vadd.f32 %v1399_v20, %v1390_v27 }
 0x21d   :  { %v1416_v18 = vmax.f32 %v1408_v62, 0.0  ;;  %v1417_v58 = vmax.f32 %v1409_v21, 0.0  ;;  %v1418_v46 = vmax.f32 %v1410_v41, 0.0  ;;  %v1419_v22 = vmax.f32 %v1411_v13, 0.0 }
 0x21e   :  { %v1420_v29 = vmax.f32 %v1412_v44, 0.0  ;;  %v1421_v14 = vmax.f32 %v1413_v11, 0.0  ;;  %v1422_v19 = vmax.f32 %v1414_v38, 0.0  ;;  %v1423_v39 = vmax.f32 %v1415_v25, 0.0 }
 0x21f   :  { %v1424_v43 = vmul.f32 %v1416_v18, %v2307_v12  ;;  %v1425_v15 = vmul.f32 %v1417_v58, %v2309_v16  ;;  %v1426_v57 = vmul.f32 %v1418_v46, %v2346_v8  ;;  %v1427_v34 = vmul.f32 %v1419_v22, %v2349_v52 }
 0x220   :  { %v1428_v59 = vmul.f32 %v1420_v29, %v2369_v63  ;;  %v1429_v0 = vmul.f32 %v1421_v14, %v2382_v3  ;;  %v1430_v7 = vmul.f32 %v1422_v19, %v2440_v60  ;;  %v1431_v55 = vmul.f32 %v1423_v39, %v2481_v35 }
 0x221   :  { %v1432_v17 = vpack.c.bf16 %v1425_v15, %v1424_v43  ;;  %v1433_v47 = vpack.c.bf16 %v1427_v34, %v1426_v57 }
 0x222   :  { %v1434_v28 = vpack.c.bf16 %v1429_v0, %v1428_v59  ;;  %v1435_v1 = vpack.c.bf16 %v1431_v55, %v1430_v7 }
 0x223   :  { %v1440_v51 = vrot.slane %v1432_v17, 3  ;;  %v1441_v12 = vrot.slane %v1433_v47, 6  ;;  %v1442_v48 = vrot.slane %v1433_v47, 1 }
 0x224   :  { %v1443_v16 = vrot.slane %v1434_v28, 4  ;;  %v1444_v31 = vrot.slane %v1434_v28, 7  ;;  %v1445_v8 = vrot.slane %v1435_v1, 2  ;;  %v1446_v10 = vrot.slane %v1435_v1, 5 }
 0x225   :  { %v1449_v52 = vsel %vm646_vm3, %v1432_v17, %v1440_v51  ;;  %v1452_v63 = vsel %vm1370_vm15, %v1441_v12, %v1442_v48 }
 0x226   :  { %v1453_v3 = vsel %vm525_vm2, %v1449_v52, %v1452_v63  ;;  %v1456_v60 = vsel %vm1373_vm0, %v1443_v16, %v1444_v31  ;;  %v1459_v35 = vsel %vm1375_vm1, %v1445_v8, %v1446_v10 }
 0x227   :  { %v1460_v6 = vsel %vm1377_vm4, %v1456_v60, %v1459_v35 }
 0x228   :  { %v1461_v42 = vsel %vm1379_vm5, %v1453_v3, %v1460_v6 }
 0x229   :  { %1463 = vst [vmem:[%s2615_s8] sm:$0xff] %v1461_v42 }
 0x22a   :  { %1468 = vsyncpa [#allocation3], 1 }
 0x22b   :  { %1469 = vsyncpa [#allocation5], 1 }
 0x22c   :  { %1470 = vsyncpa [#allocation8], 1 }
 0x22d   :  { %1471 = vsyncpa [#allocation11], 1 }

// kernel: generator_forward.7
= control target key start
LH: loop header
LB: loop body
LE: loop exit
PB: predicated region body
PF: predicated region fallthrough
CT: control target
= control target key end

     0   :  { %v1299_v0 = vmov 2   ;;  %v1300_v1 = vmov 0   ;;  %v1301_v20 = vmov 3   ;;  %v1302_v27 = vmov 1   ;;  %s2192_s6 = inlined_call_operand.vmem [shape: f32[162,4], index: 6, kind: input, shape index: {}]   ;;  %s2193_s1 = inlined_call_operand.vmem [shape: bf16[128,64], index: 1, kind: input, shape index: {}]   ;;  %s2194_s0 = inlined_call_operand.vmem [shape: bf16[162,128], index: 0, kind: input, shape index: {}]   ;;  %s2195_s7 = inlined_call_operand.vmem [shape: f32[4,64], index: 7, kind: input, shape index: {}]   ;;  %s2196_s2 = inlined_call_operand.vmem [shape: f32[64,16], index: 2, kind: input, shape index: {}]   ;;  %s2197_s3 = inlined_call_operand.vmem [shape: f32[16,64], index: 3, kind: input, shape index: {}]   ;;  %s2198_s4 = inlined_call_operand.vmem [shape: f32[1,64], index: 4, kind: input, shape index: {}]   ;;  %s2199_s5 = inlined_call_operand.vmem [shape: f32[1,64], index: 5, kind: input, shape index: {}]   ;;  %s2200_s8 = inlined_call_operand.vmem [shape: bf16[162,64], index: 8, kind: output, shape index: {}]  }
   0x1   :  { %1268 = vset.pattern.permute.xlu0 %v1299_v0  ;;  %1254 = vset.pattern.permute.xlu2 %v1300_v1  ;;  %v1353_v2 = vld [vmem:[%s2192_s6 + $0x38] sm:$0xff]  ;;  %v1358_v3 = vld [vmem:[%s2192_s6 + $0x20] sm:$0xff]  ;;  %v1363_v4 = vld [vmem:[%s2192_s6 + $0x10] sm:$0xff]  ;;  %vm792_vm0 = vcmask 523264   ;;  %vm832_vm1 = vcmask 517120   ;;  %vm909_vm2 = vcmask 1040384  }
   0x2   :  { %1253 = vset.pattern.permute.xlu1 %v1300_v1  ;;  %546 = vperm.xlu0 %1268, %v1353_v2   ;;  %v1224_v5 = vld [vmem:[%s2193_s1 + $0x38] sm:$0xff]  ;;  %v1223_v6 = vld [vmem:[%s2193_s1 + $0x30] sm:$0xff]  ;;  %v1378_v7 = vld [vmem:[%s2192_s6 + $0x60] sm:$0xff]  ;;  %vm944_vm3 = vcmask 130048   ;;  %vm1106_vm7 = vcmask 519168   ;;  %vm1127_vm8 = vcmask 516096  }
   0x3   :  { %285 = vperm.xlu2 %1254, %v1358_v3   ;;  %275 = vperm.xlu1 %1253, %v1363_v4   ;;  %v1383_v8 = vld [vmem:[%s2192_s6 + $0x28] sm:$0xff]  ;;  %v1388_v9 = vld [vmem:[%s2192_s6 + $0x18] sm:$0xff]  ;;  %v1221_v11 = vld [vmem:[%s2193_s1 + $0x20] sm:$0xff] }
   0x4   :  { %178 = vmatpush.bf16.msra.mxu0 %v1224_v5  ;;  %1226 = vmatpush.bf16.msra.mxu2 %v1224_v5  ;;  %v1222_v10 = vld [vmem:[%s2193_s1 + $0x28] sm:$0xff]  ;;  %v1402_v12 = vld [vmem:[%s2192_s6 + $0x78] sm:$0xff]  ;;  %v1407_v13 = vld [vmem:[%s2192_s6 + $0x40] sm:$0xff] }
   0x5   :  { %1225 = vmatpush.bf16.msra.mxu1 %v1224_v5  ;;  %1227 = vmatpush.bf16.msra.mxu3 %v1224_v5  ;;  %v1220_v14 = vld [vmem:[%s2193_s1 + $0x18] sm:$0xff]  ;;  %v1219_v15 = vld [vmem:[%s2193_s1 + $0x10] sm:$0xff]  ;;  %v241_v18 = vld [vmem:[%s2192_s6] sm:$0xff] }
   0x6   :  { %v1421_v16 = vld [vmem:[%s2192_s6 + $0x58] sm:$0xff]  ;;  %v1426_v17 = vld [vmem:[%s2192_s6 + $0x50] sm:$0xff]  ;;  %v1218_v19 = vld [vmem:[%s2193_s1 + $0x8] sm:$0xff] }
   0x7   :  { %v1217_v21 = vld [vmem:[%s2193_s1] sm:$0xff]  ;;  %v1443_v22 = vld [vmem:[%s2192_s6 + $0x70] sm:$0xff]  ;;  %v1448_v23 = vld [vmem:[%s2192_s6 + $0x68] sm:$0xff] }
   0x8   :  { %179 = vmatpush.bf16.msra.mxu0 %v1223_v6  ;;  %1229 = vmatpush.bf16.msra.mxu2 %v1223_v6  ;;  %v1207_v24 = vld [vmem:[%s2194_s0] sm:$0xff]  ;;  %v242_v25 = vld [vmem:[%s2192_s6 + $0x8] sm:$0xff]  ;;  %v1210_v30 = vld [vmem:[%s2194_s0 + $0x18] sm:$0xff] }
   0x9   :  { %1228 = vmatpush.bf16.msra.mxu1 %v1223_v6  ;;  %1230 = vmatpush.bf16.msra.mxu3 %v1223_v6  ;;  %v1462_v26 = vld [vmem:[%s2192_s6 + $0x48] sm:$0xff]  ;;  %v1209_v31 = vld [vmem:[%s2194_s0 + $0x10] sm:$0xff]  ;;  %v1214_v34 = vld [vmem:[%s2194_s0 + $0x38] sm:$0xff] }
   0xa   :  { %566 = vperm.xlu0 %1268, %v1378_v7   ;;  %v1208_v28 = vld [vmem:[%s2194_s0 + $0x8] sm:$0xff]  ;;  %v247_v32 = vld [vmem:[%s2192_s6 + $0x30] sm:$0xff]  ;;  %v1211_v36 = vld [vmem:[%s2194_s0 + $0x20] sm:$0xff] }
   0xb   :  { %290 = vperm.xlu2 %1254, %v1383_v8   ;;  %280 = vperm.xlu1 %1253, %v1388_v9   ;;  %v1212_v29 = vld [vmem:[%s2194_s0 + $0x28] sm:$0xff]  ;;  %v1213_v33 = vld [vmem:[%s2194_s0 + $0x30] sm:$0xff]  ;;  %v1521_v38 = vld [vmem:[%s2192_s6 + $0x98] sm:$0xff] }
   0xc   :  { %180 = vmatpush.bf16.msra.mxu0 %v1222_v10  ;;  %1232 = vmatpush.bf16.msra.mxu2 %v1222_v10  ;;  %v262_v55 = vld [vmem:[%s2195_s7] sm:$0xf] }
   0xd   :  { %1231 = vmatpush.bf16.msra.mxu1 %v1222_v10  ;;  %1233 = vmatpush.bf16.msra.mxu3 %v1222_v10  ;;  %v1572_v56 = vperm.slane %v262_v55, 0  ;;  %v1577_v58 = vperm.slane %v262_v55, 1  ;;  %v1596_v6 = vperm.slane %v262_v55, 2 }
  0x10   :  { %181 = vmatpush.bf16.msra.mxu0 %v1221_v11  ;;  %1235 = vmatpush.bf16.msra.mxu2 %v1221_v11 }
  0x11   :  { %1234 = vmatpush.bf16.msra.mxu1 %v1221_v11  ;;  %1236 = vmatpush.bf16.msra.mxu3 %v1221_v11 }
  0x12   :  { %578 = vperm.xlu0 %1268, %v1402_v12  }
  0x13   :  { %305 = vperm.xlu2 %1254, %v1407_v13   ;;  %300 = vperm.xlu1 %1253, %v1353_v2  }
  0x14   :  { %182 = vmatpush.bf16.msra.mxu0 %v1220_v14  ;;  %1238 = vmatpush.bf16.msra.mxu2 %v1220_v14 }
  0x15   :  { %1237 = vmatpush.bf16.msra.mxu1 %v1220_v14  ;;  %1239 = vmatpush.bf16.msra.mxu3 %v1220_v14 }
  0x18   :  { %183 = vmatpush.bf16.msra.mxu0 %v1219_v15  ;;  %1241 = vmatpush.bf16.msra.mxu2 %v1219_v15 }
  0x19   :  { %1240 = vmatpush.bf16.msra.mxu1 %v1219_v15  ;;  %1242 = vmatpush.bf16.msra.mxu3 %v1219_v15 }
  0x1a   :  { %1279 = vset.pattern.permute.xlu0 %v1301_v20 }
  0x1b   :  { %320 = vperm.xlu2 %1254, %v1421_v16   ;;  %315 = vperm.xlu1 %1253, %v1426_v17  }
  0x1c   :  { %645 = vperm.xlu0 %1279, %v241_v18   ;;  %184 = vmatpush.bf16.msra.mxu0 %v1218_v19 }
  0x1d   :  { %1244 = vmatpush.bf16.msra.mxu2 %v1218_v19  ;;  %1243 = vmatpush.bf16.msra.mxu1 %v1218_v19 }
  0x1e   :  { %1245 = vmatpush.bf16.msra.mxu3 %v1218_v19 }
  0x20   :  { %185 = vmatpush.bf16.msra.mxu0 %v1217_v21 }
  0x21   :  { %1247 = vmatpush.bf16.msra.mxu2 %v1217_v21  ;;  %1246 = vmatpush.bf16.msra.mxu1 %v1217_v21 }
  0x22   :  { %1248 = vmatpush.bf16.msra.mxu3 %v1217_v21 }
  0x23   :  { %335 = vperm.xlu2 %1254, %v1443_v22   ;;  %330 = vperm.xlu1 %1253, %v1448_v23  }
  0x24   :  { %661 = vperm.xlu0 %1279, %v1358_v3   ;;  %186 = vmatmul.bf16.vlgmr.msra.gmra.mxu0 %v1207_v24 }
  0x25   :  { %211 = vmatmul.bf16.vlgmr.msra.gmra.mxu2 %v1212_v29  ;;  %201 = vmatmul.bf16.vlgmr.msra.gmra.mxu1 %v1210_v30 }
  0x2b   :  { %1256 = vset.pattern.permute.xlu2 %v1302_v27  ;;  %1255 = vset.pattern.permute.xlu1 %v1302_v27 }
  0x2c   :  { %395 = vperm.xlu2 %1256, %v242_v25   ;;  %681 = vperm.xlu0 %1279, %v1462_v26  }
  0x2d   :  { %391 = vperm.xlu1 %1255, %v241_v18  }
  0x34   :  { %1258 = vset.pattern.permute.xlu2 %v1299_v0  ;;  %705 = vperm.xlu0 %1279, %v1402_v12  }
  0x35   :  { %1257 = vset.pattern.permute.xlu1 %v1299_v0  ;;  %522 = vperm.xlu2 %1258, %v242_v25  }
  0x36   :  { %518 = vperm.xlu1 %1257, %v241_v18   ;;  %191 = vmatmul.bf16.gmra.mxu0 %v1208_v28 }
  0x37   :  { %216 = vmatmul.bf16.gmra.mxu2 %v1213_v33  ;;  %206 = vmatmul.bf16.gmra.mxu1 %v1211_v36  ;;  %v1216_v36 = vld [vmem:[%s2194_s0 + $0x48] sm:$0xff] }
  0x3c   :  { %1284 = vset.pattern.permute.xlu0 %v1300_v1 }
  0x3d   :  { %526 = vperm.xlu2 %1258, %v1363_v4   ;;  %265 = vperm.xlu0 %1284, %v241_v18  }
  0x3e   :  { %1259 = vset.pattern.permute.xlu1 %v1302_v27 }
  0x3f   :  { %403 = vperm.xlu1 %1259, %v1388_v9  }
  0x45   :  { %1261 = vset.pattern.permute.xlu2 %v1302_v27  ;;  %270 = vperm.xlu0 %1284, %v242_v25  }
  0x46   :  { %407 = vperm.xlu2 %1261, %v1358_v3   ;;  %196 = vmatmul.bf16.gmra.mxu0 %v1209_v31 }
  0x47   :  { %1260 = vset.pattern.permute.xlu1 %v1301_v20  ;;  %221 = vmatmul.bf16.gmra.mxu2 %v1214_v34 }
  0x48   :  { %649 = vperm.xlu1 %1260, %v242_v25  }
  0x4d   :  { %295 = vperm.xlu0 %1284, %v247_v32  }
  0x4e   :  { %1263 = vset.pattern.permute.xlu2 %v1301_v20 }
  0x4f   :  { %653 = vperm.xlu2 %1263, %v1363_v4  }
  0x50   :  { %1262 = vset.pattern.permute.xlu1 %v1299_v0 }
  0x51   :  { %530 = vperm.xlu1 %1262, %v1388_v9  }
  0x55   :  { %310 = vperm.xlu0 %1284, %v1462_v26  }
  0x57   :  { %657 = vperm.xlu2 %1263, %v1388_v9  }
  0x59   :  { %534 = vperm.xlu1 %1262, %v1358_v3  }
  0x5d   :  { %v1505_v35 = vpop.permute.xlu2 %285  ;;  %325 = vperm.xlu0 %1284, %v1378_v7  }
  0x5e   :  { %v373_v61 = vmax.f32 %v1505_v35, %v1572_v56 }
  0x5f   :  { %1265 = vset.pattern.permute.xlu2 %v1299_v0 }
  0x60   :  { %538 = vperm.xlu2 %1265, %v1383_v8  }
  0x61   :  { %1264 = vset.pattern.permute.xlu1 %v1302_v27 }
  0x62   :  { %415 = vperm.xlu1 %1264, %v247_v32  }
  0x65   :  { %v1514_v37 = vpop.permute.xlu2 %290  ;;  %340 = vperm.xlu0 %1284, %v1402_v12  }
  0x68   :  { %542 = vperm.xlu2 %1265, %v247_v32  }
  0x6a   :  { %419 = vperm.xlu1 %1264, %v1353_v2  }
  0x6d   :  { %v1523_v39 = vpop.permute.xlu2 %305  ;;  %360 = vperm.xlu0 %1284, %v1521_v38  }
  0x70   :  { %1267 = vset.pattern.permute.xlu2 %v1302_v27 }
  0x71   :  { %423 = vperm.xlu2 %1267, %v1407_v13  }
  0x72   :  { %1266 = vset.pattern.permute.xlu1 %v1301_v20 }
  0x73   :  { %665 = vperm.xlu1 %1266, %v1383_v8  }
  0x74   :  { %v1530_v40 = vpop.permute.xlu0 %546 }
  0x75   :  { %v1532_v41 = vpop.permute.xlu2 %320  ;;  %v1534_v42 = vpop.permute.xlu1 %275  ;;  %1289 = vset.pattern.permute.xlu0 %v1302_v27 }
  0x76   :  { %399 = vperm.xlu0 %1289, %v1363_v4  }
  0x79   :  { %427 = vperm.xlu2 %1267, %v1462_v26  }
  0x7b   :  { %669 = vperm.xlu1 %1266, %v247_v32  }
  0x7c   :  { %v1539_v43 = vpop.permute.xlu0 %566 }
  0x7d   :  { %v281_v44 = vpop.permute.xlu1 %280  ;;  %v1541_v45 = vpop.permute.xlu2 %335 }
  0x7e   :  { %411 = vperm.xlu0 %1289, %v1383_v8   ;;  %v1598_v8 = vperm.slane %v262_v55, 3 }
  0x81   :  { %1270 = vset.pattern.permute.xlu2 %v1301_v20 }
  0x82   :  { %673 = vperm.xlu2 %1270, %v1353_v2   ;;  %v1215_v2 = vld [vmem:[%s2194_s0 + $0x40] sm:$0xff] }
  0x83   :  { %1269 = vset.pattern.permute.xlu1 %v1299_v0  ;;  %226 = vmatmul.bf16.vlgmr.msra.gmra.mxu3 %v1215_v2 }
  0x84   :  { %550 = vperm.xlu1 %1269, %v1407_v13   ;;  %v1548_v46 = vpop.permute.xlu0 %578 }
  0x85   :  { %v1550_v47 = vpop.permute.xlu1 %300 }
  0x86   :  { %431 = vperm.xlu0 %1289, %v1426_v17   ;;  %v396_v48 = vpop.permute.xlu2 %395 }
  0x8a   :  { %677 = vperm.xlu2 %1270, %v1407_v13  }
  0x8c   :  { %554 = vperm.xlu1 %1269, %v1462_v26   ;;  %v476_v26 = vmax.f32 %v396_v48, %v1577_v58 }
  0x8d   :  { %v1555_v49 = vpop.permute.xlu1 %315 }
  0x8e   :  { %451 = vperm.xlu0 %1289, %v1402_v12   ;;  %v646_v50 = vpop.permute.xlu0 %645  ;;  %v372_v12 = vmax.f32 %v281_v44, %v1572_v56 }
  0x8f   :  { %v523_v51 = vpop.permute.xlu2 %522  ;;  %v729_v15 = vmax.f32 %v646_v50, %v1598_v8  ;;  %v1629_v50 = vld [vmem:[%s2192_s6 + $0x80] sm:$0xff] }
  0x90   :  { %v603_v29 = vmax.f32 %v523_v51, %v1596_v6 }
  0x92   :  { %1272 = vset.pattern.permute.xlu2 %v1299_v0 }
  0x93   :  { %558 = vperm.xlu2 %1272, %v1426_v17   ;;  %231 = vmatmul.bf16.gmra.mxu3 %v1216_v36 }
  0x94   :  { %1271 = vset.pattern.permute.xlu1 %v1302_v27 }
  0x95   :  { %435 = vperm.xlu1 %1271, %v1421_v16   ;;  %v1562_v52 = vpop.permute.xlu1 %330 }
  0x96   :  { %v1564_v53 = vpop.permute.xlu0 %661 }
  0x97   :  { %v1566_v54 = vpop.permute.xlu2 %526 }
  0x9b   :  { %562 = vperm.xlu2 %1272, %v1421_v16  }
  0x9d   :  { %439 = vperm.xlu1 %1271, %v1378_v7  }
  0x9e   :  { %v1575_v57 = vpop.permute.xlu0 %681 }
  0x9f   :  { %v392_v59 = vpop.permute.xlu1 %391 }
  0xa0   :  { %v408_v60 = vpop.permute.xlu2 %407  ;;  %v475_v10 = vmax.f32 %v392_v59, %v1577_v58  ;;  %v1638_v59 = vld [vmem:[%s2192_s6 + $0xa0] sm:$0x3] }
  0xa1   :  { %v479_v62 = vmax.f32 %v408_v60, %v1577_v58  ;;  %471 = vperm.xlu0 %1289, %v1638_v59  }
  0xa3   :  { %v1582_v63 = vmul.f32 %v479_v62, %v373_v61  ;;  %1274 = vset.pattern.permute.xlu2 %v1302_v27 }
  0xa4   :  { %443 = vperm.xlu2 %1274, %v1448_v23  }
  0xa5   :  { %1273 = vset.pattern.permute.xlu1 %v1301_v20 }
  0xa6   :  { %685 = vperm.xlu1 %1273, %v1426_v17   ;;  %v1591_v3 = vpop.permute.xlu0 %705 }
  0xa8   :  { %v519_v4 = vpop.permute.xlu1 %518 }
  0xa9   :  { %v1593_v5 = vpop.permute.xlu2 %653  ;;  %v602_v17 = vmax.f32 %v519_v4, %v1596_v6  ;;  %v377_v4 = vmax.f32 %v1523_v39, %v1572_v56  ;;  %1296 = vset.pattern.permute.xlu0 %v1301_v20 }
  0xaa   :  { %725 = vperm.xlu0 %1296, %v1638_v59  }
  0xac   :  { %447 = vperm.xlu2 %1274, %v1443_v22  }
  0xae   :  { %689 = vperm.xlu1 %1273, %v1421_v16  }
  0xaf   :  { %v266_v9 = vpop.permute.xlu0 %265 }
  0xb0   :  { %v369_v11 = vmax.f32 %v266_v9, %v1572_v56  ;;  %v733_v9 = vmax.f32 %v1564_v53, %v1598_v8 }
  0xb1   :  { %v404_v13 = vpop.permute.xlu1 %403  ;;  %v658_v14 = vpop.permute.xlu2 %657 }
  0xb2   :  { %v496_v18 = vmul.f32 %v475_v10, %v369_v11  ;;  %v478_v19 = vmax.f32 %v404_v13, %v1577_v58 }
  0xb4   :  { %v623_v21 = vmul.f32 %v602_v17, %v496_v18  ;;  %v499_v24 = vmul.f32 %v478_v19, %v372_v12  ;;  %1276 = vset.pattern.permute.xlu2 %v1301_v20  ;;  %v1656_v12 = vld [vmem:[%s2192_s6 + $0x88] sm:$0xff] }
  0xb5   :  { %693 = vperm.xlu2 %1276, %v1378_v7  }
  0xb6   :  { %v1609_v16 = vmul.f32 %v729_v15, %v623_v21  ;;  %1275 = vset.pattern.permute.xlu1 %v1299_v0 }
  0xb7   :  { %570 = vperm.xlu1 %1275, %v1448_v23   ;;  %v271_v25 = vpop.permute.xlu0 %270 }
  0xb8   :  { %2214 = vst [vmem:[#allocation2_spill] sm:$0xff] %v1609_v16  ;;  %v370_v28 = vmax.f32 %v271_v25, %v1572_v56  ;;  %v49_v25 = vld [vmem:[%s2194_s0 + $0x50] sm:$0x1] }
  0xba   :  { %v497_v30 = vmul.f32 %v476_v26, %v370_v28  ;;  %v650_v31 = vpop.permute.xlu1 %649  ;;  %v1616_v32 = vpop.permute.xlu2 %538 }
  0xbb   :  { %v730_v7 = vmax.f32 %v650_v31, %v1598_v8  ;;  %v609_v31 = vmax.f32 %v1530_v40, %v1596_v6 }
  0xbc   :  { %v624_v33 = vmul.f32 %v603_v29, %v497_v30 }
  0xbd   :  { %697 = vperm.xlu2 %1276, %v1448_v23   ;;  %v732_v23 = vmax.f32 %v658_v14, %v1598_v8 }
  0xbe   :  { %v1620_v34 = vmul.f32 %v730_v7, %v624_v33  ;;  %v376_v33 = vmax.f32 %v1550_v47, %v1572_v56 }
  0xbf   :  { %574 = vperm.xlu1 %1275, %v1443_v22   ;;  %v296_v35 = vpop.permute.xlu0 %295 }
  0xc0   :  { %2215 = vst [vmem:[#allocation3_spill] sm:$0xff] %v1620_v34 }
  0xc2   :  { %v543_v44 = vpop.permute.xlu2 %542 }
  0xc3   :  { %v531_v48 = vpop.permute.xlu1 %530  ;;  %v608_v19 = vmax.f32 %v543_v44, %v1596_v6 }
  0xc4   :  { %v605_v51 = vmax.f32 %v531_v48, %v1596_v6 }
  0xc5   :  { %1278 = vset.pattern.permute.xlu2 %v1302_v27 }
  0xc6   :  { %v626_v55 = vmul.f32 %v605_v51, %v499_v24  ;;  %455 = vperm.xlu2 %1278, %v1629_v50  }
  0xc7   :  { %1277 = vset.pattern.permute.xlu1 %v1300_v1  ;;  %v1641_v60 = vpop.permute.xlu0 %310 }
  0xc8   :  { %345 = vperm.xlu1 %1277, %v1629_v50   ;;  %v1645_v61 = vmul.f32 %v732_v23, %v626_v55 }
  0xca   :  { %2216 = vst [vmem:[#allocation4_spill] sm:$0xff] %v1645_v61 }
  0xcb   :  { %v535_v62 = vpop.permute.xlu1 %534  ;;  %v424_v2 = vpop.permute.xlu2 %423 }
  0xcc   :  { %v606_v10 = vmax.f32 %v535_v62, %v1596_v6  ;;  %v483_v11 = vmax.f32 %v424_v2, %v1577_v58  ;;  %v371_v62 = vmax.f32 %v1534_v42, %v1572_v56 }
  0xce   :  { %v627_v13 = vmul.f32 %v606_v10, %v1582_v63  ;;  %v1659_v14 = vmul.f32 %v483_v11, %v377_v4  ;;  %1281 = vset.pattern.permute.xlu2 %v1300_v1  ;;  %v375_v63 = vmax.f32 %v296_v35, %v1572_v56  ;;  %v1693_v35 = vld [vmem:[%s2192_s6 + $0x90] sm:$0xff]  ;;  %v604_v4 = vmax.f32 %v1566_v54, %v1596_v6 }
  0xcf   :  { %350 = vperm.xlu2 %1281, %v1656_v12   ;;  %v1663_v39 = vpop.permute.xlu0 %325  ;;  %v731_v10 = vmax.f32 %v1593_v5, %v1598_v8  ;;  %v374_v54 = vmax.f32 %v1514_v37, %v1572_v56  ;;  %v607_v5 = vmax.f32 %v1616_v32, %v1596_v6 }
  0xd0   :  { %1280 = vset.pattern.permute.xlu1 %v1301_v20  ;;  %v1667_v53 = vmul.f32 %v733_v9, %v627_v13 }
  0xd1   :  { %701 = vperm.xlu1 %1280, %v1443_v22   ;;  %v107_v22 = vunpack.c.l.b16 %v49_v25 }
  0xd2   :  { %2217 = vst [vmem:[#allocation5_spill] sm:$0xff] %v1667_v53 }
  0xd3   :  { %v1672_v15 = vpop.permute.xlu2 %427  ;;  %v118_v28 = vpack.c.b16 %v107_v22, %v107_v22 }
  0xd4   :  { %v416_v17 = vpop.permute.xlu1 %415 }
  0xd5   :  { %v481_v18 = vmax.f32 %v416_v17, %v1577_v58  ;;  %236 = vmatmul.bf16.gmra.mxu3 %v118_v28 }
  0xd7   :  { %v502_v21 = vmul.f32 %v481_v18, %v375_v63  ;;  %1283 = vset.pattern.permute.xlu2 %v1299_v0  ;;  %v1677_v24 = vpop.permute.xlu0 %340 }
  0xd8   :  { %582 = vperm.xlu2 %1283, %v1629_v50  }
  0xd9   :  { %1282 = vset.pattern.permute.xlu1 %v1302_v27  ;;  %v629_v26 = vmul.f32 %v608_v19, %v502_v21 }
  0xda   :  { %459 = vperm.xlu1 %1282, %v1656_v12  }
  0xdc   :  { %v420_v29 = vpop.permute.xlu1 %419  ;;  %v674_v30 = vpop.permute.xlu2 %673 }
  0xdd   :  { %v482_v7 = vmax.f32 %v420_v29, %v1577_v58  ;;  %v736_v44 = vmax.f32 %v674_v30, %v1598_v8  ;;  %v379_v30 = vmax.f32 %v1555_v49, %v1572_v56 }
  0xdf   :  { %v503_v36 = vmul.f32 %v482_v7, %v376_v33  ;;  %v1696_v48 = vpop.permute.xlu0 %360 }
  0xe0   :  { %1286 = vset.pattern.permute.xlu2 %v1302_v27 }
  0xe1   :  { %v630_v51 = vmul.f32 %v609_v31, %v503_v36  ;;  %463 = vperm.xlu2 %1286, %v1693_v35   ;;  %v378_v36 = vmax.f32 %v1641_v60, %v1572_v56 }
  0xe2   :  { %1285 = vset.pattern.permute.xlu1 %v1300_v1 }
  0xe3   :  { %v1701_v40 = vmul.f32 %v736_v44, %v630_v51  ;;  %355 = vperm.xlu1 %1285, %v1693_v35   ;;  %v484_v44 = vmax.f32 %v1672_v15, %v1577_v58 }
  0xe4   :  { %v678_v47 = vpop.permute.xlu2 %677 }
  0xe5   :  { %2218 = vst [vmem:[#allocation6_spill] sm:$0xff] %v1701_v40  ;;  %v666_v23 = vpop.permute.xlu1 %665  ;;  %v737_v31 = vmax.f32 %v678_v47, %v1598_v8  ;;  %v738_v47 = vmax.f32 %v1575_v57, %v1598_v8  ;;  %v617_v57 = vmax.f32 %v1548_v46, %v1596_v6 }
  0xe6   :  { %v734_v25 = vmax.f32 %v666_v23, %v1598_v8 }
  0xe8   :  { %v400_v55 = vpop.permute.xlu0 %399 }
  0xe9   :  { %v477_v2 = vmax.f32 %v400_v55, %v1577_v58  ;;  %1288 = vset.pattern.permute.xlu2 %v1301_v20  ;;  %v505_v55 = vmul.f32 %v484_v44, %v378_v36 }
  0xea   :  { %709 = vperm.xlu2 %1288, %v1629_v50  }
  0xeb   :  { %v498_v9 = vmul.f32 %v477_v2, %v371_v62  ;;  %1287 = vset.pattern.permute.xlu1 %v1299_v0 }
  0xec   :  { %586 = vperm.xlu1 %1287, %v1656_v12  }
  0xed   :  { %v625_v11 = vmul.f32 %v604_v4, %v498_v9  ;;  %v670_v13 = vpop.permute.xlu1 %669  ;;  %v559_v42 = vpop.permute.xlu2 %558 }
  0xee   :  { %v735_v63 = vmax.f32 %v670_v13, %v1598_v8  ;;  %v612_v33 = vmax.f32 %v559_v42, %v1596_v6 }
  0xef   :  { %v1716_v17 = vmul.f32 %v731_v10, %v625_v11 }
  0xf0   :  { %v1718_v18 = vmul.f32 %v735_v63, %v629_v26  ;;  %v412_v50 = vpop.permute.xlu0 %411  ;;  %v383_v63 = vmax.f32 %v1541_v45, %v1572_v56  ;;  %v381_v45 = vmax.f32 %v1663_v39, %v1572_v56 }
  0xf1   :  { %2219 = vst [vmem:[#allocation7_spill] sm:$0xff] %v1716_v17  ;;  %v480_v19 = vmax.f32 %v412_v50, %v1577_v58 }
  0xf2   :  { %2220 = vst [vmem:[#allocation8_spill] sm:$0xff] %v1718_v18  ;;  %1291 = vset.pattern.permute.xlu2 %v1299_v0 }
  0xf3   :  { %v501_v21 = vmul.f32 %v480_v19, %v374_v54  ;;  %590 = vperm.xlu2 %1291, %v1693_v35  }
  0xf4   :  { %1290 = vset.pattern.permute.xlu1 %v1302_v27 }
  0xf5   :  { %467 = vperm.xlu1 %1290, %v1521_v38   ;;  %v563_v22 = vpop.permute.xlu2 %562  ;;  %v628_v26 = vmul.f32 %v607_v5, %v501_v21 }
  0xf6   :  { %v551_v28 = vpop.permute.xlu1 %550 }
  0xf7   :  { %v610_v37 = vmax.f32 %v551_v28, %v1596_v6  ;;  %v1731_v29 = vmul.f32 %v734_v25, %v628_v26 }
  0xf8   :  { %v432_v32 = vpop.permute.xlu0 %431 }
  0xf9   :  { %2221 = vst [vmem:[#allocation9_spill] sm:$0xff] %v1731_v29  ;;  %v631_v27 = vmul.f32 %v610_v37, %v1659_v14  ;;  %v485_v7 = vmax.f32 %v432_v32, %v1577_v58  ;;  %v382_v14 = vmax.f32 %v1562_v52, %v1572_v56 }
  0xfb   :  { %v506_v51 = vmul.f32 %v485_v7, %v379_v30  ;;  %1293 = vset.pattern.permute.xlu2 %v1300_v1  ;;  %v1744_v23 = vmul.f32 %v737_v31, %v631_v27  ;;  %v384_v1 = vmax.f32 %v1677_v24, %v1572_v56  ;;  %v744_v24 = vmax.f32 %v1591_v3, %v1598_v8 }
  0xfc   :  { %365 = vperm.xlu2 %1293, %v1638_v59  }
  0xfd   :  { %2222 = vst [vmem:[#allocation10_spill] sm:$0xff] %v1744_v23  ;;  %1292 = vset.pattern.permute.xlu1 %v1301_v20  ;;  %v633_v49 = vmul.f32 %v612_v33, %v506_v51  ;;  %v1793_v33 = vpop.f32.mrf.mxu0 }
  0xfe   :  { %713 = vperm.xlu1 %1292, %v1656_v12   ;;  %v555_v60 = vpop.permute.xlu1 %554  ;;  %v444_v15 = vpop.permute.xlu2 %443 }
  0xff   :  { %v611_v62 = vmax.f32 %v555_v60, %v1596_v6  ;;  %v488_v2 = vmax.f32 %v444_v15, %v1577_v58 }
 0x100   :  { %v452_v4 = vpop.permute.xlu0 %451 }
 0x101   :  { %v632_v9 = vmul.f32 %v611_v62, %v505_v55  ;;  %v509_v10 = vmul.f32 %v488_v2, %v382_v14  ;;  %v490_v52 = vmax.f32 %v452_v4, %v1577_v58 }
 0x103   :  { %v511_v11 = vmul.f32 %v490_v52, %v384_v1  ;;  %v1760_v12 = vmul.f32 %v738_v47, %v632_v9  ;;  %v1816_v1 = vpop.f32.mrf.mxu2  ;;  %v1824_v9 = vpop.f32.mrf.mxu1 }
 0x104   :  { %1295 = vset.pattern.permute.xlu2 %v1301_v20  ;;  %v380_v20 = vmax.f32 %v1532_v41, %v1572_v56  ;;  %v614_v41 = vmax.f32 %v1539_v43, %v1596_v6 }
 0x105   :  { %2223 = vst [vmem:[#allocation11_spill] sm:$0xff] %v1760_v12  ;;  %717 = vperm.xlu2 %1295, %v1693_v35   ;;  %v638_v13 = vmul.f32 %v617_v57, %v511_v11  ;;  %v1800_v44 = vpop.f32.mrf.mxu0 }
 0x106   :  { %1294 = vset.pattern.permute.xlu1 %v1299_v0  ;;  %v448_v42 = vpop.permute.xlu2 %447  ;;  %v613_v0 = vmax.f32 %v563_v22, %v1596_v6  ;;  %v1814_v55 = vpop.f32.mrf.mxu3  ;;  %v772_v57 = vmul.f32 %v1620_v34, %v1800_v44 }
 0x107   :  { %v489_v50 = vmax.f32 %v448_v42, %v1577_v58  ;;  %594 = vperm.xlu1 %1294, %v1521_v38   ;;  %v436_v46 = vpop.permute.xlu1 %435  ;;  %v1771_v54 = vmul.f32 %v744_v24, %v638_v13  ;;  %v771_v24 = vmul.f32 %v1609_v16, %v1793_v33 }
 0x108   :  { %v486_v3 = vmax.f32 %v436_v46, %v1577_v58 }
 0x109   :  { %2224 = vst [vmem:[#allocation12_spill] sm:$0xff] %v1771_v54  ;;  %v1776_v35 = vmul.f32 %v489_v50, %v383_v63  ;;  %v842_v50 = vmul.f32 %v772_v57, %v772_v57 }
 0x10a   :  { %v507_v19 = vmul.f32 %v486_v3, %v380_v20  ;;  %v841_v20 = vmul.f32 %v771_v24, %v771_v24  ;;  %v794_v3 = vsel %vm792_vm0, %v772_v57, 0.0 }
 0x10b   :  { %v1828_v52 = vpop.f32.mrf.mxu2  ;;  %v1842_v46 = vpop.f32.mrf.mxu1 }
 0x10c   :  { %v634_v5 = vmul.f32 %v613_v0, %v507_v19 }
 0x10d   :  { %721 = vperm.xlu2 %1295, %v1521_v38   ;;  %v1808_v47 = vpop.f32.mrf.mxu0 }
 0x10e   :  { %v773_v13 = vmul.f32 %v1716_v17, %v1808_v47 }
 0x10f   :  { %598 = vperm.xlu1 %1294, %v1638_v59   ;;  %v440_v21 = vpop.permute.xlu1 %439  ;;  %v694_v25 = vpop.permute.xlu2 %693 }
 0x110   :  { %v487_v26 = vmax.f32 %v440_v21, %v1577_v58  ;;  %v741_v37 = vmax.f32 %v694_v25, %v1598_v8  ;;  %v843_v0 = vmul.f32 %v773_v13, %v773_v13  ;;  %v796_v25 = vsel %vm792_vm0, %v773_v13, 0.0 }
 0x112   :  { %v508_v28 = vmul.f32 %v487_v26, %v381_v45  ;;  %v863_v45 = vsel %vm792_vm0, %v842_v50, 0.0 }
 0x113   :  { %v1866_v13 = vpop.f32.mrf.mxu1 }
 0x114   :  { %v635_v22 = vmul.f32 %v614_v41, %v508_v28  ;;  %v1852_v41 = vpop.f32.mrf.mxu2 }
 0x115   :  { %v1818_v62 = vpop.f32.mrf.mxu0 }
 0x116   :  { %v1787_v30 = vmul.f32 %v741_v37, %v635_v22  ;;  %v774_v21 = vmul.f32 %v1645_v61, %v1818_v62  ;;  %v862_v37 = vsel %vm792_vm0, %v841_v20, 0.0  ;;  %v865_v22 = vsel %vm792_vm0, %v843_v0, 0.0 }
 0x117   :  { %v1795_v27 = vpop.permute.xlu2 %697 }
 0x118   :  { %v686_v32 = vpop.permute.xlu1 %685  ;;  %v798_v50 = vsel %vm792_vm0, %v774_v21, 0.0 }
 0x119   :  { %v739_v38 = vmax.f32 %v686_v32, %v1598_v8  ;;  %v864_v32 = vadd.f32 %v863_v45, %v862_v37  ;;  %v777_v37 = vmul.f32 %v1718_v18, %v1824_v9 }
 0x11b   :  { %v1790_v31 = vmul.f32 %v739_v38, %v633_v49 }
 0x11d   :  { %2225 = vst [vmem:[#allocation13_spill] sm:$0xff] %v1790_v31  ;;  %v1832_v11 = vpop.f32.mrf.mxu0 }
 0x120   :  { %v690_v39 = vpop.permute.xlu1 %689  ;;  %v1804_v14 = vpop.permute.xlu2 %455 }
 0x121   :  { %v740_v59 = vmax.f32 %v690_v39, %v1598_v8  ;;  %v844_v39 = vmul.f32 %v774_v21, %v774_v21 }
 0x123   :  { %v1797_v7 = vmul.f32 %v740_v59, %v634_v5  ;;  %v793_v5 = vsel %vm792_vm0, %v771_v24, 0.0  ;;  %v775_v59 = vmul.f32 %v1667_v53, %v1832_v11  ;;  %v866_v24 = vadd.f32 %v865_v22, %v864_v32  ;;  %v1876_v32 = vpop.f32.mrf.mxu2 }
 0x124   :  { %v795_v26 = vadd.f32 %v794_v3, %v793_v5  ;;  %v867_v0 = vsel %vm792_vm0, %v844_v39, 0.0 }
 0x125   :  { %v1854_v28 = vpop.f32.mrf.mxu0  ;;  %v845_v5 = vmul.f32 %v775_v59, %v775_v59 }
 0x126   :  { %v797_v38 = vadd.f32 %v796_v25, %v795_v26  ;;  %v868_v25 = vadd.f32 %v867_v0, %v866_v24  ;;  %v800_v26 = vsel %vm792_vm0, %v775_v59, 0.0  ;;  %v778_v59 = vmul.f32 %v1701_v40, %v1842_v46 }
 0x127   :  { %v869_v21 = vsel %vm792_vm0, %v845_v5, 0.0  ;;  %v847_v24 = vmul.f32 %v777_v37, %v777_v37  ;;  %v779_v5 = vmul.f32 %v1744_v23, %v1866_v13  ;;  %v742_v23 = vmax.f32 %v1795_v27, %v1598_v8 }
 0x128   :  { %v799_v3 = vadd.f32 %v798_v50, %v797_v38  ;;  %v870_v50 = vadd.f32 %v869_v21, %v868_v25  ;;  %v848_v18 = vmul.f32 %v778_v59, %v778_v59  ;;  %v918_v21 = vld [vmem:[%s2196_s2 + $0x38] sm:$0xff] }
 0x129   :  { %v571_v43 = vpop.permute.xlu1 %570  ;;  %v1810_v60 = vpop.permute.xlu2 %350  ;;  %930 = vmatpush.msrb.mxu1 %v918_v21  ;;  %v782_v21 = vmul.f32 %v1797_v7, %v1828_v52 }
 0x12a   :  { %v615_v36 = vmax.f32 %v571_v43, %v1596_v6  ;;  %v776_v43 = vmul.f32 %v1731_v29, %v1854_v28  ;;  %v801_v22 = vadd.f32 %v800_v26, %v799_v3  ;;  %v1888_v3 = vpop.f32.mrf.mxu1  ;;  %v804_v26 = vsel %vm792_vm0, %v777_v37, 0.0 }
 0x12b   :  { %v780_v25 = vmul.f32 %v1760_v12, %v1888_v3  ;;  %v806_v37 = vsel %vm792_vm0, %v778_v59, 0.0 }
 0x12c   :  { %v1802_v51 = vmul.f32 %v615_v36, %v509_v10  ;;  %v1826_v10 = vpop.f32.mrf.mxu3  ;;  %v846_v45 = vmul.f32 %v776_v43, %v776_v43  ;;  %v802_v29 = vsel %vm792_vm0, %v776_v43, 0.0 }
 0x12d   :  { %v803_v39 = vadd.f32 %v802_v29, %v801_v22  ;;  %v873_v29 = vsel %vm792_vm0, %v847_v24, 0.0  ;;  %v781_v24 = vmul.f32 %v1790_v31, %v1816_v1  ;;  %v850_v12 = vmul.f32 %v780_v25, %v780_v25 }
 0x12e   :  { %v871_v53 = vsel %vm792_vm0, %v846_v45, 0.0  ;;  %v1923_v17 = vmul.f32 %v742_v23, %v1802_v51  ;;  %v810_v34 = vsel %vm792_vm0, %v780_v25, 0.0  ;;  %v852_v51 = vmul.f32 %v782_v21, %v782_v21 }
 0x12f   :  { %v872_v43 = vadd.f32 %v871_v53, %v870_v50  ;;  %v805_v45 = vadd.f32 %v804_v26, %v803_v39  ;;  %v917_v53 = vld [vmem:[%s2196_s2 + $0x30] sm:$0xff]  ;;  %v849_v50 = vmul.f32 %v779_v5, %v779_v5  ;;  %v1903_v26 = vpop.f32.mrf.mxu2  ;;  %v851_v16 = vmul.f32 %v781_v24, %v781_v24 }
 0x130   :  { %931 = vmatpush.msrb.mxu1 %v917_v53  ;;  %v879_v53 = vsel %vm792_vm0, %v850_v12, 0.0  ;;  %v812_v23 = vsel %vm792_vm0, %v781_v24, 0.0 }
 0x131   :  { %v1806_v49 = vpop.permute.xlu1 %574  ;;  %v874_v22 = vadd.f32 %v873_v29, %v872_v43  ;;  %v807_v39 = vadd.f32 %v806_v37, %v805_v45  ;;  %v875_v29 = vsel %vm792_vm0, %v848_v18, 0.0  ;;  %v877_v18 = vsel %vm792_vm0, %v849_v50, 0.0 }
 0x132   :  { %v1820_v2 = vpop.permute.xlu2 %582  ;;  %v616_v43 = vmax.f32 %v1806_v49, %v1596_v6  ;;  %v808_v49 = vsel %vm792_vm0, %v779_v5, 0.0 }
 0x133   :  { %v876_v45 = vadd.f32 %v875_v29, %v874_v22  ;;  %v809_v27 = vadd.f32 %v808_v49, %v807_v39  ;;  %v783_v29 = vmul.f32 %v1787_v30, %v1852_v41  ;;  %v881_v39 = vsel %vm792_vm0, %v851_v16, 0.0 }
 0x134   :  { %v1845_v19 = vpop.f32.mrf.mxu3  ;;  %v637_v22 = vmul.f32 %v616_v43, %v1776_v35  ;;  %v784_v35 = vmul.f32 %v1923_v17, %v1876_v32  ;;  %v814_v43 = vsel %vm792_vm0, %v782_v21, 0.0  ;;  %v618_v24 = vmax.f32 %v1820_v2, %v1596_v6 }
 0x135   :  { %v878_v5 = vadd.f32 %v877_v18, %v876_v45  ;;  %v811_v25 = vadd.f32 %v810_v34, %v809_v27  ;;  %v853_v49 = vmul.f32 %v783_v29, %v783_v29  ;;  %v883_v34 = vsel %vm792_vm0, %v852_v51, 0.0  ;;  %v916_v27 = vld [vmem:[%s2196_s2 + $0x28] sm:$0xff] }
 0x136   :  { %v386_v18 = vmax.f32 %v1810_v60, %v1572_v56  ;;  %932 = vmatpush.msrb.mxu1 %v916_v27  ;;  %v915_v60 = vld [vmem:[%s2196_s2 + $0x20] sm:$0xff] }
 0x137   :  { %v880_v12 = vadd.f32 %v879_v53, %v878_v5  ;;  %v854_v53 = vmul.f32 %v784_v35, %v784_v35 }
 0x138   :  { %933 = vmatpush.msrb.mxu1 %v915_v60 }
 0x139   :  { %v882_v2 = vadd.f32 %v881_v39, %v880_v12  ;;  %v816_v12 = vsel %vm792_vm0, %v783_v29, 0.0  ;;  %v887_v27 = vsel %vm792_vm0, %v854_v53, 0.0 }
 0x13a   :  { %v1812_v15 = vpop.permute.xlu1 %345 }
 0x13b   :  { %v1838_v42 = vpop.permute.xlu2 %463  ;;  %v884_v39 = vadd.f32 %v883_v34, %v882_v2  ;;  %v472_v2 = vpop.permute.xlu0 %471 }
 0x13c   :  { %v1869_v20 = vpop.f32.mrf.mxu3 }
 0x143   :  { %v1822_v4 = vpop.permute.xlu1 %701 }
 0x144   :  { %v1862_v36 = vpop.permute.xlu2 %709  ;;  %v743_v37 = vmax.f32 %v1822_v4, %v1598_v8  ;;  %v385_v4 = vmax.f32 %v1812_v15, %v1572_v56  ;;  %v813_v15 = vadd.f32 %v812_v23, %v811_v25  ;;  %v914_v25 = vld [vmem:[%s2196_s2 + $0x18] sm:$0xff] }
 0x145   :  { %934 = vmatpush.msrb.mxu1 %v914_v25 }
 0x146   :  { %v1935_v50 = vmul.f32 %v743_v37, %v637_v22  ;;  %v1945_v37 = vpop.f32.mrf.mxu2  ;;  %v815_v22 = vadd.f32 %v814_v43, %v813_v15 }
 0x148   :  { %2226 = vst [vmem:[#allocation14_spill] sm:$0xff] %v1935_v50  ;;  %v785_v16 = vmul.f32 %v1935_v50, %v1903_v26 }
 0x14a   :  { %v855_v15 = vmul.f32 %v785_v16, %v785_v16 }
 0x14c   :  { %v1840_v63 = vpop.permute.xlu1 %459 }
 0x14d   :  { %v1880_v38 = vpop.permute.xlu2 %590 }
 0x14e   :  { %v620_v29 = vmax.f32 %v1880_v38, %v1596_v6 }
 0x155   :  { %v1864_v57 = vpop.permute.xlu1 %355 }
 0x156   :  { %v1912_v40 = vpop.permute.xlu2 %365  ;;  %v387_v23 = vmax.f32 %v1864_v57, %v1572_v56 }
 0x158   :  { %v1886_v0 = vpop.f32.mrf.mxu3 }
 0x15e   :  { %v1882_v61 = vpop.permute.xlu1 %586 }
 0x15f   :  { %v619_v21 = vmax.f32 %v1882_v61, %v1596_v6  ;;  %v493_v61 = vmax.f32 %v1838_v42, %v1577_v58  ;;  %v885_v42 = vsel %vm792_vm0, %v853_v49, 0.0 }
 0x160   :  { %v239_v31 = vpop.f32.mrf.mxu3  ;;  %v886_v34 = vadd.f32 %v885_v42, %v884_v39 }
 0x161   :  { %v491_v31 = vmax.f32 %v1804_v14, %v1577_v58  ;;  %v492_v14 = vmax.f32 %v1840_v63, %v1577_v58  ;;  %v514_v49 = vmul.f32 %v493_v61, %v387_v23 }
 0x162   :  { %v888_v60 = vadd.f32 %v887_v27, %v886_v34  ;;  %v495_v27 = vmax.f32 %v472_v2, %v1577_v58 }
 0x163   :  { %v512_v45 = vmul.f32 %v491_v31, %v385_v4  ;;  %v745_v31 = vmax.f32 %v1862_v36, %v1598_v8  ;;  %v718_v4 = vpop.permute.xlu2 %717  ;;  %v513_v5 = vmul.f32 %v492_v14, %v386_v18  ;;  %v786_v36 = vmul.f32 %v1771_v54, %v1945_v37  ;;  %v913_v18 = vld [vmem:[%s2196_s2 + $0x10] sm:$0xff] }
 0x164   :  { %v818_v14 = vsel %vm792_vm0, %v784_v35, 0.0  ;;  %v820_v54 = vsel %vm792_vm0, %v785_v16, 0.0  ;;  %935 = vmatpush.msrb.mxu1 %v913_v18  ;;  %v388_v16 = vmax.f32 %v1696_v48, %v1572_v56  ;;  %v747_v38 = vmax.f32 %v718_v4, %v1598_v8 }
 0x165   :  { %v639_v43 = vmul.f32 %v618_v24, %v512_v45  ;;  %v640_v57 = vmul.f32 %v619_v21, %v513_v5  ;;  %v912_v45 = vld [vmem:[%s2196_s2 + $0x8] sm:$0xff]  ;;  %v856_v53 = vmul.f32 %v786_v36, %v786_v36  ;;  %v822_v39 = vsel %vm792_vm0, %v786_v36, 0.0 }
 0x166   :  { %936 = vmatpush.msrb.mxu1 %v912_v45  ;;  %v389_v36 = vmax.f32 %v1912_v40, %v1572_v56  ;;  %v726_v45 = vpop.permute.xlu0 %725 }
 0x167   :  { %v1914_v59 = vpop.permute.xlu1 %467  ;;  %v1980_v50 = vmul.f32 %v745_v31, %v639_v43 }
 0x168   :  { %v494_v35 = vmax.f32 %v1914_v59, %v1577_v58  ;;  %v911_v59 = vld [vmem:[%s2196_s2] sm:$0xff]  ;;  %v516_v40 = vmul.f32 %v495_v27, %v389_v36 }
 0x169   :  { %v787_v61 = vmul.f32 %v1980_v50, %v1814_v55  ;;  %937 = vmatpush.msrb.mxu1 %v911_v59 }
 0x16a   :  { %v515_v25 = vmul.f32 %v494_v35, %v388_v16 }
 0x16b   :  { %v722_v5 = vpop.permute.xlu2 %721  ;;  %v824_v34 = vsel %vm792_vm0, %v787_v61, 0.0 }
 0x170   :  { %v714_v63 = vpop.permute.xlu1 %713 }
 0x171   :  { %v746_v51 = vmax.f32 %v714_v63, %v1598_v8  ;;  %v817_v63 = vadd.f32 %v816_v12, %v815_v22  ;;  %v889_v22 = vsel %vm792_vm0, %v855_v15, 0.0  ;;  %v942_v15 = vld [vmem:[%s2197_s3] sm:$0xff] }
 0x172   :  { %v890_v12 = vadd.f32 %v889_v22, %v888_v60 }
 0x173   :  { %v1986_v24 = vmul.f32 %v746_v51, %v640_v57  ;;  %v819_v21 = vadd.f32 %v818_v14, %v817_v63  ;;  %v641_v51 = vmul.f32 %v620_v29, %v514_v49  ;;  %v943_v14 = vld [vmem:[%s2197_s3 + $0x8] sm:$0xff]  ;;  %v891_v57 = vsel %vm792_vm0, %v856_v53, 0.0 }
 0x174   :  { %v857_v63 = vmul.f32 %v787_v61, %v787_v61  ;;  %962 = vmatpush.msra.mxu1 %v943_v14  ;;  %v892_v35 = vadd.f32 %v891_v57, %v890_v12  ;;  %v749_v53 = vmax.f32 %v726_v45, %v1598_v8 }
 0x175   :  { %v821_v31 = vadd.f32 %v820_v54, %v819_v21  ;;  %v788_v48 = vmul.f32 %v1986_v24, %v1826_v10  ;;  %v2004_v43 = vmul.f32 %v747_v38, %v641_v51  ;;  %v748_v54 = vmax.f32 %v722_v5, %v1598_v8 }
 0x176   :  { %963 = vmatpush.msra.mxu1 %v942_v15  ;;  %v893_v56 = vsel %vm792_vm0, %v857_v63, 0.0 }
 0x177   :  { %v823_v18 = vadd.f32 %v822_v39, %v821_v31  ;;  %v858_v29 = vmul.f32 %v788_v48, %v788_v48  ;;  %v789_v21 = vmul.f32 %v2004_v43, %v1845_v19  ;;  %v826_v16 = vsel %vm792_vm0, %v788_v48, 0.0 }
 0x178   :  { %v894_v31 = vadd.f32 %v893_v56, %v892_v35 }
 0x179   :  { %v595_v23 = vpop.permute.xlu1 %594  ;;  %v825_v38 = vadd.f32 %v824_v34, %v823_v18  ;;  %v895_v2 = vsel %vm792_vm0, %v858_v29, 0.0  ;;  %v859_v61 = vmul.f32 %v789_v21, %v789_v21 }
 0x17a   :  { %v621_v4 = vmax.f32 %v595_v23, %v1596_v6  ;;  %v896_v51 = vadd.f32 %v895_v2, %v894_v31 }
 0x17b   :  { %v827_v60 = vadd.f32 %v826_v16, %v825_v38  ;;  %v897_v39 = vsel %vm792_vm0, %v859_v61, 0.0 }
 0x17c   :  { %v642_v42 = vmul.f32 %v621_v4, %v515_v25  ;;  %v828_v25 = vsel %vm792_vm0, %v789_v21, 0.0 }
 0x17d   :  { %v829_v12 = vadd.f32 %v828_v25, %v827_v60 }
 0x17e   :  { %v2017_v49 = vmul.f32 %v748_v54, %v642_v42  ;;  %v898_v54 = vadd.f32 %v897_v39, %v896_v51 }
 0x180   :  { %v790_v22 = vmul.f32 %v2017_v49, %v1869_v20 }
 0x181   :  { %v599_v58 = vpop.permute.xlu1 %598 }
 0x182   :  { %v622_v59 = vmax.f32 %v599_v58, %v1596_v6  ;;  %v860_v5 = vmul.f32 %v790_v22, %v790_v22  ;;  %v830_v48 = vsel %vm792_vm0, %v790_v22, 0.0 }
 0x183   :  { %v831_v42 = vadd.f32 %v830_v48, %v829_v12 }
 0x184   :  { %v643_v23 = vmul.f32 %v622_v59, %v516_v40  ;;  %v899_v6 = vsel %vm792_vm0, %v860_v5, 0.0 }
 0x185   :  { %v900_v18 = vadd.f32 %v899_v6, %v898_v54  ;;  %v974_v54 = vld [vmem:[%s2198_s4] sm:$0x1] }
 0x186   :  { %v2031_v4 = vmul.f32 %v749_v53, %v643_v23 }
 0x188   :  { %v791_v8 = vmul.f32 %v2031_v4, %v1886_v0 }
 0x18a   :  { %v833_v14 = vsel %vm832_vm1, %v791_v8, 0.0  ;;  %v861_v15 = vmul.f32 %v791_v8, %v791_v8 }
 0x18b   :  { %v834_v57 = vadd.f32 %v833_v14, %v831_v42 }
 0x18c   :  { %v901_v63 = vsel %vm832_vm1, %v861_v15, 0.0 }
 0x18d   :  { %v835_v36 = vrot.slane %v834_v57, 4  ;;  %v902_v27 = vadd.f32 %v901_v63, %v900_v18 }
 0x18f   :  { %v836_v29 = vadd.f32 %v835_v36, %v834_v57  ;;  %v903_v35 = vrot.slane %v902_v27, 4  ;;  %v992_v57 = vld [vmem:[%s2199_s5] sm:$0x1] }
 0x191   :  { %v837_v45 = vrot.slane %v836_v29, 2  ;;  %v904_v34 = vadd.f32 %v903_v35, %v902_v27 }
 0x193   :  { %v838_v21 = vadd.f32 %v837_v45, %v836_v29  ;;  %v905_v16 = vrot.slane %v904_v34, 2 }
 0x195   :  { %v839_v22 = vrot.slane %v838_v21, 1  ;;  %v906_v38 = vadd.f32 %v905_v16, %v904_v34 }
 0x197   :  { %v907_v56 = vrot.slane %v906_v38, 1  ;;  %v840_v58 = vadd.f32 %v839_v22, %v838_v21 }
 0x199   :  { %v908_v40 = vadd.f32 %v907_v56, %v906_v38 }
 0x19b   :  { %v910_v2 = vsel %vm909_vm2, %v840_v58, %v908_v40 }
 0x19c   :  { %1205 = vmatmul.msk.f32.vlgmr.msrb.gmra.mxu1 %vm792_vm0, %v910_v2 }
 0x219   :  { %v939_v59 = vpop.f32.mrf.mxu1 }
 0x21a   :  { %1206 = vmatmul.msk.f32.vlgmr.msra.gmra.mxu1 %vm944_vm3, %v939_v59 }
 0x297   :  { %v965_v53 = vpop.f32.mrf.mxu1 }
 0x298   :  { %v968_v31 = vmul.f32 0.001953125, %v965_v53 }
 0x29a   :  { %v969_v60 = vmul.f32 %v968_v31, %v968_v31 }
 0x29c   :  { %v971_v61 = vrot.slane %v969_v60, 7 }
 0x29e   :  { %v973_v5 = vsub.f32 %v968_v31, %v971_v61 }
 0x2a0   :  { %v975_v23 = vadd.f32 1e-05, %v973_v5 }
 0x2a2   :  { %1297 = vrsqrt.f32 %v975_v23  ;;  %vm982_vm5 = vweird.f32 %v975_v23 }
 0x2a8   :  { %v1298_v51 = vpop.eup %1297 }
 0x2a9   :  { %v977_v25 = vmul.f32 %v1298_v51, %v975_v23  ;;  %vm983_vm4 = vweird.f32 %v1298_v51 }
 0x2aa   :  { %vm984_vm6 = vmor %vm982_vm5, %vm983_vm4 }
 0x2ab   :  { %v978_v48 = vmul.f32 %v1298_v51, %v977_v25 }
 0x2ad   :  { %v979_v12 = vmul.f32 0.5, %v978_v48 }
 0x2af   :  { %v980_v39 = vsub.f32 1.5, %v979_v12  ;;  %v2227_v12 = vld [vmem:[#allocation2_spill] sm:$0xff] }
 0x2b1   :  { %v981_v6 = vmul.f32 %v1298_v51, %v980_v39 }
 0x2b3   :  { %v985_v8 = vsel %vm984_vm6, %v1298_v51, %v981_v6  ;;  %v2228_v6 = vld [vmem:[#allocation3_spill] sm:$0xff] }
 0x2b4   :  { %987 = vst [vmem:[#allocation1] sm:$0xff] %v985_v8  ;;  %v2229_v8 = vld [vmem:[#allocation7_spill] sm:$0xff] }
 0x2bb   :  { %v989_v42 = vld [vmem:[#allocation1 + $0x1] ss:$9 sm:$0xff] }
 0x2bc   :  { %v991_v14 = vmul.f32 %v989_v42, %v974_v54  ;;  %v2230_v42 = vld [vmem:[#allocation4_spill] sm:$0xff] }
 0x2be   :  { %v993_v15 = vmul.f32 %v991_v14, %v968_v31  ;;  %v996_v63 = vperm.slane %v991_v14, 0 }
 0x2c0   :  { %v994_v18 = vsub.f32 %v992_v57, %v993_v15  ;;  %v998_v27 = vmul.f32 %v996_v63, %v1793_v33  ;;  %v999_v29 = vmul.f32 %v996_v63, %v1800_v44  ;;  %v1000_v35 = vmul.f32 %v996_v63, %v1808_v47  ;;  %v2231_v57 = vld [vmem:[#allocation5_spill] sm:$0xff] }
 0x2c1   :  { %v1001_v45 = vmul.f32 %v996_v63, %v1818_v62  ;;  %v1002_v34 = vmul.f32 %v996_v63, %v1832_v11  ;;  %v1003_v21 = vmul.f32 %v996_v63, %v1854_v28  ;;  %v1004_v16 = vmul.f32 %v996_v63, %v1824_v9 }
 0x2c2   :  { %v2044_v36 = vperm.slane %v994_v18, 0  ;;  %v1005_v22 = vmul.f32 %v996_v63, %v1842_v46  ;;  %v1006_v56 = vmul.f32 %v996_v63, %v1866_v13  ;;  %v1007_v62 = vmul.f32 %v996_v63, %v1888_v3 }
 0x2c3   :  { %v1008_v11 = vmul.f32 %v996_v63, %v1816_v1  ;;  %v1009_v28 = vmul.f32 %v996_v63, %v1828_v52  ;;  %v1010_v46 = vmul.f32 %v996_v63, %v1852_v41  ;;  %v1011_v58 = vmul.f32 %v996_v63, %v1876_v32 }
 0x2c4   :  { %v1022_v38 = vadd.f32 %v2044_v36, %v998_v27  ;;  %v1023_v33 = vadd.f32 %v2044_v36, %v999_v29  ;;  %v1024_v44 = vadd.f32 %v2044_v36, %v1000_v35  ;;  %v1025_v47 = vadd.f32 %v2044_v36, %v1001_v45  ;;  %v2232_v35 = vld [vmem:[#allocation9_spill] sm:$0xff] }
 0x2c5   :  { %v1026_v9 = vadd.f32 %v2044_v36, %v1002_v34  ;;  %v1012_v13 = vmul.f32 %v996_v63, %v1903_v26  ;;  %v1027_v40 = vadd.f32 %v2044_v36, %v1003_v21  ;;  %v1013_v2 = vmul.f32 %v996_v63, %v1945_v37 }
 0x2c6   :  { %v1014_v59 = vmul.f32 %v996_v63, %v1814_v55  ;;  %v1028_v3 = vadd.f32 %v2044_v36, %v1004_v16  ;;  %v1043_v1 = vmax.f32 %v1022_v38, 0.0  ;;  %v1029_v52 = vadd.f32 %v2044_v36, %v1005_v22  ;;  %v2233_v16 = vld [vmem:[#allocation8_spill] sm:$0xff] }
 0x2c7   :  { %v1044_v53 = vmax.f32 %v1023_v33, 0.0  ;;  %v1045_v31 = vmax.f32 %v1024_v44, 0.0  ;;  %v1046_v60 = vmax.f32 %v1025_v47, 0.0  ;;  %v1015_v41 = vmul.f32 %v996_v63, %v1826_v10 }
 0x2c8   :  { %v1016_v32 = vmul.f32 %v996_v63, %v1845_v19  ;;  %v1030_v26 = vadd.f32 %v2044_v36, %v1006_v56  ;;  %v1047_v61 = vmax.f32 %v1026_v9, 0.0  ;;  %v1017_v5 = vmul.f32 %v996_v63, %v1869_v20  ;;  %v2234_v56 = vld [vmem:[#allocation6_spill] sm:$0xff] }
 0x2c9   :  { %v1018_v37 = vmul.f32 %v996_v63, %v1886_v0  ;;  %v1031_v55 = vadd.f32 %v2044_v36, %v1007_v62  ;;  %v1048_v23 = vmax.f32 %v1027_v40, 0.0  ;;  %v1032_v51 = vadd.f32 %v2044_v36, %v1008_v11  ;;  %v2235_v9 = vld [vmem:[#allocation10_spill] sm:$0xff] }
 0x2ca   :  { %v1033_v25 = vadd.f32 %v2044_v36, %v1009_v28  ;;  %v1049_v48 = vmax.f32 %v1028_v3, 0.0  ;;  %v1064_v39 = vmul.f32 %v1043_v1, %v2227_v12  ;;  %v1050_v10 = vmax.f32 %v1029_v52, 0.0 }
 0x2cb   :  { %v1065_v19 = vmul.f32 %v1044_v53, %v2228_v6  ;;  %v1066_v54 = vmul.f32 %v1045_v31, %v2229_v8  ;;  %v1067_v14 = vmul.f32 %v1046_v60, %v2230_v42  ;;  %v1034_v20 = vadd.f32 %v2044_v36, %v1010_v46  ;;  %v2237_v53 = vld [vmem:[#allocation13_spill] sm:$0xff] }
 0x2cc   :  { %v1035_v0 = vadd.f32 %v2044_v36, %v1011_v58  ;;  %v1051_v15 = vmax.f32 %v1030_v26, 0.0  ;;  %v1068_v18 = vmul.f32 %v1047_v61, %v2231_v57  ;;  %v1036_v63 = vadd.f32 %v2044_v36, %v1012_v13 }
 0x2cd   :  { %v1037_v27 = vadd.f32 %v2044_v36, %v1013_v2  ;;  %v1052_v29 = vmax.f32 %v1031_v55, 0.0  ;;  %v1069_v45 = vmul.f32 %v1048_v23, %v2232_v35  ;;  %v1053_v34 = vmax.f32 %v1032_v51, 0.0  ;;  %v2236_v2 = vld [vmem:[#allocation11_spill] sm:$0xff] }
 0x2ce   :  { %v1054_v21 = vmax.f32 %v1033_v25, 0.0  ;;  %v1070_v22 = vmul.f32 %v1049_v48, %v2233_v16  ;;  %v1085_v38 = vpack.c.bf16 %v1064_v39, %v1064_v39  ;;  %v1071_v33 = vmul.f32 %v1050_v10, %v2234_v56  ;;  %v2239_v10 = vld [vmem:[#allocation12_spill] sm:$0xff] }
 0x2cf   :  { %v1086_v44 = vpack.c.bf16 %v1065_v19, %v1065_v19  ;;  %v1087_v47 = vpack.c.bf16 %v1066_v54, %v1066_v54  ;;  %v1088_v62 = vpack.c.bf16 %v1067_v14, %v1067_v14  ;;  %v1038_v11 = vadd.f32 %v2044_v36, %v1014_v59 }
 0x2d0   :  { %v1055_v28 = vmax.f32 %v1034_v20, 0.0  ;;  %v1072_v46 = vmul.f32 %v1051_v15, %v2235_v9  ;;  %v1089_v58 = vpack.c.bf16 %v1068_v18, %v1068_v18  ;;  %1107 = vst.msk [vmem:[%s2200_s8] sm:$0xf] %vm1106_vm7, %v1085_v38  ;;  %v1039_v13 = vadd.f32 %v2044_v36, %v1015_v41 }
 0x2d1   :  { %v1056_v40 = vmax.f32 %v1035_v0, 0.0  ;;  %v1073_v3 = vmul.f32 %v1052_v29, %v2236_v2  ;;  %v1090_v1 = vpack.c.bf16 %v1069_v45, %v1069_v45  ;;  %1108 = vst.msk [vmem:[%s2200_s8 + $0x4] sm:$0xf] %vm1106_vm7, %v1086_v44  ;;  %v1040_v59 = vadd.f32 %v2044_v36, %v1016_v32 }
 0x2d2   :  { %v1057_v52 = vmax.f32 %v1036_v63, 0.0  ;;  %v1074_v31 = vmul.f32 %v1053_v34, %v2237_v53  ;;  %v1091_v60 = vpack.c.bf16 %v1070_v22, %v1070_v22  ;;  %1109 = vst.msk [vmem:[%s2200_s8 + $0x8] sm:$0xf] %vm1106_vm7, %v1087_v47  ;;  %v1041_v41 = vadd.f32 %v2044_v36, %v1017_v5 }
 0x2d3   :  { %v1058_v26 = vmax.f32 %v1037_v27, 0.0  ;;  %v1075_v61 = vmul.f32 %v1054_v21, %v1797_v7  ;;  %v1092_v55 = vpack.c.bf16 %v1071_v33, %v1071_v33  ;;  %1110 = vst.msk [vmem:[%s2200_s8 + $0xc] sm:$0xf] %vm1106_vm7, %v1088_v62  ;;  %v1042_v32 = vadd.f32 %v2044_v36, %v1018_v37  ;;  %v2238_v36 = vld [vmem:[#allocation14_spill] sm:$0xff] }
 0x2d4   :  { %v1059_v23 = vmax.f32 %v1038_v11, 0.0  ;;  %v1076_v51 = vmul.f32 %v1055_v28, %v1787_v30  ;;  %v1093_v25 = vpack.c.bf16 %v1072_v46, %v1072_v46  ;;  %1111 = vst.msk [vmem:[%s2200_s8 + $0x10] sm:$0xf] %vm1106_vm7, %v1089_v58  ;;  %v1060_v5 = vmax.f32 %v1039_v13, 0.0 }
 0x2d5   :  { %v1077_v7 = vmul.f32 %v1056_v40, %v1923_v17  ;;  %v1094_v48 = vpack.c.bf16 %v1073_v3, %v1073_v3  ;;  %1112 = vst.msk [vmem:[%s2200_s8 + $0x14] sm:$0xf] %vm1106_vm7, %v1090_v1  ;;  %v1061_v12 = vmax.f32 %v1040_v59, 0.0  ;;  %v1078_v37 = vmul.f32 %v1057_v52, %v2238_v36 }
 0x2d6   :  { %v1095_v39 = vpack.c.bf16 %v1074_v31, %v1074_v31  ;;  %1113 = vst.msk [vmem:[%s2200_s8 + $0x18] sm:$0xf] %vm1106_vm7, %v1091_v60  ;;  %v1062_v30 = vmax.f32 %v1041_v41, 0.0  ;;  %v1079_v6 = vmul.f32 %v1058_v26, %v2239_v10  ;;  %v1096_v19 = vpack.c.bf16 %v1075_v61, %v1075_v61 }
 0x2d7   :  { %1114 = vst.msk [vmem:[%s2200_s8 + $0x1c] sm:$0xf] %vm1106_vm7, %v1092_v55  ;;  %v1063_v17 = vmax.f32 %v1042_v32, 0.0  ;;  %v1080_v8 = vmul.f32 %v1059_v23, %v1980_v50  ;;  %v1097_v54 = vpack.c.bf16 %v1076_v51, %v1076_v51  ;;  %v1081_v42 = vmul.f32 %v1060_v5, %v1986_v24 }
 0x2d8   :  { %1115 = vst.msk [vmem:[%s2200_s8 + $0x20] sm:$0xf] %vm1106_vm7, %v1093_v25  ;;  %v1098_v14 = vpack.c.bf16 %v1077_v7, %v1077_v7  ;;  %v1082_v20 = vmul.f32 %v1061_v12, %v2004_v43  ;;  %v1099_v0 = vpack.c.bf16 %v1078_v37, %v1078_v37  ;;  %v1083_v50 = vmul.f32 %v1062_v30, %v2017_v49 }
 0x2d9   :  { %1116 = vst.msk [vmem:[%s2200_s8 + $0x24] sm:$0xf] %vm1106_vm7, %v1094_v48  ;;  %v1100_v15 = vpack.c.bf16 %v1079_v6, %v1079_v6  ;;  %v1084_v24 = vmul.f32 %v1063_v17, %v2031_v4  ;;  %v1101_v57 = vpack.c.bf16 %v1080_v8, %v1080_v8  ;;  %v1102_v43 = vpack.c.bf16 %v1081_v42, %v1081_v42 }
 0x2da   :  { %1117 = vst.msk [vmem:[%s2200_s8 + $0x28] sm:$0xf] %vm1106_vm7, %v1095_v39  ;;  %v1103_v49 = vpack.c.bf16 %v1082_v20, %v1082_v20  ;;  %v1104_v18 = vpack.c.bf16 %v1083_v50, %v1083_v50 }
 0x2db   :  { %1118 = vst.msk [vmem:[%s2200_s8 + $0x2c] sm:$0xf] %vm1106_vm7, %v1096_v19  ;;  %v1105_v4 = vpack.c.bf16 %v1084_v24, %v1084_v24 }
 0x2dc   :  { %1119 = vst.msk [vmem:[%s2200_s8 + $0x30] sm:$0xf] %vm1106_vm7, %v1097_v54 }
 0x2dd   :  { %1120 = vst.msk [vmem:[%s2200_s8 + $0x34] sm:$0xf] %vm1106_vm7, %v1098_v14 }
 0x2de   :  { %1121 = vst.msk [vmem:[%s2200_s8 + $0x38] sm:$0xf] %vm1106_vm7, %v1099_v0 }
 0x2df   :  { %1122 = vst.msk [vmem:[%s2200_s8 + $0x3c] sm:$0xf] %vm1106_vm7, %v1100_v15 }
 0x2e0   :  { %1123 = vst.msk [vmem:[%s2200_s8 + $0x40] sm:$0xf] %vm1106_vm7, %v1101_v57 }
 0x2e1   :  { %1124 = vst.msk [vmem:[%s2200_s8 + $0x44] sm:$0xf] %vm1106_vm7, %v1102_v43 }
 0x2e2   :  { %1125 = vst.msk [vmem:[%s2200_s8 + $0x48] sm:$0xf] %vm1106_vm7, %v1103_v49 }
 0x2e3   :  { %1126 = vst.msk [vmem:[%s2200_s8 + $0x4c] sm:$0xf] %vm1106_vm7, %v1104_v18 }
 0x2e4   :  { %1128 = vst.msk [vmem:[%s2200_s8 + $0x50] sm:$0x1] %vm1127_vm8, %v1105_v4 }

// kernel: generator_forward.8
= control target key start
LH: loop header
LB: loop body
LE: loop exit
PB: predicated region body
PF: predicated region fallthrough
CT: control target
= control target key end

     0   :  { %v3788_v0 = vmov 0   ;;  %vm318_vm0 = vcmask 523264   ;;  %vm2526_vm1 = vcmask 261120   ;;  %vm2670_vm2 = vcmask 254976   ;;  %s7348_s6 = inlined_call_operand.vmem [shape: f32[578,4], index: 6, kind: input, shape index: {}]   ;;  %s7349_s1 = inlined_call_operand.vmem [shape: bf16[64,32], index: 1, kind: input, shape index: {}]   ;;  %s7350_s0 = inlined_call_operand.vmem [shape: bf16[578,64], index: 0, kind: input, shape index: {}]   ;;  %s7351_s7 = inlined_call_operand.vmem [shape: f32[4,32], index: 7, kind: input, shape index: {}]   ;;  %s7352_s2 = inlined_call_operand.vmem [shape: f32[32,8], index: 2, kind: input, shape index: {}]   ;;  %s7353_s3 = inlined_call_operand.vmem [shape: f32[8,32], index: 3, kind: input, shape index: {}]   ;;  %s7354_s4 = inlined_call_operand.vmem [shape: f32[1,32], index: 4, kind: input, shape index: {}]   ;;  %s7355_s5 = inlined_call_operand.vmem [shape: f32[1,32], index: 5, kind: input, shape index: {}]   ;;  %s7356_s8 = inlined_call_operand.vmem [shape: bf16[578,32], index: 8, kind: output, shape index: {}]  }
   0x1   :  { %3691 = vset.pattern.permute.xlu2 %v3788_v0  ;;  %3690 = vset.pattern.permute.xlu1 %v3788_v0  ;;  %v3840_v1 = vld [vmem:[%s7348_s6 + $0x20] sm:$0xff]  ;;  %v3845_v2 = vld [vmem:[%s7348_s6 + $0x10] sm:$0xff]  ;;  %v3858_v4 = vld [vmem:[%s7348_s6 + $0x28] sm:$0xff]  ;;  %vm2903_vm3 = vcmask 1040384   ;;  %vm2933_vm4 = vcmask 64512   ;;  %vm3355_vm8 = vcmask 257024  }
   0x2   :  { %v3850_v3 = vld [vmem:[%s7348_s6] sm:$0xff]  ;;  %3689 = vset.pattern.permute.xlu0 %v3788_v0  ;;  %719 = vperm.xlu2 %3691, %v3840_v1   ;;  %v3863_v5 = vld [vmem:[%s7348_s6 + $0x18] sm:$0xff]  ;;  %v3868_v6 = vld [vmem:[%s7348_s6 + $0x8] sm:$0xff]  ;;  %vm3428_vm9 = vcmask 253952  }
   0x3   :  { %709 = vperm.xlu1 %3690, %v3845_v2   ;;  %699 = vperm.xlu0 %3689, %v3850_v3   ;;  %7562 = vst [vmem:[#allocation2_spill] sm:$0xff] %v3868_v6  ;;  %v3876_v7 = vld [vmem:[%s7348_s6 + $0x40] sm:$0xff]  ;;  %v3881_v8 = vld [vmem:[%s7348_s6 + $0x38] sm:$0xff]  ;;  %v3886_v9 = vld [vmem:[%s7348_s6 + $0x30] sm:$0xff] }
   0x4   :  { %v3894_v10 = vld [vmem:[%s7348_s6 + $0x58] sm:$0xff]  ;;  %v3899_v11 = vld [vmem:[%s7348_s6 + $0x50] sm:$0xff]  ;;  %v3904_v12 = vld [vmem:[%s7348_s6 + $0x48] sm:$0xff] }
   0x5   :  { %v3912_v13 = vld [vmem:[%s7348_s6 + $0x70] sm:$0xff]  ;;  %v3917_v14 = vld [vmem:[%s7348_s6 + $0x68] sm:$0xff]  ;;  %v3922_v15 = vld [vmem:[%s7348_s6 + $0x60] sm:$0xff] }
   0x6   :  { %v3930_v16 = vld [vmem:[%s7348_s6 + $0x88] sm:$0xff]  ;;  %v3935_v17 = vld [vmem:[%s7348_s6 + $0x80] sm:$0xff]  ;;  %v3940_v18 = vld [vmem:[%s7348_s6 + $0x78] sm:$0xff] }
   0x7   :  { %v3948_v19 = vld [vmem:[%s7348_s6 + $0xa0] sm:$0xff]  ;;  %v3953_v20 = vld [vmem:[%s7348_s6 + $0x98] sm:$0xff]  ;;  %v3958_v21 = vld [vmem:[%s7348_s6 + $0x90] sm:$0xff] }
   0x8   :  { %v3966_v22 = vld [vmem:[%s7348_s6 + $0xb8] sm:$0xff]  ;;  %v3971_v23 = vld [vmem:[%s7348_s6 + $0xb0] sm:$0xff]  ;;  %v3976_v24 = vld [vmem:[%s7348_s6 + $0xa8] sm:$0xff] }
   0x9   :  { %v3984_v25 = vld [vmem:[%s7348_s6 + $0xd0] sm:$0xff]  ;;  %v3989_v26 = vld [vmem:[%s7348_s6 + $0xc8] sm:$0xff]  ;;  %v3994_v27 = vld [vmem:[%s7348_s6 + $0xc0] sm:$0xff] }
   0xa   :  { %724 = vperm.xlu2 %3691, %v3858_v4   ;;  %v4002_v28 = vld [vmem:[%s7348_s6 + $0xe8] sm:$0xff]  ;;  %v4007_v29 = vld [vmem:[%s7348_s6 + $0xe0] sm:$0xff]  ;;  %v4012_v30 = vld [vmem:[%s7348_s6 + $0xd8] sm:$0xff] }
   0xb   :  { %714 = vperm.xlu1 %3690, %v3863_v5   ;;  %704 = vperm.xlu0 %3689, %v3868_v6   ;;  %v4020_v31 = vld [vmem:[%s7348_s6 + $0x100] sm:$0xff]  ;;  %v4025_v32 = vld [vmem:[%s7348_s6 + $0xf8] sm:$0xff]  ;;  %v4030_v33 = vld [vmem:[%s7348_s6 + $0xf0] sm:$0xff] }
   0xc   :  { %v4038_v34 = vld [vmem:[%s7348_s6 + $0x118] sm:$0xff]  ;;  %v4043_v35 = vld [vmem:[%s7348_s6 + $0x110] sm:$0xff]  ;;  %v4048_v36 = vld [vmem:[%s7348_s6 + $0x108] sm:$0xff] }
   0xd   :  { %v4058_v38 = vld [vmem:[%s7348_s6 + $0x130] sm:$0xff]  ;;  %v4063_v39 = vld [vmem:[%s7348_s6 + $0x128] sm:$0xff]  ;;  %v4068_v40 = vld [vmem:[%s7348_s6 + $0x120] sm:$0xff] }
   0xe   :  { %v4078_v42 = vld [vmem:[%s7348_s6 + $0x148] sm:$0xff]  ;;  %v4083_v43 = vld [vmem:[%s7348_s6 + $0x140] sm:$0xff]  ;;  %v4088_v44 = vld [vmem:[%s7348_s6 + $0x138] sm:$0xff] }
   0xf   :  { %v4098_v46 = vld [vmem:[%s7348_s6 + $0x160] sm:$0xff]  ;;  %v4103_v47 = vld [vmem:[%s7348_s6 + $0x158] sm:$0xff]  ;;  %v4108_v48 = vld [vmem:[%s7348_s6 + $0x150] sm:$0xff] }
  0x10   :  { %v4122_v52 = vld [vmem:[%s7348_s6 + $0x178] sm:$0xff]  ;;  %v4127_v53 = vld [vmem:[%s7348_s6 + $0x170] sm:$0xff]  ;;  %v4132_v54 = vld [vmem:[%s7348_s6 + $0x168] sm:$0xff] }
  0x11   :  { %v4146_v58 = vld [vmem:[%s7348_s6 + $0x190] sm:$0xff]  ;;  %v4151_v59 = vld [vmem:[%s7348_s6 + $0x188] sm:$0xff]  ;;  %v4156_v60 = vld [vmem:[%s7348_s6 + $0x180] sm:$0xff] }
  0x12   :  { %739 = vperm.xlu2 %3691, %v3876_v7   ;;  %v4170_v0 = vld [vmem:[%s7348_s6 + $0x1a8] sm:$0xff] }
  0x13   :  { %734 = vperm.xlu1 %3690, %v3881_v8   ;;  %729 = vperm.xlu0 %3689, %v3886_v9  }
  0x1a   :  { %754 = vperm.xlu2 %3691, %v3894_v10  }
  0x1b   :  { %749 = vperm.xlu1 %3690, %v3899_v11   ;;  %744 = vperm.xlu0 %3689, %v3904_v12  }
  0x22   :  { %769 = vperm.xlu2 %3691, %v3912_v13  }
  0x23   :  { %764 = vperm.xlu1 %3690, %v3917_v14   ;;  %759 = vperm.xlu0 %3689, %v3922_v15  }
  0x2a   :  { %784 = vperm.xlu2 %3691, %v3930_v16  }
  0x2b   :  { %779 = vperm.xlu1 %3690, %v3935_v17   ;;  %774 = vperm.xlu0 %3689, %v3940_v18  }
  0x32   :  { %799 = vperm.xlu2 %3691, %v3948_v19  }
  0x33   :  { %794 = vperm.xlu1 %3690, %v3953_v20   ;;  %789 = vperm.xlu0 %3689, %v3958_v21  }
  0x3a   :  { %814 = vperm.xlu2 %3691, %v3966_v22  }
  0x3b   :  { %809 = vperm.xlu1 %3690, %v3971_v23   ;;  %804 = vperm.xlu0 %3689, %v3976_v24  }
  0x42   :  { %829 = vperm.xlu2 %3691, %v3984_v25  }
  0x43   :  { %824 = vperm.xlu1 %3690, %v3989_v26   ;;  %819 = vperm.xlu0 %3689, %v3994_v27  }
  0x4a   :  { %844 = vperm.xlu2 %3691, %v4002_v28  }
  0x4b   :  { %839 = vperm.xlu1 %3690, %v4007_v29   ;;  %834 = vperm.xlu0 %3689, %v4012_v30  }
  0x52   :  { %859 = vperm.xlu2 %3691, %v4020_v31  }
  0x53   :  { %854 = vperm.xlu1 %3690, %v4025_v32   ;;  %849 = vperm.xlu0 %3689, %v4030_v33  }
  0x5a   :  { %874 = vperm.xlu2 %3691, %v4038_v34  }
  0x5b   :  { %869 = vperm.xlu1 %3690, %v4043_v35   ;;  %864 = vperm.xlu0 %3689, %v4048_v36  }
  0x5c   :  { %v4053_v37 = vpop.permute.xlu2 %719 }
  0x5d   :  { %7563 = vst [vmem:[#allocation3_spill] sm:$0xff] %v4053_v37  ;;  %v4218_v37 = vld [vmem:[%s7348_s6 + $0x1d8] sm:$0xff] }
  0x5e   :  { %7586 = vst [vmem:[#allocation26_spill] sm:$0xff] %v4218_v37 }
  0x62   :  { %889 = vperm.xlu2 %3691, %v4058_v38  }
  0x63   :  { %884 = vperm.xlu1 %3690, %v4063_v39   ;;  %879 = vperm.xlu0 %3689, %v4068_v40  }
  0x64   :  { %v4073_v41 = vpop.permute.xlu2 %724 }
  0x65   :  { %7564 = vst [vmem:[#allocation4_spill] sm:$0xff] %v4073_v41  ;;  %v4228_v41 = vld [vmem:[%s7348_s6 + $0x1c8] sm:$0xff] }
  0x66   :  { %7588 = vst [vmem:[#allocation28_spill] sm:$0xff] %v4228_v41 }
  0x6a   :  { %904 = vperm.xlu2 %3691, %v4078_v42  }
  0x6b   :  { %899 = vperm.xlu1 %3690, %v4083_v43   ;;  %894 = vperm.xlu0 %3689, %v4088_v44  }
  0x6c   :  { %v4093_v45 = vpop.permute.xlu2 %739 }
  0x6d   :  { %7565 = vst [vmem:[#allocation5_spill] sm:$0xff] %v4093_v45  ;;  %v4223_v45 = vld [vmem:[%s7348_s6 + $0x1d0] sm:$0xff] }
  0x6e   :  { %7587 = vst [vmem:[#allocation27_spill] sm:$0xff] %v4223_v45 }
  0x72   :  { %919 = vperm.xlu2 %3691, %v4098_v46  }
  0x73   :  { %914 = vperm.xlu1 %3690, %v4103_v47   ;;  %909 = vperm.xlu0 %3689, %v4108_v48  }
  0x74   :  { %v4113_v49 = vpop.permute.xlu2 %754 }
  0x75   :  { %7566 = vst [vmem:[#allocation6_spill] sm:$0xff] %v4113_v49  ;;  %v4115_v50 = vpop.permute.xlu1 %709  ;;  %v4117_v51 = vpop.permute.xlu0 %699  ;;  %v4204_v49 = vld [vmem:[%s7348_s6 + $0x1b0] sm:$0xff] }
  0x76   :  { %7567 = vst [vmem:[#allocation7_spill] sm:$0xff] %v4115_v50  ;;  %v4199_v50 = vld [vmem:[%s7348_s6 + $0x1b8] sm:$0xff] }
  0x77   :  { %7568 = vst [vmem:[#allocation8_spill] sm:$0xff] %v4117_v51  ;;  %v4242_v51 = vld [vmem:[%s7348_s6 + $0x1f0] sm:$0xff] }
  0x78   :  { %7581 = vst [vmem:[#allocation21_spill] sm:$0xff] %v4199_v50 }
  0x79   :  { %7582 = vst [vmem:[#allocation22_spill] sm:$0xff] %v4204_v49 }
  0x7a   :  { %934 = vperm.xlu2 %3691, %v4122_v52   ;;  %7592 = vst [vmem:[#allocation32_spill] sm:$0xff] %v4242_v51 }
  0x7b   :  { %929 = vperm.xlu1 %3690, %v4127_v53   ;;  %924 = vperm.xlu0 %3689, %v4132_v54  }
  0x7c   :  { %v4137_v55 = vpop.permute.xlu2 %769 }
  0x7d   :  { %7569 = vst [vmem:[#allocation9_spill] sm:$0xff] %v4137_v55  ;;  %v4139_v56 = vpop.permute.xlu1 %714  ;;  %v4141_v57 = vpop.permute.xlu0 %704  ;;  %v4194_v55 = vld [vmem:[%s7348_s6 + $0x1c0] sm:$0xff] }
  0x7e   :  { %7570 = vst [vmem:[#allocation10_spill] sm:$0xff] %v4139_v56  ;;  %v4180_v56 = vld [vmem:[%s7348_s6 + $0x198] sm:$0xff] }
  0x7f   :  { %7571 = vst [vmem:[#allocation11_spill] sm:$0xff] %v4141_v57  ;;  %v4175_v57 = vld [vmem:[%s7348_s6 + $0x1a0] sm:$0xff] }
  0x80   :  { %7575 = vst [vmem:[#allocation15_spill] sm:$0xff] %v4175_v57 }
  0x81   :  { %7576 = vst [vmem:[#allocation16_spill] sm:$0xff] %v4180_v56 }
  0x82   :  { %949 = vperm.xlu2 %3691, %v4146_v58   ;;  %7580 = vst [vmem:[#allocation20_spill] sm:$0xff] %v4194_v55 }
  0x83   :  { %944 = vperm.xlu1 %3690, %v4151_v59   ;;  %939 = vperm.xlu0 %3689, %v4156_v60  }
  0x84   :  { %v4161_v61 = vpop.permute.xlu2 %784 }
  0x85   :  { %7572 = vst [vmem:[#allocation12_spill] sm:$0xff] %v4161_v61  ;;  %v4163_v62 = vpop.permute.xlu1 %734  ;;  %v4165_v63 = vpop.permute.xlu0 %729 }
  0x86   :  { %7573 = vst [vmem:[#allocation13_spill] sm:$0xff] %v4163_v62 }
  0x87   :  { %7574 = vst [vmem:[#allocation14_spill] sm:$0xff] %v4165_v63 }
  0x8a   :  { %964 = vperm.xlu2 %3691, %v4170_v0  }
  0x8b   :  { %959 = vperm.xlu1 %3690, %v4175_v57   ;;  %954 = vperm.xlu0 %3689, %v4180_v56  }
  0x8c   :  { %v4185_v63 = vpop.permute.xlu2 %799 }
  0x8d   :  { %7577 = vst [vmem:[#allocation17_spill] sm:$0xff] %v4185_v63  ;;  %v4187_v62 = vpop.permute.xlu1 %749  ;;  %v4189_v61 = vpop.permute.xlu0 %744 }
  0x8e   :  { %7578 = vst [vmem:[#allocation18_spill] sm:$0xff] %v4187_v62 }
  0x8f   :  { %7579 = vst [vmem:[#allocation19_spill] sm:$0xff] %v4189_v61 }
  0x92   :  { %979 = vperm.xlu2 %3691, %v4194_v55   ;;  %v4247_v55 = vld [vmem:[%s7348_s6 + $0x1e8] sm:$0xff] }
  0x93   :  { %974 = vperm.xlu1 %3690, %v4199_v50   ;;  %969 = vperm.xlu0 %3689, %v4204_v49   ;;  %7593 = vst [vmem:[#allocation33_spill] sm:$0xff] %v4247_v55 }
  0x94   :  { %v4209_v61 = vpop.permute.xlu2 %814 }
  0x95   :  { %7583 = vst [vmem:[#allocation23_spill] sm:$0xff] %v4209_v61  ;;  %v4211_v62 = vpop.permute.xlu1 %764  ;;  %v4213_v63 = vpop.permute.xlu0 %759 }
  0x96   :  { %7584 = vst [vmem:[#allocation24_spill] sm:$0xff] %v4211_v62 }
  0x97   :  { %7585 = vst [vmem:[#allocation25_spill] sm:$0xff] %v4213_v63 }
  0x9a   :  { %994 = vperm.xlu2 %3691, %v4218_v37   ;;  %v4252_v37 = vld [vmem:[%s7348_s6 + $0x1e0] sm:$0xff] }
  0x9b   :  { %989 = vperm.xlu1 %3690, %v4223_v45   ;;  %984 = vperm.xlu0 %3689, %v4228_v41   ;;  %7594 = vst [vmem:[#allocation34_spill] sm:$0xff] %v4252_v37  ;;  %v4266_v45 = vld [vmem:[%s7348_s6 + $0x208] sm:$0xff]  ;;  %v4271_v41 = vld [vmem:[%s7348_s6 + $0x200] sm:$0xff] }
  0x9c   :  { %v4233_v63 = vpop.permute.xlu2 %829  ;;  %7598 = vst [vmem:[#allocation38_spill] sm:$0xff] %v4266_v45 }
  0x9d   :  { %7589 = vst [vmem:[#allocation29_spill] sm:$0xff] %v4233_v63  ;;  %v4235_v62 = vpop.permute.xlu1 %779  ;;  %v4237_v61 = vpop.permute.xlu0 %774 }
  0x9e   :  { %7590 = vst [vmem:[#allocation30_spill] sm:$0xff] %v4235_v62 }
  0x9f   :  { %7591 = vst [vmem:[#allocation31_spill] sm:$0xff] %v4237_v61 }
  0xa0   :  { %7599 = vst [vmem:[#allocation39_spill] sm:$0xff] %v4271_v41 }
  0xa2   :  { %1009 = vperm.xlu2 %3691, %v4242_v51   ;;  %v4276_v51 = vld [vmem:[%s7348_s6 + $0x1f8] sm:$0xff] }
  0xa3   :  { %1004 = vperm.xlu1 %3690, %v4247_v55   ;;  %999 = vperm.xlu0 %3689, %v4252_v37   ;;  %7600 = vst [vmem:[#allocation40_spill] sm:$0xff] %v4276_v51  ;;  %v4290_v55 = vld [vmem:[%s7348_s6 + $0x220] sm:$0xff]  ;;  %v4295_v37 = vld [vmem:[%s7348_s6 + $0x218] sm:$0xff] }
  0xa4   :  { %v4257_v61 = vpop.permute.xlu2 %844  ;;  %7604 = vst [vmem:[#allocation44_spill] sm:$0xff] %v4290_v55 }
  0xa5   :  { %7595 = vst [vmem:[#allocation35_spill] sm:$0xff] %v4257_v61  ;;  %v4259_v62 = vpop.permute.xlu1 %794  ;;  %v4261_v63 = vpop.permute.xlu0 %789 }
  0xa6   :  { %7596 = vst [vmem:[#allocation36_spill] sm:$0xff] %v4259_v62 }
  0xa7   :  { %7597 = vst [vmem:[#allocation37_spill] sm:$0xff] %v4261_v63 }
  0xa8   :  { %7605 = vst [vmem:[#allocation45_spill] sm:$0xff] %v4295_v37 }
  0xaa   :  { %1024 = vperm.xlu2 %3691, %v4266_v45   ;;  %v4300_v45 = vld [vmem:[%s7348_s6 + $0x210] sm:$0xff] }
  0xab   :  { %1019 = vperm.xlu1 %3690, %v4271_v41   ;;  %1014 = vperm.xlu0 %3689, %v4276_v51   ;;  %7606 = vst [vmem:[#allocation46_spill] sm:$0xff] %v4300_v45  ;;  %v4314_v41 = vld [vmem:[%s7348_s6 + $0x238] sm:$0xff]  ;;  %v4319_v51 = vld [vmem:[%s7348_s6 + $0x230] sm:$0xff] }
  0xac   :  { %v4281_v63 = vpop.permute.xlu2 %859  ;;  %7610 = vst [vmem:[#allocation50_spill] sm:$0xff] %v4314_v41 }
  0xad   :  { %7601 = vst [vmem:[#allocation41_spill] sm:$0xff] %v4281_v63  ;;  %v4283_v62 = vpop.permute.xlu1 %809  ;;  %v4285_v61 = vpop.permute.xlu0 %804 }
  0xae   :  { %7602 = vst [vmem:[#allocation42_spill] sm:$0xff] %v4283_v62 }
  0xaf   :  { %7603 = vst [vmem:[#allocation43_spill] sm:$0xff] %v4285_v61 }
  0xb2   :  { %1039 = vperm.xlu2 %3691, %v4290_v55   ;;  %v4324_v55 = vld [vmem:[%s7348_s6 + $0x228] sm:$0xff] }
  0xb3   :  { %1034 = vperm.xlu1 %3690, %v4295_v37   ;;  %1029 = vperm.xlu0 %3689, %v4300_v45   ;;  %v4338_v37 = vld [vmem:[%s7348_s6 + $0x240] sm:$0x3]  ;;  %v3789_v45 = vmov 1  }
  0xb4   :  { %v4305_v61 = vpop.permute.xlu2 %874  ;;  %7614 = vst [vmem:[#allocation54_spill] sm:$0xff] %v4338_v37 }
  0xb5   :  { %7607 = vst [vmem:[#allocation47_spill] sm:$0xff] %v4305_v61  ;;  %v4307_v62 = vpop.permute.xlu1 %824  ;;  %v4309_v63 = vpop.permute.xlu0 %819 }
  0xb6   :  { %7608 = vst [vmem:[#allocation48_spill] sm:$0xff] %v4307_v62 }
  0xb7   :  { %7609 = vst [vmem:[#allocation49_spill] sm:$0xff] %v4309_v63 }
  0xba   :  { %1054 = vperm.xlu2 %3691, %v4314_v41  }
  0xbb   :  { %1049 = vperm.xlu1 %3690, %v4319_v51   ;;  %1044 = vperm.xlu0 %3689, %v4324_v55  }
  0xbc   :  { %v4329_v63 = vpop.permute.xlu2 %889 }
  0xbd   :  { %7611 = vst [vmem:[#allocation51_spill] sm:$0xff] %v4329_v63  ;;  %v4331_v62 = vpop.permute.xlu1 %839  ;;  %v4333_v61 = vpop.permute.xlu0 %834 }
  0xbe   :  { %7612 = vst [vmem:[#allocation52_spill] sm:$0xff] %v4331_v62 }
  0xbf   :  { %7613 = vst [vmem:[#allocation53_spill] sm:$0xff] %v4333_v61 }
  0xc2   :  { %3693 = vset.pattern.permute.xlu2 %v3789_v45 }
  0xc3   :  { %3692 = vset.pattern.permute.xlu1 %v3789_v45  ;;  %1059 = vperm.xlu0 %3689, %v4338_v37  }
  0xc4   :  { %1141 = vperm.xlu2 %3693, %v3868_v6   ;;  %1137 = vperm.xlu1 %3692, %v3850_v3   ;;  %v4343_v41 = vpop.permute.xlu2 %904 }
  0xc5   :  { %7615 = vst [vmem:[#allocation55_spill] sm:$0xff] %v4343_v41  ;;  %v4345_v63 = vpop.permute.xlu1 %854  ;;  %v4347_v62 = vpop.permute.xlu0 %849 }
  0xc6   :  { %7616 = vst [vmem:[#allocation56_spill] sm:$0xff] %v4345_v63 }
  0xc7   :  { %7617 = vst [vmem:[#allocation57_spill] sm:$0xff] %v4347_v62 }
  0xcb   :  { %3694 = vset.pattern.permute.xlu0 %v3789_v45 }
  0xcc   :  { %1153 = vperm.xlu2 %3693, %v3840_v1   ;;  %1149 = vperm.xlu1 %3692, %v3863_v5   ;;  %v4351_v61 = vpop.permute.xlu2 %919 }
  0xcd   :  { %7618 = vst [vmem:[#allocation58_spill] sm:$0xff] %v4351_v61  ;;  %1145 = vperm.xlu0 %3694, %v3845_v2   ;;  %v4354_v37 = vpop.permute.xlu1 %869  ;;  %v4356_v6 = vpop.permute.xlu0 %864 }
  0xce   :  { %7619 = vst [vmem:[#allocation59_spill] sm:$0xff] %v4354_v37 }
  0xcf   :  { %7620 = vst [vmem:[#allocation60_spill] sm:$0xff] %v4356_v6 }
  0xd4   :  { %1161 = vperm.xlu2 %3693, %v3886_v9   ;;  %1157 = vperm.xlu1 %3692, %v3858_v4   ;;  %v4360_v63 = vpop.permute.xlu2 %934 }
  0xd5   :  { %7621 = vst [vmem:[#allocation61_spill] sm:$0xff] %v4360_v63  ;;  %1165 = vperm.xlu0 %3694, %v3881_v8   ;;  %v4363_v45 = vpop.permute.xlu1 %884  ;;  %v4365_v62 = vpop.permute.xlu0 %879 }
  0xd6   :  { %7622 = vst [vmem:[#allocation62_spill] sm:$0xff] %v4363_v45 }
  0xd7   :  { %7623 = vst [vmem:[#allocation63_spill] sm:$0xff] %v4365_v62 }
  0xdc   :  { %1173 = vperm.xlu2 %3693, %v3904_v12   ;;  %1169 = vperm.xlu1 %3692, %v3876_v7   ;;  %v4369_v61 = vpop.permute.xlu2 %949 }
  0xdd   :  { %7624 = vst [vmem:[#allocation64_spill] sm:$0xff] %v4369_v61  ;;  %1177 = vperm.xlu0 %3694, %v3899_v11   ;;  %v4372_v6 = vpop.permute.xlu1 %899  ;;  %v4374_v37 = vpop.permute.xlu0 %894 }
  0xde   :  { %7625 = vst [vmem:[#allocation65_spill] sm:$0xff] %v4372_v6 }
  0xdf   :  { %7626 = vst [vmem:[#allocation66_spill] sm:$0xff] %v4374_v37 }
  0xe4   :  { %1185 = vperm.xlu2 %3693, %v3922_v15   ;;  %1181 = vperm.xlu1 %3692, %v3894_v10   ;;  %v4378_v63 = vpop.permute.xlu2 %964 }
  0xe5   :  { %7627 = vst [vmem:[#allocation67_spill] sm:$0xff] %v4378_v63  ;;  %1189 = vperm.xlu0 %3694, %v3917_v14   ;;  %v4381_v62 = vpop.permute.xlu1 %914  ;;  %v4383_v45 = vpop.permute.xlu0 %909 }
  0xe6   :  { %7628 = vst [vmem:[#allocation68_spill] sm:$0xff] %v4381_v62 }
  0xe7   :  { %7629 = vst [vmem:[#allocation69_spill] sm:$0xff] %v4383_v45 }
  0xec   :  { %1197 = vperm.xlu2 %3693, %v3940_v18   ;;  %1193 = vperm.xlu1 %3692, %v3912_v13   ;;  %v4387_v61 = vpop.permute.xlu2 %979 }
  0xed   :  { %7630 = vst [vmem:[#allocation70_spill] sm:$0xff] %v4387_v61  ;;  %1201 = vperm.xlu0 %3694, %v3935_v17   ;;  %v4390_v37 = vpop.permute.xlu1 %929  ;;  %v4392_v6 = vpop.permute.xlu0 %924 }
  0xee   :  { %7631 = vst [vmem:[#allocation71_spill] sm:$0xff] %v4390_v37 }
  0xef   :  { %7632 = vst [vmem:[#allocation72_spill] sm:$0xff] %v4392_v6 }
  0xf4   :  { %1209 = vperm.xlu2 %3693, %v3958_v21   ;;  %1205 = vperm.xlu1 %3692, %v3930_v16   ;;  %v4396_v63 = vpop.permute.xlu2 %994 }
  0xf5   :  { %7633 = vst [vmem:[#allocation73_spill] sm:$0xff] %v4396_v63  ;;  %1213 = vperm.xlu0 %3694, %v3953_v20   ;;  %v4399_v45 = vpop.permute.xlu1 %944  ;;  %v4401_v62 = vpop.permute.xlu0 %939 }
  0xf6   :  { %7634 = vst [vmem:[#allocation74_spill] sm:$0xff] %v4399_v45 }
  0xf7   :  { %7635 = vst [vmem:[#allocation75_spill] sm:$0xff] %v4401_v62 }
  0xfc   :  { %1221 = vperm.xlu2 %3693, %v3976_v24   ;;  %1217 = vperm.xlu1 %3692, %v3948_v19   ;;  %v4405_v61 = vpop.permute.xlu2 %1009 }
  0xfd   :  { %7636 = vst [vmem:[#allocation76_spill] sm:$0xff] %v4405_v61  ;;  %1225 = vperm.xlu0 %3694, %v3971_v23   ;;  %v4408_v6 = vpop.permute.xlu1 %959  ;;  %v4410_v37 = vpop.permute.xlu0 %954 }
  0xfe   :  { %7637 = vst [vmem:[#allocation77_spill] sm:$0xff] %v4408_v6 }
  0xff   :  { %7638 = vst [vmem:[#allocation78_spill] sm:$0xff] %v4410_v37 }
 0x104   :  { %1233 = vperm.xlu2 %3693, %v3994_v27   ;;  %1229 = vperm.xlu1 %3692, %v3966_v22   ;;  %v4414_v63 = vpop.permute.xlu2 %1024 }
 0x105   :  { %7639 = vst [vmem:[#allocation79_spill] sm:$0xff] %v4414_v63  ;;  %1237 = vperm.xlu0 %3694, %v3989_v26   ;;  %v4417_v62 = vpop.permute.xlu1 %974  ;;  %v4419_v45 = vpop.permute.xlu0 %969 }
 0x106   :  { %7640 = vst [vmem:[#allocation80_spill] sm:$0xff] %v4417_v62 }
 0x107   :  { %7641 = vst [vmem:[#allocation81_spill] sm:$0xff] %v4419_v45 }
 0x10c   :  { %1245 = vperm.xlu2 %3693, %v4012_v30   ;;  %1241 = vperm.xlu1 %3692, %v3984_v25   ;;  %v4423_v61 = vpop.permute.xlu2 %1039 }
 0x10d   :  { %7642 = vst [vmem:[#allocation82_spill] sm:$0xff] %v4423_v61  ;;  %1249 = vperm.xlu0 %3694, %v4007_v29   ;;  %v4426_v37 = vpop.permute.xlu1 %989  ;;  %v4428_v6 = vpop.permute.xlu0 %984 }
 0x10e   :  { %7643 = vst [vmem:[#allocation83_spill] sm:$0xff] %v4426_v37  ;;  %v7672_v37 = vld [vmem:[#allocation28_spill] sm:$0xff] }
 0x10f   :  { %7644 = vst [vmem:[#allocation84_spill] sm:$0xff] %v4428_v6 }
 0x114   :  { %1257 = vperm.xlu2 %3693, %v4030_v33   ;;  %1253 = vperm.xlu1 %3692, %v4002_v28   ;;  %v4432_v63 = vpop.permute.xlu2 %1054 }
 0x115   :  { %7645 = vst [vmem:[#allocation85_spill] sm:$0xff] %v4432_v63  ;;  %1261 = vperm.xlu0 %3694, %v4025_v32   ;;  %v4435_v45 = vpop.permute.xlu1 %1004  ;;  %v4437_v62 = vpop.permute.xlu0 %999 }
 0x116   :  { %7646 = vst [vmem:[#allocation86_spill] sm:$0xff] %v4435_v45 }
 0x117   :  { %7647 = vst [vmem:[#allocation87_spill] sm:$0xff] %v4437_v62 }
 0x11c   :  { %1269 = vperm.xlu2 %3693, %v4048_v36   ;;  %1265 = vperm.xlu1 %3692, %v4020_v31  }
 0x11d   :  { %1273 = vperm.xlu0 %3694, %v4043_v35   ;;  %v4442_v61 = vpop.permute.xlu1 %1019  ;;  %v4444_v6 = vpop.permute.xlu0 %1014 }
 0x11e   :  { %7648 = vst [vmem:[#allocation88_spill] sm:$0xff] %v4442_v61  ;;  %v4446_v41 = vpop.permute.xlu2 %1141 }
 0x11f   :  { %7649 = vst [vmem:[#allocation89_spill] sm:$0xff] %v4444_v6 }
 0x120   :  { %7650 = vst [vmem:[#allocation90_spill] sm:$0xff] %v4446_v41 }
 0x124   :  { %1281 = vperm.xlu2 %3693, %v4068_v40   ;;  %1277 = vperm.xlu1 %3692, %v4038_v34  }
 0x125   :  { %1285 = vperm.xlu0 %3694, %v4063_v39   ;;  %v4451_v63 = vpop.permute.xlu1 %1034  ;;  %v4453_v62 = vpop.permute.xlu0 %1029 }
 0x126   :  { %7651 = vst [vmem:[#allocation91_spill] sm:$0xff] %v4451_v63  ;;  %v4455_v45 = vpop.permute.xlu2 %1153 }
 0x127   :  { %7652 = vst [vmem:[#allocation92_spill] sm:$0xff] %v4453_v62 }
 0x128   :  { %7653 = vst [vmem:[#allocation93_spill] sm:$0xff] %v4455_v45 }
 0x12c   :  { %1293 = vperm.xlu2 %3693, %v4088_v44   ;;  %1289 = vperm.xlu1 %3692, %v4058_v38  }
 0x12d   :  { %1297 = vperm.xlu0 %3694, %v4083_v43   ;;  %v4460_v6 = vpop.permute.xlu1 %1049  ;;  %v4462_v61 = vpop.permute.xlu0 %1044 }
 0x12e   :  { %7654 = vst [vmem:[#allocation94_spill] sm:$0xff] %v4460_v6  ;;  %v4464_v41 = vpop.permute.xlu2 %1161 }
 0x12f   :  { %7655 = vst [vmem:[#allocation95_spill] sm:$0xff] %v4462_v61 }
 0x130   :  { %7656 = vst [vmem:[#allocation96_spill] sm:$0xff] %v4464_v41 }
 0x134   :  { %1305 = vperm.xlu2 %3693, %v4108_v48   ;;  %1301 = vperm.xlu1 %3692, %v4078_v42  }
 0x135   :  { %1309 = vperm.xlu0 %3694, %v4103_v47   ;;  %v4469_v62 = vpop.permute.xlu0 %1059 }
 0x136   :  { %7657 = vst [vmem:[#allocation97_spill] sm:$0xff] %v4469_v62  ;;  %v4471_v63 = vpop.permute.xlu2 %1173  ;;  %v4473_v45 = vpop.permute.xlu1 %1137 }
 0x137   :  { %7658 = vst [vmem:[#allocation98_spill] sm:$0xff] %v4471_v63 }
 0x138   :  { %7659 = vst [vmem:[#allocation99_spill] sm:$0xff] %v4473_v45 }
 0x13c   :  { %1317 = vperm.xlu2 %3693, %v4132_v54   ;;  %1313 = vperm.xlu1 %3692, %v4098_v46  }
 0x13d   :  { %1321 = vperm.xlu0 %3694, %v4127_v53  }
 0x13e   :  { %v4478_v61 = vpop.permute.xlu2 %1185  ;;  %v4480_v6 = vpop.permute.xlu1 %1149 }
 0x13f   :  { %7660 = vst [vmem:[#allocation100_spill] sm:$0xff] %v4478_v61  ;;  %v4482_v41 = vpop.permute.xlu0 %1145 }
 0x140   :  { %7661 = vst [vmem:[#allocation101_spill] sm:$0xff] %v4480_v6 }
 0x141   :  { %7662 = vst [vmem:[#allocation102_spill] sm:$0xff] %v4482_v41 }
 0x144   :  { %1329 = vperm.xlu2 %3693, %v4156_v60   ;;  %1325 = vperm.xlu1 %3692, %v4122_v52  }
 0x145   :  { %1333 = vperm.xlu0 %3694, %v4151_v59  }
 0x146   :  { %v4487_v62 = vpop.permute.xlu2 %1197  ;;  %v4489_v63 = vpop.permute.xlu1 %1157 }
 0x147   :  { %7663 = vst [vmem:[#allocation103_spill] sm:$0xff] %v4487_v62  ;;  %v4491_v45 = vpop.permute.xlu0 %1165 }
 0x148   :  { %7664 = vst [vmem:[#allocation104_spill] sm:$0xff] %v4489_v63 }
 0x149   :  { %7665 = vst [vmem:[#allocation105_spill] sm:$0xff] %v4491_v45 }
 0x14c   :  { %1341 = vperm.xlu2 %3693, %v4180_v56   ;;  %1337 = vperm.xlu1 %3692, %v4146_v58   ;;  %v7673_v56 = vld [vmem:[#allocation20_spill] sm:$0xff] }
 0x14d   :  { %1345 = vperm.xlu0 %3694, %v4175_v57   ;;  %v7678_v57 = vld [vmem:[#allocation34_spill] sm:$0xff] }
 0x14e   :  { %v4496_v61 = vpop.permute.xlu2 %1209  ;;  %v4498_v6 = vpop.permute.xlu1 %1169 }
 0x14f   :  { %7666 = vst [vmem:[#allocation106_spill] sm:$0xff] %v4496_v61  ;;  %v4500_v41 = vpop.permute.xlu0 %1177  ;;  %v7674_v61 = vld [vmem:[#allocation27_spill] sm:$0xff] }
 0x150   :  { %7667 = vst [vmem:[#allocation107_spill] sm:$0xff] %v4498_v6 }
 0x151   :  { %7668 = vst [vmem:[#allocation108_spill] sm:$0xff] %v4500_v41 }
 0x154   :  { %1353 = vperm.xlu2 %3693, %v4204_v49   ;;  %1349 = vperm.xlu1 %3692, %v4170_v0  }
 0x155   :  { %1357 = vperm.xlu0 %3694, %v4199_v50   ;;  %v7679_v50 = vld [vmem:[#allocation26_spill] sm:$0xff] }
 0x156   :  { %v4505_v62 = vpop.permute.xlu2 %1221  ;;  %v4507_v45 = vpop.permute.xlu1 %1181 }
 0x157   :  { %7669 = vst [vmem:[#allocation109_spill] sm:$0xff] %v4505_v62  ;;  %v4509_v63 = vpop.permute.xlu0 %1189  ;;  %v7680_v62 = vld [vmem:[#allocation33_spill] sm:$0xff] }
 0x158   :  { %7670 = vst [vmem:[#allocation110_spill] sm:$0xff] %v4507_v45 }
 0x159   :  { %7671 = vst [vmem:[#allocation111_spill] sm:$0xff] %v4509_v63 }
 0x15c   :  { %1365 = vperm.xlu2 %3693, %v7672_v37   ;;  %1361 = vperm.xlu1 %3692, %v7673_v56   ;;  %v7684_v56 = vld [vmem:[#allocation40_spill] sm:$0xff] }
 0x15d   :  { %1369 = vperm.xlu0 %3694, %v7674_v61   ;;  %v7685_v61 = vld [vmem:[#allocation32_spill] sm:$0xff] }
 0x15e   :  { %v4514_v6 = vpop.permute.xlu2 %1233  ;;  %v4516_v41 = vpop.permute.xlu1 %1193 }
 0x15f   :  { %7675 = vst [vmem:[#allocation112_spill] sm:$0xff] %v4514_v6  ;;  %v4518_v49 = vpop.permute.xlu0 %1201  ;;  %v7686_v6 = vld [vmem:[#allocation39_spill] sm:$0xff] }
 0x160   :  { %7676 = vst [vmem:[#allocation113_spill] sm:$0xff] %v4516_v41 }
 0x161   :  { %7677 = vst [vmem:[#allocation114_spill] sm:$0xff] %v4518_v49 }
 0x164   :  { %1377 = vperm.xlu2 %3693, %v7678_v57   ;;  %1373 = vperm.xlu1 %3692, %v7679_v50   ;;  %v7689_v50 = vld [vmem:[#allocation46_spill] sm:$0xff] }
 0x165   :  { %1381 = vperm.xlu0 %3694, %v7680_v62   ;;  %v7690_v62 = vld [vmem:[#allocation38_spill] sm:$0xff] }
 0x166   :  { %v4523_v45 = vpop.permute.xlu2 %1245  ;;  %v4525_v63 = vpop.permute.xlu1 %1205 }
 0x167   :  { %7681 = vst [vmem:[#allocation115_spill] sm:$0xff] %v4523_v45  ;;  %v4527_v37 = vpop.permute.xlu0 %1213  ;;  %v7691_v45 = vld [vmem:[#allocation45_spill] sm:$0xff] }
 0x168   :  { %7682 = vst [vmem:[#allocation116_spill] sm:$0xff] %v4525_v63 }
 0x169   :  { %7683 = vst [vmem:[#allocation117_spill] sm:$0xff] %v4527_v37 }
 0x16c   :  { %1389 = vperm.xlu2 %3693, %v7684_v56   ;;  %1385 = vperm.xlu1 %3692, %v7685_v61  }
 0x16d   :  { %1393 = vperm.xlu0 %3694, %v7686_v6   ;;  %v7694_v6 = vld [vmem:[#allocation44_spill] sm:$0xff] }
 0x16e   :  { %v4532_v41 = vpop.permute.xlu2 %1257  ;;  %v4534_v49 = vpop.permute.xlu1 %1217 }
 0x16f   :  { %7687 = vst [vmem:[#allocation40_spill] sm:$0xff] %v4532_v41  ;;  %v4536_v57 = vpop.permute.xlu0 %1225 }
 0x170   :  { %7688 = vst [vmem:[#allocation32_spill] sm:$0xff] %v4536_v57 }
 0x174   :  { %1401 = vperm.xlu2 %3693, %v7689_v50   ;;  %1397 = vperm.xlu1 %3692, %v7690_v62   ;;  %v7698_v62 = vld [vmem:[#allocation54_spill] sm:$0xff] }
 0x175   :  { %1405 = vperm.xlu0 %3694, %v7691_v45   ;;  %v7699_v45 = vld [vmem:[#allocation50_spill] sm:$0xff] }
 0x176   :  { %v4541_v63 = vpop.permute.xlu2 %1269  ;;  %v4543_v37 = vpop.permute.xlu1 %1229 }
 0x177   :  { %7692 = vst [vmem:[#allocation39_spill] sm:$0xff] %v4541_v63  ;;  %v4545_v56 = vpop.permute.xlu0 %1237  ;;  %v7425_v63 = vmov 2  }
 0x178   :  { %7693 = vst [vmem:[#allocation46_spill] sm:$0xff] %v4545_v56  ;;  %v3759_v56 = vld [vmem:[%s7348_s6 + $0x158] sm:$0xff] }
 0x17c   :  { %1413 = vperm.xlu2 %3693, %v4324_v55   ;;  %1409 = vperm.xlu1 %3692, %v7694_v6  }
 0x17d   :  { %1417 = vperm.xlu0 %3694, %v4319_v51  }
 0x17e   :  { %v4550_v61 = vpop.permute.xlu2 %1281  ;;  %v4552_v41 = vpop.permute.xlu1 %1241 }
 0x17f   :  { %7695 = vst [vmem:[#allocation38_spill] sm:$0xff] %v4550_v61  ;;  %v4554_v57 = vpop.permute.xlu0 %1249  ;;  %v3672_v61 = vld [vmem:[%s7349_s1 + $0x18] sm:$0xff] }
 0x180   :  { %7696 = vst [vmem:[#allocation45_spill] sm:$0xff] %v4552_v41  ;;  %434 = vmatpush.bf16.msra.mxu0 %v3672_v61  ;;  %3673 = vmatpush.bf16.msra.mxu1 %v3672_v61  ;;  %v7847_v41 = vld [vmem:[#allocation42_spill] sm:$0xff] }
 0x181   :  { %7697 = vst [vmem:[#allocation44_spill] sm:$0xff] %v4554_v57  ;;  %3674 = vmatpush.bf16.msra.mxu2 %v3672_v61  ;;  %3675 = vmatpush.bf16.msra.mxu3 %v3672_v61  ;;  %v3670_v61 = vld [vmem:[%s7349_s1 + $0x8] sm:$0xff] }
 0x184   :  { %1425 = vperm.xlu2 %3693, %v7698_v62   ;;  %1421 = vperm.xlu1 %3692, %v7699_v45   ;;  %v3671_v62 = vld [vmem:[%s7349_s1 + $0x10] sm:$0xff] }
 0x185   :  { %3695 = vset.pattern.permute.xlu0 %v7425_v63  ;;  %435 = vmatpush.bf16.msra.mxu0 %v3671_v62 }
 0x186   :  { %1576 = vperm.xlu0 %3695, %v3850_v3   ;;  %v4560_v55 = vpop.permute.xlu2 %1293  ;;  %v4562_v6 = vpop.permute.xlu1 %1253  ;;  %v7703_v3 = vld [vmem:[#allocation2_spill] sm:$0xff]  ;;  %3676 = vmatpush.bf16.msra.mxu1 %v3671_v62 }
 0x187   :  { %7700 = vst [vmem:[#allocation54_spill] sm:$0xff] %v4560_v55  ;;  %v4564_v51 = vpop.permute.xlu0 %1261  ;;  %3677 = vmatpush.bf16.msra.mxu2 %v3671_v62  ;;  %3678 = vmatpush.bf16.msra.mxu3 %v3671_v62  ;;  %v3633_v62 = vld [vmem:[%s7350_s0] sm:$0xff] }
 0x188   :  { %7701 = vst [vmem:[#allocation50_spill] sm:$0xff] %v4562_v6 }
 0x189   :  { %7702 = vst [vmem:[#allocation118_spill] sm:$0xff] %v4564_v51  ;;  %436 = vmatpush.bf16.msra.mxu0 %v3670_v61 }
 0x18a   :  { %3679 = vmatpush.bf16.msra.mxu1 %v3670_v61 }
 0x18b   :  { %3680 = vmatpush.bf16.msra.mxu2 %v3670_v61  ;;  %3681 = vmatpush.bf16.msra.mxu3 %v3670_v61 }
 0x18c   :  { %3697 = vset.pattern.permute.xlu2 %v7425_v63  ;;  %3696 = vset.pattern.permute.xlu1 %v7425_v63 }
 0x18d   :  { %1584 = vperm.xlu2 %3697, %v3845_v2   ;;  %1580 = vperm.xlu1 %3696, %v7703_v3   ;;  %v3669_v2 = vld [vmem:[%s7349_s1] sm:$0xff] }
 0x18e   :  { %1596 = vperm.xlu0 %3695, %v3858_v4   ;;  %v4577_v45 = vpop.permute.xlu2 %1305  ;;  %v4579_v55 = vpop.permute.xlu1 %1265  ;;  %437 = vmatpush.bf16.msra.mxu0 %v3669_v2 }
 0x18f   :  { %7704 = vst [vmem:[#allocation2_spill] sm:$0xff] %v4577_v45  ;;  %v4581_v51 = vpop.permute.xlu0 %1273  ;;  %3682 = vmatpush.bf16.msra.mxu1 %v3669_v2  ;;  %3683 = vmatpush.bf16.msra.mxu2 %v3669_v2 }
 0x190   :  { %7705 = vst [vmem:[#allocation119_spill] sm:$0xff] %v4579_v55  ;;  %3684 = vmatpush.bf16.msra.mxu3 %v3669_v2 }
 0x191   :  { %7706 = vst [vmem:[#allocation120_spill] sm:$0xff] %v4581_v51  ;;  %3594 = vmatmul.msk.bf16.vlgmr.msra.gmra.mxu0 %vm318_vm0, %v3633_v62 }
 0x195   :  { %1592 = vperm.xlu2 %3697, %v3840_v1   ;;  %1588 = vperm.xlu1 %3696, %v3863_v5  }
 0x196   :  { %1608 = vperm.xlu0 %3695, %v3876_v7   ;;  %v4592_v4 = vpop.permute.xlu2 %1317  ;;  %v4594_v3 = vpop.permute.xlu1 %1277 }
 0x197   :  { %7707 = vst [vmem:[#allocation121_spill] sm:$0xff] %v4592_v4  ;;  %v4599_v63 = vpop.permute.xlu0 %1285 }
 0x198   :  { %7708 = vst [vmem:[#allocation122_spill] sm:$0xff] %v4594_v3 }
 0x199   :  { %7709 = vst [vmem:[#allocation123_spill] sm:$0xff] %v4599_v63 }
 0x19d   :  { %1604 = vperm.xlu2 %3697, %v3881_v8   ;;  %1600 = vperm.xlu1 %3696, %v3886_v9   ;;  %v3634_v8 = vld [vmem:[%s7350_s0 + $0x8] sm:$0xff] }
 0x19e   :  { %1620 = vperm.xlu0 %3695, %v3894_v10   ;;  %v4605_v1 = vpop.permute.xlu2 %1329  ;;  %v4607_v5 = vpop.permute.xlu1 %1289 }
 0x19f   :  { %7710 = vst [vmem:[#allocation124_spill] sm:$0xff] %v4605_v1  ;;  %v4609_v7 = vpop.permute.xlu0 %1297  ;;  %v3660_v1 = vld [vmem:[%s7350_s0 + $0xd8] sm:$0xff] }
 0x1a0   :  { %7711 = vst [vmem:[#allocation125_spill] sm:$0xff] %v4607_v5  ;;  %3621 = vmatmul.msk.bf16.vlgmr.msra.gmra.mxu3 %vm318_vm0, %v3660_v1  ;;  %v3730_v1 = vld [vmem:[%s7348_s6 + $0x78] sm:$0xff] }
 0x1a1   :  { %7712 = vst [vmem:[#allocation126_spill] sm:$0xff] %v4609_v7  ;;  %3595 = vmatmul.msk.bf16.gmra.mxu0 %vm318_vm0, %v3634_v8 }
 0x1a5   :  { %1616 = vperm.xlu2 %3697, %v3899_v11   ;;  %1612 = vperm.xlu1 %3696, %v3904_v12  }
 0x1a6   :  { %1632 = vperm.xlu0 %3695, %v3912_v13   ;;  %v4614_v61 = vpop.permute.xlu2 %1341  ;;  %v4616_v2 = vpop.permute.xlu1 %1301 }
 0x1a7   :  { %7713 = vst [vmem:[#allocation127_spill] sm:$0xff] %v4614_v61  ;;  %v4621_v9 = vpop.permute.xlu0 %1309  ;;  %v3724_v61 = vld [vmem:[%s7348_s6 + $0x48] sm:$0xff] }
 0x1a8   :  { %7714 = vst [vmem:[#allocation128_spill] sm:$0xff] %v4616_v2 }
 0x1a9   :  { %7715 = vst [vmem:[#allocation129_spill] sm:$0xff] %v4621_v9 }
 0x1ad   :  { %1628 = vperm.xlu2 %3697, %v3917_v14   ;;  %1624 = vperm.xlu1 %3696, %v3922_v15   ;;  %v3635_v14 = vld [vmem:[%s7350_s0 + $0x10] sm:$0xff] }
 0x1ae   :  { %1644 = vperm.xlu0 %3695, %v3930_v16   ;;  %v4627_v10 = vpop.permute.xlu2 %1353  ;;  %v4629_v11 = vpop.permute.xlu1 %1313 }
 0x1af   :  { %7716 = vst [vmem:[#allocation130_spill] sm:$0xff] %v4627_v10  ;;  %v4631_v12 = vpop.permute.xlu0 %1321 }
 0x1b0   :  { %7717 = vst [vmem:[#allocation131_spill] sm:$0xff] %v4629_v11 }
 0x1b1   :  { %7718 = vst [vmem:[#allocation132_spill] sm:$0xff] %v4631_v12  ;;  %3596 = vmatmul.msk.bf16.gmra.mxu0 %vm318_vm0, %v3635_v14  ;;  %v3729_v12 = vld [vmem:[%s7348_s6 + $0x68] sm:$0xff] }
 0x1b5   :  { %1640 = vperm.xlu2 %3697, %v3935_v17   ;;  %1636 = vperm.xlu1 %3696, %v3940_v18  }
 0x1b6   :  { %1656 = vperm.xlu0 %3695, %v3948_v19   ;;  %v4636_v13 = vpop.permute.xlu2 %1365  ;;  %v4638_v62 = vpop.permute.xlu1 %1325 }
 0x1b7   :  { %7719 = vst [vmem:[#allocation133_spill] sm:$0xff] %v4636_v13  ;;  %v4643_v15 = vpop.permute.xlu0 %1333 }
 0x1b8   :  { %7720 = vst [vmem:[#allocation134_spill] sm:$0xff] %v4638_v62 }
 0x1b9   :  { %7721 = vst [vmem:[#allocation135_spill] sm:$0xff] %v4643_v15 }
 0x1bd   :  { %1652 = vperm.xlu2 %3697, %v3953_v20   ;;  %1648 = vperm.xlu1 %3696, %v3958_v21   ;;  %v3636_v20 = vld [vmem:[%s7350_s0 + $0x18] sm:$0xff] }
 0x1be   :  { %1668 = vperm.xlu0 %3695, %v3966_v22   ;;  %v4649_v16 = vpop.permute.xlu2 %1377  ;;  %v4651_v17 = vpop.permute.xlu1 %1337 }
 0x1bf   :  { %7722 = vst [vmem:[#allocation136_spill] sm:$0xff] %v4649_v16  ;;  %v4653_v18 = vpop.permute.xlu0 %1345 }
 0x1c0   :  { %7723 = vst [vmem:[#allocation137_spill] sm:$0xff] %v4651_v17 }
 0x1c1   :  { %7724 = vst [vmem:[#allocation138_spill] sm:$0xff] %v4653_v18  ;;  %3597 = vmatmul.msk.bf16.gmra.mxu0 %vm318_vm0, %v3636_v20 }
 0x1c5   :  { %1664 = vperm.xlu2 %3697, %v3971_v23   ;;  %1660 = vperm.xlu1 %3696, %v3976_v24  }
 0x1c6   :  { %1680 = vperm.xlu0 %3695, %v3984_v25   ;;  %v4658_v19 = vpop.permute.xlu2 %1389  ;;  %v4660_v8 = vpop.permute.xlu1 %1349 }
 0x1c7   :  { %7725 = vst [vmem:[#allocation139_spill] sm:$0xff] %v4658_v19  ;;  %v4665_v21 = vpop.permute.xlu0 %1357 }
 0x1c8   :  { %7726 = vst [vmem:[#allocation140_spill] sm:$0xff] %v4660_v8  ;;  %v3723_v8 = vld [vmem:[%s7348_s6 + $0x38] sm:$0xff] }
 0x1c9   :  { %7727 = vst [vmem:[#allocation141_spill] sm:$0xff] %v4665_v21 }
 0x1cd   :  { %1676 = vperm.xlu2 %3697, %v3989_v26   ;;  %1672 = vperm.xlu1 %3696, %v3994_v27   ;;  %v3637_v26 = vld [vmem:[%s7350_s0 + $0x20] sm:$0xff]  ;;  %v3643_v27 = vld [vmem:[%s7350_s0 + $0x50] sm:$0xff] }
 0x1ce   :  { %1692 = vperm.xlu0 %3695, %v4002_v28   ;;  %v4671_v22 = vpop.permute.xlu2 %1401  ;;  %v4673_v23 = vpop.permute.xlu1 %1361  ;;  %3604 = vmatmul.msk.bf16.vlgmr.msra.gmra.mxu1 %vm318_vm0, %v3643_v27  ;;  %v3651_v27 = vld [vmem:[%s7350_s0 + $0x90] sm:$0xff] }
 0x1cf   :  { %7728 = vst [vmem:[#allocation142_spill] sm:$0xff] %v4671_v22  ;;  %v4675_v24 = vpop.permute.xlu0 %1369  ;;  %3612 = vmatmul.msk.bf16.vlgmr.msra.gmra.mxu2 %vm318_vm0, %v3651_v27  ;;  %v3652_v27 = vld [vmem:[%s7350_s0 + $0x98] sm:$0xff] }
 0x1d0   :  { %7729 = vst [vmem:[#allocation143_spill] sm:$0xff] %v4673_v23  ;;  %v3721_v23 = vld [vmem:[%s7348_s6 + $0x30] sm:$0xff] }
 0x1d1   :  { %3598 = vmatmul.msk.bf16.gmra.mxu0 %vm318_vm0, %v3637_v26 }
 0x1d5   :  { %1688 = vperm.xlu2 %3697, %v4007_v29   ;;  %1684 = vperm.xlu1 %3696, %v4012_v30  }
 0x1d6   :  { %1704 = vperm.xlu0 %3695, %v4020_v31   ;;  %v4680_v25 = vpop.permute.xlu2 %1413  ;;  %v4682_v14 = vpop.permute.xlu1 %1373 }
 0x1d7   :  { %7730 = vst [vmem:[#allocation144_spill] sm:$0xff] %v4680_v25  ;;  %v4690_v28 = vpop.permute.xlu0 %1381 }
 0x1d8   :  { %7731 = vst [vmem:[#allocation145_spill] sm:$0xff] %v4682_v14 }
 0x1dd   :  { %1700 = vperm.xlu2 %3697, %v4025_v32   ;;  %1696 = vperm.xlu1 %3696, %v4030_v33   ;;  %v3638_v32 = vld [vmem:[%s7350_s0 + $0x28] sm:$0xff]  ;;  %v3644_v33 = vld [vmem:[%s7350_s0 + $0x58] sm:$0xff] }
 0x1de   :  { %1716 = vperm.xlu0 %3695, %v4038_v34   ;;  %v4697_v29 = vpop.permute.xlu2 %1425  ;;  %v4699_v30 = vpop.permute.xlu1 %1385  ;;  %3605 = vmatmul.msk.bf16.gmra.mxu1 %vm318_vm0, %v3644_v33 }
 0x1df   :  { %7732 = vst [vmem:[#allocation146_spill] sm:$0xff] %v4697_v29  ;;  %v4701_v31 = vpop.permute.xlu0 %1393  ;;  %3613 = vmatmul.msk.bf16.gmra.mxu2 %vm318_vm0, %v3652_v27  ;;  %v3653_v27 = vld [vmem:[%s7350_s0 + $0xa0] sm:$0xff] }
 0x1e0   :  { %7733 = vst [vmem:[#allocation147_spill] sm:$0xff] %v4699_v30  ;;  %v7427_v30 = vmov 3  }
 0x1e1   :  { %7734 = vst [vmem:[#allocation148_spill] sm:$0xff] %v4701_v31  ;;  %3599 = vmatmul.msk.bf16.gmra.mxu0 %vm318_vm0, %v3638_v32 }
 0x1e5   :  { %1712 = vperm.xlu2 %3697, %v4043_v35   ;;  %1708 = vperm.xlu1 %3696, %v4048_v36  }
 0x1e6   :  { %1728 = vperm.xlu0 %3695, %v4058_v38   ;;  %v4706_v20 = vpop.permute.xlu1 %1397 }
 0x1e7   :  { %7735 = vst [vmem:[#allocation149_spill] sm:$0xff] %v4706_v20  ;;  %v4714_v34 = vpop.permute.xlu0 %1405  ;;  %v4716_v26 = vpop.permute.xlu2 %1584 }
 0x1e8   :  { %7736 = vst [vmem:[#allocation150_spill] sm:$0xff] %v4714_v34  ;;  %v3654_v34 = vld [vmem:[%s7350_s0 + $0xa8] sm:$0xff] }
 0x1ed   :  { %1724 = vperm.xlu2 %3697, %v4063_v39   ;;  %1720 = vperm.xlu1 %3696, %v4068_v40   ;;  %v3639_v40 = vld [vmem:[%s7350_s0 + $0x30] sm:$0xff] }
 0x1ee   :  { %1740 = vperm.xlu0 %3695, %v4078_v42   ;;  %v4723_v35 = vpop.permute.xlu1 %1409  ;;  %v3645_v42 = vld [vmem:[%s7350_s0 + $0x60] sm:$0xff] }
 0x1ef   :  { %7737 = vst [vmem:[#allocation151_spill] sm:$0xff] %v4723_v35  ;;  %v4725_v36 = vpop.permute.xlu0 %1417  ;;  %v4727_v38 = vpop.permute.xlu2 %1592  ;;  %3606 = vmatmul.msk.bf16.gmra.mxu1 %vm318_vm0, %v3645_v42  ;;  %3614 = vmatmul.msk.bf16.gmra.mxu2 %vm318_vm0, %v3653_v27  ;;  %v7745_v27 = vld [vmem:[#allocation21_spill] sm:$0xff] }
 0x1f0   :  { %7738 = vst [vmem:[#allocation152_spill] sm:$0xff] %v4725_v36 }
 0x1f1   :  { %3600 = vmatmul.msk.bf16.gmra.mxu0 %vm318_vm0, %v3639_v40 }
 0x1f5   :  { %1736 = vperm.xlu2 %3697, %v4083_v43   ;;  %1732 = vperm.xlu1 %3696, %v4088_v44  }
 0x1f6   :  { %1752 = vperm.xlu0 %3695, %v4098_v46   ;;  %v4736_v39 = vpop.permute.xlu1 %1421 }
 0x1f7   :  { %7739 = vst [vmem:[#allocation153_spill] sm:$0xff] %v4736_v39  ;;  %v4744_v32 = vpop.permute.xlu2 %1604 }
 0x1f8   :  { %v4746_v33 = vpop.permute.xlu0 %1576 }
 0x1fd   :  { %1748 = vperm.xlu2 %3697, %v4103_v47   ;;  %1744 = vperm.xlu1 %3696, %v4108_v48   ;;  %v3640_v47 = vld [vmem:[%s7350_s0 + $0x38] sm:$0xff]  ;;  %v3646_v48 = vld [vmem:[%s7350_s0 + $0x68] sm:$0xff] }
 0x1fe   :  { %1764 = vperm.xlu0 %3695, %v4122_v52  }
 0x1ff   :  { %v4753_v43 = vpop.permute.xlu2 %1616  ;;  %v4755_v44 = vpop.permute.xlu1 %1580  ;;  %3607 = vmatmul.msk.bf16.gmra.mxu1 %vm318_vm0, %v3646_v48  ;;  %v7741_v48 = vld [vmem:[#allocation15_spill] sm:$0xff]  ;;  %3615 = vmatmul.msk.bf16.gmra.mxu2 %vm318_vm0, %v3654_v34  ;;  %v7755_v34 = vld [vmem:[#allocation34_spill] sm:$0xff] }
 0x200   :  { %v4757_v46 = vpop.permute.xlu0 %1596 }
 0x201   :  { %3601 = vmatmul.msk.bf16.gmra.mxu0 %vm318_vm0, %v3640_v47  ;;  %v7742_v47 = vld [vmem:[#allocation16_spill] sm:$0xff] }
 0x205   :  { %1760 = vperm.xlu2 %3697, %v4127_v53   ;;  %1756 = vperm.xlu1 %3696, %v4132_v54  }
 0x206   :  { %1776 = vperm.xlu0 %3695, %v4146_v58  }
 0x207   :  { %v4772_v52 = vpop.permute.xlu2 %1628  ;;  %v4774_v40 = vpop.permute.xlu1 %1588 }
 0x208   :  { %v4776_v42 = vpop.permute.xlu0 %1608 }
 0x20d   :  { %1772 = vperm.xlu2 %3697, %v4151_v59   ;;  %1768 = vperm.xlu1 %3696, %v4156_v60   ;;  %v7743_v59 = vld [vmem:[#allocation20_spill] sm:$0xff]  ;;  %v3641_v60 = vld [vmem:[%s7350_s0 + $0x40] sm:$0xff] }
 0x20e   :  { %1788 = vperm.xlu0 %3695, %v4170_v0   ;;  %v3647_v0 = vld [vmem:[%s7350_s0 + $0x70] sm:$0xff] }
 0x20f   :  { %v4783_v53 = vpop.permute.xlu2 %1640  ;;  %v4785_v54 = vpop.permute.xlu1 %1600  ;;  %3608 = vmatmul.msk.bf16.gmra.mxu1 %vm318_vm0, %v3647_v0  ;;  %v7750_v0 = vld [vmem:[#allocation27_spill] sm:$0xff] }
 0x210   :  { %7740 = vst [vmem:[#allocation154_spill] sm:$0xff] %v4783_v53  ;;  %v4787_v58 = vpop.permute.xlu0 %1620 }
 0x211   :  { %3602 = vmatmul.msk.bf16.gmra.mxu0 %vm318_vm0, %v3641_v60  ;;  %v7751_v60 = vld [vmem:[#allocation28_spill] sm:$0xff] }
 0x215   :  { %1784 = vperm.xlu2 %3697, %v7741_v48   ;;  %1780 = vperm.xlu1 %3696, %v7742_v47   ;;  %v7746_v48 = vld [vmem:[#allocation22_spill] sm:$0xff] }
 0x216   :  { %1800 = vperm.xlu0 %3695, %v7743_v59   ;;  %v7747_v47 = vld [vmem:[#allocation26_spill] sm:$0xff] }
 0x217   :  { %v4802_v39 = vpop.permute.xlu2 %1652  ;;  %v4804_v29 = vpop.permute.xlu1 %1612 }
 0x218   :  { %7744 = vst [vmem:[#allocation15_spill] sm:$0xff] %v4802_v39  ;;  %v4806_v36 = vpop.permute.xlu0 %1632 }
 0x21d   :  { %1796 = vperm.xlu2 %3697, %v7745_v27   ;;  %1792 = vperm.xlu1 %3696, %v7746_v48   ;;  %v7752_v27 = vld [vmem:[#allocation33_spill] sm:$0xff]  ;;  %v3648_v48 = vld [vmem:[%s7350_s0 + $0x78] sm:$0xff] }
 0x21e   :  { %1812 = vperm.xlu0 %3695, %v7747_v47  }
 0x21f   :  { %v4813_v59 = vpop.permute.xlu2 %1664  ;;  %v4815_v35 = vpop.permute.xlu1 %1624  ;;  %3609 = vmatmul.msk.bf16.gmra.mxu1 %vm318_vm0, %v3648_v48  ;;  %v3655_v48 = vld [vmem:[%s7350_s0 + $0xb0] sm:$0xff] }
 0x220   :  { %7748 = vst [vmem:[#allocation16_spill] sm:$0xff] %v4813_v59  ;;  %v4817_v25 = vpop.permute.xlu0 %1644  ;;  %3616 = vmatmul.msk.bf16.gmra.mxu2 %vm318_vm0, %v3655_v48  ;;  %v3717_v48 = vld [vmem:[%s7348_s6 + $0x10] sm:$0xff] }
 0x221   :  { %7749 = vst [vmem:[#allocation20_spill] sm:$0xff] %v4815_v35 }
 0x225   :  { %1808 = vperm.xlu2 %3697, %v7750_v0   ;;  %1804 = vperm.xlu1 %3696, %v7751_v60   ;;  %v3715_v0 = vld [vmem:[%s7348_s6] sm:$0xff]  ;;  %v4842_v60 = vpop.f32.mrf.mxu0 }
 0x226   :  { %1820 = vperm.xlu0 %3695, %v7752_v27   ;;  %7756 = vst [vmem:[#allocation26_spill] sm:$0xff] %v4842_v60 }
 0x227   :  { %v4829_v47 = vpop.permute.xlu2 %1676  ;;  %v4831_v20 = vpop.permute.xlu1 %1636 }
 0x228   :  { %7753 = vst [vmem:[#allocation21_spill] sm:$0xff] %v4829_v47  ;;  %v4833_v31 = vpop.permute.xlu0 %1656  ;;  %v7816_v47 = vld [vmem:[#allocation5_spill] sm:$0xff] }
 0x229   :  { %7754 = vst [vmem:[#allocation22_spill] sm:$0xff] %v4831_v20 }
 0x22d   :  { %3698 = vset.pattern.permute.xlu2 %v7427_v30  ;;  %1816 = vperm.xlu1 %3696, %v7755_v34   ;;  %v3642_v34 = vld [vmem:[%s7350_s0 + $0x48] sm:$0xff]  ;;  %v4877_v13 = vpop.f32.mrf.mxu0 }
 0x22e   :  { %1840 = vperm.xlu0 %3695, %v7689_v50   ;;  %2015 = vperm.xlu2 %3698, %v3715_v0   ;;  %v3716_v50 = vld [vmem:[%s7348_s6 + $0x18] sm:$0xff]  ;;  %v3649_v0 = vld [vmem:[%s7350_s0 + $0x80] sm:$0xff]  ;;  %7762 = vst [vmem:[#allocation156_spill] sm:$0xff] %v4877_v13 }
 0x22f   :  { %v4844_v27 = vpop.permute.xlu2 %1688  ;;  %v4846_v22 = vpop.permute.xlu1 %1648  ;;  %3603 = vmatmul.msk.bf16.gmra.mxu0 %vm318_vm0, %v3642_v34  ;;  %3610 = vmatmul.msk.bf16.gmra.mxu1 %vm318_vm0, %v3649_v0 }
 0x230   :  { %7757 = vst [vmem:[#allocation27_spill] sm:$0xff] %v4844_v27  ;;  %v4848_v19 = vpop.permute.xlu0 %1668  ;;  %v7799_v27 = vld [vmem:[#allocation8_spill] sm:$0xff] }
 0x231   :  { %7758 = vst [vmem:[#allocation28_spill] sm:$0xff] %v4846_v22 }
 0x235   :  { %3699 = vset.pattern.permute.xlu1 %v7427_v30  ;;  %v4899_v21 = vpop.f32.mrf.mxu0 }
 0x236   :  { %3703 = vset.pattern.permute.xlu0 %v7427_v30  ;;  %2027 = vperm.xlu2 %3698, %v3716_v50   ;;  %v3718_v30 = vld [vmem:[%s7348_s6 + $0x8] sm:$0xff]  ;;  %7766 = vst [vmem:[#allocation160_spill] sm:$0xff] %v4899_v21 }
 0x237   :  { %2023 = vperm.xlu1 %3699, %v3717_v48   ;;  %2019 = vperm.xlu0 %3703, %v3718_v30   ;;  %v4871_v14 = vpop.permute.xlu2 %1700  ;;  %v4873_v50 = vpop.permute.xlu1 %1660  ;;  %v3719_v48 = vld [vmem:[%s7348_s6 + $0x28] sm:$0xff]  ;;  %v3720_v30 = vld [vmem:[%s7348_s6 + $0x20] sm:$0xff] }
 0x238   :  { %7759 = vst [vmem:[#allocation33_spill] sm:$0xff] %v4871_v14  ;;  %v4875_v16 = vpop.permute.xlu0 %1680  ;;  %v3745_v14 = vld [vmem:[%s7348_s6 + $0xf0] sm:$0xff] }
 0x239   :  { %7760 = vst [vmem:[#allocation34_spill] sm:$0xff] %v4873_v50  ;;  %v7798_v50 = vld [vmem:[#allocation99_spill] sm:$0xff] }
 0x23a   :  { %7761 = vst [vmem:[#allocation155_spill] sm:$0xff] %v4875_v16 }
 0x23e   :  { %2035 = vperm.xlu2 %3698, %v3719_v48   ;;  %v3656_v48 = vld [vmem:[%s7350_s0 + $0xb8] sm:$0xff] }
 0x23f   :  { %2031 = vperm.xlu1 %3699, %v3720_v30   ;;  %2039 = vperm.xlu0 %3703, %v3721_v23   ;;  %v4890_v10 = vpop.permute.xlu2 %1712  ;;  %v4892_v34 = vpop.permute.xlu1 %1672  ;;  %v3722_v30 = vld [vmem:[%s7348_s6 + $0x40] sm:$0xff]  ;;  %v3650_v23 = vld [vmem:[%s7350_s0 + $0x88] sm:$0xff] }
 0x240   :  { %7763 = vst [vmem:[#allocation157_spill] sm:$0xff] %v4890_v10  ;;  %v4894_v0 = vpop.permute.xlu0 %1692  ;;  %3617 = vmatmul.msk.bf16.gmra.mxu2 %vm318_vm0, %v3656_v48  ;;  %3611 = vmatmul.msk.bf16.gmra.mxu1 %vm318_vm0, %v3650_v23  ;;  %v3727_v23 = vld [vmem:[%s7348_s6 + $0x60] sm:$0xff] }
 0x241   :  { %7764 = vst [vmem:[#allocation158_spill] sm:$0xff] %v4892_v34  ;;  %v3743_v34 = vld [vmem:[%s7348_s6 + $0xe8] sm:$0xff] }
 0x242   :  { %7765 = vst [vmem:[#allocation159_spill] sm:$0xff] %v4894_v0 }
 0x246   :  { %2047 = vperm.xlu2 %3698, %v3722_v30   ;;  %v4921_v30 = vpop.f32.mrf.mxu0 }
 0x247   :  { %2043 = vperm.xlu1 %3699, %v3723_v8   ;;  %2051 = vperm.xlu0 %3703, %v3724_v61   ;;  %v4914_v48 = vpop.permute.xlu2 %1724  ;;  %v4916_v18 = vpop.permute.xlu1 %1684  ;;  %7770 = vst [vmem:[#allocation164_spill] sm:$0xff] %v4921_v30  ;;  %v3725_v8 = vld [vmem:[%s7348_s6 + $0x58] sm:$0xff]  ;;  %v3726_v61 = vld [vmem:[%s7348_s6 + $0x50] sm:$0xff] }
 0x248   :  { %7767 = vst [vmem:[#allocation161_spill] sm:$0xff] %v4914_v48  ;;  %v4918_v17 = vpop.permute.xlu0 %1704 }
 0x249   :  { %7768 = vst [vmem:[#allocation162_spill] sm:$0xff] %v4916_v18 }
 0x24a   :  { %7769 = vst [vmem:[#allocation163_spill] sm:$0xff] %v4918_v17  ;;  %v7830_v17 = vld [vmem:[#allocation13_spill] sm:$0xff] }
 0x24e   :  { %2059 = vperm.xlu2 %3698, %v3725_v8   ;;  %v3657_v8 = vld [vmem:[%s7350_s0 + $0xc0] sm:$0xff] }
 0x24f   :  { %2055 = vperm.xlu1 %3699, %v3726_v61   ;;  %2063 = vperm.xlu0 %3703, %v3727_v23   ;;  %v4935_v15 = vpop.permute.xlu2 %1736  ;;  %v4937_v62 = vpop.permute.xlu1 %1696  ;;  %v3728_v23 = vld [vmem:[%s7348_s6 + $0x70] sm:$0xff] }
 0x250   :  { %7771 = vst [vmem:[#allocation165_spill] sm:$0xff] %v4935_v15  ;;  %v4939_v4 = vpop.permute.xlu0 %1716  ;;  %3618 = vmatmul.msk.bf16.gmra.mxu2 %vm318_vm0, %v3657_v8  ;;  %v4946_v61 = vpop.f32.mrf.mxu0  ;;  %v3731_v15 = vld [vmem:[%s7348_s6 + $0x88] sm:$0xff] }
 0x251   :  { %7772 = vst [vmem:[#allocation166_spill] sm:$0xff] %v4937_v62 }
 0x252   :  { %7773 = vst [vmem:[#allocation167_spill] sm:$0xff] %v4939_v4 }
 0x253   :  { %7774 = vst [vmem:[#allocation168_spill] sm:$0xff] %v4946_v61 }
 0x256   :  { %2071 = vperm.xlu2 %3698, %v3728_v23   ;;  %v3661_v23 = vld [vmem:[%s7350_s0 + $0xe0] sm:$0xff] }
 0x257   :  { %2067 = vperm.xlu1 %3699, %v3729_v12   ;;  %2075 = vperm.xlu0 %3703, %v3730_v1   ;;  %v4957_v45 = vpop.permute.xlu2 %1748  ;;  %v4959_v8 = vpop.permute.xlu1 %1708  ;;  %v3732_v12 = vld [vmem:[%s7348_s6 + $0x80] sm:$0xff]  ;;  %v3733_v1 = vld [vmem:[%s7348_s6 + $0x90] sm:$0xff] }
 0x258   :  { %7775 = vst [vmem:[#allocation169_spill] sm:$0xff] %v4957_v45  ;;  %v4961_v9 = vpop.permute.xlu0 %1728  ;;  %v4979_v62 = vpop.f32.mrf.mxu0  ;;  %3622 = vmatmul.msk.bf16.gmra.mxu3 %vm318_vm0, %v3661_v23  ;;  %v3736_v23 = vld [vmem:[%s7348_s6 + $0xa8] sm:$0xff] }
 0x259   :  { %7776 = vst [vmem:[#allocation170_spill] sm:$0xff] %v4959_v8 }
 0x25a   :  { %7777 = vst [vmem:[#allocation171_spill] sm:$0xff] %v4961_v9 }
 0x25b   :  { %7780 = vst [vmem:[#allocation174_spill] sm:$0xff] %v4979_v62 }
 0x25e   :  { %2083 = vperm.xlu2 %3698, %v3731_v15   ;;  %v3658_v15 = vld [vmem:[%s7350_s0 + $0xc8] sm:$0xff] }
 0x25f   :  { %2079 = vperm.xlu1 %3699, %v3732_v12   ;;  %2087 = vperm.xlu0 %3703, %v3733_v1   ;;  %v4975_v8 = vpop.permute.xlu2 %1760  ;;  %v4977_v45 = vpop.permute.xlu1 %1720  ;;  %v3734_v12 = vld [vmem:[%s7348_s6 + $0xa0] sm:$0xff]  ;;  %v3735_v1 = vld [vmem:[%s7348_s6 + $0x98] sm:$0xff] }
 0x260   :  { %7778 = vst [vmem:[#allocation172_spill] sm:$0xff] %v4975_v8  ;;  %v4981_v7 = vpop.permute.xlu0 %1740  ;;  %3619 = vmatmul.msk.bf16.gmra.mxu2 %vm318_vm0, %v3658_v15  ;;  %v5003_v48 = vpop.f32.mrf.mxu0 }
 0x261   :  { %7779 = vst [vmem:[#allocation173_spill] sm:$0xff] %v4977_v45 }
 0x262   :  { %7781 = vst [vmem:[#allocation175_spill] sm:$0xff] %v4981_v7 }
 0x263   :  { %7785 = vst [vmem:[#allocation179_spill] sm:$0xff] %v5003_v48 }
 0x266   :  { %2095 = vperm.xlu2 %3698, %v3734_v12   ;;  %v3662_v12 = vld [vmem:[%s7350_s0 + $0xe8] sm:$0xff] }
 0x267   :  { %2091 = vperm.xlu1 %3699, %v3735_v1   ;;  %2099 = vperm.xlu0 %3703, %v3736_v23   ;;  %v4997_v8 = vpop.permute.xlu2 %1772  ;;  %v4999_v45 = vpop.permute.xlu1 %1732  ;;  %v3737_v1 = vld [vmem:[%s7348_s6 + $0xb8] sm:$0xff]  ;;  %v3738_v23 = vld [vmem:[%s7348_s6 + $0xb0] sm:$0xff] }
 0x268   :  { %7782 = vst [vmem:[#allocation176_spill] sm:$0xff] %v4997_v8  ;;  %v5001_v15 = vpop.permute.xlu0 %1752  ;;  %v3739_v8 = vld [vmem:[%s7348_s6 + $0xc0] sm:$0xff]  ;;  %3623 = vmatmul.msk.bf16.gmra.mxu3 %vm318_vm0, %v3662_v12  ;;  %v3742_v12 = vld [vmem:[%s7348_s6 + $0xd8] sm:$0xff] }
 0x269   :  { %7783 = vst [vmem:[#allocation177_spill] sm:$0xff] %v4999_v45 }
 0x26a   :  { %7784 = vst [vmem:[#allocation178_spill] sm:$0xff] %v5001_v15 }
 0x26e   :  { %2107 = vperm.xlu2 %3698, %v3737_v1   ;;  %v3659_v1 = vld [vmem:[%s7350_s0 + $0xd0] sm:$0xff] }
 0x26f   :  { %2103 = vperm.xlu1 %3699, %v3738_v23   ;;  %2111 = vperm.xlu0 %3703, %v3739_v8   ;;  %v5017_v45 = vpop.permute.xlu2 %1784  ;;  %v5019_v63 = vpop.permute.xlu1 %1744  ;;  %v3740_v8 = vld [vmem:[%s7348_s6 + $0xd0] sm:$0xff] }
 0x270   :  { %7786 = vst [vmem:[#allocation180_spill] sm:$0xff] %v5017_v45  ;;  %v5021_v18 = vpop.permute.xlu0 %1764  ;;  %3620 = vmatmul.msk.bf16.gmra.mxu2 %vm318_vm0, %v3659_v1  ;;  %v5028_v23 = vpop.f32.mrf.mxu0  ;;  %v3741_v45 = vld [vmem:[%s7348_s6 + $0xc8] sm:$0xff] }
 0x271   :  { %7787 = vst [vmem:[#allocation181_spill] sm:$0xff] %v5019_v63 }
 0x272   :  { %7788 = vst [vmem:[#allocation182_spill] sm:$0xff] %v5021_v18 }
 0x273   :  { %7789 = vst [vmem:[#allocation183_spill] sm:$0xff] %v5028_v23 }
 0x276   :  { %2119 = vperm.xlu2 %3698, %v3740_v8   ;;  %v696_v8 = vld [vmem:[%s7351_s7] sm:$0xf] }
 0x277   :  { %2115 = vperm.xlu1 %3699, %v3741_v45   ;;  %2123 = vperm.xlu0 %3703, %v3742_v12   ;;  %v5039_v18 = vpop.permute.xlu2 %1796  ;;  %v5041_v1 = vpop.permute.xlu1 %1756  ;;  %v5048_v15 = vperm.slane %v696_v8, 1  ;;  %v5050_v10 = vperm.slane %v696_v8, 0  ;;  %v3663_v12 = vld [vmem:[%s7350_s0 + $0xf0] sm:$0xff]  ;;  %v5059_v11 = vperm.slane %v696_v8, 2  ;;  %v5086_v57 = vperm.slane %v696_v8, 3 }
 0x278   :  { %7790 = vst [vmem:[#allocation184_spill] sm:$0xff] %v5039_v18  ;;  %v5043_v63 = vpop.permute.xlu0 %1776  ;;  %v7793_v18 = vld [vmem:[#allocation83_spill] sm:$0xff]  ;;  %3624 = vmatmul.msk.bf16.gmra.mxu3 %vm318_vm0, %v3663_v12 }
 0x279   :  { %7791 = vst [vmem:[#allocation185_spill] sm:$0xff] %v5041_v1  ;;  %v1487_v45 = vmax.f32 %v4675_v24, %v5048_v15  ;;  %v1121_v1 = vmax.f32 %v7793_v18, %v5050_v10  ;;  %v3744_v24 = vld [vmem:[%s7348_s6 + $0xe0] sm:$0xff]  ;;  %v1063_v5 = vmax.f32 %v7799_v27, %v5050_v10  ;;  %v1869_v59 = vmax.f32 %v4755_v44, %v5059_v11 }
 0x27a   :  { %7792 = vst [vmem:[#allocation186_spill] sm:$0xff] %v5043_v63  ;;  %v5061_v63 = vpop.f32.mrf.mxu0  ;;  %v1870_v35 = vmax.f32 %v4716_v26, %v5059_v11  ;;  %v3763_v26 = vld [vmem:[%s7348_s6 + $0x180] sm:$0xff] }
 0x27b   :  { %7794 = vst [vmem:[#allocation83_spill] sm:$0xff] %v5061_v63  ;;  %v1560_v7 = vmul.f32 %v1487_v45, %v1121_v1  ;;  %v3746_v1 = vld [vmem:[%s7348_s6 + $0x100] sm:$0xff] }
 0x27e   :  { %2131 = vperm.xlu2 %3698, %v3743_v34  }
 0x27f   :  { %2127 = vperm.xlu1 %3699, %v3744_v24   ;;  %2135 = vperm.xlu0 %3703, %v3745_v14   ;;  %v1809_v18 = vpop.permute.xlu2 %1808  ;;  %v5072_v51 = vpop.permute.xlu1 %1768  ;;  %v1429_v24 = vmax.f32 %v7798_v50, %v5048_v15  ;;  %v1868_v14 = vmax.f32 %v4746_v33, %v5059_v11 }
 0x280   :  { %7795 = vst [vmem:[#allocation187_spill] sm:$0xff] %v5072_v51  ;;  %v1926_v2 = vmax.f32 %v1809_v18, %v5059_v11  ;;  %v5075_v9 = vpop.permute.xlu0 %1788 }
 0x281   :  { %7796 = vst [vmem:[#allocation188_spill] sm:$0xff] %v5075_v9  ;;  %v1502_v45 = vmul.f32 %v1429_v24, %v1063_v5  ;;  %v5106_v24 = vpop.f32.mrf.mxu1  ;;  %v1490_v9 = vmax.f32 %v4690_v28, %v5048_v15  ;;  %v3754_v28 = vld [vmem:[%s7348_s6 + $0x138] sm:$0xff] }
 0x282   :  { %v5078_v34 = vmul.f32 %v1926_v2, %v1560_v7  ;;  %v3747_v7 = vld [vmem:[%s7348_s6 + $0xf8] sm:$0xff]  ;;  %v3748_v2 = vld [vmem:[%s7348_s6 + $0x108] sm:$0xff]  ;;  %v5101_v12 = vpop.f32.mrf.mxu0  ;;  %7804 = vst [vmem:[#allocation192_spill] sm:$0xff] %v5106_v24 }
 0x283   :  { %v1941_v8 = vmul.f32 %v1868_v14, %v1502_v45  ;;  %7802 = vst [vmem:[#allocation190_spill] sm:$0xff] %v5101_v12  ;;  %v3750_v14 = vld [vmem:[%s7348_s6 + $0x110] sm:$0xff]  ;;  %v3751_v45 = vld [vmem:[%s7348_s6 + $0x120] sm:$0xff] }
 0x284   :  { %7797 = vst [vmem:[#allocation189_spill] sm:$0xff] %v5078_v34 }
 0x286   :  { %2143 = vperm.xlu2 %3698, %v3746_v1   ;;  %v3664_v1 = vld [vmem:[%s7350_s0 + $0xf8] sm:$0xff] }
 0x287   :  { %2139 = vperm.xlu1 %3699, %v3747_v7   ;;  %2147 = vperm.xlu0 %3703, %v3748_v2   ;;  %v5097_v27 = vpop.permute.xlu1 %1780  ;;  %v3749_v7 = vld [vmem:[%s7348_s6 + $0x118] sm:$0xff] }
 0x288   :  { %7800 = vst [vmem:[#allocation99_spill] sm:$0xff] %v5097_v27  ;;  %v5099_v33 = vpop.permute.xlu0 %1800  ;;  %v2016_v50 = vpop.permute.xlu2 %2015  ;;  %3625 = vmatmul.msk.bf16.gmra.mxu3 %vm318_vm0, %v3664_v1  ;;  %v7810_v1 = vld [vmem:[#allocation86_spill] sm:$0xff] }
 0x289   :  { %7801 = vst [vmem:[#allocation8_spill] sm:$0xff] %v5099_v33  ;;  %v2307_v5 = vmax.f32 %v2016_v50, %v5086_v57  ;;  %v5142_v27 = vpop.f32.mrf.mxu1 }
 0x28a   :  { %v5129_v34 = vpop.f32.mrf.mxu0 }
 0x28b   :  { %v5104_v18 = vmul.f32 %v2307_v5, %v1941_v8  ;;  %v7807_v5 = vld [vmem:[#allocation104_spill] sm:$0xff] }
 0x28c   :  { %7808 = vst [vmem:[#allocation104_spill] sm:$0xff] %v5129_v34 }
 0x28d   :  { %7803 = vst [vmem:[#allocation191_spill] sm:$0xff] %v5104_v18 }
 0x28e   :  { %2155 = vperm.xlu2 %3698, %v3749_v7   ;;  %v1434_v7 = vmax.f32 %v7807_v5, %v5048_v15 }
 0x28f   :  { %2151 = vperm.xlu1 %3699, %v3750_v14   ;;  %2159 = vperm.xlu0 %3703, %v3751_v45   ;;  %v5120_v2 = vpop.permute.xlu1 %1792  ;;  %v7809_v14 = vld [vmem:[#allocation4_spill] sm:$0xff]  ;;  %v1873_v45 = vmax.f32 %v4757_v46, %v5059_v11 }
 0x290   :  { %7805 = vst [vmem:[#allocation193_spill] sm:$0xff] %v5120_v2  ;;  %v5122_v50 = vpop.permute.xlu0 %1812  ;;  %v5124_v8 = vpop.permute.xlu2 %2027  ;;  %v1068_v33 = vmax.f32 %v7809_v14, %v5050_v10  ;;  %v1124_v2 = vmax.f32 %v7810_v1, %v5050_v10  ;;  %v3753_v14 = vld [vmem:[%s7348_s6 + $0x128] sm:$0xff]  ;;  %v7813_v1 = vld [vmem:[#allocation107_spill] sm:$0xff] }
 0x291   :  { %7806 = vst [vmem:[#allocation194_spill] sm:$0xff] %v5122_v50  ;;  %v3752_v50 = vld [vmem:[%s7348_s6 + $0x130] sm:$0xff] }
 0x292   :  { %v1507_v5 = vmul.f32 %v1434_v7, %v1068_v33  ;;  %7811 = vst [vmem:[#allocation4_spill] sm:$0xff] %v5142_v27  ;;  %v1563_v24 = vmul.f32 %v1490_v9, %v1124_v2  ;;  %v1437_v27 = vmax.f32 %v7813_v1, %v5048_v15  ;;  %v5164_v3 = vpop.f32.mrf.mxu0  ;;  %v3755_v9 = vld [vmem:[%s7348_s6 + $0x148] sm:$0xff] }
 0x293   :  { %7817 = vst [vmem:[#allocation5_spill] sm:$0xff] %v5164_v3  ;;  %v7822_v1 = vld [vmem:[#allocation6_spill] sm:$0xff]  ;;  %v7837_v3 = vld [vmem:[#allocation24_spill] sm:$0xff] }
 0x294   :  { %v1946_v4 = vmul.f32 %v1873_v45, %v1507_v5 }
 0x296   :  { %2167 = vperm.xlu2 %3698, %v3752_v50  }
 0x297   :  { %2163 = vperm.xlu1 %3699, %v3753_v14   ;;  %2171 = vperm.xlu0 %3703, %v3754_v28   ;;  %v5150_v46 = vpop.permute.xlu1 %1804  ;;  %v1071_v28 = vmax.f32 %v7816_v47, %v5050_v10 }
 0x298   :  { %7812 = vst [vmem:[#allocation86_spill] sm:$0xff] %v5150_v46  ;;  %v1821_v51 = vpop.permute.xlu0 %1820  ;;  %v2036_v50 = vpop.permute.xlu2 %2035  ;;  %v1876_v46 = vmax.f32 %v4776_v42, %v5059_v11  ;;  %v3757_v42 = vld [vmem:[%s7348_s6 + $0x150] sm:$0xff] }
 0x299   :  { %v1929_v33 = vmax.f32 %v1821_v51, %v5059_v11  ;;  %v2312_v7 = vmax.f32 %v2036_v50, %v5086_v57  ;;  %v3665_v51 = vld [vmem:[%s7350_s0 + $0x100] sm:$0xff]  ;;  %v5183_v50 = vpop.f32.mrf.mxu1 }
 0x29a   :  { %3626 = vmatmul.msk.bf16.gmra.mxu3 %vm318_vm0, %v3665_v51  ;;  %7820 = vst [vmem:[#allocation198_spill] sm:$0xff] %v5183_v50  ;;  %v7829_v50 = vld [vmem:[#allocation12_spill] sm:$0xff]  ;;  %v5225_v39 = vpop.f32.mrf.mxu0 }
 0x29b   :  { %v5156_v22 = vmul.f32 %v1929_v33, %v1563_v24  ;;  %v5158_v14 = vmul.f32 %v2312_v7, %v1946_v4  ;;  %v1510_v24 = vmul.f32 %v1437_v27, %v1071_v28  ;;  %v3756_v4 = vld [vmem:[%s7348_s6 + $0x140] sm:$0xff]  ;;  %v7821_v33 = vld [vmem:[#allocation3_spill] sm:$0xff]  ;;  %v1074_v28 = vmax.f32 %v7822_v1, %v5050_v10  ;;  %v7835_v1 = vld [vmem:[#allocation90_spill] sm:$0xff]  ;;  %7838 = vst [vmem:[#allocation6_spill] sm:$0xff] %v5225_v39 }
 0x29c   :  { %v1430_v55 = vmax.f32 %v7835_v1, %v5048_v15  ;;  %v3760_v1 = vld [vmem:[%s7348_s6 + $0x168] sm:$0xff] }
 0x29d   :  { %7814 = vst [vmem:[#allocation107_spill] sm:$0xff] %v5156_v22  ;;  %v1949_v5 = vmul.f32 %v1876_v46, %v1510_v24  ;;  %v7826_v46 = vld [vmem:[#allocation9_spill] sm:$0xff]  ;;  %v7827_v24 = vld [vmem:[#allocation10_spill] sm:$0xff]  ;;  %v1879_v22 = vmax.f32 %v4787_v58, %v5059_v11  ;;  %v7861_v58 = vld [vmem:[#allocation96_spill] sm:$0xff] }
 0x29e   :  { %7815 = vst [vmem:[#allocation195_spill] sm:$0xff] %v5158_v14  ;;  %2179 = vperm.xlu2 %3698, %v3755_v9   ;;  %v7823_v9 = vld [vmem:[#allocation110_spill] sm:$0xff]  ;;  %v1077_v51 = vmax.f32 %v7826_v46, %v5050_v10  ;;  %v7832_v46 = vld [vmem:[#allocation17_spill] sm:$0xff] }
 0x29f   :  { %2175 = vperm.xlu1 %3699, %v3756_v4   ;;  %2183 = vperm.xlu0 %3703, %v3757_v42   ;;  %v5178_v47 = vpop.permute.xlu1 %1816  ;;  %v1440_v4 = vmax.f32 %v7823_v9, %v5048_v15  ;;  %v3758_v9 = vld [vmem:[%s7348_s6 + $0x160] sm:$0xff] }
 0x2a0   :  { %7818 = vst [vmem:[#allocation196_spill] sm:$0xff] %v5178_v47  ;;  %v5180_v2 = vpop.permute.xlu0 %1840  ;;  %v2048_v45 = vpop.permute.xlu2 %2047  ;;  %v7828_v47 = vld [vmem:[#allocation11_spill] sm:$0xff] }
 0x2a1   :  { %7819 = vst [vmem:[#allocation197_spill] sm:$0xff] %v5180_v2  ;;  %v2315_v27 = vmax.f32 %v2048_v45, %v5086_v57  ;;  %v7825_v2 = vld [vmem:[#allocation7_spill] sm:$0xff]  ;;  %v1064_v7 = vmax.f32 %v7828_v47, %v5050_v10  ;;  %v7833_v45 = vld [vmem:[#allocation18_spill] sm:$0xff]  ;;  %v1513_v0 = vmul.f32 %v1440_v4, %v1074_v28  ;;  %v1435_v4 = vmax.f32 %v7861_v58, %v5048_v15 }
 0x2a2   :  { %v7834_v47 = vld [vmem:[#allocation19_spill] sm:$0xff] }
 0x2a3   :  { %v5192_v42 = vmul.f32 %v2315_v27, %v1949_v5  ;;  %v7831_v5 = vld [vmem:[#allocation14_spill] sm:$0xff]  ;;  %v7836_v27 = vld [vmem:[#allocation23_spill] sm:$0xff] }
 0x2a5   :  { %7824 = vst [vmem:[#allocation3_spill] sm:$0xff] %v5192_v42  ;;  %v1503_v42 = vmul.f32 %v1430_v55, %v1064_v7  ;;  %v7852_v55 = vld [vmem:[#allocation93_spill] sm:$0xff] }
 0x2a6   :  { %2191 = vperm.xlu2 %3698, %v3758_v9   ;;  %v7839_v9 = vld [vmem:[#allocation25_spill] sm:$0xff]  ;;  %v1433_v7 = vmax.f32 %v7852_v55, %v5048_v15  ;;  %v3666_v55 = vld [vmem:[%s7350_s0 + $0x108] sm:$0xff] }
 0x2a7   :  { %2187 = vperm.xlu1 %3699, %v3759_v56   ;;  %2195 = vperm.xlu0 %3703, %v3760_v1   ;;  %v7842_v56 = vld [vmem:[#allocation31_spill] sm:$0xff]  ;;  %v1952_v1 = vmul.f32 %v1879_v22, %v1513_v0  ;;  %v7848_v22 = vld [vmem:[#allocation113_spill] sm:$0xff]  ;;  %v5257_v0 = vpop.f32.mrf.mxu1  ;;  %v1942_v34 = vmul.f32 %v1869_v59, %v1503_v42 }
 0x2a8   :  { %v2060_v39 = vpop.permute.xlu2 %2059  ;;  %7849 = vst [vmem:[#allocation110_spill] sm:$0xff] %v5257_v0  ;;  %v3762_v42 = vld [vmem:[%s7348_s6 + $0x170] sm:$0xff] }
 0x2a9   :  { %v2318_v53 = vmax.f32 %v2060_v39, %v5086_v57  ;;  %v2024_v20 = vpop.permute.xlu1 %2023  ;;  %v2020_v16 = vpop.permute.xlu0 %2019  ;;  %v1443_v39 = vmax.f32 %v7848_v22, %v5048_v15 }
 0x2aa   :  { %v2308_v44 = vmax.f32 %v2020_v16, %v5086_v57  ;;  %v7853_v16 = vld [vmem:[#allocation102_spill] sm:$0xff]  ;;  %3627 = vmatmul.msk.bf16.gmra.mxu3 %vm318_vm0, %v3666_v55  ;;  %v7868_v55 = vmax.f32 %v7831_v5, %v5050_v10 }
 0x2ab   :  { %v5259_v12 = vmul.f32 %v2318_v53, %v1952_v1  ;;  %v1431_v28 = vmax.f32 %v7853_v16, %v5048_v15  ;;  %v1882_v1 = vmax.f32 %v4806_v36, %v5059_v11  ;;  %v3761_v53 = vld [vmem:[%s7348_s6 + $0x178] sm:$0xff]  ;;  %v1516_v16 = vmul.f32 %v1443_v39, %v1077_v51 }
 0x2ac   :  { %v5284_v22 = vmul.f32 %v2308_v44, %v1942_v34  ;;  %v7862_v34 = vmax.f32 %v7821_v33, %v5050_v10  ;;  %v7864_v51 = vmax.f32 %v7825_v2, %v5050_v10  ;;  %v2309_v39 = vmax.f32 %v2024_v20, %v5086_v57 }
 0x2ad   :  { %7850 = vst [vmem:[#allocation7_spill] sm:$0xff] %v5259_v12  ;;  %v1955_v33 = vmul.f32 %v1882_v1, %v1516_v16  ;;  %v1872_v2 = vmax.f32 %v4727_v38, %v5059_v11  ;;  %v1871_v20 = vmax.f32 %v4774_v40, %v5059_v11  ;;  %v7869_v1 = vld [vmem:[#allocation116_spill] sm:$0xff]  ;;  %v7871_v38 = vmax.f32 %v7827_v24, %v5050_v10 }
 0x2ae   :  { %7859 = vst [vmem:[#allocation9_spill] sm:$0xff] %v5284_v22  ;;  %2203 = vperm.xlu2 %3698, %v3761_v53   ;;  %v1506_v44 = vmul.f32 %v1433_v7, %v7862_v34  ;;  %v7863_v53 = vld [vmem:[#allocation101_spill] sm:$0xff]  ;;  %v1504_v58 = vmul.f32 %v1431_v28, %v7864_v51  ;;  %v5313_v7 = vpop.f32.mrf.mxu0  ;;  %v2454_v28 = vmul.f32 %v5284_v22, %v4877_v13 }
 0x2af   :  { %2199 = vperm.xlu1 %3699, %v3762_v42   ;;  %2207 = vperm.xlu0 %3703, %v3763_v26   ;;  %v1432_v0 = vmax.f32 %v7863_v53, %v5048_v15  ;;  %v7865_v42 = vld [vmem:[#allocation98_spill] sm:$0xff]  ;;  %v7866_v26 = vld [vmem:[#allocation105_spill] sm:$0xff]  ;;  %7867 = vst [vmem:[#allocation10_spill] sm:$0xff] %v5313_v7  ;;  %v5325_v51 = vmul.f32 %v1435_v4, %v7868_v55 }
 0x2b0   :  { %v2072_v36 = vpop.permute.xlu2 %2071  ;;  %v1438_v6 = vmax.f32 %v7865_v42, %v5048_v15  ;;  %v1436_v59 = vmax.f32 %v7866_v26, %v5048_v15  ;;  %v1943_v63 = vmul.f32 %v1870_v35, %v1504_v58  ;;  %v1446_v16 = vmax.f32 %v7869_v1, %v5048_v15  ;;  %v5338_v42 = vpop.f32.mrf.mxu2 }
 0x2b1   :  { %v2321_v34 = vmax.f32 %v2072_v36, %v5086_v57  ;;  %v2032_v53 = vpop.permute.xlu1 %2031  ;;  %v2453_v35 = vmul.f32 %v5104_v18, %v4842_v60  ;;  %v1505_v40 = vmul.f32 %v1432_v0, %v7871_v38  ;;  %v2310_v58 = vmax.f32 %v5124_v8, %v5086_v57  ;;  %7872 = vst [vmem:[#allocation12_spill] sm:$0xff] %v5338_v42  ;;  %v5354_v0 = vpop.f32.mrf.mxu1  ;;  %v7878_v38 = vld [vmem:[#allocation108_spill] sm:$0xff] }
 0x2b2   :  { %v5340_v5 = vmul.f32 %v2309_v39, %v1943_v63  ;;  %v2311_v4 = vmax.f32 %v2032_v53, %v5086_v57  ;;  %v7874_v26 = vmax.f32 %v7834_v47, %v5050_v10  ;;  %v1875_v24 = vmax.f32 %v4744_v32, %v5059_v11  ;;  %7876 = vst [vmem:[#allocation14_spill] sm:$0xff] %v5354_v0 }
 0x2b3   :  { %v5331_v36 = vmul.f32 %v2321_v34, %v1955_v33  ;;  %v7875_v33 = vld [vmem:[#allocation100_spill] sm:$0xff]  ;;  %v1885_v8 = vmax.f32 %v4817_v25, %v5059_v11  ;;  %v7877_v63 = vmax.f32 %v7830_v17, %v5050_v10  ;;  %v1945_v53 = vmul.f32 %v1872_v2, %v1506_v44  ;;  %v3765_v17 = vld [vmem:[%s7348_s6 + $0x188] sm:$0xff] }
 0x2b4   :  { %7873 = vst [vmem:[#allocation13_spill] sm:$0xff] %v5340_v5  ;;  %v5346_v55 = vmul.f32 %v1438_v6, %v7874_v26  ;;  %v1441_v34 = vmax.f32 %v7875_v33, %v5048_v15  ;;  %v1944_v1 = vmul.f32 %v1871_v20, %v1505_v40  ;;  %v2680_v47 = vmul.f32 %v2454_v28, %v2454_v28  ;;  %v3764_v6 = vld [vmem:[%s7348_s6 + $0x190] sm:$0xff] }
 0x2b5   :  { %7870 = vst [vmem:[#allocation11_spill] sm:$0xff] %v5331_v36  ;;  %v1509_v39 = vmul.f32 %v1436_v59, %v7877_v63  ;;  %v1439_v32 = vmax.f32 %v7878_v38, %v5048_v15  ;;  %v7879_v25 = vmax.f32 %v7829_v50, %v5050_v10  ;;  %v2679_v33 = vmul.f32 %v2453_v35, %v2453_v35  ;;  %v3766_v59 = vld [vmem:[%s7348_s6 + $0x198] sm:$0xff] }
 0x2b6   :  { %2215 = vperm.xlu2 %3698, %v3764_v6   ;;  %v5373_v44 = vmul.f32 %v2310_v58, %v1944_v1  ;;  %v2455_v2 = vmul.f32 %v5340_v5, %v4899_v21  ;;  %v2528_v50 = vsel %vm2526_vm1, %v2454_v28, 0.0  ;;  %v5378_v20 = vmul.f32 %v2311_v4, %v1945_v53  ;;  %v7983_v21 = vld [vmem:[#allocation52_spill] sm:$0xff] }
 0x2b7   :  { %v1519_v26 = vmul.f32 %v1446_v16, %v7879_v25  ;;  %2211 = vperm.xlu1 %3699, %v3765_v17   ;;  %2219 = vperm.xlu0 %3703, %v3766_v59   ;;  %v1449_v40 = vmax.f32 %v4534_v49, %v5048_v15  ;;  %v1948_v63 = vmul.f32 %v1875_v24, %v1509_v39  ;;  %v2527_v1 = vsel %vm2526_vm1, %v2453_v35, 0.0  ;;  %v2040_v59 = vpop.permute.xlu0 %2039  ;;  %v5391_v24 = vpop.f32.mrf.mxu0 }
 0x2b8   :  { %7880 = vst [vmem:[#allocation17_spill] sm:$0xff] %v5373_v44  ;;  %v2084_v16 = vpop.permute.xlu2 %2083  ;;  %v1878_v58 = vmax.f32 %v4753_v43, %v5059_v11  ;;  %v2753_v17 = vsel %vm2526_vm1, %v2680_v47, 0.0  ;;  %v1874_v4 = vmax.f32 %v4785_v54, %v5059_v11  ;;  %v2752_v49 = vsel %vm2526_vm1, %v2679_v33, 0.0 }
 0x2b9   :  { %7881 = vst [vmem:[#allocation18_spill] sm:$0xff] %v5378_v20  ;;  %v1958_v6 = vmul.f32 %v1885_v8, %v1519_v26  ;;  %v2324_v38 = vmax.f32 %v2084_v16, %v5086_v57  ;;  %v2044_v25 = vpop.permute.xlu1 %2043  ;;  %v2529_v8 = vadd.f32 %v2528_v50, %v2527_v1  ;;  %v2456_v43 = vmul.f32 %v5373_v44, %v4921_v30  ;;  %v7888_v1 = vld [vmem:[#allocation111_spill] sm:$0xff]  ;;  %v7961_v30 = vld [vmem:[#allocation37_spill] sm:$0xff] }
 0x2ba   :  { %v2314_v28 = vmax.f32 %v2044_v25, %v5086_v57  ;;  %7882 = vst [vmem:[#allocation19_spill] sm:$0xff] %v5391_v24  ;;  %v2681_v53 = vmul.f32 %v2455_v2, %v2455_v2  ;;  %v2457_v35 = vmul.f32 %v5378_v20, %v4946_v61  ;;  %v7885_v26 = vmax.f32 %v7839_v9, %v5050_v10 }
 0x2bb   :  { %v5393_v39 = vmul.f32 %v2324_v38, %v1958_v6  ;;  %v7886_v33 = vmax.f32 %v7833_v45, %v5050_v10  ;;  %v1888_v16 = vmax.f32 %v4833_v31, %v5059_v11  ;;  %v2754_v6 = vadd.f32 %v2753_v17, %v2752_v49  ;;  %v7887_v38 = vld [vmem:[#allocation103_spill] sm:$0xff]  ;;  %v3767_v45 = vld [vmem:[%s7348_s6 + $0x1a8] sm:$0xff] }
 0x2bc   :  { %v5399_v47 = vmul.f32 %v2314_v28, %v1948_v63  ;;  %v5404_v54 = vmul.f32 %v1441_v34, %v7885_v26  ;;  %v1444_v25 = vmax.f32 %v7887_v38, %v5048_v15  ;;  %v1442_v63 = vmax.f32 %v7888_v1, %v5048_v15  ;;  %v5415_v28 = vpop.f32.mrf.mxu2  ;;  %v3667_v31 = vld [vmem:[%s7350_s0 + $0x110] sm:$0xff]  ;;  %v5428_v26 = vpop.f32.mrf.mxu1 }
 0x2bd   :  { %7883 = vst [vmem:[#allocation90_spill] sm:$0xff] %v5393_v39  ;;  %v1512_v50 = vmul.f32 %v1439_v32, %v7886_v33  ;;  %v2530_v9 = vsel %vm2526_vm1, %v2455_v2, 0.0  ;;  %v2313_v34 = vmax.f32 %v2040_v59, %v5086_v57  ;;  %v7890_v32 = vmax.f32 %v7832_v46, %v5050_v10  ;;  %v3768_v2 = vld [vmem:[%s7348_s6 + $0x1a0] sm:$0xff]  ;;  %v3769_v59 = vld [vmem:[%s7348_s6 + $0x1b0] sm:$0xff]  ;;  %3628 = vmatmul.msk.bf16.gmra.mxu3 %vm318_vm0, %v3667_v31 }
 0x2be   :  { %7884 = vst [vmem:[#allocation23_spill] sm:$0xff] %v5399_v47  ;;  %2227 = vperm.xlu2 %3698, %v3767_v45   ;;  %v2531_v33 = vadd.f32 %v2530_v9, %v2529_v8  ;;  %v1947_v38 = vmul.f32 %v1874_v4, %v5325_v51  ;;  %v2682_v1 = vmul.f32 %v2456_v43, %v2456_v43  ;;  %v2755_v46 = vsel %vm2526_vm1, %v2681_v53, 0.0 }
 0x2bf   :  { %7889 = vst [vmem:[#allocation24_spill] sm:$0xff] %v5415_v28  ;;  %v1522_v17 = vmul.f32 %v1449_v40, %v7890_v32  ;;  %v1951_v49 = vmul.f32 %v1878_v58, %v1512_v50  ;;  %2223 = vperm.xlu1 %3699, %v3768_v2   ;;  %2231 = vperm.xlu0 %3703, %v3769_v59   ;;  %v2532_v50 = vsel %vm2526_vm1, %v2456_v43, 0.0  ;;  %v2534_v59 = vsel %vm2526_vm1, %v2457_v35, 0.0 }
 0x2c0   :  { %7891 = vst [vmem:[#allocation25_spill] sm:$0xff] %v5428_v26  ;;  %v2683_v40 = vmul.f32 %v2457_v35, %v2457_v35  ;;  %v2096_v58 = vpop.permute.xlu2 %2095  ;;  %v2756_v9 = vadd.f32 %v2755_v46, %v2754_v6  ;;  %v2458_v2 = vmul.f32 %v5158_v14, %v4979_v62  ;;  %v5444_v51 = vmul.f32 %v2313_v34, %v1947_v38  ;;  %v2052_v38 = vpop.permute.xlu0 %2051 }
 0x2c1   :  { %v1961_v8 = vmul.f32 %v1888_v16, %v1522_v17  ;;  %v2327_v45 = vmax.f32 %v2096_v58, %v5086_v57  ;;  %v2056_v32 = vpop.permute.xlu1 %2055  ;;  %v7893_v53 = vmax.f32 %v7842_v56, %v5050_v10  ;;  %v1452_v43 = vmax.f32 %v4543_v37, %v5048_v15  ;;  %v5466_v37 = vpop.f32.mrf.mxu0 }
 0x2c2   :  { %7892 = vst [vmem:[#allocation31_spill] sm:$0xff] %v5444_v51  ;;  %v2317_v4 = vmax.f32 %v2056_v32, %v5086_v57  ;;  %v2533_v16 = vadd.f32 %v2532_v50, %v2531_v33  ;;  %v1881_v17 = vmax.f32 %v4772_v52, %v5059_v11  ;;  %v2757_v35 = vsel %vm2526_vm1, %v2682_v1, 0.0  ;;  %v3772_v32 = vld [vmem:[%s7348_s6 + $0x1c8] sm:$0xff] }
 0x2c3   :  { %v5450_v31 = vmul.f32 %v1444_v25, %v7893_v53  ;;  %v5454_v6 = vmul.f32 %v2327_v45, %v1961_v8  ;;  %v2759_v34 = vsel %vm2526_vm1, %v2683_v40, 0.0  ;;  %v1877_v56 = vmax.f32 %v4804_v29, %v5059_v11  ;;  %7896 = vst [vmem:[#allocation93_spill] sm:$0xff] %v5466_v37  ;;  %v3770_v29 = vld [vmem:[%s7348_s6 + $0x1c0] sm:$0xff]  ;;  %v3771_v45 = vld [vmem:[%s7348_s6 + $0x1b8] sm:$0xff] }
 0x2c4   :  { %v5460_v46 = vmul.f32 %v2317_v4, %v1951_v49  ;;  %v1891_v25 = vmax.f32 %v4848_v19, %v5059_v11  ;;  %v2535_v33 = vadd.f32 %v2534_v59, %v2533_v16  ;;  %v2758_v58 = vadd.f32 %v2757_v35, %v2756_v9  ;;  %v7898_v19 = vld [vmem:[#allocation114_spill] sm:$0xff]  ;;  %v7900_v59 = vld [vmem:[#allocation45_spill] sm:$0xff]  ;;  %v5492_v35 = vpop.f32.mrf.mxu2 }
 0x2c5   :  { %7894 = vst [vmem:[#allocation42_spill] sm:$0xff] %v5454_v6  ;;  %v7897_v52 = vmax.f32 %v7837_v3, %v5050_v10  ;;  %v2684_v1 = vmul.f32 %v2458_v2, %v2458_v2  ;;  %v2459_v40 = vmul.f32 %v5444_v51, %v5003_v48  ;;  %v2460_v49 = vmul.f32 %v5399_v47, %v5028_v23  ;;  %v7905_v47 = vld [vmem:[#allocation3_spill] sm:$0xff] }
 0x2c6   :  { %7895 = vst [vmem:[#allocation113_spill] sm:$0xff] %v5460_v46  ;;  %2239 = vperm.xlu2 %3698, %v3770_v29   ;;  %v1445_v50 = vmax.f32 %v7898_v19, %v5048_v15  ;;  %v7899_v9 = vmax.f32 %v7836_v27, %v5050_v10  ;;  %v1455_v4 = vmax.f32 %v7900_v59, %v5048_v15  ;;  %v2536_v16 = vsel %vm2526_vm1, %v2458_v2, 0.0  ;;  %v7911_v59 = vld [vmem:[#allocation117_spill] sm:$0xff] }
 0x2c7   :  { %v1515_v8 = vmul.f32 %v1442_v63, %v7897_v52  ;;  %v2760_v63 = vadd.f32 %v2759_v34, %v2758_v58  ;;  %2235 = vperm.xlu1 %3699, %v3771_v45   ;;  %2243 = vperm.xlu0 %3703, %v3772_v32   ;;  %7901 = vst [vmem:[#allocation102_spill] sm:$0xff] %v5492_v35  ;;  %v5496_v52 = vpop.f32.mrf.mxu1  ;;  %v2761_v45 = vsel %vm2526_vm1, %v2684_v1, 0.0 }
 0x2c8   :  { %v1525_v3 = vmul.f32 %v1452_v43, %v7899_v9  ;;  %v2316_v27 = vmax.f32 %v2052_v38, %v5086_v57  ;;  %v2108_v43 = vpop.permute.xlu2 %2107  ;;  %v1950_v34 = vmul.f32 %v1877_v56, %v5346_v55  ;;  %7902 = vst [vmem:[#allocation96_spill] sm:$0xff] %v5496_v52  ;;  %v2537_v29 = vadd.f32 %v2536_v16, %v2535_v33  ;;  %v7904_v38 = vld [vmem:[#allocation83_spill] sm:$0xff]  ;;  %v7909_v16 = vld [vmem:[#allocation30_spill] sm:$0xff] }
 0x2c9   :  { %v1954_v53 = vmul.f32 %v1881_v17, %v1515_v8  ;;  %v2330_v19 = vmax.f32 %v2108_v43, %v5086_v57  ;;  %v2068_v9 = vpop.permute.xlu1 %2067  ;;  %v2685_v32 = vmul.f32 %v2459_v40, %v2459_v40  ;;  %v2686_v17 = vmul.f32 %v2460_v49, %v2460_v49  ;;  %v7903_v8 = vld [vmem:[#allocation106_spill] sm:$0xff] }
 0x2ca   :  { %v1964_v58 = vmul.f32 %v1891_v25, %v1525_v3  ;;  %v2320_v2 = vmax.f32 %v2068_v9, %v5086_v57  ;;  %v2461_v51 = vmul.f32 %v7905_v47, %v7904_v38  ;;  %v2762_v55 = vadd.f32 %v2761_v45, %v2760_v63  ;;  %v7912_v47 = vld [vmem:[#allocation155_spill] sm:$0xff] }
 0x2cb   :  { %v2538_v25 = vsel %vm2526_vm1, %v2459_v40, 0.0  ;;  %v2540_v33 = vsel %vm2526_vm1, %v2460_v49, 0.0  ;;  %v5509_v3 = vmul.f32 %v2316_v27, %v1950_v34  ;;  %v7910_v43 = vmax.f32 %v7909_v16, %v5050_v10  ;;  %v7915_v49 = vld [vmem:[#allocation154_spill] sm:$0xff] }
 0x2cc   :  { %v5505_v56 = vmul.f32 %v2330_v19, %v1964_v58  ;;  %v5511_v1 = vmul.f32 %v2320_v2, %v1954_v53  ;;  %v1448_v14 = vmax.f32 %v7911_v59, %v5048_v15  ;;  %v1894_v63 = vmax.f32 %v7912_v47, %v5059_v11  ;;  %v7913_v19 = vld [vmem:[#allocation29_spill] sm:$0xff]  ;;  %v2064_v2 = vpop.permute.xlu0 %2063  ;;  %v3668_v47 = vld [vmem:[%s7350_s0 + $0x118] sm:$0xff]  ;;  %v5554_v18 = vpop.f32.mrf.mxu2 }
 0x2cd   :  { %7907 = vst [vmem:[#allocation98_spill] sm:$0xff] %v5509_v3  ;;  %v1518_v9 = vmul.f32 %v1445_v50, %v7910_v43  ;;  %v2539_v58 = vadd.f32 %v2538_v25, %v2537_v29  ;;  %v7914_v40 = vmax.f32 %v7913_v19, %v5050_v10  ;;  %v1884_v27 = vmax.f32 %v7915_v49, %v5059_v11  ;;  %v3773_v50 = vld [vmem:[%s7348_s6 + $0x1d8] sm:$0xff]  ;;  %v5535_v25 = vpop.f32.mrf.mxu0  ;;  %v7919_v49 = vld [vmem:[#allocation190_spill] sm:$0xff] }
 0x2ce   :  { %7906 = vst [vmem:[#allocation101_spill] sm:$0xff] %v5505_v56  ;;  %v2763_v53 = vsel %vm2526_vm1, %v2685_v32, 0.0  ;;  %v2765_v34 = vsel %vm2526_vm1, %v2686_v17, 0.0  ;;  %2251 = vperm.xlu2 %3698, %v3773_v50   ;;  %v7916_v29 = vld [vmem:[#allocation20_spill] sm:$0xff]  ;;  %v3774_v32 = vld [vmem:[%s7348_s6 + $0x1d0] sm:$0xff]  ;;  %3629 = vmatmul.msk.bf16.gmra.mxu3 %vm318_vm0, %v3668_v47  ;;  %v7921_v50 = vld [vmem:[#allocation50_spill] sm:$0xff]  ;;  %v7984_v13 = vmax.f32 %v7983_v21, %v5050_v10 }
 0x2cf   :  { %7908 = vst [vmem:[#allocation105_spill] sm:$0xff] %v5511_v1  ;;  %v1528_v45 = vmul.f32 %v1455_v4, %v7914_v40  ;;  %v1880_v4 = vmax.f32 %v7916_v29, %v5059_v11  ;;  %v2764_v59 = vadd.f32 %v2763_v53, %v2762_v55  ;;  %v2541_v16 = vadd.f32 %v2540_v33, %v2539_v58  ;;  %v3775_v17 = vld [vmem:[%s7348_s6 + $0x1f0] sm:$0xff]  ;;  %v7918_v43 = vld [vmem:[#allocation32_spill] sm:$0xff] }
 0x2d0   :  { %7917 = vst [vmem:[#allocation116_spill] sm:$0xff] %v5535_v25  ;;  %2247 = vperm.xlu1 %3699, %v3774_v32   ;;  %2263 = vperm.xlu0 %3703, %v3775_v17   ;;  %v1451_v19 = vmax.f32 %v7918_v43, %v5048_v15  ;;  %v2687_v40 = vmul.f32 %v2461_v51, %v2461_v51  ;;  %v7920_v53 = vld [vmem:[#allocation104_spill] sm:$0xff]  ;;  %v2120_v58 = vpop.permute.xlu2 %2119  ;;  %v2542_v43 = vsel %vm2526_vm1, %v2461_v51, 0.0  ;;  %v7934_v38 = vmov 2  }
 0x2d1   :  { %v2462_v55 = vmul.f32 %v5509_v3, %v7919_v49  ;;  %v2463_v33 = vmul.f32 %v5460_v46, %v7920_v53  ;;  %v1458_v29 = vmax.f32 %v7921_v50, %v5048_v15  ;;  %v1967_v32 = vmul.f32 %v1894_v63, %v1528_v45  ;;  %v2080_v5 = vpop.permute.xlu1 %2079  ;;  %7922 = vst [vmem:[#allocation100_spill] sm:$0xff] %v5554_v18  ;;  %v7923_v53 = vld [vmem:[#allocation15_spill] sm:$0xff]  ;;  %v5561_v50 = vpop.f32.mrf.mxu1 }
 0x2d2   :  { %v2766_v20 = vadd.f32 %v2765_v34, %v2764_v59  ;;  %v2333_v44 = vmax.f32 %v2120_v58, %v5086_v57  ;;  %v1957_v22 = vmul.f32 %v1884_v27, %v1518_v9  ;;  %v2319_v3 = vmax.f32 %v2064_v2, %v5086_v57  ;;  %7924 = vst [vmem:[#allocation108_spill] sm:$0xff] %v5561_v50  ;;  %v5565_v34 = vpop.f32.mrf.mxu3  ;;  %v7928_v2 = vld [vmem:[#allocation36_spill] sm:$0xff] }
 0x2d3   :  { %v2323_v46 = vmax.f32 %v2080_v5, %v5086_v57  ;;  %v1887_v47 = vmax.f32 %v7923_v53, %v5059_v11  ;;  %v1953_v49 = vmul.f32 %v1880_v4, %v5404_v54  ;;  %v2543_v63 = vadd.f32 %v2542_v43, %v2541_v16  ;;  %7926 = vst [vmem:[#allocation111_spill] sm:$0xff] %v5565_v34  ;;  %v7931_v16 = vld [vmem:[#allocation159_spill] sm:$0xff] }
 0x2d4   :  { %v5563_v45 = vmul.f32 %v2333_v44, %v1967_v32  ;;  %v2767_v51 = vsel %vm2526_vm1, %v2687_v40, 0.0  ;;  %v2688_v9 = vmul.f32 %v2462_v55, %v2462_v55  ;;  %v2689_v27 = vmul.f32 %v2463_v33, %v2463_v33  ;;  %v7932_v32 = vld [vmem:[#allocation5_spill] sm:$0xff] }
 0x2d5   :  { %v5568_v59 = vmul.f32 %v2323_v46, %v1957_v22  ;;  %v7929_v5 = vmax.f32 %v7928_v2, %v5050_v10  ;;  %v7930_v54 = vmax.f32 %v7847_v41, %v5050_v10  ;;  %v1897_v44 = vmax.f32 %v7931_v16, %v5059_v11 }
 0x2d6   :  { %7925 = vst [vmem:[#allocation103_spill] sm:$0xff] %v5563_v45  ;;  %v2768_v53 = vadd.f32 %v2767_v51, %v2766_v20  ;;  %v2464_v43 = vmul.f32 %v5259_v12, %v7932_v32  ;;  %v2544_v40 = vsel %vm2526_vm1, %v2462_v55, 0.0  ;;  %v2546_v22 = vsel %vm2526_vm1, %v2463_v33, 0.0  ;;  %3700 = vset.pattern.permute.xlu2 %v7934_v38  ;;  %v3776_v20 = vld [vmem:[%s7348_s6 + $0x1e0] sm:$0xff]  ;;  %v7938_v55 = vld [vmem:[#allocation22_spill] sm:$0xff]  ;;  %v2076_v51 = vpop.permute.xlu0 %2075 }
 0x2d7   :  { %7927 = vst [vmem:[#allocation114_spill] sm:$0xff] %v5568_v59  ;;  %v1521_v58 = vmul.f32 %v1448_v14, %v7929_v5  ;;  %v1524_v4 = vmul.f32 %v1451_v19, %v7930_v54  ;;  %v5582_v46 = vmul.f32 %v2319_v3, %v1953_v49  ;;  %v7935_v14 = vld [vmem:[#allocation35_spill] sm:$0xff]  ;;  %v2545_v54 = vadd.f32 %v2544_v40, %v2543_v63  ;;  %v5596_v3 = vld [vmem:[%s7348_s6 + $0x218] sm:$0xff] }
 0x2d8   :  { %v7936_v2 = vmax.f32 %v7935_v14, %v5050_v10  ;;  %v7937_v19 = vld [vmem:[#allocation119_spill] sm:$0xff]  ;;  %2255 = vperm.xlu1 %3699, %v3776_v20   ;;  %2283 = vperm.xlu0 %3703, %v5596_v3   ;;  %v1883_v33 = vmax.f32 %v7938_v55, %v5059_v11  ;;  %v2771_v63 = vsel %vm2526_vm1, %v2689_v27, 0.0  ;;  %v2132_v16 = vpop.permute.xlu2 %2131  ;;  %v2690_v32 = vmul.f32 %v2464_v43, %v2464_v43 }
 0x2d9   :  { %7933 = vst [vmem:[#allocation45_spill] sm:$0xff] %v5582_v46  ;;  %v1461_v5 = vmax.f32 %v7937_v19, %v5048_v15  ;;  %v1960_v49 = vmul.f32 %v1887_v47, %v1521_v58  ;;  %1824 = vperm.xlu2 %3700, %v3775_v17   ;;  %v2547_v19 = vadd.f32 %v2546_v22, %v2545_v54  ;;  %v2092_v12 = vpop.permute.xlu1 %2091  ;;  %v7940_v47 = vld [vmem:[#allocation6_spill] sm:$0xff] }
 0x2da   :  { %v1531_v41 = vmul.f32 %v1458_v29, %v7936_v2  ;;  %v2769_v29 = vsel %vm2526_vm1, %v2688_v9, 0.0  ;;  %v5603_v2 = vpop.f32.mrf.mxu0  ;;  %v2336_v20 = vmax.f32 %v2132_v16, %v5086_v57  ;;  %v2465_v58 = vmul.f32 %v5582_v46, %v7940_v47  ;;  %v7941_v17 = vld [vmem:[#allocation46_spill] sm:$0xff]  ;;  %v5617_v54 = vpop.f32.mrf.mxu3 }
 0x2db   :  { %v2770_v14 = vadd.f32 %v2769_v29, %v2768_v53  ;;  %7939 = vst [vmem:[#allocation106_spill] sm:$0xff] %v5603_v2  ;;  %v2466_v9 = vmul.f32 %v5511_v1, %v5313_v7  ;;  %v2326_v27 = vmax.f32 %v2092_v12, %v5086_v57  ;;  %v1454_v55 = vmax.f32 %v7941_v17, %v5048_v15  ;;  %v102_v29 = vld [vmem:[%s7350_s0 + $0x120] sm:$0x1]  ;;  %v5623_v1 = vpop.f32.mrf.mxu2  ;;  %v5634_v47 = vpop.f32.mrf.mxu1 }
 0x2dc   :  { %v1970_v40 = vmul.f32 %v1897_v44, %v1531_v41  ;;  %v7942_v44 = vld [vmem:[#allocation16_spill] sm:$0xff]  ;;  %7944 = vst [vmem:[#allocation117_spill] sm:$0xff] %v5617_v54  ;;  %v2548_v16 = vsel %vm2526_vm1, %v2464_v43, 0.0  ;;  %v2322_v12 = vmax.f32 %v2076_v51, %v5086_v57  ;;  %v256_v17 = vunpack.c.l.b16 %v102_v29  ;;  %v7947_v7 = vld [vmem:[#allocation41_spill] sm:$0xff] }
 0x2dd   :  { %v1890_v53 = vmax.f32 %v7942_v44, %v5059_v11  ;;  %v2772_v41 = vadd.f32 %v2771_v63, %v2770_v14  ;;  %7945 = vst [vmem:[#allocation155_spill] sm:$0xff] %v5623_v1  ;;  %v5626_v46 = vmul.f32 %v2326_v27, %v1960_v49  ;;  %v7948_v63 = vmax.f32 %v7947_v7, %v5050_v10  ;;  %v7951_v49 = vld [vmem:[#allocation122_spill] sm:$0xff] }
 0x2de   :  { %v5615_v22 = vmul.f32 %v2336_v20, %v1970_v40  ;;  %v1956_v14 = vmul.f32 %v1883_v33, %v5450_v31  ;;  %v7949_v20 = vld [vmem:[#allocation163_spill] sm:$0xff]  ;;  %7950 = vst [vmem:[#allocation154_spill] sm:$0xff] %v5634_v47  ;;  %v2549_v23 = vadd.f32 %v2548_v16, %v2547_v19  ;;  %v2773_v43 = vsel %vm2526_vm1, %v2690_v32, 0.0  ;;  %v3778_v7 = vld [vmem:[%s7348_s6 + $0x1e8] sm:$0xff]  ;;  %v5655_v19 = vld [vmem:[%s7348_s6 + $0x238] sm:$0xff] }
 0x2df   :  { %7946 = vst [vmem:[#allocation29_spill] sm:$0xff] %v5626_v46  ;;  %v1534_v40 = vmul.f32 %v1461_v5, %v7948_v63  ;;  %v1900_v44 = vmax.f32 %v7949_v20, %v5059_v11  ;;  %v2691_v48 = vmul.f32 %v2465_v58, %v2465_v58  ;;  %v2692_v62 = vmul.f32 %v2466_v9, %v2466_v9 }
 0x2e0   :  { %7943 = vst [vmem:[#allocation30_spill] sm:$0xff] %v5615_v22  ;;  %v293_v51 = vpack.c.b16 %v256_v17, %v256_v17  ;;  %v1464_v27 = vmax.f32 %v7951_v49, %v5048_v15  ;;  %v1963_v29 = vmul.f32 %v1890_v53, %v1524_v4  ;;  %v2774_v61 = vadd.f32 %v2773_v43, %v2772_v41  ;;  %v3779_v4 = vld [vmem:[%s7348_s6 + $0x1f8] sm:$0xff]  ;;  %v2144_v53 = vpop.permute.xlu2 %2143  ;;  %v7953_v41 = vld [vmem:[#allocation21_spill] sm:$0xff] }
 0x2e1   :  { %2259 = vperm.xlu1 %3699, %v3778_v7   ;;  %3708 = vset.pattern.permute.xlu0 %v7934_v38  ;;  %v2467_v31 = vmul.f32 %v5331_v36, %v5391_v24  ;;  %v2550_v32 = vsel %vm2526_vm1, %v2465_v58, 0.0  ;;  %v2552_v5 = vsel %vm2526_vm1, %v2466_v9, 0.0  ;;  %v5647_v33 = vmul.f32 %v2322_v12, %v1956_v14  ;;  %v2104_v63 = vpop.permute.xlu1 %2103  ;;  %v7955_v14 = vld [vmem:[#allocation28_spill] sm:$0xff]  ;;  %v2088_v7 = vpop.permute.xlu0 %2087 }
 0x2e2   :  { %1828 = vperm.xlu2 %3700, %v3779_v4   ;;  %1860 = vperm.xlu0 %3708, %v5655_v19   ;;  %v1893_v58 = vmax.f32 %v7953_v41, %v5059_v11  ;;  %v1973_v16 = vmul.f32 %v1900_v44, %v1534_v40  ;;  %v2551_v9 = vadd.f32 %v2550_v32, %v2549_v23  ;;  %v5660_v12 = vpop.f32.mrf.mxu0  ;;  %v2775_v43 = vsel %vm2526_vm1, %v2691_v48, 0.0  ;;  %v7956_v40 = vld [vmem:[#allocation167_spill] sm:$0xff] }
 0x2e3   :  { %7952 = vst [vmem:[#allocation20_spill] sm:$0xff] %v5647_v33  ;;  %v2339_v17 = vmax.f32 %v2144_v53, %v5086_v57  ;;  %3630 = vmatmul.msk.bf16.gmra.mxu3 %vm318_vm0, %v293_v51  ;;  %v1886_v20 = vmax.f32 %v7955_v14, %v5059_v11  ;;  %v2777_v49 = vsel %vm2526_vm1, %v2692_v62, 0.0  ;;  %v2329_v36 = vmax.f32 %v2104_v63, %v5086_v57  ;;  %v5673_v53 = vpop.f32.mrf.mxu3  ;;  %v7960_v63 = vld [vmem:[#allocation56_spill] sm:$0xff] }
 0x2e4   :  { %7954 = vst [vmem:[#allocation32_spill] sm:$0xff] %v5660_v12  ;;  %v1903_v23 = vmax.f32 %v7956_v40, %v5059_v11  ;;  %v2776_v44 = vadd.f32 %v2775_v43, %v2774_v61  ;;  %v2553_v32 = vadd.f32 %v2552_v5, %v2551_v9  ;;  %v2693_v51 = vmul.f32 %v2467_v31, %v2467_v31  ;;  %v7964_v9 = vld [vmem:[#allocation48_spill] sm:$0xff] }
 0x2e5   :  { %v5671_v41 = vmul.f32 %v2339_v17, %v1973_v16  ;;  %7958 = vst [vmem:[#allocation15_spill] sm:$0xff] %v5673_v53  ;;  %v2468_v14 = vmul.f32 %v5647_v33, %v5466_v37  ;;  %v2469_v48 = vmul.f32 %v5568_v59, %v5535_v25  ;;  %v5679_v62 = vmul.f32 %v2329_v36, %v1963_v29  ;;  %v7966_v33 = vld [vmem:[#allocation59_spill] sm:$0xff]  ;;  %v5698_v37 = vpop.f32.mrf.mxu2  ;;  %v7975_v59 = vld [vmem:[#allocation125_spill] sm:$0xff] }
 0x2e6   :  { %v7962_v61 = vmax.f32 %v7961_v30, %v5050_v10  ;;  %v7963_v5 = vmax.f32 %v7903_v8, %v5048_v15  ;;  %v7965_v17 = vmax.f32 %v7964_v9, %v5050_v10  ;;  %v2778_v40 = vadd.f32 %v2777_v49, %v2776_v44  ;;  %v7967_v36 = vld [vmem:[#allocation47_spill] sm:$0xff]  ;;  %7969 = vst [vmem:[#allocation159_spill] sm:$0xff] %v5698_v37  ;;  %v7970_v8 = vld [vmem:[#allocation44_spill] sm:$0xff] }
 0x2e7   :  { %7957 = vst [vmem:[#allocation50_spill] sm:$0xff] %v5671_v41  ;;  %v7968_v29 = vmax.f32 %v7967_v36, %v5050_v10  ;;  %v2554_v24 = vsel %vm2526_vm1, %v2467_v31, 0.0  ;;  %v2325_v30 = vmax.f32 %v2088_v7, %v5086_v57  ;;  %v2695_v36 = vmul.f32 %v2469_v48, %v2469_v48  ;;  %v3781_v7 = vld [vmem:[%s7348_s6 + $0x200] sm:$0xff] }
 0x2e8   :  { %7959 = vst [vmem:[#allocation36_spill] sm:$0xff] %v5679_v62  ;;  %v1520_v16 = vmul.f32 %v7963_v5, %v7962_v61  ;;  %v1527_v43 = vmul.f32 %v1454_v55, %v7965_v17  ;;  %v1457_v61 = vmax.f32 %v7970_v8, %v5048_v15  ;;  %v5703_v55 = vpop.f32.mrf.mxu1  ;;  %v2555_v49 = vadd.f32 %v2554_v24, %v2553_v32 }
 0x2e9   :  { %v1537_v25 = vmul.f32 %v1464_v27, %v7968_v29  ;;  %7971 = vst [vmem:[#allocation35_spill] sm:$0xff] %v5703_v55  ;;  %3701 = vset.pattern.permute.xlu1 %v7934_v38  ;;  %v2779_v17 = vsel %vm2526_vm1, %v2693_v51, 0.0  ;;  %v2694_v27 = vmul.f32 %v2468_v14, %v2468_v14  ;;  %v7972_v31 = vmov 3   ;;  %v2156_v29 = vpop.permute.xlu2 %2155 }
 0x2ea   :  { %v1966_v5 = vmul.f32 %v1893_v58, %v1527_v43  ;;  %v1959_v9 = vmul.f32 %v1886_v20, %v1520_v16  ;;  %3702 = vset.pattern.permute.xlu2 %v7972_v31  ;;  %1832 = vperm.xlu1 %3701, %v3781_v7   ;;  %v2470_v58 = vmul.f32 %v5393_v39, %v5603_v2  ;;  %v2558_v32 = vsel %vm2526_vm1, %v2469_v48, 0.0  ;;  %v7974_v43 = vld [vmem:[#allocation109_spill] sm:$0xff] }
 0x2eb   :  { %v1976_v44 = vmul.f32 %v1903_v23, %v1537_v25  ;;  %v2780_v20 = vadd.f32 %v2779_v17, %v2778_v40  ;;  %2267 = vperm.xlu2 %3702, %v3779_v4   ;;  %v2342_v24 = vmax.f32 %v2156_v29, %v5086_v57  ;;  %v2116_v25 = vpop.permute.xlu1 %2115  ;;  %3712 = vset.pattern.permute.xlu0 %v7972_v31  ;;  %v2556_v23 = vsel %vm2526_vm1, %v2468_v14, 0.0  ;;  %v5724_v17 = vpop.f32.mrf.mxu0  ;;  %v7979_v14 = vld [vmem:[#allocation27_spill] sm:$0xff] }
 0x2ec   :  { %v5717_v51 = vmul.f32 %v2325_v30, %v1959_v9  ;;  %v2332_v16 = vmax.f32 %v2116_v25, %v5086_v57  ;;  %v1450_v8 = vmax.f32 %v7974_v43, %v5048_v15  ;;  %v1467_v40 = vmax.f32 %v7975_v59, %v5048_v15  ;;  %7976 = vst [vmem:[#allocation22_spill] sm:$0xff] %v5724_v17  ;;  %v5728_v39 = vpop.f32.mrf.mxu3  ;;  %v2100_v25 = vpop.permute.xlu0 %2099  ;;  %v7981_v43 = vld [vmem:[#allocation34_spill] sm:$0xff] }
 0x2ed   :  { %v2557_v4 = vadd.f32 %v2556_v23, %v2555_v49  ;;  %v5726_v29 = vmul.f32 %v2342_v24, %v1976_v44  ;;  %7978 = vst [vmem:[#allocation16_spill] sm:$0xff] %v5728_v39  ;;  %v1896_v48 = vmax.f32 %v7979_v14, %v5059_v11  ;;  %v2781_v30 = vsel %vm2526_vm1, %v2694_v27, 0.0  ;;  %v7982_v49 = vld [vmem:[#allocation171_spill] sm:$0xff]  ;;  %v7987_v39 = vld [vmem:[#allocation112_spill] sm:$0xff] }
 0x2ee   :  { %7973 = vst [vmem:[#allocation119_spill] sm:$0xff] %v5717_v51  ;;  %v2783_v9 = vsel %vm2526_vm1, %v2695_v36, 0.0  ;;  %v5734_v2 = vmul.f32 %v2332_v16, %v1966_v5  ;;  %v1889_v59 = vmax.f32 %v7981_v43, %v5059_v11  ;;  %v1906_v23 = vmax.f32 %v7982_v49, %v5059_v11  ;;  %v7985_v36 = vld [vmem:[#allocation43_spill] sm:$0xff] }
 0x2ef   :  { %7977 = vst [vmem:[#allocation46_spill] sm:$0xff] %v5726_v29  ;;  %v2782_v44 = vadd.f32 %v2781_v30, %v2780_v20  ;;  %v2559_v24 = vadd.f32 %v2558_v32, %v2557_v4  ;;  %v1530_v60 = vmul.f32 %v1457_v61, %v7984_v13  ;;  %v2696_v14 = vmul.f32 %v2470_v58, %v2470_v58  ;;  %v7988_v20 = vld [vmem:[#allocation51_spill] sm:$0xff]  ;;  %v7990_v13 = vld [vmem:[#allocation118_spill] sm:$0xff] }
 0x2f0   :  { %7980 = vst [vmem:[#allocation41_spill] sm:$0xff] %v5734_v2  ;;  %v2471_v27 = vmul.f32 %v5717_v51, %v5660_v12  ;;  %v2472_v5 = vmul.f32 %v5626_v46, %v5724_v17  ;;  %v7986_v16 = vmax.f32 %v7985_v36, %v5050_v10  ;;  %v1453_v49 = vmax.f32 %v7987_v39, %v5048_v15  ;;  %v5758_v12 = vpop.f32.mrf.mxu2  ;;  %v7994_v17 = vld [vmem:[#allocation192_spill] sm:$0xff] }
 0x2f1   :  { %v7989_v32 = vmax.f32 %v7988_v20, %v5050_v10  ;;  %v2784_v21 = vadd.f32 %v2783_v9, %v2782_v44  ;;  %v1460_v61 = vmax.f32 %v7990_v13, %v5048_v15  ;;  %v1969_v30 = vmul.f32 %v1896_v48, %v1530_v60  ;;  %7991 = vst [vmem:[#allocation163_spill] sm:$0xff] %v5758_v12  ;;  %v2168_v39 = vpop.permute.xlu2 %2167 }
 0x2f2   :  { %v1523_v43 = vmul.f32 %v1450_v8, %v7986_v16  ;;  %v2560_v51 = vsel %vm2526_vm1, %v2470_v58, 0.0  ;;  %v2328_v46 = vmax.f32 %v2100_v25, %v5086_v57  ;;  %v3782_v8 = vld [vmem:[%s7348_s6 + $0x208] sm:$0xff]  ;;  %v2345_v60 = vmax.f32 %v2168_v39, %v5086_v57  ;;  %v7999_v39 = vld [vmem:[#allocation49_spill] sm:$0xff] }
 0x2f3   :  { %v1540_v4 = vmul.f32 %v1467_v40, %v7989_v32  ;;  %1836 = vperm.xlu1 %3701, %v3782_v8   ;;  %v5764_v40 = vpop.f32.mrf.mxu1  ;;  %v2561_v9 = vadd.f32 %v2560_v51, %v2559_v24  ;;  %2271 = vperm.xlu2 %3702, %v3781_v7   ;;  %v2128_v48 = vpop.permute.xlu1 %2127  ;;  %v2785_v58 = vsel %vm2526_vm1, %v2696_v14, 0.0  ;;  %v2697_v44 = vmul.f32 %v2471_v27, %v2471_v27  ;;  %v7993_v32 = vld [vmem:[#allocation128_spill] sm:$0xff] }
 0x2f4   :  { %v1962_v36 = vmul.f32 %v1889_v59, %v1523_v43  ;;  %7992 = vst [vmem:[#allocation122_spill] sm:$0xff] %v5764_v40  ;;  %v2698_v20 = vmul.f32 %v2472_v5, %v2472_v5  ;;  %v2335_v25 = vmax.f32 %v2128_v48, %v5086_v57  ;;  %v1470_v13 = vmax.f32 %v7993_v32, %v5048_v15  ;;  %v5775_v51 = vpop.f32.mrf.mxu3 }
 0x2f5   :  { %v1979_v16 = vmul.f32 %v1906_v23, %v1540_v4  ;;  %v2473_v59 = vmul.f32 %v5454_v6, %v7994_v17  ;;  %v2786_v23 = vadd.f32 %v2785_v58, %v2784_v21  ;;  %7996 = vst [vmem:[#allocation28_spill] sm:$0xff] %v5775_v51  ;;  %v2562_v7 = vsel %vm2526_vm1, %v2471_v27, 0.0  ;;  %v8003_v27 = vld [vmem:[#allocation120_spill] sm:$0xff] }
 0x2f6   :  { %v5778_v24 = vmul.f32 %v2328_v46, %v1962_v36  ;;  %v2564_v14 = vsel %vm2526_vm1, %v2472_v5, 0.0  ;;  %v5781_v4 = vmul.f32 %v2335_v25, %v1969_v30  ;;  %v8000_v48 = vmax.f32 %v7999_v39, %v5050_v10  ;;  %v8004_v36 = vld [vmem:[#allocation33_spill] sm:$0xff]  ;;  %v2112_v39 = vpop.permute.xlu0 %2111  ;;  %v8009_v51 = vld [vmem:[#allocation4_spill] sm:$0xff] }
 0x2f7   :  { %v5773_v43 = vmul.f32 %v2345_v60, %v1979_v16  ;;  %v8001_v6 = vmax.f32 %v7960_v63, %v5050_v10  ;;  %v8002_v16 = vld [vmem:[#allocation175_spill] sm:$0xff]  ;;  %v2563_v58 = vadd.f32 %v2562_v7, %v2561_v9  ;;  %v1463_v46 = vmax.f32 %v8003_v27, %v5048_v15 }
 0x2f8   :  { %7997 = vst [vmem:[#allocation167_spill] sm:$0xff] %v5778_v24  ;;  %v1526_v32 = vmul.f32 %v1453_v49, %v8000_v48  ;;  %v1909_v60 = vmax.f32 %v8002_v16, %v5059_v11  ;;  %v1899_v5 = vmax.f32 %v8004_v36, %v5059_v11  ;;  %v2787_v30 = vsel %vm2526_vm1, %v2697_v44, 0.0  ;;  %v8005_v49 = vld [vmem:[#allocation55_spill] sm:$0xff]  ;;  %v8010_v44 = vld [vmem:[#allocation198_spill] sm:$0xff] }
 0x2f9   :  { %7995 = vst [vmem:[#allocation21_spill] sm:$0xff] %v5773_v43  ;;  %v1533_v21 = vmul.f32 %v1460_v61, %v8001_v6  ;;  %v2789_v25 = vsel %vm2526_vm1, %v2698_v20, 0.0  ;;  %v8006_v48 = vmax.f32 %v8005_v49, %v5050_v10  ;;  %v8007_v6 = vld [vmem:[#allocation158_spill] sm:$0xff]  ;;  %v2788_v16 = vadd.f32 %v2787_v30, %v2786_v23  ;;  %v8008_v7 = vld [vmem:[#allocation131_spill] sm:$0xff]  ;;  %v2180_v53 = vpop.permute.xlu2 %2179  ;;  %v5811_v30 = vpop.f32.mrf.mxu2 }
 0x2fa   :  { %7998 = vst [vmem:[#allocation56_spill] sm:$0xff] %v5781_v4  ;;  %v1892_v61 = vmax.f32 %v8007_v6, %v5059_v11  ;;  %v2565_v9 = vadd.f32 %v2564_v14, %v2563_v58  ;;  %v1473_v27 = vmax.f32 %v8008_v7, %v5048_v15  ;;  %v2699_v17 = vmul.f32 %v2473_v59, %v2473_v59 }
 0x2fb   :  { %v1543_v63 = vmul.f32 %v1470_v13, %v8006_v48  ;;  %v2474_v36 = vmul.f32 %v5778_v24, %v8009_v51  ;;  %v2475_v20 = vmul.f32 %v5679_v62, %v8010_v44  ;;  %3704 = vset.pattern.permute.xlu1 %v7972_v31  ;;  %v2790_v13 = vadd.f32 %v2789_v25, %v2788_v16  ;;  %v2140_v14 = vpop.permute.xlu1 %2139  ;;  %v5819_v16 = vpop.f32.mrf.mxu1  ;;  %v8022_v44 = vld [vmem:[#allocation115_spill] sm:$0xff] }
 0x2fc   :  { %3705 = vset.pattern.permute.xlu2 %v7934_v38  ;;  %v2348_v23 = vmax.f32 %v2180_v53, %v5086_v57  ;;  %2275 = vperm.xlu1 %3704, %v3782_v8   ;;  %v1972_v58 = vmul.f32 %v1899_v5, %v1533_v21  ;;  %8011 = vst [vmem:[#allocation37_spill] sm:$0xff] %v5811_v30  ;;  %v2566_v48 = vsel %vm2526_vm1, %v2473_v59, 0.0  ;;  %v5823_v21 = vpop.f32.mrf.mxu3  ;;  %v2791_v59 = vsel %vm2526_vm1, %v2699_v17, 0.0 }
 0x2fd   :  { %v1982_v49 = vmul.f32 %v1909_v60, %v1543_v63  ;;  %v2331_v6 = vmax.f32 %v2112_v39, %v5086_v57  ;;  %v2338_v7 = vmax.f32 %v2140_v14, %v5086_v57  ;;  %1844 = vperm.xlu2 %3705, %v5596_v3   ;;  %v8012_v60 = vld [vmem:[#allocation157_spill] sm:$0xff]  ;;  %v1965_v63 = vmul.f32 %v1892_v61, %v1526_v32  ;;  %v8016_v14 = vld [vmem:[#allocation58_spill] sm:$0xff] }
 0x2fe   :  { %v1902_v25 = vmax.f32 %v8012_v60, %v5059_v11  ;;  %8013 = vst [vmem:[#allocation48_spill] sm:$0xff] %v5819_v16  ;;  %v2567_v53 = vadd.f32 %v2566_v48, %v2565_v9  ;;  %v2700_v5 = vmul.f32 %v2474_v36, %v2474_v36  ;;  %v2701_v62 = vmul.f32 %v2475_v20, %v2475_v20  ;;  %v8018_v61 = vld [vmem:[#allocation178_spill] sm:$0xff] }
 0x2ff   :  { %v5821_v8 = vmul.f32 %v2348_v23, %v1982_v49  ;;  %v5826_v39 = vmul.f32 %v2338_v7, %v1972_v58  ;;  %v1107_v3 = vmax.f32 %v8016_v14, %v5050_v10  ;;  %v8017_v60 = vmax.f32 %v7966_v33, %v5050_v10  ;;  %v8019_v23 = vld [vmem:[#allocation110_spill] sm:$0xff]  ;;  %v8021_v7 = vld [vmem:[#allocation53_spill] sm:$0xff] }
 0x300   :  { %v1912_v9 = vmax.f32 %v8018_v61, %v5059_v11  ;;  %v2792_v49 = vadd.f32 %v2791_v59, %v2790_v13  ;;  %v2476_v48 = vmul.f32 %v5505_v56, %v8019_v23  ;;  %v2568_v24 = vsel %vm2526_vm1, %v2474_v36, 0.0  ;;  %v8023_v13 = vld [vmem:[#allocation162_spill] sm:$0xff]  ;;  %v2124_v56 = vpop.permute.xlu0 %2123 }
 0x301   :  { %8014 = vst [vmem:[#allocation59_spill] sm:$0xff] %v5821_v8  ;;  %v1536_v32 = vmul.f32 %v1463_v46, %v8017_v60  ;;  %v2570_v17 = vsel %vm2526_vm1, %v2475_v20, 0.0  ;;  %v5839_v58 = vmul.f32 %v2331_v6, %v1965_v63  ;;  %v1090_v14 = vmax.f32 %v8021_v7, %v5050_v10  ;;  %v2192_v20 = vpop.permute.xlu2 %2191 }
 0x302   :  { %8015 = vst [vmem:[#allocation47_spill] sm:$0xff] %v5826_v39  ;;  %v1456_v33 = vmax.f32 %v8022_v44, %v5048_v15  ;;  %v1546_v46 = vmul.f32 %v1473_v27, %v1107_v3  ;;  %v2569_v60 = vadd.f32 %v2568_v24, %v2567_v53  ;;  %v1895_v59 = vmax.f32 %v8023_v13, %v5059_v11  ;;  %v3783_v27 = vld [vmem:[%s7348_s6 + $0x210] sm:$0xff]  ;;  %v5868_v13 = vpop.f32.mrf.mxu2 }
 0x303   :  { %8020 = vst [vmem:[#allocation44_spill] sm:$0xff] %v5839_v58  ;;  %v1975_v51 = vmul.f32 %v1902_v25, %v1536_v32  ;;  %v2793_v61 = vsel %vm2526_vm1, %v2700_v5, 0.0  ;;  %v2795_v36 = vsel %vm2526_vm1, %v2701_v62, 0.0  ;;  %v2351_v7 = vmax.f32 %v2192_v20, %v5086_v57  ;;  %v2152_v24 = vpop.permute.xlu1 %2151  ;;  %v3784_v5 = vld [vmem:[%s7348_s6 + $0x220] sm:$0xff]  ;;  %v8024_v3 = vld [vmem:[#allocation123_spill] sm:$0xff] }
 0x304   :  { %v1985_v6 = vmul.f32 %v1912_v9, %v1546_v46  ;;  %v2794_v63 = vadd.f32 %v2793_v61, %v2792_v49  ;;  %v2571_v23 = vadd.f32 %v2570_v17, %v2569_v60  ;;  %2279 = vperm.xlu1 %3704, %v3783_v27   ;;  %v2702_v44 = vmul.f32 %v2476_v48, %v2476_v48  ;;  %v5865_v17 = vpop.f32.mrf.mxu3  ;;  %v8028_v27 = vld [vmem:[#allocation62_spill] sm:$0xff] }
 0x305   :  { %v2477_v25 = vmul.f32 %v5839_v58, %v5354_v0  ;;  %v2478_v62 = vmul.f32 %v5734_v2, %v5428_v26  ;;  %v2341_v53 = vmax.f32 %v2152_v24, %v5086_v57  ;;  %1848 = vperm.xlu2 %3705, %v3784_v5   ;;  %v1466_v32 = vmax.f32 %v8024_v3, %v5048_v15  ;;  %v8029_v2 = vld [vmem:[#allocation161_spill] sm:$0xff] }
 0x306   :  { %v2796_v9 = vadd.f32 %v2795_v36, %v2794_v63  ;;  %v5863_v49 = vmul.f32 %v2351_v7, %v1985_v6  ;;  %v1529_v46 = vmul.f32 %v1456_v33, %v1090_v14  ;;  %v2572_v60 = vsel %vm2526_vm1, %v2476_v48, 0.0  ;;  %8026 = vst [vmem:[#allocation125_spill] sm:$0xff] %v5868_v13  ;;  %v5877_v36 = vpop.f32.mrf.mxu1  ;;  %v8038_v26 = vld [vmem:[#allocation165_spill] sm:$0xff] }
 0x307   :  { %v2334_v61 = vmax.f32 %v2124_v56, %v5086_v57  ;;  %v5871_v20 = vmul.f32 %v2341_v53, %v1975_v51  ;;  %v1100_v24 = vmax.f32 %v8028_v27, %v5050_v10  ;;  %v1905_v3 = vmax.f32 %v8029_v2, %v5059_v11  ;;  %8030 = vst [vmem:[#allocation34_spill] sm:$0xff] %v5877_v36 }
 0x308   :  { %8025 = vst [vmem:[#allocation109_spill] sm:$0xff] %v5863_v49  ;;  %v2573_v6 = vadd.f32 %v2572_v60, %v2571_v23  ;;  %v1968_v63 = vmul.f32 %v1895_v59, %v1529_v46  ;;  %v2797_v14 = vsel %vm2526_vm1, %v2702_v44, 0.0  ;;  %v2703_v33 = vmul.f32 %v2477_v25, %v2477_v25  ;;  %v8032_v23 = vld [vmem:[#allocation57_spill] sm:$0xff]  ;;  %v8033_v44 = vld [vmem:[#allocation40_spill] sm:$0xff] }
 0x309   :  { %8027 = vst [vmem:[#allocation27_spill] sm:$0xff] %v5871_v20  ;;  %v2704_v48 = vmul.f32 %v2478_v62, %v2478_v62  ;;  %v1539_v7 = vmul.f32 %v1466_v32, %v1100_v24  ;;  %v2798_v58 = vadd.f32 %v2797_v14, %v2796_v9  ;;  %v2479_v56 = vmul.f32 %v5563_v45, %v5496_v52  ;;  %v5886_v2 = vpop.permute.xlu2 %2203  ;;  %v8037_v52 = vld [vmem:[#allocation65_spill] sm:$0xff] }
 0x30a   :  { %v2574_v51 = vsel %vm2526_vm1, %v2477_v25, 0.0  ;;  %v2576_v53 = vsel %vm2526_vm1, %v2478_v62, 0.0  ;;  %v5884_v27 = vmul.f32 %v2334_v61, %v1968_v63  ;;  %v1093_v59 = vmax.f32 %v8032_v23, %v5050_v10  ;;  %v2136_v62 = vpop.permute.xlu0 %2135  ;;  %v3785_v63 = vld [vmem:[%s7348_s6 + $0x228] sm:$0xff] }
 0x30b   :  { %v1459_v46 = vmax.f32 %v8033_v44, %v5048_v15  ;;  %v2575_v60 = vadd.f32 %v2574_v51, %v2573_v6  ;;  %v2164_v32 = vpop.permute.xlu1 %2163  ;;  %v1978_v9 = vmul.f32 %v1905_v3, %v1539_v7  ;;  %v2799_v24 = vsel %vm2526_vm1, %v2703_v33, 0.0  ;;  %v8034_v6 = vld [vmem:[#allocation126_spill] sm:$0xff] }
 0x30c   :  { %8031 = vst [vmem:[#allocation171_spill] sm:$0xff] %v5884_v27  ;;  %3706 = vset.pattern.permute.xlu1 %v7934_v38  ;;  %v2801_v25 = vsel %vm2526_vm1, %v2704_v48, 0.0  ;;  %v2344_v61 = vmax.f32 %v2164_v32, %v5086_v57  ;;  %v1469_v14 = vmax.f32 %v8034_v6, %v5048_v15  ;;  %v8035_v51 = vld [vmem:[#allocation166_spill] sm:$0xff]  ;;  %v2800_v7 = vadd.f32 %v2799_v24, %v2798_v58  ;;  %v5904_v48 = vpop.f32.mrf.mxu3 }
 0x30d   :  { %3707 = vset.pattern.permute.xlu2 %v7972_v31  ;;  %1852 = vperm.xlu1 %3706, %v3785_v63   ;;  %v1898_v3 = vmax.f32 %v8035_v51, %v5059_v11  ;;  %v2577_v33 = vadd.f32 %v2576_v53, %v2575_v60  ;;  %v2705_v23 = vmul.f32 %v2479_v56, %v2479_v56  ;;  %v5917_v60 = vpop.f32.mrf.mxu2 }
 0x30e   :  { %2287 = vperm.xlu2 %3707, %v3784_v5   ;;  %v2480_v44 = vmul.f32 %v5884_v27, %v5561_v50  ;;  %v2481_v32 = vmul.f32 %v5781_v4, %v5634_v47  ;;  %v5910_v45 = vmul.f32 %v2344_v61, %v1978_v9  ;;  %v1103_v6 = vmax.f32 %v8037_v52, %v5050_v10  ;;  %v5920_v50 = vpop.f32.mrf.mxu1 }
 0x30f   :  { %v1908_v51 = vmax.f32 %v8038_v26, %v5059_v11  ;;  %v2802_v58 = vadd.f32 %v2801_v25, %v2800_v7  ;;  %v1532_v53 = vmul.f32 %v1459_v46, %v1093_v59  ;;  %v2578_v5 = vsel %vm2526_vm1, %v2479_v56, 0.0  ;;  %8039 = vst [vmem:[#allocation43_spill] sm:$0xff] %v5917_v60  ;;  %v3786_v7 = vld [vmem:[%s7348_s6 + $0x230] sm:$0xff] }
 0x310   :  { %8036 = vst [vmem:[#allocation52_spill] sm:$0xff] %v5910_v45  ;;  %v2337_v24 = vmax.f32 %v2136_v62, %v5086_v57  ;;  %v1542_v27 = vmul.f32 %v1469_v14, %v1103_v6  ;;  %v2579_v4 = vadd.f32 %v2578_v5, %v2577_v33  ;;  %v2803_v61 = vsel %vm2526_vm1, %v2705_v23, 0.0  ;;  %v8043_v23 = vld [vmem:[#allocation39_spill] sm:$0xff] }
 0x311   :  { %8040 = vst [vmem:[#allocation112_spill] sm:$0xff] %v5920_v50  ;;  %v1971_v9 = vmul.f32 %v1898_v3, %v1532_v53  ;;  %v2706_v47 = vmul.f32 %v2480_v44, %v2480_v44  ;;  %v2707_v52 = vmul.f32 %v2481_v32, %v2481_v32  ;;  %v5923_v0 = vpop.permute.xlu2 %2215  ;;  %v2482_v59 = vmul.f32 %v5615_v22, %v5703_v55  ;;  %v8046_v53 = vld [vmem:[#allocation68_spill] sm:$0xff]  ;;  %v8049_v22 = vld [vmem:[#allocation170_spill] sm:$0xff] }
 0x312   :  { %v1981_v26 = vmul.f32 %v1908_v51, %v1542_v27  ;;  %v2804_v56 = vadd.f32 %v2803_v61, %v2802_v58  ;;  %v2580_v25 = vsel %vm2526_vm1, %v2480_v44, 0.0  ;;  %v2582_v62 = vsel %vm2526_vm1, %v2481_v32, 0.0  ;;  %v8042_v27 = vld [vmem:[#allocation60_spill] sm:$0xff]  ;;  %v8044_v51 = vld [vmem:[#allocation129_spill] sm:$0xff]  ;;  %v2148_v61 = vpop.permute.xlu0 %2147 }
 0x313   :  { %v2176_v46 = vpop.permute.xlu1 %2175  ;;  %v5929_v14 = vmul.f32 %v2337_v24, %v1971_v9  ;;  %v1096_v33 = vmax.f32 %v8042_v27, %v5050_v10  ;;  %v1462_v6 = vmax.f32 %v8043_v23, %v5048_v15  ;;  %v1472_v44 = vmax.f32 %v8044_v51, %v5048_v15  ;;  %v8048_v27 = vld [vmem:[#allocation169_spill] sm:$0xff] }
 0x314   :  { %v2347_v3 = vmax.f32 %v2176_v46, %v5086_v57  ;;  %v2581_v58 = vadd.f32 %v2580_v25, %v2579_v4  ;;  %v5941_v32 = vpop.f32.mrf.mxu3  ;;  %v1106_v5 = vmax.f32 %v8046_v53, %v5050_v10  ;;  %v2805_v24 = vsel %vm2526_vm1, %v2706_v47, 0.0 }
 0x315   :  { %8041 = vst [vmem:[#allocation51_spill] sm:$0xff] %v5929_v14  ;;  %1856 = vperm.xlu1 %3706, %v3786_v7   ;;  %v2807_v9 = vsel %vm2526_vm1, %v2707_v52, 0.0  ;;  %v1911_v23 = vmax.f32 %v8048_v27, %v5059_v11  ;;  %v1901_v51 = vmax.f32 %v8049_v22, %v5059_v11  ;;  %v2806_v4 = vadd.f32 %v2805_v24, %v2804_v56  ;;  %v5961_v27 = vpop.f32.mrf.mxu2 }
 0x316   :  { %2291 = vperm.xlu2 %3707, %v3785_v63   ;;  %8045 = vst [vmem:[#allocation118_spill] sm:$0xff] %v5941_v32  ;;  %v5947_v46 = vmul.f32 %v2347_v3, %v1981_v26  ;;  %v2583_v63 = vadd.f32 %v2582_v62, %v2581_v58  ;;  %v2708_v25 = vmul.f32 %v2482_v59, %v2482_v59  ;;  %v2908_v26 = vld [vmem:[%s7352_s2 + $0x18] sm:$0xff]  ;;  %v2584_v3 = vsel %vm2526_vm1, %v2482_v59, 0.0  ;;  %v5966_v24 = vpop.f32.mrf.mxu1 }
 0x317   :  { %v2483_v55 = vmul.f32 %v5929_v14, %v5764_v40  ;;  %v2484_v47 = vmul.f32 %v5826_v39, %v5819_v16  ;;  %v1535_v53 = vmul.f32 %v1462_v6, %v1096_v33  ;;  %v1545_v52 = vmul.f32 %v1472_v44, %v1106_v5  ;;  %8050 = vst [vmem:[#allocation49_spill] sm:$0xff] %v5961_v27 }
 0x318   :  { %8047 = vst [vmem:[#allocation128_spill] sm:$0xff] %v5947_v46  ;;  %v2808_v32 = vadd.f32 %v2807_v9, %v2806_v4  ;;  %v2340_v22 = vmax.f32 %v2148_v61, %v5086_v57  ;;  %2924 = vmatpush.msrb.mxu1 %v2908_v26  ;;  %v2585_v33 = vadd.f32 %v2584_v3, %v2583_v63  ;;  %v2809_v44 = vsel %vm2526_vm1, %v2708_v25, 0.0 }
 0x319   :  { %v5964_v56 = vpop.permute.xlu2 %2227  ;;  %v1984_v62 = vmul.f32 %v1911_v23, %v1545_v52  ;;  %v1974_v58 = vmul.f32 %v1901_v51, %v1535_v53  ;;  %8051 = vst [vmem:[#allocation175_spill] sm:$0xff] %v5966_v24  ;;  %v2709_v5 = vmul.f32 %v2483_v55, %v2483_v55  ;;  %v2710_v9 = vmul.f32 %v2484_v47, %v2484_v47  ;;  %v3787_v52 = vld [vmem:[%s7348_s6 + $0x240] sm:$0x3] }
 0x31a   :  { %v2485_v59 = vmul.f32 %v5671_v41, %v5877_v36  ;;  %v2810_v61 = vadd.f32 %v2809_v44, %v2808_v32  ;;  %v2586_v51 = vsel %vm2526_vm1, %v2483_v55, 0.0  ;;  %v2588_v63 = vsel %vm2526_vm1, %v2484_v47, 0.0  ;;  %v8054_v32 = vld [vmem:[#allocation38_spill] sm:$0xff]  ;;  %v2160_v55 = vpop.permute.xlu0 %2159  ;;  %v8055_v47 = vld [vmem:[#allocation63_spill] sm:$0xff] }
 0x31b   :  { %v2188_v6 = vpop.permute.xlu1 %2187  ;;  %v5978_v25 = vmul.f32 %v2340_v22, %v1974_v58  ;;  %v2587_v26 = vadd.f32 %v2586_v51, %v2585_v33  ;;  %v2813_v3 = vsel %vm2526_vm1, %v2710_v9, 0.0  ;;  %v1099_v22 = vmax.f32 %v8055_v47, %v5050_v10 }
 0x31c   :  { %v2350_v4 = vmax.f32 %v2188_v6, %v5086_v57  ;;  %v5974_v23 = vpop.f32.mrf.mxu3  ;;  %v8056_v6 = vld [vmem:[#allocation173_spill] sm:$0xff]  ;;  %v2487_v51 = vmul.f32 %v5871_v20, %v5966_v24  ;;  %v2590_v47 = vsel %vm2526_vm1, %v2485_v59, 0.0 }
 0x31d   :  { %3709 = vset.pattern.permute.xlu1 %v7972_v31  ;;  %8052 = vst [vmem:[#allocation120_spill] sm:$0xff] %v5978_v25  ;;  %v1904_v44 = vmax.f32 %v8056_v6, %v5059_v11  ;;  %v2486_v33 = vmul.f32 %v5978_v25, %v5920_v50 }
 0x31e   :  { %3710 = vset.pattern.permute.xlu2 %v7934_v38  ;;  %2295 = vperm.xlu1 %3709, %v3786_v7   ;;  %v5980_v53 = vmul.f32 %v2350_v4, %v1984_v62  ;;  %v1465_v38 = vmax.f32 %v8054_v32, %v5048_v15  ;;  %v2811_v7 = vsel %vm2526_vm1, %v2709_v5, 0.0  ;;  %v2589_v62 = vadd.f32 %v2588_v63, %v2587_v26  ;;  %v6005_v26 = vpop.f32.mrf.mxu1 }
 0x31f   :  { %1864 = vperm.xlu2 %3710, %v3787_v52   ;;  %v2812_v58 = vadd.f32 %v2811_v7, %v2810_v61  ;;  %v2711_v4 = vmul.f32 %v2485_v59, %v2485_v59  ;;  %v6002_v61 = vpop.f32.mrf.mxu2  ;;  %v2343_v63 = vmax.f32 %v2160_v55, %v5086_v57  ;;  %8058 = vst [vmem:[#allocation158_spill] sm:$0xff] %v6005_v26  ;;  %v2592_v55 = vsel %vm2526_vm1, %v2486_v33, 0.0 }
 0x320   :  { %8053 = vst [vmem:[#allocation33_spill] sm:$0xff] %v5980_v53  ;;  %v1538_v41 = vmul.f32 %v1465_v38, %v1099_v22  ;;  %v2591_v7 = vadd.f32 %v2590_v47, %v2589_v62  ;;  %v2488_v59 = vmul.f32 %v5726_v29, %v6005_v26  ;;  %v2594_v22 = vsel %vm2526_vm1, %v2487_v51, 0.0 }
 0x321   :  { %v5997_v32 = vpop.permute.xlu2 %2239  ;;  %v2814_v5 = vadd.f32 %v2813_v3, %v2812_v58  ;;  %8057 = vst [vmem:[#allocation55_spill] sm:$0xff] %v6002_v61  ;;  %v2815_v25 = vsel %vm2526_vm1, %v2711_v4, 0.0  ;;  %v2712_v3 = vmul.f32 %v2486_v33, %v2486_v33  ;;  %v2713_v58 = vmul.f32 %v2487_v51, %v2487_v51 }
 0x322   :  { %v1977_v20 = vmul.f32 %v1904_v44, %v1538_v41  ;;  %v8060_v41 = vld [vmem:[#allocation54_spill] sm:$0xff] }
 0x323   :  { %v5999_v9 = vpop.permute.xlu1 %2199  ;;  %v2816_v38 = vadd.f32 %v2815_v25, %v2814_v5  ;;  %v1468_v44 = vmax.f32 %v8060_v41, %v5048_v15  ;;  %v2817_v4 = vsel %vm2526_vm1, %v2712_v3, 0.0  ;;  %v2819_v47 = vsel %vm2526_vm1, %v2713_v58, 0.0  ;;  %v8061_v25 = vld [vmem:[#allocation66_spill] sm:$0xff] }
 0x324   :  { %v6008_v6 = vpop.f32.mrf.mxu3  ;;  %v6016_v62 = vmul.f32 %v2343_v63, %v1977_v20  ;;  %v8062_v20 = vld [vmem:[#allocation177_spill] sm:$0xff]  ;;  %v2714_v63 = vmul.f32 %v2488_v59, %v2488_v59  ;;  %v2490_v3 = vmul.f32 %v5910_v45, %v5415_v28  ;;  %v2491_v45 = vmul.f32 %v5773_v43, %v5492_v35 }
 0x325   :  { %v2818_v5 = vadd.f32 %v2817_v4, %v2816_v38  ;;  %v1907_v51 = vmax.f32 %v8062_v20, %v5059_v11  ;;  %v2596_v38 = vsel %vm2526_vm1, %v2488_v59, 0.0 }
 0x326   :  { %2299 = vperm.xlu1 %3709, %v5655_v19   ;;  %8059 = vst [vmem:[#allocation131_spill] sm:$0xff] %v6016_v62  ;;  %v2593_v19 = vadd.f32 %v2592_v55, %v2591_v7  ;;  %v2489_v7 = vmul.f32 %v6016_v62, %v5338_v42  ;;  %v2821_v20 = vsel %vm2526_vm1, %v2714_v63, 0.0  ;;  %v2716_v26 = vmul.f32 %v2490_v3, %v2490_v3 }
 0x327   :  { %3711 = vset.pattern.permute.xlu2 %v7972_v31  ;;  %v2172_v31 = vpop.permute.xlu0 %2171  ;;  %v2820_v58 = vadd.f32 %v2819_v47, %v2818_v5 }
 0x328   :  { %2303 = vperm.xlu2 %3711, %v3787_v52   ;;  %v1102_v52 = vmax.f32 %v8061_v25, %v5050_v10  ;;  %v2595_v29 = vadd.f32 %v2594_v22, %v2593_v19  ;;  %v6037_v22 = vpop.f32.mrf.mxu2  ;;  %v2346_v19 = vmax.f32 %v2172_v31, %v5086_v57  ;;  %v2715_v14 = vmul.f32 %v2489_v7, %v2489_v7 }
 0x329   :  { %v6024_v39 = vpop.permute.xlu2 %2251  ;;  %8063 = vst [vmem:[#allocation157_spill] sm:$0xff] %v6037_v22  ;;  %v2822_v62 = vadd.f32 %v2821_v20, %v2820_v58  ;;  %v2598_v47 = vsel %vm2526_vm1, %v2489_v7, 0.0  ;;  %v2825_v63 = vsel %vm2526_vm1, %v2716_v26, 0.0 }
 0x32a   :  { %v1541_v41 = vmul.f32 %v1468_v44, %v1102_v52  ;;  %v2597_v4 = vadd.f32 %v2596_v38, %v2595_v29  ;;  %v2600_v44 = vsel %vm2526_vm1, %v2490_v3, 0.0  ;;  %v8065_v29 = vld [vmem:[#allocation2_spill] sm:$0xff]  ;;  %v2907_v3 = vld [vmem:[%s7352_s2 + $0x10] sm:$0xff] }
 0x32b   :  { %v6026_v33 = vpop.permute.xlu1 %2211  ;;  %v1471_v31 = vmax.f32 %v8065_v29, %v5048_v15  ;;  %2925 = vmatpush.msrb.mxu1 %v2907_v3  ;;  %v2494_v3 = vmul.f32 %v5821_v8, %v5698_v37  ;;  %v8075_v8 = vld [vmem:[#allocation172_spill] sm:$0xff] }
 0x32c   :  { %v6034_v55 = vpop.f32.mrf.mxu3  ;;  %v1980_v25 = vmul.f32 %v1907_v51, %v1541_v41  ;;  %v2599_v59 = vadd.f32 %v2598_v47, %v2597_v4  ;;  %v2823_v51 = vsel %vm2526_vm1, %v2715_v14, 0.0  ;;  %v8066_v41 = vld [vmem:[#allocation69_spill] sm:$0xff]  ;;  %v2717_v14 = vmul.f32 %v2491_v45, %v2491_v45 }
 0x32d   :  { %v1105_v38 = vmax.f32 %v8066_v41, %v5050_v10  ;;  %v2824_v20 = vadd.f32 %v2823_v51, %v2822_v62  ;;  %v8067_v4 = vld [vmem:[#allocation181_spill] sm:$0xff]  ;;  %v2493_v47 = vmul.f32 %v5947_v46, %v5623_v1  ;;  %v2720_v1 = vmul.f32 %v2494_v3, %v2494_v3 }
 0x32e   :  { %v6045_v52 = vmul.f32 %v2346_v19, %v1980_v25  ;;  %v2601_v7 = vadd.f32 %v2600_v44, %v2599_v59  ;;  %v1910_v25 = vmax.f32 %v8067_v4, %v5059_v11  ;;  %v2602_v59 = vsel %vm2526_vm1, %v2491_v45, 0.0 }
 0x32f   :  { %v2184_v58 = vpop.permute.xlu0 %2183  ;;  %v2826_v62 = vadd.f32 %v2825_v63, %v2824_v20  ;;  %v1544_v44 = vmul.f32 %v1471_v31, %v1105_v38  ;;  %v2827_v4 = vsel %vm2526_vm1, %v2717_v14, 0.0  ;;  %v2719_v42 = vmul.f32 %v2493_v47, %v2493_v47  ;;  %v8071_v20 = vld [vmem:[#allocation132_spill] sm:$0xff] }
 0x330   :  { %8064 = vst [vmem:[#allocation58_spill] sm:$0xff] %v6045_v52  ;;  %v2492_v26 = vmul.f32 %v6045_v52, %v5554_v18  ;;  %v6069_v29 = vpop.f32.mrf.mxu2  ;;  %v2349_v51 = vmax.f32 %v2184_v58, %v5086_v57  ;;  %v2603_v41 = vadd.f32 %v2602_v59, %v2601_v7  ;;  %v2606_v45 = vsel %vm2526_vm1, %v2493_v47, 0.0  ;;  %v8070_v58 = vld [vmem:[#allocation61_spill] sm:$0xff]  ;;  %v8078_v18 = vld [vmem:[#allocation67_spill] sm:$0xff] }
 0x331   :  { %8068 = vst [vmem:[#allocation178_spill] sm:$0xff] %v6069_v29  ;;  %v1983_v35 = vmul.f32 %v1910_v25, %v1544_v44  ;;  %v2828_v24 = vadd.f32 %v2827_v4, %v2826_v62  ;;  %v1110_v38 = vmax.f32 %v8070_v58, %v5050_v10  ;;  %v1475_v7 = vmax.f32 %v8071_v20, %v5048_v15  ;;  %v8072_v62 = vld [vmem:[#allocation71_spill] sm:$0xff]  ;;  %v8073_v59 = vld [vmem:[#allocation121_spill] sm:$0xff] }
 0x332   :  { %v2718_v28 = vmul.f32 %v2492_v26, %v2492_v26  ;;  %v2604_v31 = vsel %vm2526_vm1, %v2492_v26, 0.0  ;;  %v1109_v44 = vmax.f32 %v8072_v62, %v5050_v10  ;;  %v1474_v4 = vmax.f32 %v8073_v59, %v5048_v15  ;;  %v8076_v62 = vld [vmem:[#allocation185_spill] sm:$0xff]  ;;  %v8077_v59 = vld [vmem:[#allocation64_spill] sm:$0xff] }
 0x333   :  { %v6047_v5 = vpop.permute.xlu1 %2223  ;;  %v6055_v43 = vpop.permute.xlu2 %1824  ;;  %v6079_v63 = vmul.f32 %v2349_v51, %v1983_v35  ;;  %v2605_v25 = vadd.f32 %v2604_v31, %v2603_v41  ;;  %v2831_v35 = vsel %vm2526_vm1, %v2719_v42, 0.0  ;;  %v8074_v51 = vld [vmem:[#allocation72_spill] sm:$0xff]  ;;  %v1914_v20 = vmax.f32 %v8075_v8, %v5059_v11 }
 0x334   :  { %v6060_v19 = vpop.f32.mrf.mxu3  ;;  %v2829_v26 = vsel %vm2526_vm1, %v2718_v28, 0.0  ;;  %v1108_v58 = vmax.f32 %v8074_v51, %v5050_v10  ;;  %v1913_v37 = vmax.f32 %v8076_v62, %v5059_v11  ;;  %v2496_v42 = vmul.f32 %v5980_v53, %v5811_v30  ;;  %v8080_v53 = vld [vmem:[#allocation70_spill] sm:$0xff] }
 0x335   :  { %8069 = vst [vmem:[#allocation53_spill] sm:$0xff] %v6079_v63  ;;  %v2830_v41 = vadd.f32 %v2829_v26, %v2828_v24  ;;  %v2607_v31 = vadd.f32 %v2606_v45, %v2605_v25  ;;  %v2495_v28 = vmul.f32 %v6079_v63, %v5758_v12  ;;  %v1548_v24 = vmul.f32 %v1475_v7, %v1109_v44  ;;  %v8081_v51 = vld [vmem:[#allocation134_spill] sm:$0xff] }
 0x336   :  { %v1547_v25 = vmul.f32 %v1474_v4, %v1108_v58  ;;  %v2608_v26 = vsel %vm2526_vm1, %v2494_v3, 0.0  ;;  %v2353_v63 = vmax.f32 %v5999_v9, %v5086_v57  ;;  %v1476_v12 = vmax.f32 %v8081_v51, %v5048_v15  ;;  %v8083_v9 = vld [vmem:[#allocation182_spill] sm:$0xff] }
 0x337   :  { %v2196_v47 = vpop.permute.xlu0 %2195  ;;  %v2832_v45 = vadd.f32 %v2831_v35, %v2830_v41  ;;  %v1987_v36 = vmul.f32 %v1914_v20, %v1548_v24  ;;  %v2609_v8 = vadd.f32 %v2608_v26, %v2607_v31  ;;  %v2833_v3 = vsel %vm2526_vm1, %v2720_v1, 0.0 }
 0x338   :  { %v6110_v50 = vpop.f32.mrf.mxu2  ;;  %v2352_v62 = vmax.f32 %v2196_v47, %v5086_v57  ;;  %v1986_v44 = vmul.f32 %v1913_v37, %v1547_v25  ;;  %v2721_v4 = vmul.f32 %v2495_v28, %v2495_v28  ;;  %v2722_v35 = vmul.f32 %v2496_v42, %v2496_v42  ;;  %v8082_v47 = vld [vmem:[#allocation74_spill] sm:$0xff]  ;;  %v8086_v25 = vld [vmem:[#allocation135_spill] sm:$0xff] }
 0x339   :  { %8079 = vst [vmem:[#allocation115_spill] sm:$0xff] %v6110_v50  ;;  %v1112_v58 = vmax.f32 %v8082_v47, %v5050_v10  ;;  %v1915_v41 = vmax.f32 %v8083_v9, %v5059_v11  ;;  %v2497_v30 = vmul.f32 %v5863_v49, %v5868_v13  ;;  %v2834_v16 = vadd.f32 %v2833_v3, %v2832_v45  ;;  %v8087_v45 = vld [vmem:[#allocation75_spill] sm:$0xff] }
 0x33a   :  { %v2610_v20 = vsel %vm2526_vm1, %v2495_v28, 0.0  ;;  %v2612_v31 = vsel %vm2526_vm1, %v2496_v42, 0.0  ;;  %v6130_v51 = vmul.f32 %v2352_v62, %v1986_v44  ;;  %v6132_v37 = vmul.f32 %v2353_v63, %v1987_v36  ;;  %v8088_v28 = vld [vmem:[#allocation124_spill] sm:$0xff] }
 0x33b   :  { %v6073_v52 = vpop.permute.xlu1 %2235  ;;  %v1549_v24 = vmul.f32 %v1476_v12, %v1110_v38  ;;  %v1478_v26 = vmax.f32 %v8086_v25, %v5048_v15  ;;  %v2354_v47 = vmax.f32 %v5886_v2, %v5086_v57  ;;  %v2611_v9 = vadd.f32 %v2610_v20, %v2609_v8  ;;  %v8089_v12 = vld [vmem:[#allocation176_spill] sm:$0xff]  ;;  %v8090_v2 = vld [vmem:[#allocation187_spill] sm:$0xff] }
 0x33c   :  { %v6085_v14 = vpop.f32.mrf.mxu3  ;;  %v6097_v46 = vpop.permute.xlu2 %1828  ;;  %8084 = vst [vmem:[#allocation162_spill] sm:$0xff] %v6130_v51  ;;  %v1111_v3 = vmax.f32 %v8087_v45, %v5050_v10  ;;  %v1477_v42 = vmax.f32 %v8088_v28, %v5048_v15  ;;  %v2835_v62 = vsel %vm2526_vm1, %v2721_v4, 0.0  ;;  %v2837_v36 = vsel %vm2526_vm1, %v2722_v35, 0.0  ;;  %v8091_v35 = vld [vmem:[#allocation73_spill] sm:$0xff] }
 0x33d   :  { %8085 = vst [vmem:[#allocation123_spill] sm:$0xff] %v6132_v37  ;;  %v1917_v38 = vmax.f32 %v8089_v12, %v5059_v11  ;;  %v1988_v44 = vmul.f32 %v1915_v41, %v1549_v24  ;;  %v2836_v25 = vadd.f32 %v2835_v62, %v2834_v16  ;;  %v2613_v49 = vadd.f32 %v2612_v31, %v2611_v9 }
 0x33e   :  { %v1916_v8 = vmax.f32 %v8090_v2, %v5059_v11  ;;  %v2723_v20 = vmul.f32 %v2497_v30, %v2497_v30  ;;  %v2498_v45 = vmul.f32 %v6130_v51, %v5917_v60  ;;  %v2499_v4 = vmul.f32 %v6132_v37, %v5961_v27  ;;  %v8094_v37 = vld [vmem:[#allocation76_spill] sm:$0xff] }
 0x33f   :  { %v2208_v63 = vpop.permute.xlu0 %2207  ;;  %v1551_v40 = vmul.f32 %v1478_v26, %v1112_v58  ;;  %v6158_v12 = vmul.f32 %v2354_v47, %v1988_v44  ;;  %v2838_v16 = vadd.f32 %v2837_v36, %v2836_v25  ;;  %v1550_v31 = vmul.f32 %v1477_v42, %v1111_v3  ;;  %v8095_v58 = vld [vmem:[#allocation137_spill] sm:$0xff] }
 0x340   :  { %v2614_v24 = vsel %vm2526_vm1, %v2497_v30, 0.0  ;;  %v6163_v9 = vpop.f32.mrf.mxu2  ;;  %v2355_v62 = vmax.f32 %v2208_v63, %v5086_v57  ;;  %v2356_v2 = vmax.f32 %v6026_v33, %v5086_v57  ;;  %v1479_v26 = vmax.f32 %v8095_v58, %v5048_v15  ;;  %v8096_v63 = vld [vmem:[#allocation77_spill] sm:$0xff]  ;;  %v8097_v33 = vld [vmem:[#allocation186_spill] sm:$0xff] }
 0x341   :  { %8092 = vst [vmem:[#allocation62_spill] sm:$0xff] %v6158_v12  ;;  %v1990_v47 = vmul.f32 %v1917_v38, %v1551_v40  ;;  %v2615_v36 = vadd.f32 %v2614_v24, %v2613_v49  ;;  %v1989_v44 = vmul.f32 %v1916_v8, %v1550_v31  ;;  %v2839_v3 = vsel %vm2526_vm1, %v2723_v20, 0.0  ;;  %v8101_v24 = vld [vmem:[#allocation138_spill] sm:$0xff] }
 0x342   :  { %8093 = vst [vmem:[#allocation161_spill] sm:$0xff] %v6163_v9  ;;  %v2724_v42 = vmul.f32 %v2498_v45, %v2498_v45  ;;  %v2725_v30 = vmul.f32 %v2499_v4, %v2499_v4  ;;  %v1115_v28 = vmax.f32 %v8096_v63, %v5050_v10  ;;  %v1918_v27 = vmax.f32 %v8097_v33, %v5059_v11 }
 0x343   :  { %v6119_v7 = vpop.permute.xlu1 %2247  ;;  %v2500_v51 = vmul.f32 %v6158_v12, %v6002_v61  ;;  %v2840_v60 = vadd.f32 %v2839_v3, %v2838_v16  ;;  %v2616_v40 = vsel %vm2526_vm1, %v2498_v45, 0.0  ;;  %v2618_v49 = vsel %vm2526_vm1, %v2499_v4, 0.0  ;;  %v8102_v16 = vld [vmem:[#allocation78_spill] sm:$0xff]  ;;  %v8103_v4 = vld [vmem:[#allocation127_spill] sm:$0xff] }
 0x344   :  { %v6134_v1 = vpop.f32.mrf.mxu3  ;;  %v6183_v38 = vmul.f32 %v2355_v62, %v1989_v44  ;;  %v6185_v8 = vmul.f32 %v2356_v2, %v1990_v47  ;;  %v8100_v20 = vmax.f32 %v8077_v59, %v5050_v10  ;;  %v1481_v58 = vmax.f32 %v8101_v24, %v5048_v15  ;;  %v8104_v59 = vld [vmem:[#allocation180_spill] sm:$0xff] }
 0x345   :  { %v6148_v13 = vpop.permute.xlu2 %2267  ;;  %v2357_v63 = vmax.f32 %v5923_v0, %v5086_v57  ;;  %v2617_v33 = vadd.f32 %v2616_v40, %v2615_v36  ;;  %v1114_v45 = vmax.f32 %v8102_v16, %v5050_v10  ;;  %v1480_v62 = vmax.f32 %v8103_v4, %v5048_v15  ;;  %v8105_v36 = vld [vmem:[#allocation99_spill] sm:$0xff] }
 0x346   :  { %8098 = vst [vmem:[#allocation57_spill] sm:$0xff] %v6183_v38  ;;  %v1552_v31 = vmul.f32 %v1479_v26, %v8100_v20  ;;  %v2841_v2 = vsel %vm2526_vm1, %v2724_v42, 0.0  ;;  %v2843_v47 = vsel %vm2526_vm1, %v2725_v30, 0.0  ;;  %v1920_v26 = vmax.f32 %v8104_v59, %v5059_v11  ;;  %v8106_v4 = vld [vmem:[#allocation79_spill] sm:$0xff] }
 0x347   :  { %8099 = vst [vmem:[#allocation40_spill] sm:$0xff] %v6185_v8  ;;  %v2220_v44 = vpop.permute.xlu0 %2219  ;;  %v2842_v20 = vadd.f32 %v2841_v2, %v2840_v60  ;;  %v2619_v24 = vadd.f32 %v2618_v49, %v2617_v33  ;;  %v1919_v40 = vmax.f32 %v8105_v36, %v5059_v11  ;;  %v2726_v16 = vmul.f32 %v2500_v51, %v2500_v51 }
 0x348   :  { %v1991_v3 = vmul.f32 %v1918_v27, %v1552_v31  ;;  %v2501_v42 = vmul.f32 %v6183_v38, %v6037_v22  ;;  %v2502_v30 = vmul.f32 %v6185_v8, %v6069_v29  ;;  %v1554_v27 = vmul.f32 %v1481_v58, %v1115_v28  ;;  %v6217_v2 = vpop.f32.mrf.mxu2  ;;  %v8109_v8 = vld [vmem:[#allocation80_spill] sm:$0xff] }
 0x349   :  { %v2844_v49 = vadd.f32 %v2843_v47, %v2842_v20  ;;  %v1553_v31 = vmul.f32 %v1480_v62, %v1114_v45  ;;  %v2620_v33 = vsel %vm2526_vm1, %v2500_v51, 0.0  ;;  %8108 = vst [vmem:[#allocation166_spill] sm:$0xff] %v6217_v2  ;;  %v2358_v36 = vmax.f32 %v2220_v44, %v5086_v57  ;;  %v8110_v28 = vld [vmem:[#allocation140_spill] sm:$0xff]  ;;  %v2906_v51 = vld [vmem:[%s7352_s2 + $0x8] sm:$0xff] }
 0x34a   :  { %v6214_v60 = vmul.f32 %v2357_v63, %v1991_v3  ;;  %v2359_v38 = vmax.f32 %v6047_v5, %v5086_v57  ;;  %v1118_v29 = vmax.f32 %v8109_v8, %v5050_v10  ;;  %v1482_v58 = vmax.f32 %v8110_v28, %v5048_v15  ;;  %2926 = vmatpush.msrb.mxu1 %v2906_v51  ;;  %v8111_v5 = vld [vmem:[#allocation81_spill] sm:$0xff]  ;;  %v8112_v8 = vld [vmem:[#allocation188_spill] sm:$0xff] }
 0x34b   :  { %v6160_v41 = vpop.permute.xlu1 %2255  ;;  %v1993_v63 = vmul.f32 %v1920_v26, %v1554_v27  ;;  %v2621_v47 = vadd.f32 %v2620_v33, %v2619_v24  ;;  %v1992_v45 = vmul.f32 %v1919_v40, %v1553_v31  ;;  %v2845_v62 = vsel %vm2526_vm1, %v2726_v16, 0.0  ;;  %v8116_v51 = vld [vmem:[#allocation141_spill] sm:$0xff] }
 0x34c   :  { %v6173_v25 = vpop.f32.mrf.mxu3  ;;  %8107 = vst [vmem:[#allocation126_spill] sm:$0xff] %v6214_v60  ;;  %v2727_v44 = vmul.f32 %v2501_v42, %v2501_v42  ;;  %v2728_v3 = vmul.f32 %v2502_v30, %v2502_v30  ;;  %v1117_v20 = vmax.f32 %v8111_v5, %v5050_v10  ;;  %v1921_v59 = vmax.f32 %v8112_v8, %v5059_v11 }
 0x34d   :  { %v6202_v12 = vpop.permute.xlu2 %2271  ;;  %v2503_v26 = vmul.f32 %v6214_v60, %v6110_v50  ;;  %v2846_v24 = vadd.f32 %v2845_v62, %v2844_v49  ;;  %v2622_v27 = vsel %vm2526_vm1, %v2501_v42, 0.0  ;;  %v2624_v33 = vsel %vm2526_vm1, %v2502_v30, 0.0  ;;  %v8117_v49 = vld [vmem:[#allocation82_spill] sm:$0xff] }
 0x34e   :  { %v6240_v40 = vmul.f32 %v2358_v36, %v1992_v45  ;;  %v6242_v16 = vmul.f32 %v2359_v38, %v1993_v63  ;;  %v8115_v31 = vmax.f32 %v8078_v18, %v5050_v10  ;;  %v1484_v5 = vmax.f32 %v8116_v51, %v5048_v15  ;;  %v8118_v30 = vld [vmem:[#allocation130_spill] sm:$0xff]  ;;  %v8119_v18 = vld [vmem:[#allocation184_spill] sm:$0xff] }
 0x34f   :  { %v2360_v8 = vmax.f32 %v5964_v56, %v5086_v57  ;;  %v2623_v60 = vadd.f32 %v2622_v27, %v2621_v47  ;;  %v1483_v36 = vmax.f32 %v8118_v30, %v5048_v15  ;;  %v2847_v38 = vsel %vm2526_vm1, %v2727_v44, 0.0  ;;  %v2232_v56 = vpop.permute.xlu0 %2231  ;;  %v8120_v27 = vld [vmem:[#allocation193_spill] sm:$0xff] }
 0x350   :  { %8113 = vst [vmem:[#allocation65_spill] sm:$0xff] %v6240_v40  ;;  %v1555_v28 = vmul.f32 %v1482_v58, %v8115_v31  ;;  %v2849_v63 = vsel %vm2526_vm1, %v2728_v3, 0.0  ;;  %v1923_v58 = vmax.f32 %v8119_v18, %v5059_v11  ;;  %v2848_v31 = vadd.f32 %v2847_v38, %v2846_v24  ;;  %v8122_v18 = vld [vmem:[#allocation84_spill] sm:$0xff] }
 0x351   :  { %8114 = vst [vmem:[#allocation165_spill] sm:$0xff] %v6242_v16  ;;  %v2625_v51 = vadd.f32 %v2624_v33, %v2623_v60  ;;  %v1922_v42 = vmax.f32 %v8120_v27, %v5059_v11  ;;  %v2729_v50 = vmul.f32 %v2503_v26, %v2503_v26  ;;  %v2504_v44 = vmul.f32 %v6240_v40, %v6163_v9  ;;  %v6276_v27 = vpop.f32.mrf.mxu2  ;;  %v8125_v9 = vld [vmem:[#allocation143_spill] sm:$0xff] }
 0x352   :  { %v1994_v62 = vmul.f32 %v1921_v59, %v1555_v28  ;;  %v2505_v3 = vmul.f32 %v6242_v16, %v6217_v2  ;;  %v1120_v59 = vmax.f32 %v8122_v18, %v5050_v10  ;;  %v1557_v24 = vmul.f32 %v1484_v5, %v1118_v29  ;;  %v8124_v16 = vld [vmem:[#allocation87_spill] sm:$0xff] }
 0x353   :  { %v6204_v0 = vpop.permute.xlu1 %2259  ;;  %v2850_v33 = vadd.f32 %v2849_v63, %v2848_v31  ;;  %v1556_v28 = vmul.f32 %v1483_v36, %v1117_v20  ;;  %v2626_v38 = vsel %vm2526_vm1, %v2503_v26, 0.0  ;;  %v2361_v61 = vmax.f32 %v2232_v56, %v5086_v57  ;;  %v8126_v63 = vld [vmem:[#allocation88_spill] sm:$0xff] }
 0x354   :  { %v6222_v22 = vpop.f32.mrf.mxu3  ;;  %v6273_v60 = vmul.f32 %v2360_v8, %v1994_v62  ;;  %v2362_v40 = vmax.f32 %v6073_v52, %v5086_v57  ;;  %v1123_v2 = vmax.f32 %v8124_v16, %v5050_v10  ;;  %v1485_v18 = vmax.f32 %v8125_v9, %v5048_v15  ;;  %v8127_v31 = vld [vmem:[#allocation8_spill] sm:$0xff] }
 0x355   :  { %v1996_v29 = vmul.f32 %v1923_v58, %v1557_v24  ;;  %v2627_v5 = vadd.f32 %v2626_v38, %v2625_v51  ;;  %v1995_v8 = vmul.f32 %v1922_v42, %v1556_v28  ;;  %v2851_v20 = vsel %vm2526_vm1, %v2729_v50, 0.0  ;;  %v8130_v51 = vld [vmem:[#allocation133_spill] sm:$0xff] }
 0x356   :  { %8123 = vst [vmem:[#allocation39_spill] sm:$0xff] %v6273_v60  ;;  %v2730_v36 = vmul.f32 %v2504_v44, %v2504_v44  ;;  %v2731_v26 = vmul.f32 %v2505_v3, %v2505_v3  ;;  %v1924_v56 = vmax.f32 %v8127_v31, %v5059_v11  ;;  %v2506_v52 = vmul.f32 %v6273_v60, %v6276_v27 }
 0x357   :  { %v6261_v47 = vpop.permute.xlu2 %1844  ;;  %v2852_v16 = vadd.f32 %v2851_v20, %v2850_v33  ;;  %v2630_v9 = vsel %vm2526_vm1, %v2505_v3, 0.0  ;;  %v6294_v58 = vmul.f32 %v2361_v61, %v1995_v8  ;;  %v6296_v42 = vmul.f32 %v2362_v40, %v1996_v29  ;;  %v8133_v61 = vld [vmem:[#allocation136_spill] sm:$0xff] }
 0x358   :  { %v1486_v24 = vmax.f32 %v8130_v51, %v5048_v15  ;;  %v8131_v28 = vmax.f32 %v8080_v53, %v5050_v10  ;;  %v2363_v33 = vmax.f32 %v5997_v32, %v5086_v57  ;;  %v1489_v40 = vmax.f32 %v8133_v61, %v5048_v15  ;;  %v8134_v53 = vld [vmem:[#allocation86_spill] sm:$0xff]  ;;  %v2244_v32 = vpop.permute.xlu0 %2243 }
 0x359   :  { %8128 = vst [vmem:[#allocation129_spill] sm:$0xff] %v6294_v58  ;;  %v2853_v29 = vsel %vm2526_vm1, %v2730_v36, 0.0  ;;  %v2855_v8 = vsel %vm2526_vm1, %v2731_v26, 0.0  ;;  %v2732_v60 = vmul.f32 %v2506_v52, %v2506_v52  ;;  %v2507_v36 = vmul.f32 %v6294_v58, %v5565_v34  ;;  %v8138_v58 = vld [vmem:[#allocation139_spill] sm:$0xff] }
 0x35a   :  { %8129 = vst [vmem:[#allocation68_spill] sm:$0xff] %v6296_v42  ;;  %v1558_v38 = vmul.f32 %v1485_v18, %v8131_v28  ;;  %v1925_v18 = vmax.f32 %v8134_v53, %v5059_v11  ;;  %v2854_v28 = vadd.f32 %v2853_v29, %v2852_v16  ;;  %v2508_v26 = vmul.f32 %v6296_v42, %v5617_v54  ;;  %v8139_v42 = vld [vmem:[#allocation194_spill] sm:$0xff] }
 0x35b   :  { %v1559_v61 = vmul.f32 %v1486_v24, %v1120_v59  ;;  %v2364_v29 = vmax.f32 %v2244_v32, %v5086_v57  ;;  %v2365_v3 = vmax.f32 %v6119_v7, %v5086_v57  ;;  %v1492_v34 = vmax.f32 %v8138_v58, %v5048_v15  ;;  %v8142_v7 = vld [vmem:[#allocation15_spill] sm:$0xff] }
 0x35c   :  { %v6257_v45 = vpop.permute.xlu1 %1832  ;;  %v6269_v30 = vpop.f32.mrf.mxu3  ;;  %v1997_v51 = vmul.f32 %v1924_v56, %v1558_v38  ;;  %v8136_v56 = vld [vmem:[#allocation145_spill] sm:$0xff]  ;;  %v2856_v16 = vadd.f32 %v2855_v8, %v2854_v28  ;;  %v1927_v59 = vmax.f32 %v8139_v42, %v5059_v11  ;;  %v8141_v8 = vmax.f32 %v8091_v35, %v5050_v10 }
 0x35d   :  { %8121 = vst [vmem:[#allocation60_spill] sm:$0xff] %v6269_v30  ;;  %v2628_v30 = vsel %vm2526_vm1, %v2504_v44, 0.0  ;;  %v8132_v44 = vld [vmem:[#allocation89_spill] sm:$0xff]  ;;  %v1488_v38 = vmax.f32 %v8136_v56, %v5048_v15  ;;  %v1998_v24 = vmul.f32 %v1925_v18, %v1559_v61  ;;  %v2366_v58 = vmax.f32 %v6024_v39, %v5086_v57 }
 0x35e   :  { %v2629_v20 = vadd.f32 %v2628_v30, %v2627_v5  ;;  %v8135_v5 = vld [vmem:[#allocation91_spill] sm:$0xff]  ;;  %v6327_v53 = vmul.f32 %v2363_v33, %v1997_v51  ;;  %v8140_v33 = vld [vmem:[#allocation196_spill] sm:$0xff]  ;;  %v2636_v61 = vsel %vm2526_vm1, %v2508_v26, 0.0  ;;  %v8144_v56 = vld [vmem:[#allocation189_spill] sm:$0xff]  ;;  %v2367_v39 = vmax.f32 %v6160_v41, %v5086_v57 }
 0x35f   :  { %v6317_v30 = vpop.permute.xlu2 %1848  ;;  %v1928_v51 = vmax.f32 %v8140_v33, %v5059_v11  ;;  %v1561_v28 = vmul.f32 %v1488_v38, %v8141_v8  ;;  %v8146_v38 = vld [vmem:[#allocation142_spill] sm:$0xff] }
 0x360   :  { %v2631_v62 = vadd.f32 %v2630_v9, %v2629_v20  ;;  %8137 = vst [vmem:[#allocation169_spill] sm:$0xff] %v6327_v53  ;;  %v1562_v9 = vmul.f32 %v1489_v40, %v1123_v2  ;;  %v2632_v20 = vsel %vm2526_vm1, %v2506_v52, 0.0  ;;  %v2857_v2 = vsel %vm2526_vm1, %v2732_v60, 0.0 }
 0x361   :  { %v2733_v40 = vmul.f32 %v2507_v36, %v2507_v36  ;;  %v2734_v52 = vmul.f32 %v2508_v26, %v2508_v26  ;;  %v2509_v32 = vmul.f32 %v6327_v53, %v8142_v7  ;;  %v2858_v42 = vadd.f32 %v2857_v2, %v2856_v16  ;;  %v8147_v16 = vld [vmem:[#allocation147_spill] sm:$0xff] }
 0x362   :  { %v2633_v54 = vadd.f32 %v2632_v20, %v2631_v62  ;;  %v2634_v62 = vsel %vm2526_vm1, %v2507_v36, 0.0  ;;  %v6351_v60 = vmul.f32 %v2364_v29, %v1998_v24  ;;  %v6354_v20 = vmul.f32 %v2365_v3, %v8144_v56 }
 0x363   :  { %v1495_v33 = vmax.f32 %v8146_v38, %v5048_v15  ;;  %v2000_v8 = vmul.f32 %v1927_v59, %v1561_v28  ;;  %v1491_v2 = vmax.f32 %v8147_v16, %v5048_v15  ;;  %v2001_v36 = vmul.f32 %v1928_v51, %v1562_v9  ;;  %v8150_v28 = vld [vmem:[#allocation16_spill] sm:$0xff] }
 0x364   :  { %8143 = vst [vmem:[#allocation170_spill] sm:$0xff] %v6351_v60  ;;  %v2635_v53 = vadd.f32 %v2634_v62, %v2633_v54  ;;  %v2859_v26 = vsel %vm2526_vm1, %v2733_v40, 0.0  ;;  %v2861_v29 = vsel %vm2526_vm1, %v2734_v52, 0.0  ;;  %v2735_v24 = vmul.f32 %v2509_v32, %v2509_v32  ;;  %v8149_v54 = vld [vmem:[#allocation92_spill] sm:$0xff]  ;;  %v8152_v40 = vld [vmem:[#allocation94_spill] sm:$0xff] }
 0x365   :  { %v6298_v50 = vpop.permute.xlu1 %1836  ;;  %8145 = vst [vmem:[#allocation38_spill] sm:$0xff] %v6354_v20  ;;  %v6364_v3 = vmul.f32 %v2366_v58, %v2000_v8  ;;  %v2860_v56 = vadd.f32 %v2859_v26, %v2858_v42  ;;  %v1129_v59 = vmax.f32 %v8149_v54, %v5050_v10  ;;  %v2510_v41 = vmul.f32 %v6351_v60, %v8150_v28  ;;  %v8151_v62 = vld [vmem:[#allocation28_spill] sm:$0xff] }
 0x366   :  { %v6313_v31 = vpop.f32.mrf.mxu3  ;;  %v2511_v9 = vmul.f32 %v6354_v20, %v8151_v62  ;;  %v2368_v51 = vmax.f32 %v6204_v0, %v5086_v57  ;;  %v8153_v58 = vld [vmem:[#allocation148_spill] sm:$0xff]  ;;  %v6380_v38 = vmul.f32 %v2367_v39, %v2001_v36  ;;  %v8155_v8 = vmax.f32 %v8132_v44, %v5050_v10 }
 0x367   :  { %8148 = vst [vmem:[#allocation63_spill] sm:$0xff] %v6364_v3  ;;  %v2862_v42 = vadd.f32 %v2861_v29, %v2860_v56  ;;  %v1568_v26 = vmul.f32 %v1495_v33, %v1129_v59  ;;  %v2638_v54 = vsel %vm2526_vm1, %v2509_v32, 0.0  ;;  %v1930_v0 = vmax.f32 %v6055_v43, %v5059_v11  ;;  %v8157_v32 = vld [vmem:[#allocation107_spill] sm:$0xff] }
 0x368   :  { %v6366_v7 = vpop.permute.xlu2 %2287  ;;  %8154 = vst [vmem:[#allocation173_spill] sm:$0xff] %v6380_v38  ;;  %v1565_v16 = vmul.f32 %v1492_v34, %v8155_v8  ;;  %v8156_v52 = vmax.f32 %v8094_v37, %v5050_v10  ;;  %v2512_v39 = vmul.f32 %v6364_v3, %v5823_v21  ;;  %v2736_v44 = vmul.f32 %v2510_v41, %v2510_v41  ;;  %v8246_v3 = vld [vmem:[#allocation49_spill] sm:$0xff] }
 0x369   :  { %v2737_v34 = vmul.f32 %v2511_v9, %v2511_v9  ;;  %v6398_v56 = vmul.f32 %v2368_v51, %v8157_v32  ;;  %v8159_v43 = vmax.f32 %v8126_v63, %v5050_v10  ;;  %v2640_v8 = vsel %vm2526_vm1, %v2510_v41, 0.0 }
 0x36a   :  { %v1564_v20 = vmul.f32 %v1491_v2, %v8156_v52  ;;  %v8160_v2 = vld [vmem:[#allocation149_spill] sm:$0xff]  ;;  %v1932_v51 = vmax.f32 %v6257_v45, %v5059_v11  ;;  %v2738_v63 = vmul.f32 %v2512_v39, %v2512_v39 }
 0x36b   :  { %8158 = vst [vmem:[#allocation54_spill] sm:$0xff] %v6398_v56  ;;  %v2867_v41 = vsel %vm2526_vm1, %v2737_v34, 0.0  ;;  %v2514_v45 = vmul.f32 %v6398_v56, %v5904_v48  ;;  %v2371_v34 = vmax.f32 %v6202_v12, %v5086_v57 }
 0x36c   :  { %v2003_v52 = vmul.f32 %v1930_v0, %v1564_v20  ;;  %v2865_v20 = vsel %vm2526_vm1, %v2736_v44, 0.0 }
 0x36e   :  { %v6347_v18 = vpop.permute.xlu1 %2275  ;;  %v621_v35 = vpop.f32.mrf.mxu3 }
 0x36f   :  { %v2637_v35 = vadd.f32 %v2636_v61, %v2635_v53  ;;  %v1493_v53 = vmax.f32 %v8153_v58, %v5048_v15  ;;  %v2264_v61 = vpop.permute.xlu0 %2263  ;;  %v2863_v58 = vsel %vm2526_vm1, %v2735_v24, 0.0  ;;  %v1494_v24 = vmax.f32 %v8160_v2, %v5048_v15 }
 0x370   :  { %v2369_v33 = vmax.f32 %v2264_v61, %v5086_v57  ;;  %v2864_v59 = vadd.f32 %v2863_v58, %v2862_v42  ;;  %v8161_v61 = vld [vmem:[#allocation150_spill] sm:$0xff]  ;;  %v2905_v42 = vld [vmem:[%s7352_s2] sm:$0xff]  ;;  %v6426_v2 = vpop.permute.xlu2 %2291 }
 0x371   :  { %v2639_v36 = vadd.f32 %v2638_v54, %v2637_v35  ;;  %v1566_v37 = vmul.f32 %v1493_v53, %v8159_v43  ;;  %v2513_v35 = vmul.f32 %v6380_v38, %v5865_v17  ;;  %v2642_v54 = vsel %vm2526_vm1, %v2511_v9, 0.0  ;;  %2927 = vmatpush.msrb.mxu1 %v2905_v42 }
 0x372   :  { %v1496_v32 = vmax.f32 %v8161_v61, %v5048_v15  ;;  %v1931_v43 = vmax.f32 %v6097_v46, %v5059_v11  ;;  %v6420_v9 = vmul.f32 %v2369_v33, %v2003_v52  ;;  %v2866_v0 = vadd.f32 %v2865_v20, %v2864_v59  ;;  %v8164_v59 = vld [vmem:[#allocation197_spill] sm:$0xff] }
 0x373   :  { %v2641_v53 = vadd.f32 %v2640_v8, %v2639_v36  ;;  %v2370_v36 = vmax.f32 %v6148_v13, %v5086_v57  ;;  %v2739_v46 = vmul.f32 %v2513_v35, %v2513_v35  ;;  %v8163_v8 = vmax.f32 %v8106_v4, %v5050_v10 }
 0x374   :  { %8162 = vst [vmem:[#allocation66_spill] sm:$0xff] %v6420_v9  ;;  %v2005_v33 = vmul.f32 %v1932_v51, %v1566_v37  ;;  %v1933_v52 = vmax.f32 %v6298_v50, %v5059_v11  ;;  %v2644_v61 = vsel %vm2526_vm1, %v2512_v39, 0.0  ;;  %v2004_v13 = vmul.f32 %v1931_v43, %v1565_v16  ;;  %v8165_v37 = vld [vmem:[#allocation118_spill] sm:$0xff]  ;;  %v8168_v43 = vld [vmem:[#allocation144_spill] sm:$0xff] }
 0x375   :  { %v2643_v58 = vadd.f32 %v2642_v54, %v2641_v53  ;;  %v1567_v44 = vmul.f32 %v1494_v24, %v8163_v8  ;;  %v1934_v54 = vmax.f32 %v8164_v59, %v5059_v11  ;;  %v2868_v53 = vadd.f32 %v2867_v41, %v2866_v0 }
 0x376   :  { %v6394_v29 = vpop.permute.xlu1 %2279  ;;  %v2869_v42 = vsel %vm2526_vm1, %v2738_v63, 0.0  ;;  %v2646_v20 = vsel %vm2526_vm1, %v2513_v35, 0.0  ;;  %v2740_v4 = vmul.f32 %v2514_v45, %v2514_v45  ;;  %v2372_v24 = vmax.f32 %v6347_v18, %v5086_v57 }
 0x377   :  { %v2515_v51 = vmul.f32 %v6420_v9, %v8165_v37  ;;  %v6444_v50 = vmul.f32 %v2370_v36, %v2004_v13  ;;  %v2645_v8 = vadd.f32 %v2644_v61, %v2643_v58  ;;  %v2871_v59 = vsel %vm2526_vm1, %v2739_v46, 0.0  ;;  %v8169_v58 = vld [vmem:[#allocation95_spill] sm:$0xff] }
 0x378   :  { %v2648_v16 = vsel %vm2526_vm1, %v2514_v45, 0.0  ;;  %v6448_v39 = vmul.f32 %v2371_v34, %v2005_v33  ;;  %v2006_v63 = vmul.f32 %v1933_v52, %v1567_v44  ;;  %v2373_v35 = vmax.f32 %v6394_v29, %v5086_v57  ;;  %v8239_v9 = vld [vmem:[#allocation159_spill] sm:$0xff] }
 0x379   :  { %8166 = vst [vmem:[#allocation177_spill] sm:$0xff] %v6444_v50  ;;  %v1498_v18 = vmax.f32 %v8168_v43, %v5048_v15  ;;  %v2647_v41 = vadd.f32 %v2646_v20, %v2645_v8  ;;  %v2870_v0 = vadd.f32 %v2869_v42, %v2868_v53  ;;  %v1935_v36 = vmax.f32 %v6261_v47, %v5059_v11  ;;  %v8172_v53 = vld [vmem:[#allocation151_spill] sm:$0xff]  ;;  %v2284_v20 = vpop.permute.xlu0 %2283 }
 0x37a   :  { %8167 = vst [vmem:[#allocation2_spill] sm:$0xff] %v6448_v39  ;;  %v1132_v61 = vmax.f32 %v8169_v58, %v5050_v10  ;;  %v2007_v46 = vmul.f32 %v1934_v54, %v1568_v26  ;;  %v2873_v45 = vsel %vm2526_vm1, %v2740_v4, 0.0  ;;  %v6459_v34 = vmul.f32 %v2372_v24, %v2006_v63  ;;  %v8174_v4 = vld [vmem:[#allocation97_spill] sm:$0xff]  ;;  %v6474_v63 = vpop.permute.xlu2 %1864 }
 0x37b   :  { %v8171_v44 = vmax.f32 %v8135_v5, %v5050_v10  ;;  %v2516_v33 = vmul.f32 %v6444_v50, %v5974_v23  ;;  %v2872_v52 = vadd.f32 %v2871_v59, %v2870_v0  ;;  %v2649_v13 = vadd.f32 %v2648_v16, %v2647_v41  ;;  %v2932_v59 = vld [vmem:[%s7353_s3] sm:$0xff]  ;;  %v8175_v16 = vld [vmem:[#allocation152_spill] sm:$0xff] }
 0x37c   :  { %8170 = vst [vmem:[#allocation69_spill] sm:$0xff] %v6459_v34  ;;  %v1497_v47 = vmax.f32 %v8172_v53, %v5048_v15  ;;  %v2741_v42 = vmul.f32 %v2515_v51, %v2515_v51  ;;  %v2517_v26 = vmul.f32 %v6448_v39, %v6008_v6  ;;  %v6470_v54 = vmul.f32 %v2373_v35, %v2007_v46  ;;  %v8235_v39 = vld [vmem:[#allocation24_spill] sm:$0xff] }
 0x37d   :  { %v1569_v29 = vmul.f32 %v1496_v32, %v8171_v44  ;;  %v1135_v24 = vmax.f32 %v8174_v4, %v5050_v10  ;;  %v1571_v5 = vmul.f32 %v1498_v18, %v1132_v61  ;;  %v2874_v32 = vadd.f32 %v2873_v45, %v2872_v52  ;;  %2952 = vmatpush.msrb.mxu2 %v2932_v59  ;;  %v8237_v50 = vld [vmem:[#allocation100_spill] sm:$0xff] }
 0x37e   :  { %8173 = vst [vmem:[#allocation181_spill] sm:$0xff] %v6470_v54  ;;  %v1499_v43 = vmax.f32 %v8175_v16, %v5048_v15  ;;  %v2650_v41 = vsel %vm2526_vm1, %v2515_v51, 0.0  ;;  %v2518_v35 = vmul.f32 %v6459_v34, %v6034_v55  ;;  %v2742_v18 = vmul.f32 %v2516_v33, %v2516_v33  ;;  %v8233_v34 = vld [vmem:[#allocation158_spill] sm:$0xff] }
 0x37f   :  { %v1853_v12 = vpop.permute.xlu1 %1852  ;;  %v2008_v8 = vmul.f32 %v1935_v36, %v1569_v29  ;;  %v2374_v36 = vmax.f32 %v2284_v20, %v5086_v57  ;;  %v2651_v61 = vadd.f32 %v2650_v41, %v2649_v13  ;;  %v1936_v46 = vmax.f32 %v6317_v30, %v5059_v11 }
 0x380   :  { %v1937_v0 = vmax.f32 %v1853_v12, %v5059_v11  ;;  %v8176_v45 = vmax.f32 %v8117_v49, %v5050_v10  ;;  %v2875_v51 = vsel %vm2526_vm1, %v2741_v42, 0.0  ;;  %v2743_v29 = vmul.f32 %v2517_v26, %v2517_v26  ;;  %v8178_v42 = vld [vmem:[#allocation146_spill] sm:$0xff] }
 0x381   :  { %v2519_v52 = vmul.f32 %v6470_v54, %v6060_v19  ;;  %v2652_v12 = vsel %vm2526_vm1, %v2516_v33, 0.0  ;;  %v2876_v53 = vadd.f32 %v2875_v51, %v2874_v32  ;;  %v6495_v4 = vmul.f32 %v2374_v36, %v2008_v8  ;;  %v8231_v54 = vld [vmem:[#allocation112_spill] sm:$0xff] }
 0x382   :  { %v1570_v44 = vmul.f32 %v1497_v47, %v8176_v45  ;;  %v2375_v13 = vmax.f32 %v6366_v7, %v5086_v57  ;;  %v2654_v30 = vsel %vm2526_vm1, %v2517_v26, 0.0  ;;  %v2744_v20 = vmul.f32 %v2518_v35, %v2518_v35 }
 0x383   :  { %8177 = vst [vmem:[#allocation61_spill] sm:$0xff] %v6495_v4  ;;  %v2376_v49 = vmax.f32 %v6426_v2, %v5086_v57  ;;  %v2010_v47 = vmul.f32 %v1937_v0, %v1571_v5  ;;  %v1501_v59 = vmax.f32 %v8178_v42, %v5048_v15  ;;  %v2877_v16 = vsel %vm2526_vm1, %v2742_v18, 0.0 }
 0x384   :  { %v2009_v41 = vmul.f32 %v1936_v46, %v1570_v44  ;;  %v2653_v33 = vadd.f32 %v2652_v12, %v2651_v61  ;;  %v2879_v32 = vsel %vm2526_vm1, %v2743_v29, 0.0  ;;  %v2656_v8 = vsel %vm2526_vm1, %v2518_v35, 0.0  ;;  %v2304_v29 = vpop.permute.xlu2 %2303 }
 0x385   :  { %v2745_v36 = vmul.f32 %v2519_v52, %v2519_v52  ;;  %v8179_v26 = vmax.f32 %v8152_v40, %v5050_v10  ;;  %v2878_v0 = vadd.f32 %v2877_v16, %v2876_v53  ;;  %v2520_v18 = vmul.f32 %v6495_v4, %v6085_v14  ;;  %v1861_v40 = vpop.permute.xlu0 %1860  ;;  %v8229_v4 = vld [vmem:[#allocation48_spill] sm:$0xff] }
 0x386   :  { %v6511_v2 = vmul.f32 %v2375_v13, %v2009_v41  ;;  %v2655_v5 = vadd.f32 %v2654_v30, %v2653_v33  ;;  %v2881_v61 = vsel %vm2526_vm1, %v2744_v20, 0.0  ;;  %v2658_v46 = vsel %vm2526_vm1, %v2519_v52, 0.0  ;;  %v8182_v20 = vld [vmem:[#allocation153_spill] sm:$0xff] }
 0x387   :  { %v1857_v58 = vpop.permute.xlu1 %1856  ;;  %v1572_v45 = vmul.f32 %v1499_v43, %v8179_v26  ;;  %v6517_v44 = vmul.f32 %v2376_v49, %v2010_v47  ;;  %v1574_v35 = vmul.f32 %v1501_v59, %v1135_v24  ;;  %v2883_v43 = vsel %vm2526_vm1, %v2745_v36, 0.0 }
 0x388   :  { %v1938_v7 = vmax.f32 %v1857_v58, %v5059_v11  ;;  %8180 = vst [vmem:[#allocation132_spill] sm:$0xff] %v6511_v2  ;;  %v2657_v51 = vadd.f32 %v2656_v8, %v2655_v5  ;;  %v2880_v58 = vadd.f32 %v2879_v32, %v2878_v0  ;;  %v1940_v53 = vmax.f32 %v6474_v63, %v5059_v11  ;;  %v8184_v63 = vld [vmem:[#allocation85_spill] sm:$0xff] }
 0x389   :  { %8181 = vst [vmem:[#allocation71_spill] sm:$0xff] %v6517_v44  ;;  %v1500_v42 = vmax.f32 %v8182_v20, %v5048_v15  ;;  %v2521_v52 = vmul.f32 %v6511_v2, %v6134_v1  ;;  %v2746_v47 = vmul.f32 %v2520_v18, %v2520_v18  ;;  %v2522_v59 = vmul.f32 %v6517_v44, %v6173_v25  ;;  %v8226_v44 = vld [vmem:[#allocation154_spill] sm:$0xff]  ;;  %v8227_v2 = vld [vmem:[#allocation35_spill] sm:$0xff] }
 0x38a   :  { %v2011_v13 = vmul.f32 %v1938_v7, %v1572_v45  ;;  %v2882_v24 = vadd.f32 %v2881_v61, %v2880_v58  ;;  %v2659_v49 = vadd.f32 %v2658_v46, %v2657_v51  ;;  %v2379_v16 = vmax.f32 %v2304_v29, %v5086_v57 }
 0x38b   :  { %v1134_v33 = vmax.f32 %v8184_v63, %v5050_v10  ;;  %v1939_v32 = vmax.f32 %v1861_v40, %v5059_v11  ;;  %v2660_v15 = vsel %vm2526_vm1, %v2520_v18, 0.0  ;;  %v2013_v36 = vmul.f32 %v1940_v53, %v1574_v35 }
 0x38c   :  { %v2884_v8 = vadd.f32 %v2883_v43, %v2882_v24  ;;  %v2747_v45 = vmul.f32 %v2521_v52, %v2521_v52  ;;  %v2661_v5 = vadd.f32 %v2660_v15, %v2659_v49  ;;  %v2885_v0 = vsel %vm2526_vm1, %v2746_v47, 0.0  ;;  %v8187_v24 = vld [vmem:[#allocation60_spill] sm:$0xff] }
 0x38d   :  { %v1573_v26 = vmul.f32 %v1500_v42, %v1134_v33  ;;  %v2748_v61 = vmul.f32 %v2522_v59, %v2522_v59  ;;  %v6539_v46 = vmul.f32 %v2379_v16, %v2013_v36  ;;  %v2662_v11 = vsel %vm2526_vm1, %v2521_v52, 0.0 }
 0x38e   :  { %v2886_v58 = vadd.f32 %v2885_v0, %v2884_v8  ;;  %v2664_v29 = vsel %vm2526_vm1, %v2522_v59, 0.0  ;;  %v2663_v40 = vadd.f32 %v2662_v11, %v2661_v5 }
 0x38f   :  { %8185 = vst [vmem:[#allocation72_spill] sm:$0xff] %v6539_v46  ;;  %v2012_v51 = vmul.f32 %v1939_v32, %v1573_v26  ;;  %v2889_v43 = vsel %vm2526_vm1, %v2748_v61, 0.0  ;;  %v2525_v53 = vmul.f32 %v6539_v46, %v6313_v31  ;;  %v8223_v46 = vld [vmem:[#allocation25_spill] sm:$0xff] }
 0x390   :  { %v2296_v12 = vpop.permute.xlu1 %2295  ;;  %v2665_v20 = vadd.f32 %v2664_v29, %v2663_v40 }
 0x391   :  { %v2377_v30 = vmax.f32 %v2296_v12, %v5086_v57  ;;  %v2887_v12 = vsel %vm2526_vm1, %v2747_v45, 0.0  ;;  %v2751_v59 = vmul.f32 %v2525_v53, %v2525_v53  ;;  %v2671_v8 = vsel %vm2670_vm2, %v2525_v53, 0.0 }
 0x392   :  { %v2888_v42 = vadd.f32 %v2887_v12, %v2886_v58 }
 0x393   :  { %v6530_v41 = vmul.f32 %v2377_v30, %v2011_v13  ;;  %v2895_v26 = vsel %vm2670_vm2, %v2751_v59, 0.0 }
 0x394   :  { %v2890_v47 = vadd.f32 %v2889_v43, %v2888_v42 }
 0x395   :  { %8183 = vst [vmem:[#allocation121_spill] sm:$0xff] %v6530_v41  ;;  %v2523_v7 = vmul.f32 %v6530_v41, %v6222_v22  ;;  %v8225_v41 = vld [vmem:[#allocation108_spill] sm:$0xff] }
 0x397   :  { %v2749_v18 = vmul.f32 %v2523_v7, %v2523_v7  ;;  %v2666_v13 = vsel %vm2526_vm1, %v2523_v7, 0.0 }
 0x398   :  { %v2300_v10 = vpop.permute.xlu1 %2299 }
 0x399   :  { %v2378_v35 = vmax.f32 %v2300_v10, %v5086_v57  ;;  %v2891_v52 = vsel %vm2526_vm1, %v2749_v18, 0.0  ;;  %v2667_v57 = vadd.f32 %v2666_v13, %v2665_v20 }
 0x39a   :  { %v2892_v33 = vadd.f32 %v2891_v52, %v2890_v47 }
 0x39b   :  { %v6549_v30 = vmul.f32 %v2378_v35, %v2012_v51 }
 0x39d   :  { %8186 = vst [vmem:[#allocation172_spill] sm:$0xff] %v6549_v30  ;;  %v2524_v49 = vmul.f32 %v6549_v30, %v8187_v24  ;;  %v8224_v30 = vld [vmem:[#allocation96_spill] sm:$0xff] }
 0x39f   :  { %v2668_v16 = vsel %vm2526_vm1, %v2524_v49, 0.0  ;;  %v2750_v63 = vmul.f32 %v2524_v49, %v2524_v49 }
 0x3a0   :  { %v2669_v32 = vadd.f32 %v2668_v16, %v2667_v57 }
 0x3a1   :  { %v2893_v15 = vsel %vm2526_vm1, %v2750_v63, 0.0 }
 0x3a2   :  { %v2672_v36 = vadd.f32 %v2671_v8, %v2669_v32  ;;  %v2894_v7 = vadd.f32 %v2893_v15, %v2892_v33  ;;  %v2963_v15 = vld [vmem:[%s7354_s4] sm:$0x1] }
 0x3a4   :  { %v2673_v45 = vrot.slane %v2672_v36, 4  ;;  %v2896_v5 = vadd.f32 %v2895_v26, %v2894_v7 }
 0x3a6   :  { %v2674_v0 = vadd.f32 %v2673_v45, %v2672_v36  ;;  %v2897_v61 = vrot.slane %v2896_v5, 4  ;;  %v2981_v45 = vld [vmem:[%s7355_s5] sm:$0x1] }
 0x3a8   :  { %v2675_v51 = vrot.slane %v2674_v0, 2  ;;  %v2898_v58 = vadd.f32 %v2897_v61, %v2896_v5 }
 0x3aa   :  { %v2676_v10 = vadd.f32 %v2675_v51, %v2674_v0  ;;  %v2899_v11 = vrot.slane %v2898_v58, 2 }
 0x3ac   :  { %v2677_v29 = vrot.slane %v2676_v10, 1  ;;  %v2900_v18 = vadd.f32 %v2899_v11, %v2898_v58 }
 0x3ae   :  { %v2901_v35 = vrot.slane %v2900_v18, 1  ;;  %v2678_v12 = vadd.f32 %v2677_v29, %v2676_v10 }
 0x3b0   :  { %v2902_v40 = vadd.f32 %v2901_v35, %v2900_v18 }
 0x3b2   :  { %v2904_v43 = vsel %vm2903_vm3, %v2678_v12, %v2902_v40 }
 0x3b3   :  { %3631 = vmatmul.msk.f32.vlgmr.msrb.gmra.mxu1 %vm2526_vm1, %v2904_v43 }
 0x430   :  { %v2929_v53 = vpop.f32.mrf.mxu1 }
 0x431   :  { %3632 = vmatmul.msk.f32.vlgmr.msrb.gmra.mxu2 %vm2933_vm4, %v2929_v53  ;;  %v8198_v53 = vld [vmem:[#allocation26_spill] sm:$0xff] }
 0x4b4   :  { %v2954_v13 = vpop.f32.mrf.mxu2 }
 0x4b5   :  { %v2957_v20 = vmul.f32 0.00048828125, %v2954_v13 }
 0x4b7   :  { %v2958_v42 = vmul.f32 %v2957_v20, %v2957_v20 }
 0x4b9   :  { %v2960_v52 = vrot.slane %v2958_v42, 7 }
 0x4bb   :  { %v2962_v49 = vsub.f32 %v2957_v20, %v2960_v52  ;;  %v8200_v52 = vld [vmem:[#allocation160_spill] sm:$0xff] }
 0x4bd   :  { %v2964_v57 = vadd.f32 1e-05, %v2962_v49 }
 0x4bf   :  { %3713 = vrsqrt.f32 %v2964_v57  ;;  %vm2971_vm6 = vweird.f32 %v2964_v57 }
 0x4c5   :  { %v3714_v47 = vpop.eup %3713 }
 0x4c6   :  { %v2966_v59 = vmul.f32 %v3714_v47, %v2964_v57  ;;  %vm2972_vm5 = vweird.f32 %v3714_v47  ;;  %v8201_v57 = vld [vmem:[#allocation164_spill] sm:$0xff] }
 0x4c7   :  { %vm2973_vm7 = vmor %vm2971_vm6, %vm2972_vm5 }
 0x4c8   :  { %v2967_v16 = vmul.f32 %v3714_v47, %v2966_v59  ;;  %v8202_v59 = vld [vmem:[#allocation168_spill] sm:$0xff] }
 0x4ca   :  { %v2968_v63 = vmul.f32 0.5, %v2967_v16 }
 0x4cc   :  { %v2969_v33 = vsub.f32 1.5, %v2968_v63  ;;  %v8203_v63 = vld [vmem:[#allocation174_spill] sm:$0xff] }
 0x4ce   :  { %v2970_v32 = vmul.f32 %v3714_v47, %v2969_v33 }
 0x4d0   :  { %v2974_v8 = vsel %vm2973_vm7, %v3714_v47, %v2970_v32  ;;  %v8204_v32 = vld [vmem:[#allocation179_spill] sm:$0xff] }
 0x4d1   :  { %2976 = vst [vmem:[#allocation1] sm:$0xff] %v2974_v8 }
 0x4d8   :  { %v2978_v36 = vld [vmem:[#allocation1 + $0x1] ss:$9 sm:$0xff] }
 0x4d9   :  { %v2980_v7 = vmul.f32 %v2978_v36, %v2963_v15  ;;  %v8205_v15 = vld [vmem:[#allocation183_spill] sm:$0xff] }
 0x4db   :  { %v2982_v26 = vmul.f32 %v2980_v7, %v2957_v20  ;;  %v6563_v0 = vperm.slane %v2980_v7, 0  ;;  %v8199_v20 = vld [vmem:[#allocation156_spill] sm:$0xff]  ;;  %v8206_v7 = vld [vmem:[#allocation83_spill] sm:$0xff] }
 0x4dd   :  { %v2983_v5 = vsub.f32 %v2981_v45, %v2982_v26  ;;  %v3050_v51 = vmul.f32 %v6563_v0, %v5974_v23  ;;  %v3051_v58 = vmul.f32 %v6563_v0, %v6008_v6  ;;  %v3052_v10 = vmul.f32 %v6563_v0, %v6034_v55  ;;  %v8207_v45 = vld [vmem:[#allocation190_spill] sm:$0xff] }
 0x4de   :  { %v3053_v11 = vmul.f32 %v6563_v0, %v6060_v19  ;;  %v3054_v29 = vmul.f32 %v6563_v0, %v6085_v14  ;;  %v3055_v18 = vmul.f32 %v6563_v0, %v6134_v1  ;;  %v3056_v35 = vmul.f32 %v6563_v0, %v6173_v25 }
 0x4df   :  { %v6565_v61 = vperm.slane %v2983_v5, 0  ;;  %v3057_v23 = vmul.f32 %v6563_v0, %v6222_v22  ;;  %v3058_v6 = vmul.f32 %v6563_v0, %v8187_v24  ;;  %v3059_v55 = vmul.f32 %v6563_v0, %v6313_v31 }
 0x4e0   :  { %v2987_v13 = vmul.f32 %v6563_v0, %v8198_v53  ;;  %v2988_v42 = vmul.f32 %v6563_v0, %v8199_v20  ;;  %v2989_v49 = vmul.f32 %v6563_v0, %v8200_v52  ;;  %v2990_v47 = vmul.f32 %v6563_v0, %v8201_v57  ;;  %v8213_v53 = vld [vmem:[#allocation93_spill] sm:$0xff]  ;;  %v8214_v52 = vld [vmem:[#allocation116_spill] sm:$0xff] }
 0x4e1   :  { %v6588_v19 = vadd.f32 %v6565_v61, %v3050_v51  ;;  %v6591_v14 = vadd.f32 %v6565_v61, %v3051_v58  ;;  %v6594_v1 = vadd.f32 %v6565_v61, %v3052_v10  ;;  %v6597_v25 = vadd.f32 %v6565_v61, %v3053_v11  ;;  %v8208_v51 = vld [vmem:[#allocation104_spill] sm:$0xff]  ;;  %v8209_v10 = vld [vmem:[#allocation5_spill] sm:$0xff] }
 0x4e2   :  { %v6600_v22 = vadd.f32 %v6565_v61, %v3054_v29  ;;  %v6603_v24 = vadd.f32 %v6565_v61, %v3055_v18  ;;  %v6606_v31 = vadd.f32 %v6565_v61, %v3056_v35  ;;  %v6609_v12 = vadd.f32 %v6565_v61, %v3057_v23  ;;  %v8210_v29 = vld [vmem:[#allocation6_spill] sm:$0xff] }
 0x4e3   :  { %8188 = vst [vmem:[#allocation185_spill] sm:$0xff] %v6588_v19  ;;  %v6612_v40 = vadd.f32 %v6565_v61, %v3058_v6  ;;  %v6615_v43 = vadd.f32 %v6565_v61, %v3059_v55  ;;  %v2991_v16 = vmul.f32 %v6563_v0, %v8202_v59  ;;  %v2992_v33 = vmul.f32 %v6563_v0, %v8203_v63  ;;  %v8211_v35 = vld [vmem:[#allocation10_spill] sm:$0xff]  ;;  %v8212_v6 = vld [vmem:[#allocation19_spill] sm:$0xff] }
 0x4e4   :  { %8189 = vst [vmem:[#allocation64_spill] sm:$0xff] %v6591_v14  ;;  %v2993_v8 = vmul.f32 %v6563_v0, %v8204_v32  ;;  %v6633_v36 = vmul.f32 %v6563_v0, %v8205_v15  ;;  %v6637_v26 = vmul.f32 %v6563_v0, %v8206_v7  ;;  %v6641_v5 = vmul.f32 %v6563_v0, %v8207_v45  ;;  %v8215_v59 = vld [vmem:[#allocation106_spill] sm:$0xff]  ;;  %v8216_v32 = vld [vmem:[#allocation32_spill] sm:$0xff]  ;;  %v8248_v19 = vld [vmem:[#allocation55_spill] sm:$0xff] }
 0x4e5   :  { %8190 = vst [vmem:[#allocation67_spill] sm:$0xff] %v6594_v1  ;;  %v6645_v58 = vmul.f32 %v6563_v0, %v8208_v51  ;;  %v6649_v11 = vmul.f32 %v6563_v0, %v8209_v10  ;;  %v6653_v18 = vmul.f32 %v6563_v0, %v8210_v29  ;;  %v6657_v23 = vmul.f32 %v6563_v0, %v8211_v35  ;;  %v8217_v7 = vld [vmem:[#allocation22_spill] sm:$0xff]  ;;  %v8218_v51 = vld [vmem:[#allocation192_spill] sm:$0xff] }
 0x4e6   :  { %8191 = vst [vmem:[#allocation70_spill] sm:$0xff] %v6597_v25  ;;  %v6661_v55 = vmul.f32 %v6563_v0, %v8212_v6  ;;  %v6665_v20 = vmul.f32 %v6563_v0, %v8213_v53  ;;  %v6669_v57 = vmul.f32 %v6563_v0, %v8214_v52  ;;  %v6673_v63 = vmul.f32 %v6563_v0, %v8215_v59  ;;  %v8219_v29 = vld [vmem:[#allocation4_spill] sm:$0xff]  ;;  %v8220_v6 = vld [vmem:[#allocation198_spill] sm:$0xff]  ;;  %v8240_v25 = vld [vmem:[#allocation163_spill] sm:$0xff] }
 0x4e7   :  { %8192 = vst [vmem:[#allocation134_spill] sm:$0xff] %v6600_v22  ;;  %v6677_v15 = vmul.f32 %v6563_v0, %v8216_v32  ;;  %v6681_v45 = vmul.f32 %v6563_v0, %v8217_v7  ;;  %v6685_v10 = vmul.f32 %v6563_v0, %v8218_v51  ;;  %v6689_v35 = vmul.f32 %v6563_v0, %v8219_v29  ;;  %v8221_v52 = vld [vmem:[#allocation110_spill] sm:$0xff]  ;;  %v8238_v22 = vld [vmem:[#allocation155_spill] sm:$0xff] }
 0x4e8   :  { %8193 = vst [vmem:[#allocation74_spill] sm:$0xff] %v6603_v24  ;;  %v6693_v53 = vmul.f32 %v6563_v0, %v8220_v6  ;;  %v6697_v59 = vmul.f32 %v6563_v0, %v8221_v52  ;;  %v8222_v32 = vld [vmem:[#allocation14_spill] sm:$0xff]  ;;  %v6705_v51 = vmul.f32 %v6563_v0, %v8223_v46  ;;  %v6709_v29 = vmul.f32 %v6563_v0, %v8224_v30 }
 0x4e9   :  { %8194 = vst [vmem:[#allocation182_spill] sm:$0xff] %v6606_v31  ;;  %v6701_v7 = vmul.f32 %v6563_v0, %v8222_v32  ;;  %v6713_v6 = vmul.f32 %v6563_v0, %v8225_v41  ;;  %v6717_v52 = vmul.f32 %v6563_v0, %v8226_v44  ;;  %v6721_v32 = vmul.f32 %v6563_v0, %v8227_v2  ;;  %v8234_v31 = vld [vmem:[#allocation12_spill] sm:$0xff]  ;;  %v8236_v24 = vld [vmem:[#allocation102_spill] sm:$0xff] }
 0x4ea   :  { %8195 = vst [vmem:[#allocation135_spill] sm:$0xff] %v6609_v12  ;;  %v6729_v30 = vmul.f32 %v6563_v0, %v8229_v4  ;;  %v6737_v44 = vmul.f32 %v6563_v0, %v8231_v54  ;;  %v8232_v12 = vld [vmem:[#allocation175_spill] sm:$0xff]  ;;  %v6749_v4 = vmul.f32 %v6563_v0, %v8234_v31  ;;  %v6757_v54 = vmul.f32 %v6563_v0, %v8236_v24  ;;  %v8241_v24 = vld [vmem:[#allocation37_spill] sm:$0xff] }
 0x4eb   :  { %8196 = vst [vmem:[#allocation75_spill] sm:$0xff] %v6612_v40  ;;  %v8230_v40 = vld [vmem:[#allocation34_spill] sm:$0xff]  ;;  %v6741_v2 = vmul.f32 %v6563_v0, %v8232_v12  ;;  %v6761_v12 = vmul.f32 %v6563_v0, %v8237_v50  ;;  %v6769_v31 = vmul.f32 %v6563_v0, %v8239_v9  ;;  %v3063_v56 = vadd.f32 %v6565_v61, %v2987_v13  ;;  %v8242_v50 = vld [vmem:[#allocation125_spill] sm:$0xff] }
 0x4ec   :  { %8197 = vst [vmem:[#allocation124_spill] sm:$0xff] %v6615_v43  ;;  %v8228_v43 = vld [vmem:[#allocation122_spill] sm:$0xff]  ;;  %v6733_v41 = vmul.f32 %v6563_v0, %v8230_v40  ;;  %v6753_v40 = vmul.f32 %v6563_v0, %v8235_v39  ;;  %v6773_v39 = vmul.f32 %v6563_v0, %v8240_v25  ;;  %v6778_v1 = vmul.f32 %v6563_v0, %v8241_v24  ;;  %v8250_v24 = vld [vmem:[#allocation157_spill] sm:$0xff] }
 0x4ed   :  { %v6725_v46 = vmul.f32 %v6563_v0, %v8228_v43  ;;  %v6745_v43 = vmul.f32 %v6563_v0, %v8233_v34  ;;  %v6765_v34 = vmul.f32 %v6563_v0, %v8238_v22  ;;  %v6782_v38 = vmul.f32 %v6563_v0, %v8242_v50  ;;  %v8244_v22 = vld [vmem:[#allocation43_spill] sm:$0xff] }
 0x4ee   :  { %v6786_v14 = vmul.f32 %v6563_v0, %v8244_v22  ;;  %v3064_v9 = vadd.f32 %v6565_v61, %v2988_v42  ;;  %v6791_v25 = vmul.f32 %v6563_v0, %v8246_v3  ;;  %v6795_v13 = vmul.f32 %v6563_v0, %v8248_v19  ;;  %v8256_v3 = vld [vmem:[#allocation161_spill] sm:$0xff] }
 0x4ef   :  { %8243 = vst [vmem:[#allocation176_spill] sm:$0xff] %v6782_v38  ;;  %v6799_v60 = vmul.f32 %v6563_v0, %v8250_v24  ;;  %v3065_v50 = vadd.f32 %v6565_v61, %v2989_v49  ;;  %v8252_v38 = vld [vmem:[#allocation178_spill] sm:$0xff]  ;;  %v3066_v19 = vadd.f32 %v6565_v61, %v2990_v47  ;;  %v6821_v49 = vmul.f32 %v6563_v0, %v6276_v27 }
 0x4f0   :  { %8245 = vst [vmem:[#allocation187_spill] sm:$0xff] %v6786_v14  ;;  %v6804_v22 = vmul.f32 %v6563_v0, %v8252_v38  ;;  %v8254_v14 = vld [vmem:[#allocation115_spill] sm:$0xff]  ;;  %v3067_v38 = vadd.f32 %v6565_v61, %v2991_v16  ;;  %v3068_v47 = vadd.f32 %v6565_v61, %v2992_v33  ;;  %v6839_v27 = vmul.f32 %v6563_v0, %v8150_v28 }
 0x4f1   :  { %8247 = vst [vmem:[#allocation73_spill] sm:$0xff] %v6791_v25  ;;  %v6808_v42 = vmul.f32 %v6563_v0, %v8254_v14  ;;  %v6812_v25 = vmul.f32 %v6563_v0, %v8256_v3  ;;  %v3138_v16 = vmax.f32 %v3065_v50, 0.0  ;;  %v3070_v33 = vadd.f32 %v6565_v61, %v6633_v36  ;;  %v8269_v50 = vld [vmem:[#allocation191_spill] sm:$0xff]  ;;  %v8271_v36 = vld [vmem:[#allocation9_spill] sm:$0xff] }
 0x4f2   :  { %8249 = vst [vmem:[#allocation76_spill] sm:$0xff] %v6795_v13  ;;  %v8258_v13 = vld [vmem:[#allocation166_spill] sm:$0xff]  ;;  %v3071_v28 = vadd.f32 %v6565_v61, %v6637_v26  ;;  %v3073_v26 = vadd.f32 %v6565_v61, %v6645_v58  ;;  %v3077_v58 = vadd.f32 %v6565_v61, %v6661_v55 }
 0x4f3   :  { %8251 = vst [vmem:[#allocation137_spill] sm:$0xff] %v6799_v60  ;;  %v6817_v24 = vmul.f32 %v6563_v0, %v8258_v13  ;;  %v8260_v60 = vld [vmem:[#allocation111_spill] sm:$0xff] }
 0x4f4   :  { %8253 = vst [vmem:[#allocation77_spill] sm:$0xff] %v6804_v22  ;;  %v3136_v22 = vmax.f32 %v3063_v56, 0.0  ;;  %v6826_v14 = vmul.f32 %v6563_v0, %v8260_v60  ;;  %v8263_v13 = vld [vmem:[#allocation15_spill] sm:$0xff]  ;;  %v3069_v56 = vadd.f32 %v6565_v61, %v2993_v8  ;;  %v6844_v60 = vmul.f32 %v6563_v0, %v8151_v62 }
 0x4f5   :  { %8255 = vst [vmem:[#allocation186_spill] sm:$0xff] %v6808_v42  ;;  %v8261_v42 = vld [vmem:[#allocation117_spill] sm:$0xff]  ;;  %v3140_v8 = vmax.f32 %v3067_v38, 0.0  ;;  %v6861_v62 = vmul.f32 %v6563_v0, %v5904_v48  ;;  %v3074_v48 = vadd.f32 %v6565_v61, %v6649_v11 }
 0x4f6   :  { %8257 = vst [vmem:[#allocation138_spill] sm:$0xff] %v6812_v25  ;;  %v6830_v3 = vmul.f32 %v6563_v0, %v8261_v42  ;;  %v3137_v25 = vmax.f32 %v3064_v9, 0.0  ;;  %v6848_v42 = vmul.f32 %v6563_v0, %v5823_v21  ;;  %v3139_v9 = vmax.f32 %v3066_v19, 0.0 }
 0x4f7   :  { %8259 = vst [vmem:[#allocation78_spill] sm:$0xff] %v6817_v24  ;;  %v6835_v24 = vmul.f32 %v6563_v0, %v8263_v13  ;;  %v6854_v13 = vmul.f32 %v6563_v0, %v5865_v17  ;;  %v3072_v21 = vadd.f32 %v6565_v61, %v6641_v5  ;;  %v6868_v17 = vmul.f32 %v6563_v0, %v8165_v37  ;;  %v8275_v0 = vld [vmem:[#allocation18_spill] sm:$0xff] }
 0x4f8   :  { %8262 = vst [vmem:[#allocation127_spill] sm:$0xff] %v6830_v3  ;;  %v3210_v19 = vmul.f32 %v3137_v25, %v8271_v36  ;;  %v3142_v38 = vmax.f32 %v3069_v56, 0.0  ;;  %v3143_v5 = vmax.f32 %v3070_v33, 0.0  ;;  %v3076_v25 = vadd.f32 %v6565_v61, %v6657_v23  ;;  %v8278_v23 = vld [vmem:[#allocation23_spill] sm:$0xff] }
 0x4f9   :  { %8264 = vst [vmem:[#allocation180_spill] sm:$0xff] %v6835_v24  ;;  %v3144_v37 = vmax.f32 %v3071_v28, 0.0  ;;  %v3213_v36 = vmul.f32 %v3140_v8, %v8275_v0  ;;  %v3145_v56 = vmax.f32 %v3072_v21, 0.0  ;;  %v3146_v33 = vmax.f32 %v3073_v26, 0.0  ;;  %v8279_v8 = vld [vmem:[#allocation3_spill] sm:$0xff] }
 0x4fa   :  { %8265 = vst [vmem:[#allocation99_spill] sm:$0xff] %v6839_v27  ;;  %v3209_v27 = vmul.f32 %v3136_v22, %v8269_v50  ;;  %v3075_v50 = vadd.f32 %v6565_v61, %v6653_v18  ;;  %v3283_v11 = vpack.c.bf16 %v3210_v19, %v3210_v19  ;;  %v3078_v18 = vadd.f32 %v6565_v61, %v6665_v20  ;;  %v8280_v19 = vld [vmem:[#allocation98_spill] sm:$0xff] }
 0x4fb   :  { %8266 = vst [vmem:[#allocation79_spill] sm:$0xff] %v6844_v60  ;;  %v8277_v60 = vld [vmem:[#allocation31_spill] sm:$0xff]  ;;  %v3147_v24 = vmax.f32 %v3074_v48, 0.0  ;;  %v3216_v28 = vmul.f32 %v3143_v5, %v8278_v23  ;;  %v3217_v21 = vmul.f32 %v3144_v37, %v8279_v8  ;;  %v3080_v20 = vadd.f32 %v6565_v61, %v6673_v63  ;;  %v8286_v23 = vld [vmem:[#allocation20_spill] sm:$0xff]  ;;  %v8287_v8 = vld [vmem:[#allocation114_spill] sm:$0xff] }
 0x4fc   :  { %8267 = vst [vmem:[#allocation80_spill] sm:$0xff] %v6848_v42  ;;  %v3141_v42 = vmax.f32 %v3068_v47, 0.0  ;;  %v8274_v47 = vld [vmem:[#allocation17_spill] sm:$0xff]  ;;  %v3148_v55 = vmax.f32 %v3075_v50, 0.0  ;;  %v3218_v26 = vmul.f32 %v3145_v56, %v8280_v19  ;;  %v3082_v63 = vadd.f32 %v6565_v61, %v6681_v45  ;;  %v8282_v5 = vld [vmem:[#allocation7_spill] sm:$0xff] }
 0x4fd   :  { %8268 = vst [vmem:[#allocation140_spill] sm:$0xff] %v6854_v13  ;;  %v8273_v13 = vld [vmem:[#allocation13_spill] sm:$0xff]  ;;  %v3289_v37 = vpack.c.bf16 %v3216_v28, %v3216_v28  ;;  %v3290_v56 = vpack.c.bf16 %v3217_v21, %v3217_v21  ;;  %v3084_v45 = vadd.f32 %v6565_v61, %v6689_v35  ;;  %v3086_v35 = vadd.f32 %v6565_v61, %v6697_v59 }
 0x4fe   :  { %8270 = vst [vmem:[#allocation81_spill] sm:$0xff] %v6861_v62  ;;  %v3211_v22 = vmul.f32 %v3138_v16, %v8273_v13  ;;  %v3212_v62 = vmul.f32 %v3139_v9, %v8274_v47  ;;  %v8276_v16 = vld [vmem:[#allocation195_spill] sm:$0xff]  ;;  %v3215_v9 = vmul.f32 %v3142_v38, %v8277_v60  ;;  %v3149_v60 = vmax.f32 %v3076_v25, 0.0 }
 0x4ff   :  { %8272 = vst [vmem:[#allocation188_spill] sm:$0xff] %v6868_v17  ;;  %v3282_v17 = vpack.c.bf16 %v3209_v27, %v3209_v27  ;;  %v3214_v13 = vmul.f32 %v3141_v42, %v8276_v16  ;;  %v3079_v27 = vadd.f32 %v6565_v61, %v6669_v57  ;;  %v3286_v42 = vpack.c.bf16 %v3213_v36, %v3213_v36  ;;  %v8283_v36 = vld [vmem:[#allocation45_spill] sm:$0xff] }
 0x500   :  { %v3284_v47 = vpack.c.bf16 %v3211_v22, %v3211_v22  ;;  %v3285_v3 = vpack.c.bf16 %v3212_v62, %v3212_v62  ;;  %3357 = vst.msk [vmem:[%s7356_s8 + $0x4] sm:$0xf] %vm3355_vm8, %v3283_v11  ;;  %v3081_v57 = vadd.f32 %v6565_v61, %v6677_v15  ;;  %v3150_v38 = vmax.f32 %v3077_v58, 0.0  ;;  %v8281_v22 = vld [vmem:[#allocation113_spill] sm:$0xff] }
 0x501   :  { %3356 = vst.msk [vmem:[%s7356_s8] sm:$0xf] %vm3355_vm8, %v3282_v17  ;;  %v3287_v62 = vpack.c.bf16 %v3214_v13, %v3214_v13  ;;  %v3219_v48 = vmul.f32 %v3146_v33, %v8281_v22  ;;  %v3288_v50 = vpack.c.bf16 %v3215_v9, %v3215_v9  ;;  %v3151_v17 = vmax.f32 %v3078_v18, 0.0  ;;  %v8284_v16 = vld [vmem:[#allocation105_spill] sm:$0xff]  ;;  %v8285_v18 = vld [vmem:[#allocation11_spill] sm:$0xff] }
 0x502   :  { %3358 = vst.msk [vmem:[%s7356_s8 + $0x8] sm:$0xf] %vm3355_vm8, %v3284_v47  ;;  %v3220_v25 = vmul.f32 %v3147_v24, %v8282_v5  ;;  %v3083_v15 = vadd.f32 %v6565_v61, %v6685_v10  ;;  %v3152_v0 = vmax.f32 %v3079_v27, 0.0  ;;  %v3221_v58 = vmul.f32 %v3148_v55, %v8283_v36  ;;  %v8292_v36 = vld [vmem:[#allocation167_spill] sm:$0xff] }
 0x503   :  { %3359 = vst.msk [vmem:[%s7356_s8 + $0xc] sm:$0xf] %vm3355_vm8, %v3285_v3  ;;  %v3153_v24 = vmax.f32 %v3080_v20, 0.0  ;;  %v3222_v13 = vmul.f32 %v3149_v60, %v8284_v16  ;;  %v3291_v11 = vpack.c.bf16 %v3218_v26, %v3218_v26  ;;  %v3085_v10 = vadd.f32 %v6565_v61, %v6693_v53  ;;  %v8288_v60 = vld [vmem:[#allocation90_spill] sm:$0xff] }
 0x504   :  { %3360 = vst.msk [vmem:[%s7356_s8 + $0x10] sm:$0xf] %vm3355_vm8, %v3286_v42  ;;  %v3154_v3 = vmax.f32 %v3081_v57, 0.0  ;;  %v3223_v33 = vmul.f32 %v3150_v38, %v8285_v18  ;;  %v3292_v9 = vpack.c.bf16 %v3219_v48, %v3219_v48  ;;  %v3155_v47 = vmax.f32 %v3082_v63, 0.0  ;;  %v8289_v57 = vld [vmem:[#allocation119_spill] sm:$0xff] }
 0x505   :  { %3361 = vst.msk [vmem:[%s7356_s8 + $0x14] sm:$0xf] %vm3355_vm8, %v3287_v62  ;;  %v3224_v28 = vmul.f32 %v3151_v17, %v8286_v23  ;;  %v3293_v27 = vpack.c.bf16 %v3220_v25, %v3220_v25  ;;  %v3087_v53 = vadd.f32 %v6565_v61, %v6701_v7  ;;  %v3156_v55 = vmax.f32 %v3083_v15, 0.0  ;;  %v8291_v25 = vld [vmem:[#allocation42_spill] sm:$0xff] }
 0x506   :  { %3362 = vst.msk [vmem:[%s7356_s8 + $0x18] sm:$0xf] %vm3355_vm8, %v3288_v50  ;;  %v3225_v21 = vmul.f32 %v3152_v0, %v8287_v8  ;;  %v3294_v42 = vpack.c.bf16 %v3221_v58, %v3221_v58  ;;  %v3088_v59 = vadd.f32 %v6565_v61, %v6705_v51  ;;  %v3157_v20 = vmax.f32 %v3084_v45, 0.0  ;;  %v8290_v50 = vld [vmem:[#allocation29_spill] sm:$0xff]  ;;  %v8297_v8 = vld [vmem:[#allocation103_spill] sm:$0xff] }
 0x507   :  { %3363 = vst.msk [vmem:[%s7356_s8 + $0x1c] sm:$0xf] %vm3355_vm8, %v3289_v37  ;;  %v3226_v19 = vmul.f32 %v3153_v24, %v8288_v60  ;;  %v3295_v26 = vpack.c.bf16 %v3222_v13, %v3222_v13  ;;  %v3089_v7 = vadd.f32 %v6565_v61, %v6709_v29  ;;  %v3158_v62 = vmax.f32 %v3085_v10, 0.0  ;;  %v8293_v24 = vld [vmem:[#allocation36_spill] sm:$0xff]  ;;  %v8294_v10 = vld [vmem:[#allocation101_spill] sm:$0xff] }
 0x508   :  { %3364 = vst.msk [vmem:[%s7356_s8 + $0x20] sm:$0xf] %vm3355_vm8, %v3290_v56  ;;  %v3227_v38 = vmul.f32 %v3154_v3, %v8289_v57  ;;  %v3296_v22 = vpack.c.bf16 %v3223_v33, %v3223_v33  ;;  %v3090_v51 = vadd.f32 %v6565_v61, %v6713_v6  ;;  %v3159_v48 = vmax.f32 %v3086_v35, 0.0 }
 0x509   :  { %3365 = vst.msk [vmem:[%s7356_s8 + $0x24] sm:$0xf] %vm3355_vm8, %v3291_v11  ;;  %v3228_v63 = vmul.f32 %v3155_v47, %v8290_v50  ;;  %v3297_v17 = vpack.c.bf16 %v3224_v28, %v3224_v28  ;;  %v3091_v29 = vadd.f32 %v6565_v61, %v6717_v52  ;;  %v3160_v5 = vmax.f32 %v3087_v53, 0.0  ;;  %v8296_v28 = vld [vmem:[#allocation41_spill] sm:$0xff] }
 0x50a   :  { %3366 = vst.msk [vmem:[%s7356_s8 + $0x28] sm:$0xf] %vm3355_vm8, %v3292_v9  ;;  %v3229_v37 = vmul.f32 %v3156_v55, %v8291_v25  ;;  %v3298_v15 = vpack.c.bf16 %v3225_v21, %v3225_v21  ;;  %v3092_v6 = vadd.f32 %v6565_v61, %v6721_v32  ;;  %v3161_v0 = vmax.f32 %v3088_v59, 0.0  ;;  %v8295_v9 = vld [vmem:[#allocation44_spill] sm:$0xff]  ;;  %v8302_v25 = vld [vmem:[#allocation47_spill] sm:$0xff] }
 0x50b   :  { %3367 = vst.msk [vmem:[%s7356_s8 + $0x2c] sm:$0xf] %vm3355_vm8, %v3293_v27  ;;  %v3230_v58 = vmul.f32 %v3157_v20, %v8292_v36  ;;  %v3299_v56 = vpack.c.bf16 %v3226_v19, %v3226_v19  ;;  %v3093_v52 = vadd.f32 %v6565_v61, %v6725_v46  ;;  %v3162_v45 = vmax.f32 %v3089_v7, 0.0  ;;  %v8298_v20 = vld [vmem:[#allocation171_spill] sm:$0xff]  ;;  %v8299_v7 = vld [vmem:[#allocation56_spill] sm:$0xff] }
 0x50c   :  { %3368 = vst.msk [vmem:[%s7356_s8 + $0x30] sm:$0xf] %vm3355_vm8, %v3294_v42  ;;  %v3231_v16 = vmul.f32 %v3158_v62, %v8293_v24  ;;  %v3300_v13 = vpack.c.bf16 %v3227_v38, %v3227_v38  ;;  %v3094_v32 = vadd.f32 %v6565_v61, %v6729_v30  ;;  %v3163_v11 = vmax.f32 %v3090_v51, 0.0 }
 0x50d   :  { %3369 = vst.msk [vmem:[%s7356_s8 + $0x34] sm:$0xf] %vm3355_vm8, %v3295_v26  ;;  %v3232_v3 = vmul.f32 %v3159_v48, %v8294_v10  ;;  %v3301_v18 = vpack.c.bf16 %v3228_v63, %v3228_v63  ;;  %v3095_v46 = vadd.f32 %v6565_v61, %v6733_v41  ;;  %v3164_v33 = vmax.f32 %v3091_v29, 0.0  ;;  %v8301_v63 = vld [vmem:[#allocation51_spill] sm:$0xff] }
 0x50e   :  { %3370 = vst.msk [vmem:[%s7356_s8 + $0x38] sm:$0xf] %vm3355_vm8, %v3296_v22  ;;  %v3233_v35 = vmul.f32 %v3160_v5, %v8295_v9  ;;  %v3302_v47 = vpack.c.bf16 %v3229_v37, %v3229_v37  ;;  %v3096_v30 = vadd.f32 %v6565_v61, %v6737_v44  ;;  %v3165_v23 = vmax.f32 %v3092_v6, 0.0  ;;  %v8300_v22 = vld [vmem:[#allocation30_spill] sm:$0xff] }
 0x50f   :  { %3371 = vst.msk [vmem:[%s7356_s8 + $0x3c] sm:$0xf] %vm3355_vm8, %v3297_v17  ;;  %v3234_v27 = vmul.f32 %v3161_v0, %v8296_v28  ;;  %v3303_v53 = vpack.c.bf16 %v3230_v58, %v3230_v58  ;;  %v3097_v41 = vadd.f32 %v6565_v61, %v6741_v2  ;;  %v3166_v55 = vmax.f32 %v3093_v52, 0.0  ;;  %v8303_v0 = vld [vmem:[#allocation50_spill] sm:$0xff]  ;;  %v8304_v52 = vld [vmem:[#allocation120_spill] sm:$0xff] }
 0x510   :  { %3372 = vst.msk [vmem:[%s7356_s8 + $0x40] sm:$0xf] %vm3355_vm8, %v3298_v15  ;;  %v3235_v21 = vmul.f32 %v3162_v45, %v8297_v8  ;;  %v3304_v42 = vpack.c.bf16 %v3231_v16, %v3231_v16  ;;  %v3098_v44 = vadd.f32 %v6565_v61, %v6745_v43  ;;  %v3167_v59 = vmax.f32 %v3094_v32, 0.0 }
 0x511   :  { %3373 = vst.msk [vmem:[%s7356_s8 + $0x44] sm:$0xf] %vm3355_vm8, %v3299_v56  ;;  %v3236_v60 = vmul.f32 %v3163_v11, %v8298_v20  ;;  %v3305_v19 = vpack.c.bf16 %v3232_v3, %v3232_v3  ;;  %v3099_v2 = vadd.f32 %v6565_v61, %v6749_v4  ;;  %v3168_v26 = vmax.f32 %v3095_v46, 0.0  ;;  %v8306_v3 = vld [vmem:[#allocation46_spill] sm:$0xff]  ;;  %v8313_v20 = vld [vmem:[#allocation76_spill] sm:$0xff] }
 0x512   :  { %3374 = vst.msk [vmem:[%s7356_s8 + $0x48] sm:$0xf] %vm3355_vm8, %v3300_v13  ;;  %v3237_v62 = vmul.f32 %v3164_v33, %v8299_v7  ;;  %v3306_v57 = vpack.c.bf16 %v3233_v35, %v3233_v35  ;;  %v3100_v43 = vadd.f32 %v6565_v61, %v6753_v40  ;;  %v3169_v38 = vmax.f32 %v3096_v30, 0.0  ;;  %v8305_v13 = vld [vmem:[#allocation27_spill] sm:$0xff] }
 0x513   :  { %3375 = vst.msk [vmem:[%s7356_s8 + $0x4c] sm:$0xf] %vm3355_vm8, %v3301_v18  ;;  %v3238_v51 = vmul.f32 %v3165_v23, %v8300_v22  ;;  %v3307_v48 = vpack.c.bf16 %v3234_v27, %v3234_v27  ;;  %v3101_v4 = vadd.f32 %v6565_v61, %v6757_v54  ;;  %v3170_v50 = vmax.f32 %v3097_v41, 0.0  ;;  %v8308_v35 = vld [vmem:[#allocation131_spill] sm:$0xff]  ;;  %v8310_v27 = vld [vmem:[#allocation52_spill] sm:$0xff] }
 0x514   :  { %3376 = vst.msk [vmem:[%s7356_s8 + $0x50] sm:$0xf] %vm3355_vm8, %v3302_v47  ;;  %v3239_v17 = vmul.f32 %v3166_v55, %v8301_v63  ;;  %v3308_v29 = vpack.c.bf16 %v3235_v21, %v3235_v21  ;;  %v3102_v40 = vadd.f32 %v6565_v61, %v6761_v12  ;;  %v3171_v5 = vmax.f32 %v3098_v44, 0.0  ;;  %v8311_v55 = vld [vmem:[#allocation73_spill] sm:$0xff]  ;;  %v8318_v63 = vld [vmem:[#allocation59_spill] sm:$0xff] }
 0x515   :  { %3377 = vst.msk [vmem:[%s7356_s8 + $0x54] sm:$0xf] %vm3355_vm8, %v3303_v53  ;;  %v3240_v37 = vmul.f32 %v3167_v59, %v8302_v25  ;;  %v3309_v15 = vpack.c.bf16 %v3236_v60, %v3236_v60  ;;  %v3103_v54 = vadd.f32 %v6565_v61, %v6765_v34  ;;  %v3172_v6 = vmax.f32 %v3099_v2, 0.0  ;;  %v8314_v2 = vld [vmem:[#allocation58_spill] sm:$0xff] }
 0x516   :  { %3378 = vst.msk [vmem:[%s7356_s8 + $0x58] sm:$0xf] %vm3355_vm8, %v3304_v42  ;;  %v3241_v36 = vmul.f32 %v3168_v26, %v8303_v0  ;;  %v3310_v58 = vpack.c.bf16 %v3237_v62, %v3237_v62  ;;  %v3104_v12 = vadd.f32 %v6565_v61, %v6769_v31  ;;  %v3173_v56 = vmax.f32 %v3100_v43, 0.0  ;;  %v8312_v42 = vld [vmem:[#allocation21_spill] sm:$0xff] }
 0x517   :  { %3379 = vst.msk [vmem:[%s7356_s8 + $0x5c] sm:$0xf] %vm3355_vm8, %v3305_v19  ;;  %v3242_v45 = vmul.f32 %v3169_v38, %v8304_v52  ;;  %v3311_v24 = vpack.c.bf16 %v3238_v51, %v3238_v51  ;;  %v3105_v34 = vadd.f32 %v6565_v61, %v6773_v39  ;;  %v3174_v16 = vmax.f32 %v3101_v4, 0.0  ;;  %v8307_v39 = vld [vmem:[#allocation176_spill] sm:$0xff]  ;;  %v8315_v62 = vld [vmem:[#allocation137_spill] sm:$0xff]  ;;  %v8323_v52 = vld [vmem:[#allocation78_spill] sm:$0xff] }
 0x518   :  { %3380 = vst.msk [vmem:[%s7356_s8 + $0x60] sm:$0xf] %vm3355_vm8, %v3306_v57  ;;  %v3243_v32 = vmul.f32 %v3170_v50, %v8305_v13  ;;  %v3312_v11 = vpack.c.bf16 %v3239_v17, %v3239_v17  ;;  %v3106_v31 = vadd.f32 %v6565_v61, %v6778_v1  ;;  %v3175_v10 = vmax.f32 %v3102_v40, 0.0  ;;  %v8309_v1 = vld [vmem:[#allocation187_spill] sm:$0xff]  ;;  %v8316_v38 = vld [vmem:[#allocation128_spill] sm:$0xff]  ;;  %v8319_v40 = vld [vmem:[#allocation186_spill] sm:$0xff] }
 0x519   :  { %3381 = vst.msk [vmem:[%s7356_s8 + $0x64] sm:$0xf] %vm3355_vm8, %v3307_v48  ;;  %v3244_v18 = vmul.f32 %v3171_v5, %v8306_v3  ;;  %v3313_v46 = vpack.c.bf16 %v3240_v37, %v3240_v37  ;;  %v3107_v33 = vadd.f32 %v6565_v61, %v8307_v39  ;;  %v3176_v9 = vmax.f32 %v3103_v54, 0.0  ;;  %v8317_v48 = vld [vmem:[#allocation77_spill] sm:$0xff]  ;;  %v8326_v39 = vld [vmem:[#allocation123_spill] sm:$0xff] }
 0x51a   :  { %3382 = vst.msk [vmem:[%s7356_s8 + $0x68] sm:$0xf] %vm3355_vm8, %v3308_v29  ;;  %v3245_v47 = vmul.f32 %v3172_v6, %v8308_v35  ;;  %v3314_v30 = vpack.c.bf16 %v3241_v36, %v3241_v36  ;;  %v3108_v23 = vadd.f32 %v6565_v61, %v8309_v1  ;;  %v3177_v28 = vmax.f32 %v3104_v12, 0.0  ;;  %v8320_v37 = vld [vmem:[#allocation53_spill] sm:$0xff]  ;;  %v8321_v6 = vld [vmem:[#allocation138_spill] sm:$0xff] }
 0x51b   :  { %3383 = vst.msk [vmem:[%s7356_s8 + $0x6c] sm:$0xf] %vm3355_vm8, %v3309_v15  ;;  %v3246_v53 = vmul.f32 %v3173_v56, %v8310_v27  ;;  %v3315_v41 = vpack.c.bf16 %v3242_v45, %v3242_v45  ;;  %v3109_v8 = vadd.f32 %v6565_v61, %v8311_v55  ;;  %v3178_v21 = vmax.f32 %v3105_v34, 0.0  ;;  %v8324_v34 = vld [vmem:[#allocation109_spill] sm:$0xff] }
 0x51c   :  { %3384 = vst.msk [vmem:[%s7356_s8 + $0x70] sm:$0xf] %vm3355_vm8, %v3310_v58  ;;  %v3247_v44 = vmul.f32 %v3174_v16, %v8312_v42  ;;  %v3316_v59 = vpack.c.bf16 %v3243_v32, %v3243_v32  ;;  %v3110_v60 = vadd.f32 %v6565_v61, %v8313_v20  ;;  %v3179_v19 = vmax.f32 %v3106_v31, 0.0  ;;  %v8322_v58 = vld [vmem:[#allocation33_spill] sm:$0xff]  ;;  %v8325_v31 = vld [vmem:[#allocation162_spill] sm:$0xff] }
 0x51d   :  { %3385 = vst.msk [vmem:[%s7356_s8 + $0x74] sm:$0xf] %vm3355_vm8, %v3311_v24  ;;  %v3248_v26 = vmul.f32 %v3175_v10, %v8314_v2  ;;  %v3317_v7 = vpack.c.bf16 %v3244_v18, %v3244_v18  ;;  %v3111_v57 = vadd.f32 %v6565_v61, %v8315_v62  ;;  %v3180_v43 = vmax.f32 %v3107_v33, 0.0 }
 0x51e   :  { %3386 = vst.msk [vmem:[%s7356_s8 + $0x78] sm:$0xf] %vm3355_vm8, %v3312_v11  ;;  %v3249_v22 = vmul.f32 %v3176_v9, %v8316_v38  ;;  %v3318_v51 = vpack.c.bf16 %v3245_v47, %v3245_v47  ;;  %v3112_v4 = vadd.f32 %v6565_v61, %v8317_v48  ;;  %v3181_v50 = vmax.f32 %v3108_v23, 0.0 }
 0x51f   :  { %3387 = vst.msk [vmem:[%s7356_s8 + $0x7c] sm:$0xf] %vm3355_vm8, %v3313_v46  ;;  %v3250_v17 = vmul.f32 %v3177_v28, %v8318_v63  ;;  %v3319_v29 = vpack.c.bf16 %v3246_v53, %v3246_v53  ;;  %v3113_v5 = vadd.f32 %v6565_v61, %v8319_v40  ;;  %v3182_v25 = vmax.f32 %v3109_v8, 0.0  ;;  %v8330_v53 = vld [vmem:[#allocation57_spill] sm:$0xff]  ;;  %v8331_v8 = vld [vmem:[#allocation99_spill] sm:$0xff] }
 0x520   :  { %3388 = vst.msk [vmem:[%s7356_s8 + $0x80] sm:$0xf] %vm3355_vm8, %v3314_v30  ;;  %v3251_v15 = vmul.f32 %v3178_v21, %v8320_v37  ;;  %v3320_v54 = vpack.c.bf16 %v3247_v44, %v3247_v44  ;;  %v3114_v0 = vadd.f32 %v6565_v61, %v8321_v6  ;;  %v3183_v36 = vmax.f32 %v3110_v60, 0.0  ;;  %v8328_v30 = vld [vmem:[#allocation62_spill] sm:$0xff]  ;;  %v8332_v44 = vld [vmem:[#allocation40_spill] sm:$0xff]  ;;  %v8333_v60 = vld [vmem:[#allocation79_spill] sm:$0xff] }
 0x521   :  { %3389 = vst.msk [vmem:[%s7356_s8 + $0x84] sm:$0xf] %vm3355_vm8, %v3315_v41  ;;  %v3252_v12 = vmul.f32 %v3179_v19, %v8322_v58  ;;  %v3321_v56 = vpack.c.bf16 %v3248_v26, %v3248_v26  ;;  %v3115_v45 = vadd.f32 %v6565_v61, %v8323_v52  ;;  %v3184_v24 = vmax.f32 %v3111_v57, 0.0  ;;  %v8334_v26 = vld [vmem:[#allocation126_spill] sm:$0xff]  ;;  %v8335_v57 = vld [vmem:[#allocation80_spill] sm:$0xff] }
 0x522   :  { %3390 = vst.msk [vmem:[%s7356_s8 + $0x88] sm:$0xf] %vm3355_vm8, %v3316_v59  ;;  %v3253_v16 = vmul.f32 %v3180_v43, %v8324_v34  ;;  %v3322_v13 = vpack.c.bf16 %v3249_v22, %v3249_v22  ;;  %v3116_v32 = vadd.f32 %v6565_v61, %v6821_v49  ;;  %v3185_v11 = vmax.f32 %v3112_v4, 0.0  ;;  %v8327_v49 = vld [vmem:[#allocation127_spill] sm:$0xff]  ;;  %v8336_v22 = vld [vmem:[#allocation65_spill] sm:$0xff]  ;;  %v8337_v4 = vld [vmem:[#allocation140_spill] sm:$0xff] }
 0x523   :  { %3391 = vst.msk [vmem:[%s7356_s8 + $0x8c] sm:$0xf] %vm3355_vm8, %v3317_v7  ;;  %v3254_v10 = vmul.f32 %v3181_v50, %v8325_v31  ;;  %v3323_v3 = vpack.c.bf16 %v3250_v17, %v3250_v17  ;;  %v3117_v18 = vadd.f32 %v6565_v61, %v6826_v14  ;;  %v3186_v46 = vmax.f32 %v3113_v5, 0.0  ;;  %v8329_v14 = vld [vmem:[#allocation180_spill] sm:$0xff]  ;;  %v8338_v17 = vld [vmem:[#allocation165_spill] sm:$0xff] }
 0x524   :  { %3392 = vst.msk [vmem:[%s7356_s8 + $0x90] sm:$0xf] %vm3355_vm8, %v3318_v51  ;;  %v3255_v33 = vmul.f32 %v3182_v25, %v8326_v39  ;;  %v3324_v9 = vpack.c.bf16 %v3251_v15, %v3251_v15  ;;  %v3118_v35 = vadd.f32 %v6565_v61, %v8327_v49  ;;  %v3187_v47 = vmax.f32 %v3114_v0, 0.0  ;;  %v8339_v5 = vld [vmem:[#allocation81_spill] sm:$0xff]  ;;  %v8340_v15 = vld [vmem:[#allocation39_spill] sm:$0xff]  ;;  %v8341_v0 = vld [vmem:[#allocation188_spill] sm:$0xff] }
 0x525   :  { %3393 = vst.msk [vmem:[%s7356_s8 + $0x94] sm:$0xf] %vm3355_vm8, %v3319_v29  ;;  %v3256_v1 = vmul.f32 %v3183_v36, %v8328_v30  ;;  %v3325_v23 = vpack.c.bf16 %v3252_v12, %v3252_v12  ;;  %v3119_v28 = vadd.f32 %v6565_v61, %v8329_v14  ;;  %v3188_v27 = vmax.f32 %v3115_v45, 0.0  ;;  %v8342_v12 = vld [vmem:[#allocation129_spill] sm:$0xff]  ;;  %v8346_v39 = vld [vmem:[#allocation38_spill] sm:$0xff] }
 0x526   :  { %3394 = vst.msk [vmem:[%s7356_s8 + $0x98] sm:$0xf] %vm3355_vm8, %v3320_v54  ;;  %v3257_v41 = vmul.f32 %v3184_v24, %v8330_v53  ;;  %v3326_v55 = vpack.c.bf16 %v3253_v16, %v3253_v16  ;;  %v3120_v21 = vadd.f32 %v6565_v61, %v8331_v8  ;;  %v3189_v42 = vmax.f32 %v3116_v32, 0.0  ;;  %v8343_v24 = vld [vmem:[#allocation68_spill] sm:$0xff]  ;;  %v8347_v49 = vld [vmem:[#allocation185_spill] sm:$0xff]  ;;  %v8352_v8 = vld [vmem:[#allocation54_spill] sm:$0xff] }
 0x527   :  { %3395 = vst.msk [vmem:[%s7356_s8 + $0x9c] sm:$0xf] %vm3355_vm8, %v3321_v56  ;;  %v3258_v59 = vmul.f32 %v3185_v11, %v8332_v44  ;;  %v3327_v20 = vpack.c.bf16 %v3254_v10, %v3254_v10  ;;  %v3121_v19 = vadd.f32 %v6565_v61, %v8333_v60  ;;  %v3190_v2 = vmax.f32 %v3117_v18, 0.0  ;;  %v8345_v10 = vld [vmem:[#allocation170_spill] sm:$0xff] }
 0x528   :  { %3396 = vst.msk [vmem:[%s7356_s8 + $0xa0] sm:$0xf] %vm3355_vm8, %v3322_v13  ;;  %v3259_v7 = vmul.f32 %v3186_v46, %v8334_v26  ;;  %v3328_v62 = vpack.c.bf16 %v3255_v33, %v3255_v33  ;;  %v3122_v43 = vadd.f32 %v6565_v61, %v8335_v57  ;;  %v3191_v38 = vmax.f32 %v3118_v35, 0.0  ;;  %v8353_v44 = vld [vmem:[#allocation70_spill] sm:$0xff] }
 0x529   :  { %3397 = vst.msk [vmem:[%s7356_s8 + $0xa4] sm:$0xf] %vm3355_vm8, %v3323_v3  ;;  %v3260_v51 = vmul.f32 %v3187_v47, %v8336_v22  ;;  %v3329_v48 = vpack.c.bf16 %v3256_v1, %v3256_v1  ;;  %v3123_v50 = vadd.f32 %v6565_v61, %v8337_v4  ;;  %v3192_v63 = vmax.f32 %v3119_v28, 0.0  ;;  %v8348_v47 = vld [vmem:[#allocation63_spill] sm:$0xff]  ;;  %v8350_v28 = vld [vmem:[#allocation173_spill] sm:$0xff]  ;;  %v8358_v22 = vld [vmem:[#allocation2_spill] sm:$0xff] }
 0x52a   :  { %3398 = vst.msk [vmem:[%s7356_s8 + $0xa8] sm:$0xf] %vm3355_vm8, %v3324_v9  ;;  %v3261_v29 = vmul.f32 %v3188_v27, %v8338_v17  ;;  %v3330_v40 = vpack.c.bf16 %v3257_v41, %v3257_v41  ;;  %v3124_v25 = vadd.f32 %v6565_v61, %v8339_v5  ;;  %v3193_v37 = vmax.f32 %v3120_v21, 0.0  ;;  %v8351_v41 = vld [vmem:[#allocation67_spill] sm:$0xff]  ;;  %v8359_v4 = vld [vmem:[#allocation182_spill] sm:$0xff] }
 0x52b   :  { %3399 = vst.msk [vmem:[%s7356_s8 + $0xac] sm:$0xf] %vm3355_vm8, %v3325_v23  ;;  %v3262_v54 = vmul.f32 %v3189_v42, %v8340_v15  ;;  %v3331_v6 = vpack.c.bf16 %v3258_v59, %v3258_v59  ;;  %v3125_v36 = vadd.f32 %v6565_v61, %v8341_v0  ;;  %v3194_v58 = vmax.f32 %v3121_v19, 0.0  ;;  %v8344_v61 = vld [vmem:[#allocation169_spill] sm:$0xff]  ;;  %v8349_v23 = vld [vmem:[#allocation64_spill] sm:$0xff] }
 0x52c   :  { %3400 = vst.msk [vmem:[%s7356_s8 + $0xb0] sm:$0xf] %vm3355_vm8, %v3326_v55  ;;  %v3263_v56 = vmul.f32 %v3190_v2, %v8342_v12  ;;  %v3332_v52 = vpack.c.bf16 %v3259_v7, %v3259_v7  ;;  %v3195_v45 = vmax.f32 %v3122_v43, 0.0  ;;  %v3264_v34 = vmul.f32 %v3191_v38, %v8343_v24  ;;  %v8355_v2 = vld [vmem:[#allocation134_spill] sm:$0xff]  ;;  %v8356_v7 = vld [vmem:[#allocation177_spill] sm:$0xff]  ;;  %v8365_v12 = vld [vmem:[#allocation124_spill] sm:$0xff] }
 0x52d   :  { %3401 = vst.msk [vmem:[%s7356_s8 + $0xb4] sm:$0xf] %vm3355_vm8, %v3327_v20  ;;  %v3333_v16 = vpack.c.bf16 %v3260_v51, %v3260_v51  ;;  %v3196_v13 = vmax.f32 %v3123_v50, 0.0  ;;  %v3265_v32 = vmul.f32 %v3192_v63, %v8344_v61  ;;  %v3334_v11 = vpack.c.bf16 %v3261_v29, %v3261_v29  ;;  %v8354_v20 = vld [vmem:[#allocation66_spill] sm:$0xff]  ;;  %v8360_v63 = vld [vmem:[#allocation69_spill] sm:$0xff] }
 0x52e   :  { %3402 = vst.msk [vmem:[%s7356_s8 + $0xb8] sm:$0xf] %vm3355_vm8, %v3328_v62  ;;  %v3197_v31 = vmax.f32 %v3124_v25, 0.0  ;;  %v3266_v3 = vmul.f32 %v3193_v37, %v8345_v10  ;;  %v3335_v18 = vpack.c.bf16 %v3262_v54, %v3262_v54  ;;  %v3198_v46 = vmax.f32 %v3125_v36, 0.0  ;;  %v8357_v43 = vld [vmem:[#allocation74_spill] sm:$0xff]  ;;  %v8362_v25 = vld [vmem:[#allocation181_spill] sm:$0xff] }
 0x52f   :  { %3403 = vst.msk [vmem:[%s7356_s8 + $0xbc] sm:$0xf] %vm3355_vm8, %v3329_v48  ;;  %v3267_v33 = vmul.f32 %v3194_v58, %v8346_v39  ;;  %v3336_v9 = vpack.c.bf16 %v3263_v56, %v3263_v56  ;;  %v3199_v35 = vmax.f32 %v8347_v49, 0.0  ;;  %v3268_v30 = vmul.f32 %v3195_v45, %v8348_v47  ;;  %v8363_v54 = vld [vmem:[#allocation75_spill] sm:$0xff]  ;;  %v8364_v0 = vld [vmem:[#allocation61_spill] sm:$0xff] }
 0x530   :  { %3404 = vst.msk [vmem:[%s7356_s8 + $0xc0] sm:$0xf] %vm3355_vm8, %v3330_v40  ;;  %v3337_v1 = vpack.c.bf16 %v3264_v34, %v3264_v34  ;;  %v3200_v14 = vmax.f32 %v8349_v23, 0.0  ;;  %v3269_v27 = vmul.f32 %v3196_v13, %v8350_v28  ;;  %v3338_v53 = vpack.c.bf16 %v3265_v32, %v3265_v32  ;;  %v8361_v40 = vld [vmem:[#allocation135_spill] sm:$0xff]  ;;  %v8368_v61 = vld [vmem:[#allocation121_spill] sm:$0xff] }
 0x531   :  { %3405 = vst.msk [vmem:[%s7356_s8 + $0xc4] sm:$0xf] %vm3355_vm8, %v3331_v6  ;;  %v3201_v55 = vmax.f32 %v8351_v41, 0.0  ;;  %v3270_v21 = vmul.f32 %v3197_v31, %v8352_v8  ;;  %v3339_v42 = vpack.c.bf16 %v3266_v3, %v3266_v3  ;;  %v3202_v59 = vmax.f32 %v8353_v44, 0.0  ;;  %v8367_v34 = vld [vmem:[#allocation71_spill] sm:$0xff]  ;;  %v8369_v31 = vld [vmem:[#allocation172_spill] sm:$0xff] }
 0x532   :  { %3406 = vst.msk [vmem:[%s7356_s8 + $0xc8] sm:$0xf] %vm3355_vm8, %v3332_v52  ;;  %v3271_v60 = vmul.f32 %v3198_v46, %v8354_v20  ;;  %v3340_v19 = vpack.c.bf16 %v3267_v33, %v3267_v33  ;;  %v3203_v26 = vmax.f32 %v8355_v2, 0.0  ;;  %v3272_v62 = vmul.f32 %v3199_v35, %v8356_v7  ;;  %v8366_v52 = vld [vmem:[#allocation132_spill] sm:$0xff] }
 0x533   :  { %3407 = vst.msk [vmem:[%s7356_s8 + $0xcc] sm:$0xf] %vm3355_vm8, %v3333_v16  ;;  %v3341_v57 = vpack.c.bf16 %v3268_v30, %v3268_v30  ;;  %v3204_v38 = vmax.f32 %v8357_v43, 0.0  ;;  %v3273_v51 = vmul.f32 %v3200_v14, %v8358_v22  ;;  %v3342_v48 = vpack.c.bf16 %v3269_v27, %v3269_v27 }
 0x534   :  { %3408 = vst.msk [vmem:[%s7356_s8 + $0xd0] sm:$0xf] %vm3355_vm8, %v3334_v11  ;;  %v3205_v50 = vmax.f32 %v8359_v4, 0.0  ;;  %v3274_v17 = vmul.f32 %v3201_v55, %v8360_v63  ;;  %v3343_v29 = vpack.c.bf16 %v3270_v21, %v3270_v21  ;;  %v3206_v5 = vmax.f32 %v8361_v40, 0.0 }
 0x535   :  { %3409 = vst.msk [vmem:[%s7356_s8 + $0xd4] sm:$0xf] %vm3355_vm8, %v3335_v18  ;;  %v3275_v37 = vmul.f32 %v3202_v59, %v8362_v25  ;;  %v3344_v15 = vpack.c.bf16 %v3271_v60, %v3271_v60  ;;  %v3207_v6 = vmax.f32 %v8363_v54, 0.0  ;;  %v3276_v36 = vmul.f32 %v3203_v26, %v8364_v0  ;;  %v8370_v18 = vld [vmem:[#allocation72_spill] sm:$0xff] }
 0x536   :  { %3410 = vst.msk [vmem:[%s7356_s8 + $0xd8] sm:$0xf] %vm3355_vm8, %v3336_v9  ;;  %v3345_v58 = vpack.c.bf16 %v3272_v62, %v3272_v62  ;;  %v3208_v56 = vmax.f32 %v8365_v12, 0.0  ;;  %v3277_v45 = vmul.f32 %v3204_v38, %v8366_v52  ;;  %v3346_v24 = vpack.c.bf16 %v3273_v51, %v3273_v51 }
 0x537   :  { %3411 = vst.msk [vmem:[%s7356_s8 + $0xdc] sm:$0xf] %vm3355_vm8, %v3337_v1  ;;  %v3278_v16 = vmul.f32 %v3205_v50, %v8367_v34  ;;  %v3347_v13 = vpack.c.bf16 %v3274_v17, %v3274_v17  ;;  %v3279_v32 = vmul.f32 %v3206_v5, %v8368_v61  ;;  %v3348_v11 = vpack.c.bf16 %v3275_v37, %v3275_v37 }
 0x538   :  { %3412 = vst.msk [vmem:[%s7356_s8 + $0xe0] sm:$0xf] %vm3355_vm8, %v3338_v53  ;;  %v3280_v10 = vmul.f32 %v3207_v6, %v8369_v31  ;;  %v3349_v3 = vpack.c.bf16 %v3276_v36, %v3276_v36  ;;  %v3281_v46 = vmul.f32 %v3208_v56, %v8370_v18  ;;  %v3350_v39 = vpack.c.bf16 %v3277_v45, %v3277_v45 }
 0x539   :  { %3413 = vst.msk [vmem:[%s7356_s8 + $0xe4] sm:$0xf] %vm3355_vm8, %v3339_v42  ;;  %v3351_v33 = vpack.c.bf16 %v3278_v16, %v3278_v16  ;;  %v3352_v9 = vpack.c.bf16 %v3279_v32, %v3279_v32 }
 0x53a   :  { %3414 = vst.msk [vmem:[%s7356_s8 + $0xe8] sm:$0xf] %vm3355_vm8, %v3340_v19  ;;  %v3353_v49 = vpack.c.bf16 %v3280_v10, %v3280_v10  ;;  %v3354_v35 = vpack.c.bf16 %v3281_v46, %v3281_v46 }
 0x53b   :  { %3415 = vst.msk [vmem:[%s7356_s8 + $0xec] sm:$0xf] %vm3355_vm8, %v3341_v57 }
 0x53c   :  { %3416 = vst.msk [vmem:[%s7356_s8 + $0xf0] sm:$0xf] %vm3355_vm8, %v3342_v48 }
 0x53d   :  { %3417 = vst.msk [vmem:[%s7356_s8 + $0xf4] sm:$0xf] %vm3355_vm8, %v3343_v29 }
 0x53e   :  { %3418 = vst.msk [vmem:[%s7356_s8 + $0xf8] sm:$0xf] %vm3355_vm8, %v3344_v15 }
 0x53f   :  { %3419 = vst.msk [vmem:[%s7356_s8 + $0xfc] sm:$0xf] %vm3355_vm8, %v3345_v58 }
 0x540   :  { %3420 = vst.msk [vmem:[%s7356_s8 + $0x100] sm:$0xf] %vm3355_vm8, %v3346_v24 }
 0x541   :  { %3421 = vst.msk [vmem:[%s7356_s8 + $0x104] sm:$0xf] %vm3355_vm8, %v3347_v13 }
 0x542   :  { %3422 = vst.msk [vmem:[%s7356_s8 + $0x108] sm:$0xf] %vm3355_vm8, %v3348_v11 }
 0x543   :  { %3423 = vst.msk [vmem:[%s7356_s8 + $0x10c] sm:$0xf] %vm3355_vm8, %v3349_v3 }
 0x544   :  { %3424 = vst.msk [vmem:[%s7356_s8 + $0x110] sm:$0xf] %vm3355_vm8, %v3350_v39 }
 0x545   :  { %3425 = vst.msk [vmem:[%s7356_s8 + $0x114] sm:$0xf] %vm3355_vm8, %v3351_v33 }
 0x546   :  { %3426 = vst.msk [vmem:[%s7356_s8 + $0x118] sm:$0xf] %vm3355_vm8, %v3352_v9 }
 0x547   :  { %3427 = vst.msk [vmem:[%s7356_s8 + $0x11c] sm:$0xf] %vm3355_vm8, %v3353_v49 }
 0x548   :  { %3429 = vst.msk [vmem:[%s7356_s8 + $0x120] sm:$0x1] %vm3428_vm9, %v3354_v35 }

// kernel: generator_forward.9
= control target key start
LH: loop header
LB: loop body
LE: loop exit
PB: predicated region body
PF: predicated region fallthrough
CT: control target
= control target key end

     0   :  { %vm984_vm0 = vcmask 261120   ;;  %vm2362_vm1 = vcmask 97280   ;;  %vm2635_vm2 = vcmask 91136   ;;  %s5680_s1 = inlined_call_operand.vmem [shape: bf16[32,12], index: 1, kind: input, shape index: {}]   ;;  %s5681_s0 = inlined_call_operand.vmem [shape: bf16[2178,32], index: 0, kind: input, shape index: {}]   ;;  %s5682_s2 = inlined_call_operand.vmem [shape: f32[2178,12], index: 2, kind: output, shape index: {}]  }
   0x1   :  { %v3467_v0 = vld [vmem:[%s5680_s1 + $0x8] sm:$0xff]  ;;  %v3466_v1 = vld [vmem:[%s5680_s1] sm:$0xff]  ;;  %v3364_v2 = vld [vmem:[%s5681_s0 + $0x110] sm:$0xff] }
   0x2   :  { %3468 = vmatpush.bf16.msra.mxu1 %v3467_v0  ;;  %3469 = vmatpush.bf16.msra.mxu2 %v3467_v0  ;;  %v3399_v3 = vld [vmem:[%s5681_s0 + $0x228] sm:$0xff]  ;;  %v3330_v4 = vld [vmem:[%s5681_s0] sm:$0xff]  ;;  %v3365_v6 = vld [vmem:[%s5681_s0 + $0x118] sm:$0xff] }
   0x3   :  { %1402 = vmatpush.bf16.msra.mxu0 %v3467_v0  ;;  %3470 = vmatpush.bf16.msra.mxu3 %v3467_v0  ;;  %v3434_v5 = vld [vmem:[%s5681_s0 + $0x340] sm:$0xff]  ;;  %v3400_v7 = vld [vmem:[%s5681_s0 + $0x230] sm:$0xff]  ;;  %v3331_v8 = vld [vmem:[%s5681_s0 + $0x8] sm:$0xff] }
   0x4   :  { %v3435_v9 = vld [vmem:[%s5681_s0 + $0x348] sm:$0xff]  ;;  %v3366_v10 = vld [vmem:[%s5681_s0 + $0x120] sm:$0xff]  ;;  %v3401_v11 = vld [vmem:[%s5681_s0 + $0x238] sm:$0xff] }
   0x5   :  { %v3332_v12 = vld [vmem:[%s5681_s0 + $0x10] sm:$0xff]  ;;  %v3367_v14 = vld [vmem:[%s5681_s0 + $0x128] sm:$0xff]  ;;  %v3402_v15 = vld [vmem:[%s5681_s0 + $0x240] sm:$0xff] }
   0x6   :  { %3471 = vmatpush.bf16.msra.mxu1 %v3466_v1  ;;  %3472 = vmatpush.bf16.msra.mxu2 %v3466_v1  ;;  %v3436_v13 = vld [vmem:[%s5681_s0 + $0x350] sm:$0xff]  ;;  %v3333_v16 = vld [vmem:[%s5681_s0 + $0x18] sm:$0xff]  ;;  %v3403_v19 = vld [vmem:[%s5681_s0 + $0x248] sm:$0xff] }
   0x7   :  { %1403 = vmatpush.bf16.msra.mxu0 %v3466_v1  ;;  %3473 = vmatpush.bf16.msra.mxu3 %v3466_v1  ;;  %v3437_v17 = vld [vmem:[%s5681_s0 + $0x358] sm:$0xff]  ;;  %v3368_v18 = vld [vmem:[%s5681_s0 + $0x130] sm:$0xff]  ;;  %v3334_v20 = vld [vmem:[%s5681_s0 + $0x20] sm:$0xff] }
   0x8   :  { %v3438_v21 = vld [vmem:[%s5681_s0 + $0x360] sm:$0xff]  ;;  %v3369_v22 = vld [vmem:[%s5681_s0 + $0x138] sm:$0xff]  ;;  %v3404_v23 = vld [vmem:[%s5681_s0 + $0x250] sm:$0xff] }
   0x9   :  { %3227 = vmatmul.msk.bf16.vlgmr.msra.gmra.mxu1 %vm984_vm0, %v3364_v2  ;;  %3262 = vmatmul.msk.bf16.vlgmr.msra.gmra.mxu2 %vm984_vm0, %v3399_v3  ;;  %v3335_v24 = vld [vmem:[%s5681_s0 + $0x28] sm:$0xff]  ;;  %v3370_v26 = vld [vmem:[%s5681_s0 + $0x140] sm:$0xff]  ;;  %v3405_v27 = vld [vmem:[%s5681_s0 + $0x258] sm:$0xff] }
   0xa   :  { %3193 = vmatmul.msk.bf16.vlgmr.msra.gmra.mxu0 %vm984_vm0, %v3330_v4  ;;  %3297 = vmatmul.msk.bf16.vlgmr.msra.gmra.mxu3 %vm984_vm0, %v3434_v5  ;;  %v3439_v25 = vld [vmem:[%s5681_s0 + $0x368] sm:$0xff]  ;;  %v3336_v28 = vld [vmem:[%s5681_s0 + $0x30] sm:$0xff]  ;;  %v3406_v31 = vld [vmem:[%s5681_s0 + $0x260] sm:$0xff] }
   0xb   :  { %v3440_v29 = vld [vmem:[%s5681_s0 + $0x370] sm:$0xff]  ;;  %v3371_v30 = vld [vmem:[%s5681_s0 + $0x148] sm:$0xff]  ;;  %v3337_v32 = vld [vmem:[%s5681_s0 + $0x38] sm:$0xff] }
   0xc   :  { %v3441_v33 = vld [vmem:[%s5681_s0 + $0x378] sm:$0xff]  ;;  %v3372_v34 = vld [vmem:[%s5681_s0 + $0x150] sm:$0xff]  ;;  %v3407_v35 = vld [vmem:[%s5681_s0 + $0x268] sm:$0xff] }
   0xd   :  { %v3338_v37 = vld [vmem:[%s5681_s0 + $0x40] sm:$0xff]  ;;  %v3373_v49 = vld [vmem:[%s5681_s0 + $0x158] sm:$0xff]  ;;  %v3408_v50 = vld [vmem:[%s5681_s0 + $0x270] sm:$0xff] }
   0xe   :  { %v3442_v39 = vld [vmem:[%s5681_s0 + $0x380] sm:$0xff]  ;;  %v3339_v54 = vld [vmem:[%s5681_s0 + $0x48] sm:$0xff] }
   0xf   :  { %v3443_v56 = vld [vmem:[%s5681_s0 + $0x388] sm:$0xff]  ;;  %v3374_v5 = vld [vmem:[%s5681_s0 + $0x160] sm:$0xff] }
  0x19   :  { %3228 = vmatmul.msk.bf16.gmra.mxu1 %vm984_vm0, %v3365_v6  ;;  %3263 = vmatmul.msk.bf16.gmra.mxu2 %vm984_vm0, %v3400_v7  ;;  %v3409_v6 = vld [vmem:[%s5681_s0 + $0x278] sm:$0xff] }
  0x1a   :  { %3194 = vmatmul.msk.bf16.gmra.mxu0 %vm984_vm0, %v3331_v8  ;;  %3298 = vmatmul.msk.bf16.gmra.mxu3 %vm984_vm0, %v3435_v9 }
  0x29   :  { %3229 = vmatmul.msk.bf16.gmra.mxu1 %vm984_vm0, %v3366_v10  ;;  %3264 = vmatmul.msk.bf16.gmra.mxu2 %vm984_vm0, %v3401_v11  ;;  %v3340_v10 = vld [vmem:[%s5681_s0 + $0x50] sm:$0xff] }
  0x2a   :  { %3195 = vmatmul.msk.bf16.gmra.mxu0 %vm984_vm0, %v3332_v12  ;;  %3299 = vmatmul.msk.bf16.gmra.mxu3 %vm984_vm0, %v3436_v13  ;;  %v3444_v12 = vld [vmem:[%s5681_s0 + $0x390] sm:$0xff] }
  0x39   :  { %3230 = vmatmul.msk.bf16.gmra.mxu1 %vm984_vm0, %v3367_v14  ;;  %3265 = vmatmul.msk.bf16.gmra.mxu2 %vm984_vm0, %v3402_v15 }
  0x3a   :  { %3196 = vmatmul.msk.bf16.gmra.mxu0 %vm984_vm0, %v3333_v16  ;;  %3300 = vmatmul.msk.bf16.gmra.mxu3 %vm984_vm0, %v3437_v17 }
  0x49   :  { %3231 = vmatmul.msk.bf16.gmra.mxu1 %vm984_vm0, %v3368_v18  ;;  %3266 = vmatmul.msk.bf16.gmra.mxu2 %vm984_vm0, %v3403_v19 }
  0x4a   :  { %3197 = vmatmul.msk.bf16.gmra.mxu0 %vm984_vm0, %v3334_v20  ;;  %3301 = vmatmul.msk.bf16.gmra.mxu3 %vm984_vm0, %v3438_v21 }
  0x59   :  { %3232 = vmatmul.msk.bf16.gmra.mxu1 %vm984_vm0, %v3369_v22  ;;  %3267 = vmatmul.msk.bf16.gmra.mxu2 %vm984_vm0, %v3404_v23 }
  0x5a   :  { %3198 = vmatmul.msk.bf16.gmra.mxu0 %vm984_vm0, %v3335_v24  ;;  %3302 = vmatmul.msk.bf16.gmra.mxu3 %vm984_vm0, %v3439_v25  ;;  %v3375_v25 = vld [vmem:[%s5681_s0 + $0x168] sm:$0xff] }
  0x69   :  { %3233 = vmatmul.msk.bf16.gmra.mxu1 %vm984_vm0, %v3370_v26  ;;  %3268 = vmatmul.msk.bf16.gmra.mxu2 %vm984_vm0, %v3405_v27  ;;  %v3410_v26 = vld [vmem:[%s5681_s0 + $0x280] sm:$0xff] }
  0x6a   :  { %3199 = vmatmul.msk.bf16.gmra.mxu0 %vm984_vm0, %v3336_v28  ;;  %3303 = vmatmul.msk.bf16.gmra.mxu3 %vm984_vm0, %v3440_v29 }
  0x79   :  { %3234 = vmatmul.msk.bf16.gmra.mxu1 %vm984_vm0, %v3371_v30  ;;  %3269 = vmatmul.msk.bf16.gmra.mxu2 %vm984_vm0, %v3406_v31  ;;  %v3341_v30 = vld [vmem:[%s5681_s0 + $0x58] sm:$0xff] }
  0x7a   :  { %3200 = vmatmul.msk.bf16.gmra.mxu0 %vm984_vm0, %v3337_v32  ;;  %3304 = vmatmul.msk.bf16.gmra.mxu3 %vm984_vm0, %v3441_v33  ;;  %v3445_v32 = vld [vmem:[%s5681_s0 + $0x398] sm:$0xff] }
  0x86   :  { %v1575_v36 = vpop.f32.mrf.mxu1 }
  0x87   :  { %3474 = vtanh.f32 %v1575_v36  ;;  %v1405_v38 = vpop.f32.mrf.mxu0 }
  0x88   :  { %3476 = vtanh.f32 %v1405_v38 }
  0x89   :  { %3235 = vmatmul.msk.bf16.gmra.mxu1 %vm984_vm0, %v3372_v34  ;;  %3270 = vmatmul.msk.bf16.gmra.mxu2 %vm984_vm0, %v3407_v35 }
  0x8a   :  { %3201 = vmatmul.msk.bf16.gmra.mxu0 %vm984_vm0, %v3338_v37  ;;  %3305 = vmatmul.msk.bf16.gmra.mxu3 %vm984_vm0, %v3442_v39 }
  0x8c   :  { %v1750_v40 = vpop.f32.mrf.mxu2 }
  0x8d   :  { %v3475_v41 = vpop.eup %3474  ;;  %3478 = vtanh.f32 %v1750_v40  ;;  %v1925_v42 = vpop.f32.mrf.mxu3 }
  0x8e   :  { %v3477_v43 = vpop.eup %3476  ;;  %2431 = vst.msk [vmem:[%s5682_s2 + $0x220] sm:$0xff] %vm2362_vm1, %v3475_v41  ;;  %v1577_v44 = vpop.f32.mrf.mxu1 }
  0x8f   :  { %3480 = vtanh.f32 %v1577_v44  ;;  %2363 = vst.msk [vmem:[%s5682_s2] sm:$0xff] %vm2362_vm1, %v3477_v43  ;;  %v1407_v45 = vpop.f32.mrf.mxu0 }
  0x90   :  { %3482 = vtanh.f32 %v1407_v45  ;;  %v3376_v45 = vld [vmem:[%s5681_s0 + $0x170] sm:$0xff] }
  0x91   :  { %3484 = vtanh.f32 %v1925_v42 }
  0x93   :  { %v3479_v46 = vpop.eup %3478 }
  0x94   :  { %2501 = vst.msk [vmem:[%s5682_s2 + $0x450] sm:$0xff] %vm2362_vm1, %v3479_v46  ;;  %v1752_v47 = vpop.f32.mrf.mxu2  ;;  %v3411_v46 = vld [vmem:[%s5681_s0 + $0x288] sm:$0xff] }
  0x95   :  { %v3481_v48 = vpop.eup %3480  ;;  %3486 = vtanh.f32 %v1752_v47  ;;  %v1927_v51 = vpop.f32.mrf.mxu3 }
  0x96   :  { %v3483_v52 = vpop.eup %3482  ;;  %2432 = vst.msk [vmem:[%s5682_s2 + $0x228] sm:$0xff] %vm2362_vm1, %v3481_v48  ;;  %v1580_v53 = vpop.f32.mrf.mxu1  ;;  %3488 = vtanh.f32 %v1927_v51 }
  0x97   :  { %3490 = vtanh.f32 %v1580_v53  ;;  %2364 = vst.msk [vmem:[%s5682_s2 + $0x8] sm:$0xff] %vm2362_vm1, %v3483_v52  ;;  %v1410_v55 = vpop.f32.mrf.mxu0  ;;  %v3485_v57 = vpop.eup %3484  ;;  %v3446_v52 = vld [vmem:[%s5681_s0 + $0x3a0] sm:$0xff] }
  0x98   :  { %3492 = vtanh.f32 %v1410_v55  ;;  %2571 = vst.msk [vmem:[%s5682_s2 + $0x680] sm:$0xff] %vm2362_vm1, %v3485_v57 }
  0x99   :  { %3236 = vmatmul.msk.bf16.gmra.mxu1 %vm984_vm0, %v3373_v49  ;;  %3271 = vmatmul.msk.bf16.gmra.mxu2 %vm984_vm0, %v3408_v50  ;;  %v3342_v50 = vld [vmem:[%s5681_s0 + $0x60] sm:$0xff] }
  0x9a   :  { %3202 = vmatmul.msk.bf16.gmra.mxu0 %vm984_vm0, %v3339_v54  ;;  %3306 = vmatmul.msk.bf16.gmra.mxu3 %vm984_vm0, %v3443_v56 }
  0x9b   :  { %v3487_v58 = vpop.eup %3486 }
  0x9c   :  { %v3489_v59 = vpop.eup %3488  ;;  %2502 = vst.msk [vmem:[%s5682_s2 + $0x458] sm:$0xff] %vm2362_vm1, %v3487_v58  ;;  %v1755_v60 = vpop.f32.mrf.mxu2 }
  0x9d   :  { %v3491_v61 = vpop.eup %3490  ;;  %3494 = vtanh.f32 %v1755_v60  ;;  %2572 = vst.msk [vmem:[%s5682_s2 + $0x688] sm:$0xff] %vm2362_vm1, %v3489_v59  ;;  %v1930_v62 = vpop.f32.mrf.mxu3 }
  0x9e   :  { %v3493_v63 = vpop.eup %3492  ;;  %2433 = vst.msk [vmem:[%s5682_s2 + $0x230] sm:$0xff] %vm2362_vm1, %v3491_v61  ;;  %v1582_v0 = vpop.f32.mrf.mxu1 }
  0x9f   :  { %3496 = vtanh.f32 %v1582_v0  ;;  %2365 = vst.msk [vmem:[%s5682_s2 + $0x10] sm:$0xff] %vm2362_vm1, %v3493_v63  ;;  %v1412_v1 = vpop.f32.mrf.mxu0 }
  0xa0   :  { %3498 = vtanh.f32 %v1412_v1  ;;  %v3377_v1 = vld [vmem:[%s5681_s0 + $0x178] sm:$0xff] }
  0xa1   :  { %3500 = vtanh.f32 %v1930_v62 }
  0xa3   :  { %v3495_v2 = vpop.eup %3494 }
  0xa4   :  { %2503 = vst.msk [vmem:[%s5682_s2 + $0x460] sm:$0xff] %vm2362_vm1, %v3495_v2  ;;  %v1757_v3 = vpop.f32.mrf.mxu2  ;;  %v3412_v2 = vld [vmem:[%s5681_s0 + $0x290] sm:$0xff] }
  0xa5   :  { %v3497_v4 = vpop.eup %3496  ;;  %3502 = vtanh.f32 %v1757_v3  ;;  %v1932_v7 = vpop.f32.mrf.mxu3 }
  0xa6   :  { %v3499_v8 = vpop.eup %3498  ;;  %2434 = vst.msk [vmem:[%s5682_s2 + $0x238] sm:$0xff] %vm2362_vm1, %v3497_v4  ;;  %v1585_v9 = vpop.f32.mrf.mxu1  ;;  %3504 = vtanh.f32 %v1932_v7 }
  0xa7   :  { %3506 = vtanh.f32 %v1585_v9  ;;  %2366 = vst.msk [vmem:[%s5682_s2 + $0x18] sm:$0xff] %vm2362_vm1, %v3499_v8  ;;  %v1415_v11 = vpop.f32.mrf.mxu0  ;;  %v3501_v13 = vpop.eup %3500  ;;  %v3447_v8 = vld [vmem:[%s5681_s0 + $0x3a8] sm:$0xff] }
  0xa8   :  { %3508 = vtanh.f32 %v1415_v11  ;;  %2573 = vst.msk [vmem:[%s5682_s2 + $0x690] sm:$0xff] %vm2362_vm1, %v3501_v13 }
  0xa9   :  { %3237 = vmatmul.msk.bf16.gmra.mxu1 %vm984_vm0, %v3374_v5  ;;  %3272 = vmatmul.msk.bf16.gmra.mxu2 %vm984_vm0, %v3409_v6  ;;  %v3343_v6 = vld [vmem:[%s5681_s0 + $0x68] sm:$0xff] }
  0xaa   :  { %3203 = vmatmul.msk.bf16.gmra.mxu0 %vm984_vm0, %v3340_v10  ;;  %3307 = vmatmul.msk.bf16.gmra.mxu3 %vm984_vm0, %v3444_v12 }
  0xab   :  { %v3503_v14 = vpop.eup %3502 }
  0xac   :  { %v3505_v15 = vpop.eup %3504  ;;  %2504 = vst.msk [vmem:[%s5682_s2 + $0x468] sm:$0xff] %vm2362_vm1, %v3503_v14  ;;  %v1760_v16 = vpop.f32.mrf.mxu2 }
  0xad   :  { %v3507_v17 = vpop.eup %3506  ;;  %3510 = vtanh.f32 %v1760_v16  ;;  %2574 = vst.msk [vmem:[%s5682_s2 + $0x698] sm:$0xff] %vm2362_vm1, %v3505_v15  ;;  %v1935_v18 = vpop.f32.mrf.mxu3 }
  0xae   :  { %v3509_v19 = vpop.eup %3508  ;;  %2435 = vst.msk [vmem:[%s5682_s2 + $0x240] sm:$0xff] %vm2362_vm1, %v3507_v17  ;;  %v1587_v20 = vpop.f32.mrf.mxu1 }
  0xaf   :  { %3512 = vtanh.f32 %v1587_v20  ;;  %2367 = vst.msk [vmem:[%s5682_s2 + $0x20] sm:$0xff] %vm2362_vm1, %v3509_v19  ;;  %v1417_v21 = vpop.f32.mrf.mxu0 }
  0xb0   :  { %3514 = vtanh.f32 %v1417_v21  ;;  %v3378_v21 = vld [vmem:[%s5681_s0 + $0x180] sm:$0xff] }
  0xb1   :  { %3516 = vtanh.f32 %v1935_v18 }
  0xb3   :  { %v3511_v22 = vpop.eup %3510 }
  0xb4   :  { %2505 = vst.msk [vmem:[%s5682_s2 + $0x470] sm:$0xff] %vm2362_vm1, %v3511_v22  ;;  %v1762_v23 = vpop.f32.mrf.mxu2  ;;  %v3413_v22 = vld [vmem:[%s5681_s0 + $0x298] sm:$0xff] }
  0xb5   :  { %v3513_v24 = vpop.eup %3512  ;;  %3518 = vtanh.f32 %v1762_v23  ;;  %v1937_v27 = vpop.f32.mrf.mxu3 }
  0xb6   :  { %v3515_v28 = vpop.eup %3514  ;;  %2436 = vst.msk [vmem:[%s5682_s2 + $0x248] sm:$0xff] %vm2362_vm1, %v3513_v24  ;;  %v1590_v29 = vpop.f32.mrf.mxu1  ;;  %3520 = vtanh.f32 %v1937_v27 }
  0xb7   :  { %3522 = vtanh.f32 %v1590_v29  ;;  %2368 = vst.msk [vmem:[%s5682_s2 + $0x28] sm:$0xff] %vm2362_vm1, %v3515_v28  ;;  %v1420_v31 = vpop.f32.mrf.mxu0  ;;  %v3517_v33 = vpop.eup %3516  ;;  %v3448_v28 = vld [vmem:[%s5681_s0 + $0x3b0] sm:$0xff] }
  0xb8   :  { %3524 = vtanh.f32 %v1420_v31  ;;  %2575 = vst.msk [vmem:[%s5682_s2 + $0x6a0] sm:$0xff] %vm2362_vm1, %v3517_v33 }
  0xb9   :  { %3238 = vmatmul.msk.bf16.gmra.mxu1 %vm984_vm0, %v3375_v25  ;;  %3273 = vmatmul.msk.bf16.gmra.mxu2 %vm984_vm0, %v3410_v26  ;;  %v3344_v26 = vld [vmem:[%s5681_s0 + $0x70] sm:$0xff] }
  0xba   :  { %3204 = vmatmul.msk.bf16.gmra.mxu0 %vm984_vm0, %v3341_v30  ;;  %3308 = vmatmul.msk.bf16.gmra.mxu3 %vm984_vm0, %v3445_v32 }
  0xbb   :  { %v3519_v34 = vpop.eup %3518 }
  0xbc   :  { %v3521_v35 = vpop.eup %3520  ;;  %2506 = vst.msk [vmem:[%s5682_s2 + $0x478] sm:$0xff] %vm2362_vm1, %v3519_v34  ;;  %v1765_v36 = vpop.f32.mrf.mxu2 }
  0xbd   :  { %v3523_v37 = vpop.eup %3522  ;;  %3526 = vtanh.f32 %v1765_v36  ;;  %2576 = vst.msk [vmem:[%s5682_s2 + $0x6a8] sm:$0xff] %vm2362_vm1, %v3521_v35  ;;  %v1940_v38 = vpop.f32.mrf.mxu3 }
  0xbe   :  { %v3525_v39 = vpop.eup %3524  ;;  %2437 = vst.msk [vmem:[%s5682_s2 + $0x250] sm:$0xff] %vm2362_vm1, %v3523_v37  ;;  %v1592_v40 = vpop.f32.mrf.mxu1 }
  0xbf   :  { %3528 = vtanh.f32 %v1592_v40  ;;  %2369 = vst.msk [vmem:[%s5682_s2 + $0x30] sm:$0xff] %vm2362_vm1, %v3525_v39  ;;  %v1422_v41 = vpop.f32.mrf.mxu0 }
  0xc0   :  { %3530 = vtanh.f32 %v1422_v41  ;;  %v3379_v41 = vld [vmem:[%s5681_s0 + $0x188] sm:$0xff] }
  0xc1   :  { %3532 = vtanh.f32 %v1940_v38 }
  0xc3   :  { %v3527_v42 = vpop.eup %3526 }
  0xc4   :  { %2507 = vst.msk [vmem:[%s5682_s2 + $0x480] sm:$0xff] %vm2362_vm1, %v3527_v42  ;;  %v1767_v43 = vpop.f32.mrf.mxu2  ;;  %v3414_v42 = vld [vmem:[%s5681_s0 + $0x2a0] sm:$0xff] }
  0xc5   :  { %v3529_v44 = vpop.eup %3528  ;;  %3534 = vtanh.f32 %v1767_v43  ;;  %v1942_v47 = vpop.f32.mrf.mxu3 }
  0xc6   :  { %v3531_v48 = vpop.eup %3530  ;;  %2438 = vst.msk [vmem:[%s5682_s2 + $0x258] sm:$0xff] %vm2362_vm1, %v3529_v44  ;;  %v1595_v49 = vpop.f32.mrf.mxu1  ;;  %3536 = vtanh.f32 %v1942_v47 }
  0xc7   :  { %3538 = vtanh.f32 %v1595_v49  ;;  %2370 = vst.msk [vmem:[%s5682_s2 + $0x38] sm:$0xff] %vm2362_vm1, %v3531_v48  ;;  %v1425_v51 = vpop.f32.mrf.mxu0  ;;  %v3533_v53 = vpop.eup %3532  ;;  %v3449_v48 = vld [vmem:[%s5681_s0 + $0x3b8] sm:$0xff] }
  0xc8   :  { %3540 = vtanh.f32 %v1425_v51  ;;  %2577 = vst.msk [vmem:[%s5682_s2 + $0x6b0] sm:$0xff] %vm2362_vm1, %v3533_v53 }
  0xc9   :  { %3239 = vmatmul.msk.bf16.gmra.mxu1 %vm984_vm0, %v3376_v45  ;;  %3274 = vmatmul.msk.bf16.gmra.mxu2 %vm984_vm0, %v3411_v46  ;;  %v3345_v46 = vld [vmem:[%s5681_s0 + $0x78] sm:$0xff] }
  0xca   :  { %3205 = vmatmul.msk.bf16.gmra.mxu0 %vm984_vm0, %v3342_v50  ;;  %3309 = vmatmul.msk.bf16.gmra.mxu3 %vm984_vm0, %v3446_v52 }
  0xcb   :  { %v3535_v54 = vpop.eup %3534 }
  0xcc   :  { %v3537_v55 = vpop.eup %3536  ;;  %2508 = vst.msk [vmem:[%s5682_s2 + $0x488] sm:$0xff] %vm2362_vm1, %v3535_v54  ;;  %v1770_v56 = vpop.f32.mrf.mxu2 }
  0xcd   :  { %v3539_v57 = vpop.eup %3538  ;;  %3542 = vtanh.f32 %v1770_v56  ;;  %2578 = vst.msk [vmem:[%s5682_s2 + $0x6b8] sm:$0xff] %vm2362_vm1, %v3537_v55  ;;  %v1945_v58 = vpop.f32.mrf.mxu3 }
  0xce   :  { %v3541_v59 = vpop.eup %3540  ;;  %2439 = vst.msk [vmem:[%s5682_s2 + $0x260] sm:$0xff] %vm2362_vm1, %v3539_v57  ;;  %v1597_v60 = vpop.f32.mrf.mxu1 }
  0xcf   :  { %3544 = vtanh.f32 %v1597_v60  ;;  %2371 = vst.msk [vmem:[%s5682_s2 + $0x40] sm:$0xff] %vm2362_vm1, %v3541_v59  ;;  %v1427_v61 = vpop.f32.mrf.mxu0 }
  0xd0   :  { %3546 = vtanh.f32 %v1427_v61  ;;  %v3380_v61 = vld [vmem:[%s5681_s0 + $0x190] sm:$0xff] }
  0xd1   :  { %3548 = vtanh.f32 %v1945_v58 }
  0xd3   :  { %v3543_v62 = vpop.eup %3542 }
  0xd4   :  { %2509 = vst.msk [vmem:[%s5682_s2 + $0x490] sm:$0xff] %vm2362_vm1, %v3543_v62  ;;  %v1772_v63 = vpop.f32.mrf.mxu2  ;;  %v3415_v62 = vld [vmem:[%s5681_s0 + $0x2a8] sm:$0xff] }
  0xd5   :  { %v3545_v0 = vpop.eup %3544  ;;  %3550 = vtanh.f32 %v1772_v63  ;;  %v1947_v3 = vpop.f32.mrf.mxu3 }
  0xd6   :  { %v3547_v4 = vpop.eup %3546  ;;  %2440 = vst.msk [vmem:[%s5682_s2 + $0x268] sm:$0xff] %vm2362_vm1, %v3545_v0  ;;  %v1600_v5 = vpop.f32.mrf.mxu1  ;;  %3552 = vtanh.f32 %v1947_v3 }
  0xd7   :  { %3554 = vtanh.f32 %v1600_v5  ;;  %2372 = vst.msk [vmem:[%s5682_s2 + $0x48] sm:$0xff] %vm2362_vm1, %v3547_v4  ;;  %v1430_v7 = vpop.f32.mrf.mxu0  ;;  %v3549_v9 = vpop.eup %3548  ;;  %v3450_v4 = vld [vmem:[%s5681_s0 + $0x3c0] sm:$0xff] }
  0xd8   :  { %3556 = vtanh.f32 %v1430_v7  ;;  %2579 = vst.msk [vmem:[%s5682_s2 + $0x6c0] sm:$0xff] %vm2362_vm1, %v3549_v9 }
  0xd9   :  { %3240 = vmatmul.msk.bf16.gmra.mxu1 %vm984_vm0, %v3377_v1  ;;  %3275 = vmatmul.msk.bf16.gmra.mxu2 %vm984_vm0, %v3412_v2  ;;  %v3346_v2 = vld [vmem:[%s5681_s0 + $0x80] sm:$0xff] }
  0xda   :  { %3206 = vmatmul.msk.bf16.gmra.mxu0 %vm984_vm0, %v3343_v6  ;;  %3310 = vmatmul.msk.bf16.gmra.mxu3 %vm984_vm0, %v3447_v8 }
  0xdb   :  { %v3551_v10 = vpop.eup %3550 }
  0xdc   :  { %v3553_v11 = vpop.eup %3552  ;;  %2510 = vst.msk [vmem:[%s5682_s2 + $0x498] sm:$0xff] %vm2362_vm1, %v3551_v10  ;;  %v1775_v12 = vpop.f32.mrf.mxu2 }
  0xdd   :  { %v3555_v13 = vpop.eup %3554  ;;  %3558 = vtanh.f32 %v1775_v12  ;;  %2580 = vst.msk [vmem:[%s5682_s2 + $0x6c8] sm:$0xff] %vm2362_vm1, %v3553_v11  ;;  %v1950_v14 = vpop.f32.mrf.mxu3 }
  0xde   :  { %v3557_v15 = vpop.eup %3556  ;;  %2441 = vst.msk [vmem:[%s5682_s2 + $0x270] sm:$0xff] %vm2362_vm1, %v3555_v13  ;;  %v1602_v16 = vpop.f32.mrf.mxu1 }
  0xdf   :  { %3560 = vtanh.f32 %v1602_v16  ;;  %2373 = vst.msk [vmem:[%s5682_s2 + $0x50] sm:$0xff] %vm2362_vm1, %v3557_v15  ;;  %v1432_v17 = vpop.f32.mrf.mxu0 }
  0xe0   :  { %3562 = vtanh.f32 %v1432_v17  ;;  %v3381_v17 = vld [vmem:[%s5681_s0 + $0x198] sm:$0xff] }
  0xe1   :  { %3564 = vtanh.f32 %v1950_v14 }
  0xe3   :  { %v3559_v18 = vpop.eup %3558 }
  0xe4   :  { %2511 = vst.msk [vmem:[%s5682_s2 + $0x4a0] sm:$0xff] %vm2362_vm1, %v3559_v18  ;;  %v1777_v19 = vpop.f32.mrf.mxu2  ;;  %v3416_v18 = vld [vmem:[%s5681_s0 + $0x2b0] sm:$0xff] }
  0xe5   :  { %v3561_v20 = vpop.eup %3560  ;;  %3566 = vtanh.f32 %v1777_v19  ;;  %v1952_v23 = vpop.f32.mrf.mxu3 }
  0xe6   :  { %v3563_v24 = vpop.eup %3562  ;;  %2442 = vst.msk [vmem:[%s5682_s2 + $0x278] sm:$0xff] %vm2362_vm1, %v3561_v20  ;;  %v1605_v25 = vpop.f32.mrf.mxu1  ;;  %3568 = vtanh.f32 %v1952_v23 }
  0xe7   :  { %3570 = vtanh.f32 %v1605_v25  ;;  %2374 = vst.msk [vmem:[%s5682_s2 + $0x58] sm:$0xff] %vm2362_vm1, %v3563_v24  ;;  %v1435_v27 = vpop.f32.mrf.mxu0  ;;  %v3565_v29 = vpop.eup %3564  ;;  %v3451_v24 = vld [vmem:[%s5681_s0 + $0x3c8] sm:$0xff] }
  0xe8   :  { %3572 = vtanh.f32 %v1435_v27  ;;  %2581 = vst.msk [vmem:[%s5682_s2 + $0x6d0] sm:$0xff] %vm2362_vm1, %v3565_v29 }
  0xe9   :  { %3241 = vmatmul.msk.bf16.gmra.mxu1 %vm984_vm0, %v3378_v21  ;;  %3276 = vmatmul.msk.bf16.gmra.mxu2 %vm984_vm0, %v3413_v22  ;;  %v3347_v22 = vld [vmem:[%s5681_s0 + $0x88] sm:$0xff] }
  0xea   :  { %3207 = vmatmul.msk.bf16.gmra.mxu0 %vm984_vm0, %v3344_v26  ;;  %3311 = vmatmul.msk.bf16.gmra.mxu3 %vm984_vm0, %v3448_v28 }
  0xeb   :  { %v3567_v30 = vpop.eup %3566 }
  0xec   :  { %v3569_v31 = vpop.eup %3568  ;;  %2512 = vst.msk [vmem:[%s5682_s2 + $0x4a8] sm:$0xff] %vm2362_vm1, %v3567_v30  ;;  %v1780_v32 = vpop.f32.mrf.mxu2 }
  0xed   :  { %v3571_v33 = vpop.eup %3570  ;;  %3574 = vtanh.f32 %v1780_v32  ;;  %2582 = vst.msk [vmem:[%s5682_s2 + $0x6d8] sm:$0xff] %vm2362_vm1, %v3569_v31  ;;  %v1955_v34 = vpop.f32.mrf.mxu3 }
  0xee   :  { %v3573_v35 = vpop.eup %3572  ;;  %2443 = vst.msk [vmem:[%s5682_s2 + $0x280] sm:$0xff] %vm2362_vm1, %v3571_v33  ;;  %v1607_v36 = vpop.f32.mrf.mxu1 }
  0xef   :  { %3576 = vtanh.f32 %v1607_v36  ;;  %2375 = vst.msk [vmem:[%s5682_s2 + $0x60] sm:$0xff] %vm2362_vm1, %v3573_v35  ;;  %v1437_v37 = vpop.f32.mrf.mxu0 }
  0xf0   :  { %3578 = vtanh.f32 %v1437_v37  ;;  %v3382_v37 = vld [vmem:[%s5681_s0 + $0x1a0] sm:$0xff] }
  0xf1   :  { %3580 = vtanh.f32 %v1955_v34 }
  0xf3   :  { %v3575_v38 = vpop.eup %3574 }
  0xf4   :  { %2513 = vst.msk [vmem:[%s5682_s2 + $0x4b0] sm:$0xff] %vm2362_vm1, %v3575_v38  ;;  %v1782_v39 = vpop.f32.mrf.mxu2  ;;  %v3417_v38 = vld [vmem:[%s5681_s0 + $0x2b8] sm:$0xff] }
  0xf5   :  { %v3577_v40 = vpop.eup %3576  ;;  %3582 = vtanh.f32 %v1782_v39  ;;  %v1957_v43 = vpop.f32.mrf.mxu3 }
  0xf6   :  { %v3579_v44 = vpop.eup %3578  ;;  %2444 = vst.msk [vmem:[%s5682_s2 + $0x288] sm:$0xff] %vm2362_vm1, %v3577_v40  ;;  %v1610_v45 = vpop.f32.mrf.mxu1  ;;  %3584 = vtanh.f32 %v1957_v43 }
  0xf7   :  { %3586 = vtanh.f32 %v1610_v45  ;;  %2376 = vst.msk [vmem:[%s5682_s2 + $0x68] sm:$0xff] %vm2362_vm1, %v3579_v44  ;;  %v1440_v47 = vpop.f32.mrf.mxu0  ;;  %v3581_v49 = vpop.eup %3580  ;;  %v3452_v44 = vld [vmem:[%s5681_s0 + $0x3d0] sm:$0xff] }
  0xf8   :  { %3588 = vtanh.f32 %v1440_v47  ;;  %2583 = vst.msk [vmem:[%s5682_s2 + $0x6e0] sm:$0xff] %vm2362_vm1, %v3581_v49 }
  0xf9   :  { %3242 = vmatmul.msk.bf16.gmra.mxu1 %vm984_vm0, %v3379_v41  ;;  %3277 = vmatmul.msk.bf16.gmra.mxu2 %vm984_vm0, %v3414_v42  ;;  %v3348_v42 = vld [vmem:[%s5681_s0 + $0x90] sm:$0xff] }
  0xfa   :  { %3208 = vmatmul.msk.bf16.gmra.mxu0 %vm984_vm0, %v3345_v46  ;;  %3312 = vmatmul.msk.bf16.gmra.mxu3 %vm984_vm0, %v3449_v48 }
  0xfb   :  { %v3583_v50 = vpop.eup %3582 }
  0xfc   :  { %v3585_v51 = vpop.eup %3584  ;;  %2514 = vst.msk [vmem:[%s5682_s2 + $0x4b8] sm:$0xff] %vm2362_vm1, %v3583_v50  ;;  %v1785_v52 = vpop.f32.mrf.mxu2 }
  0xfd   :  { %v3587_v53 = vpop.eup %3586  ;;  %3590 = vtanh.f32 %v1785_v52  ;;  %2584 = vst.msk [vmem:[%s5682_s2 + $0x6e8] sm:$0xff] %vm2362_vm1, %v3585_v51  ;;  %v1960_v54 = vpop.f32.mrf.mxu3 }
  0xfe   :  { %v3589_v55 = vpop.eup %3588  ;;  %2445 = vst.msk [vmem:[%s5682_s2 + $0x290] sm:$0xff] %vm2362_vm1, %v3587_v53  ;;  %v1612_v56 = vpop.f32.mrf.mxu1 }
  0xff   :  { %3592 = vtanh.f32 %v1612_v56  ;;  %2377 = vst.msk [vmem:[%s5682_s2 + $0x70] sm:$0xff] %vm2362_vm1, %v3589_v55  ;;  %v1442_v57 = vpop.f32.mrf.mxu0 }
 0x100   :  { %3594 = vtanh.f32 %v1442_v57  ;;  %v3383_v57 = vld [vmem:[%s5681_s0 + $0x1a8] sm:$0xff] }
 0x101   :  { %3596 = vtanh.f32 %v1960_v54 }
 0x103   :  { %v3591_v58 = vpop.eup %3590 }
 0x104   :  { %2515 = vst.msk [vmem:[%s5682_s2 + $0x4c0] sm:$0xff] %vm2362_vm1, %v3591_v58  ;;  %v1787_v59 = vpop.f32.mrf.mxu2  ;;  %v3418_v58 = vld [vmem:[%s5681_s0 + $0x2c0] sm:$0xff] }
 0x105   :  { %v3593_v60 = vpop.eup %3592  ;;  %3598 = vtanh.f32 %v1787_v59  ;;  %v1962_v63 = vpop.f32.mrf.mxu3 }
 0x106   :  { %v3595_v0 = vpop.eup %3594  ;;  %2446 = vst.msk [vmem:[%s5682_s2 + $0x298] sm:$0xff] %vm2362_vm1, %v3593_v60  ;;  %v1615_v1 = vpop.f32.mrf.mxu1  ;;  %3600 = vtanh.f32 %v1962_v63 }
 0x107   :  { %3602 = vtanh.f32 %v1615_v1  ;;  %2378 = vst.msk [vmem:[%s5682_s2 + $0x78] sm:$0xff] %vm2362_vm1, %v3595_v0  ;;  %v1445_v3 = vpop.f32.mrf.mxu0  ;;  %v3597_v5 = vpop.eup %3596  ;;  %v3453_v0 = vld [vmem:[%s5681_s0 + $0x3d8] sm:$0xff] }
 0x108   :  { %3604 = vtanh.f32 %v1445_v3  ;;  %2585 = vst.msk [vmem:[%s5682_s2 + $0x6f0] sm:$0xff] %vm2362_vm1, %v3597_v5 }
 0x109   :  { %3243 = vmatmul.msk.bf16.gmra.mxu1 %vm984_vm0, %v3380_v61  ;;  %3278 = vmatmul.msk.bf16.gmra.mxu2 %vm984_vm0, %v3415_v62  ;;  %v3349_v62 = vld [vmem:[%s5681_s0 + $0x98] sm:$0xff] }
 0x10a   :  { %3209 = vmatmul.msk.bf16.gmra.mxu0 %vm984_vm0, %v3346_v2  ;;  %3313 = vmatmul.msk.bf16.gmra.mxu3 %vm984_vm0, %v3450_v4 }
 0x10b   :  { %v3599_v6 = vpop.eup %3598 }
 0x10c   :  { %v3601_v7 = vpop.eup %3600  ;;  %2516 = vst.msk [vmem:[%s5682_s2 + $0x4c8] sm:$0xff] %vm2362_vm1, %v3599_v6  ;;  %v1790_v8 = vpop.f32.mrf.mxu2 }
 0x10d   :  { %v3603_v9 = vpop.eup %3602  ;;  %3606 = vtanh.f32 %v1790_v8  ;;  %2586 = vst.msk [vmem:[%s5682_s2 + $0x6f8] sm:$0xff] %vm2362_vm1, %v3601_v7  ;;  %v1965_v10 = vpop.f32.mrf.mxu3 }
 0x10e   :  { %v3605_v11 = vpop.eup %3604  ;;  %2447 = vst.msk [vmem:[%s5682_s2 + $0x2a0] sm:$0xff] %vm2362_vm1, %v3603_v9  ;;  %v1617_v12 = vpop.f32.mrf.mxu1 }
 0x10f   :  { %3608 = vtanh.f32 %v1617_v12  ;;  %2379 = vst.msk [vmem:[%s5682_s2 + $0x80] sm:$0xff] %vm2362_vm1, %v3605_v11  ;;  %v1447_v13 = vpop.f32.mrf.mxu0 }
 0x110   :  { %3610 = vtanh.f32 %v1447_v13  ;;  %v3384_v13 = vld [vmem:[%s5681_s0 + $0x1b0] sm:$0xff] }
 0x111   :  { %3612 = vtanh.f32 %v1965_v10 }
 0x113   :  { %v3607_v14 = vpop.eup %3606 }
 0x114   :  { %2517 = vst.msk [vmem:[%s5682_s2 + $0x4d0] sm:$0xff] %vm2362_vm1, %v3607_v14  ;;  %v1792_v15 = vpop.f32.mrf.mxu2  ;;  %v3419_v14 = vld [vmem:[%s5681_s0 + $0x2c8] sm:$0xff] }
 0x115   :  { %v3609_v16 = vpop.eup %3608  ;;  %3614 = vtanh.f32 %v1792_v15  ;;  %v1967_v19 = vpop.f32.mrf.mxu3 }
 0x116   :  { %v3611_v20 = vpop.eup %3610  ;;  %2448 = vst.msk [vmem:[%s5682_s2 + $0x2a8] sm:$0xff] %vm2362_vm1, %v3609_v16  ;;  %v1620_v21 = vpop.f32.mrf.mxu1  ;;  %3616 = vtanh.f32 %v1967_v19 }
 0x117   :  { %3618 = vtanh.f32 %v1620_v21  ;;  %2380 = vst.msk [vmem:[%s5682_s2 + $0x88] sm:$0xff] %vm2362_vm1, %v3611_v20  ;;  %v1450_v23 = vpop.f32.mrf.mxu0  ;;  %v3613_v25 = vpop.eup %3612  ;;  %v3454_v20 = vld [vmem:[%s5681_s0 + $0x3e0] sm:$0xff] }
 0x118   :  { %3620 = vtanh.f32 %v1450_v23  ;;  %2587 = vst.msk [vmem:[%s5682_s2 + $0x700] sm:$0xff] %vm2362_vm1, %v3613_v25 }
 0x119   :  { %3244 = vmatmul.msk.bf16.gmra.mxu1 %vm984_vm0, %v3381_v17  ;;  %3279 = vmatmul.msk.bf16.gmra.mxu2 %vm984_vm0, %v3416_v18  ;;  %v3350_v18 = vld [vmem:[%s5681_s0 + $0xa0] sm:$0xff] }
 0x11a   :  { %3210 = vmatmul.msk.bf16.gmra.mxu0 %vm984_vm0, %v3347_v22  ;;  %3314 = vmatmul.msk.bf16.gmra.mxu3 %vm984_vm0, %v3451_v24 }
 0x11b   :  { %v3615_v26 = vpop.eup %3614 }
 0x11c   :  { %v3617_v27 = vpop.eup %3616  ;;  %2518 = vst.msk [vmem:[%s5682_s2 + $0x4d8] sm:$0xff] %vm2362_vm1, %v3615_v26  ;;  %v1795_v28 = vpop.f32.mrf.mxu2 }
 0x11d   :  { %v3619_v29 = vpop.eup %3618  ;;  %3622 = vtanh.f32 %v1795_v28  ;;  %2588 = vst.msk [vmem:[%s5682_s2 + $0x708] sm:$0xff] %vm2362_vm1, %v3617_v27  ;;  %v1970_v30 = vpop.f32.mrf.mxu3 }
 0x11e   :  { %v3621_v31 = vpop.eup %3620  ;;  %2449 = vst.msk [vmem:[%s5682_s2 + $0x2b0] sm:$0xff] %vm2362_vm1, %v3619_v29  ;;  %v1622_v32 = vpop.f32.mrf.mxu1 }
 0x11f   :  { %3624 = vtanh.f32 %v1622_v32  ;;  %2381 = vst.msk [vmem:[%s5682_s2 + $0x90] sm:$0xff] %vm2362_vm1, %v3621_v31  ;;  %v1452_v33 = vpop.f32.mrf.mxu0 }
 0x120   :  { %3626 = vtanh.f32 %v1452_v33  ;;  %v3385_v33 = vld [vmem:[%s5681_s0 + $0x1b8] sm:$0xff] }
 0x121   :  { %3628 = vtanh.f32 %v1970_v30 }
 0x123   :  { %v3623_v34 = vpop.eup %3622 }
 0x124   :  { %2519 = vst.msk [vmem:[%s5682_s2 + $0x4e0] sm:$0xff] %vm2362_vm1, %v3623_v34  ;;  %v1797_v35 = vpop.f32.mrf.mxu2  ;;  %v3420_v34 = vld [vmem:[%s5681_s0 + $0x2d0] sm:$0xff] }
 0x125   :  { %v3625_v36 = vpop.eup %3624  ;;  %3630 = vtanh.f32 %v1797_v35  ;;  %v1972_v39 = vpop.f32.mrf.mxu3 }
 0x126   :  { %v3627_v40 = vpop.eup %3626  ;;  %2450 = vst.msk [vmem:[%s5682_s2 + $0x2b8] sm:$0xff] %vm2362_vm1, %v3625_v36  ;;  %v1625_v41 = vpop.f32.mrf.mxu1  ;;  %3632 = vtanh.f32 %v1972_v39 }
 0x127   :  { %3634 = vtanh.f32 %v1625_v41  ;;  %2382 = vst.msk [vmem:[%s5682_s2 + $0x98] sm:$0xff] %vm2362_vm1, %v3627_v40  ;;  %v1455_v43 = vpop.f32.mrf.mxu0  ;;  %v3629_v45 = vpop.eup %3628  ;;  %v3455_v40 = vld [vmem:[%s5681_s0 + $0x3e8] sm:$0xff] }
 0x128   :  { %3636 = vtanh.f32 %v1455_v43  ;;  %2589 = vst.msk [vmem:[%s5682_s2 + $0x710] sm:$0xff] %vm2362_vm1, %v3629_v45 }
 0x129   :  { %3245 = vmatmul.msk.bf16.gmra.mxu1 %vm984_vm0, %v3382_v37  ;;  %3280 = vmatmul.msk.bf16.gmra.mxu2 %vm984_vm0, %v3417_v38  ;;  %v3351_v38 = vld [vmem:[%s5681_s0 + $0xa8] sm:$0xff] }
 0x12a   :  { %3211 = vmatmul.msk.bf16.gmra.mxu0 %vm984_vm0, %v3348_v42  ;;  %3315 = vmatmul.msk.bf16.gmra.mxu3 %vm984_vm0, %v3452_v44 }
 0x12b   :  { %v3631_v46 = vpop.eup %3630 }
 0x12c   :  { %v3633_v47 = vpop.eup %3632  ;;  %2520 = vst.msk [vmem:[%s5682_s2 + $0x4e8] sm:$0xff] %vm2362_vm1, %v3631_v46  ;;  %v1800_v48 = vpop.f32.mrf.mxu2 }
 0x12d   :  { %v3635_v49 = vpop.eup %3634  ;;  %3638 = vtanh.f32 %v1800_v48  ;;  %2590 = vst.msk [vmem:[%s5682_s2 + $0x718] sm:$0xff] %vm2362_vm1, %v3633_v47  ;;  %v1975_v50 = vpop.f32.mrf.mxu3 }
 0x12e   :  { %v3637_v51 = vpop.eup %3636  ;;  %2451 = vst.msk [vmem:[%s5682_s2 + $0x2c0] sm:$0xff] %vm2362_vm1, %v3635_v49  ;;  %v1627_v52 = vpop.f32.mrf.mxu1 }
 0x12f   :  { %3640 = vtanh.f32 %v1627_v52  ;;  %2383 = vst.msk [vmem:[%s5682_s2 + $0xa0] sm:$0xff] %vm2362_vm1, %v3637_v51  ;;  %v1457_v53 = vpop.f32.mrf.mxu0 }
 0x130   :  { %3642 = vtanh.f32 %v1457_v53  ;;  %v3386_v53 = vld [vmem:[%s5681_s0 + $0x1c0] sm:$0xff] }
 0x131   :  { %3644 = vtanh.f32 %v1975_v50 }
 0x133   :  { %v3639_v54 = vpop.eup %3638 }
 0x134   :  { %2521 = vst.msk [vmem:[%s5682_s2 + $0x4f0] sm:$0xff] %vm2362_vm1, %v3639_v54  ;;  %v1802_v55 = vpop.f32.mrf.mxu2  ;;  %v3421_v54 = vld [vmem:[%s5681_s0 + $0x2d8] sm:$0xff] }
 0x135   :  { %v3641_v56 = vpop.eup %3640  ;;  %3646 = vtanh.f32 %v1802_v55  ;;  %v1977_v59 = vpop.f32.mrf.mxu3 }
 0x136   :  { %v3643_v60 = vpop.eup %3642  ;;  %2452 = vst.msk [vmem:[%s5682_s2 + $0x2c8] sm:$0xff] %vm2362_vm1, %v3641_v56  ;;  %v1630_v61 = vpop.f32.mrf.mxu1  ;;  %3648 = vtanh.f32 %v1977_v59 }
 0x137   :  { %3650 = vtanh.f32 %v1630_v61  ;;  %2384 = vst.msk [vmem:[%s5682_s2 + $0xa8] sm:$0xff] %vm2362_vm1, %v3643_v60  ;;  %v1460_v63 = vpop.f32.mrf.mxu0  ;;  %v3645_v1 = vpop.eup %3644  ;;  %v3456_v60 = vld [vmem:[%s5681_s0 + $0x3f0] sm:$0xff] }
 0x138   :  { %3652 = vtanh.f32 %v1460_v63  ;;  %2591 = vst.msk [vmem:[%s5682_s2 + $0x720] sm:$0xff] %vm2362_vm1, %v3645_v1 }
 0x139   :  { %3246 = vmatmul.msk.bf16.gmra.mxu1 %vm984_vm0, %v3383_v57  ;;  %3281 = vmatmul.msk.bf16.gmra.mxu2 %vm984_vm0, %v3418_v58  ;;  %v3352_v58 = vld [vmem:[%s5681_s0 + $0xb0] sm:$0xff] }
 0x13a   :  { %3212 = vmatmul.msk.bf16.gmra.mxu0 %vm984_vm0, %v3349_v62  ;;  %3316 = vmatmul.msk.bf16.gmra.mxu3 %vm984_vm0, %v3453_v0 }
 0x13b   :  { %v3647_v2 = vpop.eup %3646 }
 0x13c   :  { %v3649_v3 = vpop.eup %3648  ;;  %2522 = vst.msk [vmem:[%s5682_s2 + $0x4f8] sm:$0xff] %vm2362_vm1, %v3647_v2  ;;  %v1805_v4 = vpop.f32.mrf.mxu2 }
 0x13d   :  { %v3651_v5 = vpop.eup %3650  ;;  %3654 = vtanh.f32 %v1805_v4  ;;  %2592 = vst.msk [vmem:[%s5682_s2 + $0x728] sm:$0xff] %vm2362_vm1, %v3649_v3  ;;  %v1980_v6 = vpop.f32.mrf.mxu3 }
 0x13e   :  { %v3653_v7 = vpop.eup %3652  ;;  %2453 = vst.msk [vmem:[%s5682_s2 + $0x2d0] sm:$0xff] %vm2362_vm1, %v3651_v5  ;;  %v1632_v8 = vpop.f32.mrf.mxu1 }
 0x13f   :  { %3656 = vtanh.f32 %v1632_v8  ;;  %2385 = vst.msk [vmem:[%s5682_s2 + $0xb0] sm:$0xff] %vm2362_vm1, %v3653_v7  ;;  %v1462_v9 = vpop.f32.mrf.mxu0 }
 0x140   :  { %3658 = vtanh.f32 %v1462_v9  ;;  %v3387_v9 = vld [vmem:[%s5681_s0 + $0x1c8] sm:$0xff] }
 0x141   :  { %3660 = vtanh.f32 %v1980_v6 }
 0x143   :  { %v3655_v10 = vpop.eup %3654 }
 0x144   :  { %2523 = vst.msk [vmem:[%s5682_s2 + $0x500] sm:$0xff] %vm2362_vm1, %v3655_v10  ;;  %v1807_v11 = vpop.f32.mrf.mxu2  ;;  %v3422_v10 = vld [vmem:[%s5681_s0 + $0x2e0] sm:$0xff] }
 0x145   :  { %v3657_v12 = vpop.eup %3656  ;;  %3662 = vtanh.f32 %v1807_v11  ;;  %v1982_v15 = vpop.f32.mrf.mxu3 }
 0x146   :  { %v3659_v16 = vpop.eup %3658  ;;  %2454 = vst.msk [vmem:[%s5682_s2 + $0x2d8] sm:$0xff] %vm2362_vm1, %v3657_v12  ;;  %v1635_v17 = vpop.f32.mrf.mxu1  ;;  %3664 = vtanh.f32 %v1982_v15 }
 0x147   :  { %3666 = vtanh.f32 %v1635_v17  ;;  %2386 = vst.msk [vmem:[%s5682_s2 + $0xb8] sm:$0xff] %vm2362_vm1, %v3659_v16  ;;  %v1465_v19 = vpop.f32.mrf.mxu0  ;;  %v3661_v21 = vpop.eup %3660  ;;  %v3457_v16 = vld [vmem:[%s5681_s0 + $0x3f8] sm:$0xff] }
 0x148   :  { %3668 = vtanh.f32 %v1465_v19  ;;  %2593 = vst.msk [vmem:[%s5682_s2 + $0x730] sm:$0xff] %vm2362_vm1, %v3661_v21 }
 0x149   :  { %3247 = vmatmul.msk.bf16.gmra.mxu1 %vm984_vm0, %v3384_v13  ;;  %3282 = vmatmul.msk.bf16.gmra.mxu2 %vm984_vm0, %v3419_v14  ;;  %v3353_v14 = vld [vmem:[%s5681_s0 + $0xb8] sm:$0xff] }
 0x14a   :  { %3213 = vmatmul.msk.bf16.gmra.mxu0 %vm984_vm0, %v3350_v18  ;;  %3317 = vmatmul.msk.bf16.gmra.mxu3 %vm984_vm0, %v3454_v20 }
 0x14b   :  { %v3663_v22 = vpop.eup %3662 }
 0x14c   :  { %v3665_v23 = vpop.eup %3664  ;;  %2524 = vst.msk [vmem:[%s5682_s2 + $0x508] sm:$0xff] %vm2362_vm1, %v3663_v22  ;;  %v1810_v24 = vpop.f32.mrf.mxu2 }
 0x14d   :  { %v3667_v25 = vpop.eup %3666  ;;  %3670 = vtanh.f32 %v1810_v24  ;;  %2594 = vst.msk [vmem:[%s5682_s2 + $0x738] sm:$0xff] %vm2362_vm1, %v3665_v23  ;;  %v1985_v26 = vpop.f32.mrf.mxu3 }
 0x14e   :  { %v3669_v27 = vpop.eup %3668  ;;  %2455 = vst.msk [vmem:[%s5682_s2 + $0x2e0] sm:$0xff] %vm2362_vm1, %v3667_v25  ;;  %v1637_v28 = vpop.f32.mrf.mxu1 }
 0x14f   :  { %3672 = vtanh.f32 %v1637_v28  ;;  %2387 = vst.msk [vmem:[%s5682_s2 + $0xc0] sm:$0xff] %vm2362_vm1, %v3669_v27  ;;  %v1467_v29 = vpop.f32.mrf.mxu0 }
 0x150   :  { %3674 = vtanh.f32 %v1467_v29  ;;  %v3388_v29 = vld [vmem:[%s5681_s0 + $0x1d0] sm:$0xff] }
 0x151   :  { %3676 = vtanh.f32 %v1985_v26 }
 0x153   :  { %v3671_v30 = vpop.eup %3670 }
 0x154   :  { %2525 = vst.msk [vmem:[%s5682_s2 + $0x510] sm:$0xff] %vm2362_vm1, %v3671_v30  ;;  %v1812_v31 = vpop.f32.mrf.mxu2  ;;  %v3423_v30 = vld [vmem:[%s5681_s0 + $0x2e8] sm:$0xff] }
 0x155   :  { %v3673_v32 = vpop.eup %3672  ;;  %3678 = vtanh.f32 %v1812_v31  ;;  %v1987_v35 = vpop.f32.mrf.mxu3 }
 0x156   :  { %v3675_v36 = vpop.eup %3674  ;;  %2456 = vst.msk [vmem:[%s5682_s2 + $0x2e8] sm:$0xff] %vm2362_vm1, %v3673_v32  ;;  %v1640_v37 = vpop.f32.mrf.mxu1  ;;  %3680 = vtanh.f32 %v1987_v35 }
 0x157   :  { %3682 = vtanh.f32 %v1640_v37  ;;  %2388 = vst.msk [vmem:[%s5682_s2 + $0xc8] sm:$0xff] %vm2362_vm1, %v3675_v36  ;;  %v1470_v39 = vpop.f32.mrf.mxu0  ;;  %v3677_v41 = vpop.eup %3676  ;;  %v3458_v36 = vld [vmem:[%s5681_s0 + $0x400] sm:$0xff] }
 0x158   :  { %3684 = vtanh.f32 %v1470_v39  ;;  %2595 = vst.msk [vmem:[%s5682_s2 + $0x740] sm:$0xff] %vm2362_vm1, %v3677_v41 }
 0x159   :  { %3248 = vmatmul.msk.bf16.gmra.mxu1 %vm984_vm0, %v3385_v33  ;;  %3283 = vmatmul.msk.bf16.gmra.mxu2 %vm984_vm0, %v3420_v34  ;;  %v3354_v34 = vld [vmem:[%s5681_s0 + $0xc0] sm:$0xff] }
 0x15a   :  { %3214 = vmatmul.msk.bf16.gmra.mxu0 %vm984_vm0, %v3351_v38  ;;  %3318 = vmatmul.msk.bf16.gmra.mxu3 %vm984_vm0, %v3455_v40 }
 0x15b   :  { %v3679_v42 = vpop.eup %3678 }
 0x15c   :  { %v3681_v43 = vpop.eup %3680  ;;  %2526 = vst.msk [vmem:[%s5682_s2 + $0x518] sm:$0xff] %vm2362_vm1, %v3679_v42  ;;  %v1815_v44 = vpop.f32.mrf.mxu2 }
 0x15d   :  { %v3683_v45 = vpop.eup %3682  ;;  %3686 = vtanh.f32 %v1815_v44  ;;  %2596 = vst.msk [vmem:[%s5682_s2 + $0x748] sm:$0xff] %vm2362_vm1, %v3681_v43  ;;  %v1990_v46 = vpop.f32.mrf.mxu3 }
 0x15e   :  { %v3685_v47 = vpop.eup %3684  ;;  %2457 = vst.msk [vmem:[%s5682_s2 + $0x2f0] sm:$0xff] %vm2362_vm1, %v3683_v45  ;;  %v1642_v48 = vpop.f32.mrf.mxu1 }
 0x15f   :  { %3688 = vtanh.f32 %v1642_v48  ;;  %2389 = vst.msk [vmem:[%s5682_s2 + $0xd0] sm:$0xff] %vm2362_vm1, %v3685_v47  ;;  %v1472_v49 = vpop.f32.mrf.mxu0 }
 0x160   :  { %3690 = vtanh.f32 %v1472_v49  ;;  %v3389_v49 = vld [vmem:[%s5681_s0 + $0x1d8] sm:$0xff] }
 0x161   :  { %3692 = vtanh.f32 %v1990_v46 }
 0x163   :  { %v3687_v50 = vpop.eup %3686 }
 0x164   :  { %2527 = vst.msk [vmem:[%s5682_s2 + $0x520] sm:$0xff] %vm2362_vm1, %v3687_v50  ;;  %v1817_v51 = vpop.f32.mrf.mxu2  ;;  %v3424_v50 = vld [vmem:[%s5681_s0 + $0x2f0] sm:$0xff] }
 0x165   :  { %v3689_v52 = vpop.eup %3688  ;;  %3694 = vtanh.f32 %v1817_v51  ;;  %v1992_v55 = vpop.f32.mrf.mxu3 }
 0x166   :  { %v3691_v56 = vpop.eup %3690  ;;  %2458 = vst.msk [vmem:[%s5682_s2 + $0x2f8] sm:$0xff] %vm2362_vm1, %v3689_v52  ;;  %v1645_v57 = vpop.f32.mrf.mxu1  ;;  %3696 = vtanh.f32 %v1992_v55 }
 0x167   :  { %3698 = vtanh.f32 %v1645_v57  ;;  %2390 = vst.msk [vmem:[%s5682_s2 + $0xd8] sm:$0xff] %vm2362_vm1, %v3691_v56  ;;  %v1475_v59 = vpop.f32.mrf.mxu0  ;;  %v3693_v61 = vpop.eup %3692  ;;  %v3459_v56 = vld [vmem:[%s5681_s0 + $0x408] sm:$0xff] }
 0x168   :  { %3700 = vtanh.f32 %v1475_v59  ;;  %2597 = vst.msk [vmem:[%s5682_s2 + $0x750] sm:$0xff] %vm2362_vm1, %v3693_v61 }
 0x169   :  { %3249 = vmatmul.msk.bf16.gmra.mxu1 %vm984_vm0, %v3386_v53  ;;  %3284 = vmatmul.msk.bf16.gmra.mxu2 %vm984_vm0, %v3421_v54  ;;  %v3355_v54 = vld [vmem:[%s5681_s0 + $0xc8] sm:$0xff] }
 0x16a   :  { %3215 = vmatmul.msk.bf16.gmra.mxu0 %vm984_vm0, %v3352_v58  ;;  %3319 = vmatmul.msk.bf16.gmra.mxu3 %vm984_vm0, %v3456_v60 }
 0x16b   :  { %v3695_v62 = vpop.eup %3694 }
 0x16c   :  { %v3697_v63 = vpop.eup %3696  ;;  %2528 = vst.msk [vmem:[%s5682_s2 + $0x528] sm:$0xff] %vm2362_vm1, %v3695_v62  ;;  %v1820_v0 = vpop.f32.mrf.mxu2 }
 0x16d   :  { %v3699_v1 = vpop.eup %3698  ;;  %3702 = vtanh.f32 %v1820_v0  ;;  %2598 = vst.msk [vmem:[%s5682_s2 + $0x758] sm:$0xff] %vm2362_vm1, %v3697_v63  ;;  %v1995_v2 = vpop.f32.mrf.mxu3 }
 0x16e   :  { %v3701_v3 = vpop.eup %3700  ;;  %2459 = vst.msk [vmem:[%s5682_s2 + $0x300] sm:$0xff] %vm2362_vm1, %v3699_v1  ;;  %v1647_v4 = vpop.f32.mrf.mxu1 }
 0x16f   :  { %3704 = vtanh.f32 %v1647_v4  ;;  %2391 = vst.msk [vmem:[%s5682_s2 + $0xe0] sm:$0xff] %vm2362_vm1, %v3701_v3  ;;  %v1477_v5 = vpop.f32.mrf.mxu0 }
 0x170   :  { %3706 = vtanh.f32 %v1477_v5  ;;  %v3390_v5 = vld [vmem:[%s5681_s0 + $0x1e0] sm:$0xff] }
 0x171   :  { %3708 = vtanh.f32 %v1995_v2 }
 0x173   :  { %v3703_v6 = vpop.eup %3702 }
 0x174   :  { %2529 = vst.msk [vmem:[%s5682_s2 + $0x530] sm:$0xff] %vm2362_vm1, %v3703_v6  ;;  %v1822_v7 = vpop.f32.mrf.mxu2  ;;  %v3425_v6 = vld [vmem:[%s5681_s0 + $0x2f8] sm:$0xff] }
 0x175   :  { %v3705_v8 = vpop.eup %3704  ;;  %3710 = vtanh.f32 %v1822_v7  ;;  %v1997_v11 = vpop.f32.mrf.mxu3 }
 0x176   :  { %v3707_v12 = vpop.eup %3706  ;;  %2460 = vst.msk [vmem:[%s5682_s2 + $0x308] sm:$0xff] %vm2362_vm1, %v3705_v8  ;;  %v1650_v13 = vpop.f32.mrf.mxu1  ;;  %3712 = vtanh.f32 %v1997_v11 }
 0x177   :  { %3714 = vtanh.f32 %v1650_v13  ;;  %2392 = vst.msk [vmem:[%s5682_s2 + $0xe8] sm:$0xff] %vm2362_vm1, %v3707_v12  ;;  %v1480_v15 = vpop.f32.mrf.mxu0  ;;  %v3709_v17 = vpop.eup %3708  ;;  %v3460_v12 = vld [vmem:[%s5681_s0 + $0x410] sm:$0xff] }
 0x178   :  { %3716 = vtanh.f32 %v1480_v15  ;;  %2599 = vst.msk [vmem:[%s5682_s2 + $0x760] sm:$0xff] %vm2362_vm1, %v3709_v17 }
 0x179   :  { %3250 = vmatmul.msk.bf16.gmra.mxu1 %vm984_vm0, %v3387_v9  ;;  %3285 = vmatmul.msk.bf16.gmra.mxu2 %vm984_vm0, %v3422_v10  ;;  %v3356_v10 = vld [vmem:[%s5681_s0 + $0xd0] sm:$0xff] }
 0x17a   :  { %3216 = vmatmul.msk.bf16.gmra.mxu0 %vm984_vm0, %v3353_v14  ;;  %3320 = vmatmul.msk.bf16.gmra.mxu3 %vm984_vm0, %v3457_v16 }
 0x17b   :  { %v3711_v18 = vpop.eup %3710 }
 0x17c   :  { %v3713_v19 = vpop.eup %3712  ;;  %2530 = vst.msk [vmem:[%s5682_s2 + $0x538] sm:$0xff] %vm2362_vm1, %v3711_v18  ;;  %v1825_v20 = vpop.f32.mrf.mxu2 }
 0x17d   :  { %v3715_v21 = vpop.eup %3714  ;;  %3718 = vtanh.f32 %v1825_v20  ;;  %2600 = vst.msk [vmem:[%s5682_s2 + $0x768] sm:$0xff] %vm2362_vm1, %v3713_v19  ;;  %v2000_v22 = vpop.f32.mrf.mxu3 }
 0x17e   :  { %v3717_v23 = vpop.eup %3716  ;;  %2461 = vst.msk [vmem:[%s5682_s2 + $0x310] sm:$0xff] %vm2362_vm1, %v3715_v21  ;;  %v1652_v24 = vpop.f32.mrf.mxu1 }
 0x17f   :  { %3720 = vtanh.f32 %v1652_v24  ;;  %2393 = vst.msk [vmem:[%s5682_s2 + $0xf0] sm:$0xff] %vm2362_vm1, %v3717_v23  ;;  %v1482_v25 = vpop.f32.mrf.mxu0 }
 0x180   :  { %3722 = vtanh.f32 %v1482_v25  ;;  %v3391_v25 = vld [vmem:[%s5681_s0 + $0x1e8] sm:$0xff] }
 0x181   :  { %3724 = vtanh.f32 %v2000_v22 }
 0x183   :  { %v3719_v26 = vpop.eup %3718 }
 0x184   :  { %2531 = vst.msk [vmem:[%s5682_s2 + $0x540] sm:$0xff] %vm2362_vm1, %v3719_v26  ;;  %v1827_v27 = vpop.f32.mrf.mxu2  ;;  %v3426_v26 = vld [vmem:[%s5681_s0 + $0x300] sm:$0xff] }
 0x185   :  { %v3721_v28 = vpop.eup %3720  ;;  %3726 = vtanh.f32 %v1827_v27  ;;  %v2002_v31 = vpop.f32.mrf.mxu3 }
 0x186   :  { %v3723_v32 = vpop.eup %3722  ;;  %2462 = vst.msk [vmem:[%s5682_s2 + $0x318] sm:$0xff] %vm2362_vm1, %v3721_v28  ;;  %v1655_v33 = vpop.f32.mrf.mxu1  ;;  %3728 = vtanh.f32 %v2002_v31 }
 0x187   :  { %3730 = vtanh.f32 %v1655_v33  ;;  %2394 = vst.msk [vmem:[%s5682_s2 + $0xf8] sm:$0xff] %vm2362_vm1, %v3723_v32  ;;  %v1485_v35 = vpop.f32.mrf.mxu0  ;;  %v3725_v37 = vpop.eup %3724  ;;  %v3461_v32 = vld [vmem:[%s5681_s0 + $0x418] sm:$0xff] }
 0x188   :  { %3732 = vtanh.f32 %v1485_v35  ;;  %2601 = vst.msk [vmem:[%s5682_s2 + $0x770] sm:$0xff] %vm2362_vm1, %v3725_v37 }
 0x189   :  { %3251 = vmatmul.msk.bf16.gmra.mxu1 %vm984_vm0, %v3388_v29  ;;  %3286 = vmatmul.msk.bf16.gmra.mxu2 %vm984_vm0, %v3423_v30  ;;  %v3357_v30 = vld [vmem:[%s5681_s0 + $0xd8] sm:$0xff] }
 0x18a   :  { %3217 = vmatmul.msk.bf16.gmra.mxu0 %vm984_vm0, %v3354_v34  ;;  %3321 = vmatmul.msk.bf16.gmra.mxu3 %vm984_vm0, %v3458_v36 }
 0x18b   :  { %v3727_v38 = vpop.eup %3726 }
 0x18c   :  { %v3729_v39 = vpop.eup %3728  ;;  %2532 = vst.msk [vmem:[%s5682_s2 + $0x548] sm:$0xff] %vm2362_vm1, %v3727_v38  ;;  %v1830_v40 = vpop.f32.mrf.mxu2 }
 0x18d   :  { %v3731_v41 = vpop.eup %3730  ;;  %3734 = vtanh.f32 %v1830_v40  ;;  %2602 = vst.msk [vmem:[%s5682_s2 + $0x778] sm:$0xff] %vm2362_vm1, %v3729_v39  ;;  %v2005_v42 = vpop.f32.mrf.mxu3 }
 0x18e   :  { %v3733_v43 = vpop.eup %3732  ;;  %2463 = vst.msk [vmem:[%s5682_s2 + $0x320] sm:$0xff] %vm2362_vm1, %v3731_v41  ;;  %v1657_v44 = vpop.f32.mrf.mxu1 }
 0x18f   :  { %3736 = vtanh.f32 %v1657_v44  ;;  %2395 = vst.msk [vmem:[%s5682_s2 + $0x100] sm:$0xff] %vm2362_vm1, %v3733_v43  ;;  %v1487_v45 = vpop.f32.mrf.mxu0 }
 0x190   :  { %3738 = vtanh.f32 %v1487_v45  ;;  %v3392_v45 = vld [vmem:[%s5681_s0 + $0x1f0] sm:$0xff] }
 0x191   :  { %3740 = vtanh.f32 %v2005_v42 }
 0x193   :  { %v3735_v46 = vpop.eup %3734 }
 0x194   :  { %2533 = vst.msk [vmem:[%s5682_s2 + $0x550] sm:$0xff] %vm2362_vm1, %v3735_v46  ;;  %v1832_v47 = vpop.f32.mrf.mxu2  ;;  %v3427_v46 = vld [vmem:[%s5681_s0 + $0x308] sm:$0xff] }
 0x195   :  { %v3737_v48 = vpop.eup %3736  ;;  %3742 = vtanh.f32 %v1832_v47  ;;  %v2007_v51 = vpop.f32.mrf.mxu3 }
 0x196   :  { %v3739_v52 = vpop.eup %3738  ;;  %2464 = vst.msk [vmem:[%s5682_s2 + $0x328] sm:$0xff] %vm2362_vm1, %v3737_v48  ;;  %v1660_v53 = vpop.f32.mrf.mxu1  ;;  %3744 = vtanh.f32 %v2007_v51 }
 0x197   :  { %3746 = vtanh.f32 %v1660_v53  ;;  %2396 = vst.msk [vmem:[%s5682_s2 + $0x108] sm:$0xff] %vm2362_vm1, %v3739_v52  ;;  %v1490_v55 = vpop.f32.mrf.mxu0  ;;  %v3741_v57 = vpop.eup %3740  ;;  %v3462_v52 = vld [vmem:[%s5681_s0 + $0x420] sm:$0xff] }
 0x198   :  { %3748 = vtanh.f32 %v1490_v55  ;;  %2603 = vst.msk [vmem:[%s5682_s2 + $0x780] sm:$0xff] %vm2362_vm1, %v3741_v57 }
 0x199   :  { %3252 = vmatmul.msk.bf16.gmra.mxu1 %vm984_vm0, %v3389_v49  ;;  %3287 = vmatmul.msk.bf16.gmra.mxu2 %vm984_vm0, %v3424_v50  ;;  %v3358_v50 = vld [vmem:[%s5681_s0 + $0xe0] sm:$0xff] }
 0x19a   :  { %3218 = vmatmul.msk.bf16.gmra.mxu0 %vm984_vm0, %v3355_v54  ;;  %3322 = vmatmul.msk.bf16.gmra.mxu3 %vm984_vm0, %v3459_v56 }
 0x19b   :  { %v3743_v58 = vpop.eup %3742 }
 0x19c   :  { %v3745_v59 = vpop.eup %3744  ;;  %2534 = vst.msk [vmem:[%s5682_s2 + $0x558] sm:$0xff] %vm2362_vm1, %v3743_v58  ;;  %v1835_v60 = vpop.f32.mrf.mxu2 }
 0x19d   :  { %v3747_v61 = vpop.eup %3746  ;;  %3750 = vtanh.f32 %v1835_v60  ;;  %2604 = vst.msk [vmem:[%s5682_s2 + $0x788] sm:$0xff] %vm2362_vm1, %v3745_v59  ;;  %v2010_v62 = vpop.f32.mrf.mxu3 }
 0x19e   :  { %v3749_v63 = vpop.eup %3748  ;;  %2465 = vst.msk [vmem:[%s5682_s2 + $0x330] sm:$0xff] %vm2362_vm1, %v3747_v61  ;;  %v1662_v0 = vpop.f32.mrf.mxu1 }
 0x19f   :  { %3752 = vtanh.f32 %v1662_v0  ;;  %2397 = vst.msk [vmem:[%s5682_s2 + $0x110] sm:$0xff] %vm2362_vm1, %v3749_v63  ;;  %v1492_v1 = vpop.f32.mrf.mxu0 }
 0x1a0   :  { %3754 = vtanh.f32 %v1492_v1  ;;  %v3393_v1 = vld [vmem:[%s5681_s0 + $0x1f8] sm:$0xff] }
 0x1a1   :  { %3756 = vtanh.f32 %v2010_v62 }
 0x1a3   :  { %v3751_v2 = vpop.eup %3750 }
 0x1a4   :  { %2535 = vst.msk [vmem:[%s5682_s2 + $0x560] sm:$0xff] %vm2362_vm1, %v3751_v2  ;;  %v1837_v3 = vpop.f32.mrf.mxu2  ;;  %v3428_v2 = vld [vmem:[%s5681_s0 + $0x310] sm:$0xff] }
 0x1a5   :  { %v3753_v4 = vpop.eup %3752  ;;  %3758 = vtanh.f32 %v1837_v3  ;;  %v2012_v7 = vpop.f32.mrf.mxu3 }
 0x1a6   :  { %v3755_v8 = vpop.eup %3754  ;;  %2466 = vst.msk [vmem:[%s5682_s2 + $0x338] sm:$0xff] %vm2362_vm1, %v3753_v4  ;;  %v1665_v9 = vpop.f32.mrf.mxu1  ;;  %3760 = vtanh.f32 %v2012_v7 }
 0x1a7   :  { %3762 = vtanh.f32 %v1665_v9  ;;  %2398 = vst.msk [vmem:[%s5682_s2 + $0x118] sm:$0xff] %vm2362_vm1, %v3755_v8  ;;  %v1495_v11 = vpop.f32.mrf.mxu0  ;;  %v3757_v13 = vpop.eup %3756  ;;  %v3463_v8 = vld [vmem:[%s5681_s0 + $0x428] sm:$0xff] }
 0x1a8   :  { %3764 = vtanh.f32 %v1495_v11  ;;  %2605 = vst.msk [vmem:[%s5682_s2 + $0x790] sm:$0xff] %vm2362_vm1, %v3757_v13 }
 0x1a9   :  { %3253 = vmatmul.msk.bf16.gmra.mxu1 %vm984_vm0, %v3390_v5  ;;  %3288 = vmatmul.msk.bf16.gmra.mxu2 %vm984_vm0, %v3425_v6  ;;  %v3359_v6 = vld [vmem:[%s5681_s0 + $0xe8] sm:$0xff] }
 0x1aa   :  { %3219 = vmatmul.msk.bf16.gmra.mxu0 %vm984_vm0, %v3356_v10  ;;  %3323 = vmatmul.msk.bf16.gmra.mxu3 %vm984_vm0, %v3460_v12 }
 0x1ab   :  { %v3759_v14 = vpop.eup %3758 }
 0x1ac   :  { %v3761_v15 = vpop.eup %3760  ;;  %2536 = vst.msk [vmem:[%s5682_s2 + $0x568] sm:$0xff] %vm2362_vm1, %v3759_v14  ;;  %v1840_v16 = vpop.f32.mrf.mxu2 }
 0x1ad   :  { %v3763_v17 = vpop.eup %3762  ;;  %3766 = vtanh.f32 %v1840_v16  ;;  %2606 = vst.msk [vmem:[%s5682_s2 + $0x798] sm:$0xff] %vm2362_vm1, %v3761_v15  ;;  %v2015_v18 = vpop.f32.mrf.mxu3 }
 0x1ae   :  { %v3765_v19 = vpop.eup %3764  ;;  %2467 = vst.msk [vmem:[%s5682_s2 + $0x340] sm:$0xff] %vm2362_vm1, %v3763_v17  ;;  %v1667_v20 = vpop.f32.mrf.mxu1 }
 0x1af   :  { %3768 = vtanh.f32 %v1667_v20  ;;  %2399 = vst.msk [vmem:[%s5682_s2 + $0x120] sm:$0xff] %vm2362_vm1, %v3765_v19  ;;  %v1497_v21 = vpop.f32.mrf.mxu0 }
 0x1b0   :  { %3770 = vtanh.f32 %v1497_v21  ;;  %v3394_v21 = vld [vmem:[%s5681_s0 + $0x200] sm:$0xff] }
 0x1b1   :  { %3772 = vtanh.f32 %v2015_v18 }
 0x1b3   :  { %v3767_v22 = vpop.eup %3766 }
 0x1b4   :  { %2537 = vst.msk [vmem:[%s5682_s2 + $0x570] sm:$0xff] %vm2362_vm1, %v3767_v22  ;;  %v1842_v23 = vpop.f32.mrf.mxu2  ;;  %v3429_v22 = vld [vmem:[%s5681_s0 + $0x318] sm:$0xff] }
 0x1b5   :  { %v3769_v24 = vpop.eup %3768  ;;  %3774 = vtanh.f32 %v1842_v23  ;;  %v2017_v27 = vpop.f32.mrf.mxu3 }
 0x1b6   :  { %v3771_v28 = vpop.eup %3770  ;;  %2468 = vst.msk [vmem:[%s5682_s2 + $0x348] sm:$0xff] %vm2362_vm1, %v3769_v24  ;;  %v1670_v29 = vpop.f32.mrf.mxu1  ;;  %3776 = vtanh.f32 %v2017_v27 }
 0x1b7   :  { %3778 = vtanh.f32 %v1670_v29  ;;  %2400 = vst.msk [vmem:[%s5682_s2 + $0x128] sm:$0xff] %vm2362_vm1, %v3771_v28  ;;  %v1500_v31 = vpop.f32.mrf.mxu0  ;;  %v3773_v33 = vpop.eup %3772  ;;  %v3464_v28 = vld [vmem:[%s5681_s0 + $0x430] sm:$0xff] }
 0x1b8   :  { %3780 = vtanh.f32 %v1500_v31  ;;  %2607 = vst.msk [vmem:[%s5682_s2 + $0x7a0] sm:$0xff] %vm2362_vm1, %v3773_v33 }
 0x1b9   :  { %3254 = vmatmul.msk.bf16.gmra.mxu1 %vm984_vm0, %v3391_v25  ;;  %3289 = vmatmul.msk.bf16.gmra.mxu2 %vm984_vm0, %v3426_v26  ;;  %v3360_v26 = vld [vmem:[%s5681_s0 + $0xf0] sm:$0xff] }
 0x1ba   :  { %3220 = vmatmul.msk.bf16.gmra.mxu0 %vm984_vm0, %v3357_v30  ;;  %3324 = vmatmul.msk.bf16.gmra.mxu3 %vm984_vm0, %v3461_v32 }
 0x1bb   :  { %v3775_v34 = vpop.eup %3774 }
 0x1bc   :  { %v3777_v35 = vpop.eup %3776  ;;  %2538 = vst.msk [vmem:[%s5682_s2 + $0x578] sm:$0xff] %vm2362_vm1, %v3775_v34  ;;  %v1845_v36 = vpop.f32.mrf.mxu2 }
 0x1bd   :  { %v3779_v37 = vpop.eup %3778  ;;  %3782 = vtanh.f32 %v1845_v36  ;;  %2608 = vst.msk [vmem:[%s5682_s2 + $0x7a8] sm:$0xff] %vm2362_vm1, %v3777_v35  ;;  %v2020_v38 = vpop.f32.mrf.mxu3 }
 0x1be   :  { %v3781_v39 = vpop.eup %3780  ;;  %2469 = vst.msk [vmem:[%s5682_s2 + $0x350] sm:$0xff] %vm2362_vm1, %v3779_v37  ;;  %v1672_v40 = vpop.f32.mrf.mxu1 }
 0x1bf   :  { %3784 = vtanh.f32 %v1672_v40  ;;  %2401 = vst.msk [vmem:[%s5682_s2 + $0x130] sm:$0xff] %vm2362_vm1, %v3781_v39  ;;  %v1502_v41 = vpop.f32.mrf.mxu0 }
 0x1c0   :  { %3786 = vtanh.f32 %v1502_v41  ;;  %v3395_v41 = vld [vmem:[%s5681_s0 + $0x208] sm:$0xff] }
 0x1c1   :  { %3788 = vtanh.f32 %v2020_v38 }
 0x1c3   :  { %v3783_v42 = vpop.eup %3782 }
 0x1c4   :  { %2539 = vst.msk [vmem:[%s5682_s2 + $0x580] sm:$0xff] %vm2362_vm1, %v3783_v42  ;;  %v1847_v43 = vpop.f32.mrf.mxu2  ;;  %v3430_v42 = vld [vmem:[%s5681_s0 + $0x320] sm:$0xff] }
 0x1c5   :  { %v3785_v44 = vpop.eup %3784  ;;  %3790 = vtanh.f32 %v1847_v43  ;;  %v2022_v47 = vpop.f32.mrf.mxu3 }
 0x1c6   :  { %v3787_v48 = vpop.eup %3786  ;;  %2470 = vst.msk [vmem:[%s5682_s2 + $0x358] sm:$0xff] %vm2362_vm1, %v3785_v44  ;;  %v1675_v49 = vpop.f32.mrf.mxu1  ;;  %3792 = vtanh.f32 %v2022_v47 }
 0x1c7   :  { %3794 = vtanh.f32 %v1675_v49  ;;  %2402 = vst.msk [vmem:[%s5682_s2 + $0x138] sm:$0xff] %vm2362_vm1, %v3787_v48  ;;  %v1505_v51 = vpop.f32.mrf.mxu0  ;;  %v3789_v53 = vpop.eup %3788  ;;  %v3465_v48 = vld [vmem:[%s5681_s0 + $0x438] sm:$0xff] }
 0x1c8   :  { %3796 = vtanh.f32 %v1505_v51  ;;  %2609 = vst.msk [vmem:[%s5682_s2 + $0x7b0] sm:$0xff] %vm2362_vm1, %v3789_v53 }
 0x1c9   :  { %3255 = vmatmul.msk.bf16.gmra.mxu1 %vm984_vm0, %v3392_v45  ;;  %3290 = vmatmul.msk.bf16.gmra.mxu2 %vm984_vm0, %v3427_v46  ;;  %v3361_v46 = vld [vmem:[%s5681_s0 + $0xf8] sm:$0xff] }
 0x1ca   :  { %3221 = vmatmul.msk.bf16.gmra.mxu0 %vm984_vm0, %v3358_v50  ;;  %3325 = vmatmul.msk.bf16.gmra.mxu3 %vm984_vm0, %v3462_v52 }
 0x1cb   :  { %v3791_v54 = vpop.eup %3790 }
 0x1cc   :  { %v3793_v55 = vpop.eup %3792  ;;  %2540 = vst.msk [vmem:[%s5682_s2 + $0x588] sm:$0xff] %vm2362_vm1, %v3791_v54  ;;  %v1850_v56 = vpop.f32.mrf.mxu2 }
 0x1cd   :  { %v3795_v57 = vpop.eup %3794  ;;  %3798 = vtanh.f32 %v1850_v56  ;;  %2610 = vst.msk [vmem:[%s5682_s2 + $0x7b8] sm:$0xff] %vm2362_vm1, %v3793_v55  ;;  %v2025_v58 = vpop.f32.mrf.mxu3 }
 0x1ce   :  { %v3797_v59 = vpop.eup %3796  ;;  %2471 = vst.msk [vmem:[%s5682_s2 + $0x360] sm:$0xff] %vm2362_vm1, %v3795_v57  ;;  %v1677_v60 = vpop.f32.mrf.mxu1 }
 0x1cf   :  { %3800 = vtanh.f32 %v1677_v60  ;;  %2403 = vst.msk [vmem:[%s5682_s2 + $0x140] sm:$0xff] %vm2362_vm1, %v3797_v59  ;;  %v1507_v61 = vpop.f32.mrf.mxu0  ;;  %v284_v60 = vld [vmem:[%s5681_s0 + $0x440] sm:$0x1] }
 0x1d0   :  { %3802 = vtanh.f32 %v1507_v61 }
 0x1d1   :  { %3804 = vtanh.f32 %v2025_v58 }
 0x1d3   :  { %v3799_v62 = vpop.eup %3798 }
 0x1d4   :  { %2541 = vst.msk [vmem:[%s5682_s2 + $0x590] sm:$0xff] %vm2362_vm1, %v3799_v62  ;;  %v1852_v63 = vpop.f32.mrf.mxu2  ;;  %v3396_v62 = vld [vmem:[%s5681_s0 + $0x210] sm:$0xff] }
 0x1d5   :  { %v3801_v0 = vpop.eup %3800  ;;  %3806 = vtanh.f32 %v1852_v63  ;;  %v2027_v3 = vpop.f32.mrf.mxu3  ;;  %v3431_v63 = vld [vmem:[%s5681_s0 + $0x328] sm:$0xff] }
 0x1d6   :  { %v3803_v4 = vpop.eup %3802  ;;  %2472 = vst.msk [vmem:[%s5682_s2 + $0x368] sm:$0xff] %vm2362_vm1, %v3801_v0  ;;  %v1680_v5 = vpop.f32.mrf.mxu1  ;;  %3808 = vtanh.f32 %v2027_v3 }
 0x1d7   :  { %3810 = vtanh.f32 %v1680_v5  ;;  %2404 = vst.msk [vmem:[%s5682_s2 + $0x148] sm:$0xff] %vm2362_vm1, %v3803_v4  ;;  %v1510_v7 = vpop.f32.mrf.mxu0  ;;  %v3805_v9 = vpop.eup %3804  ;;  %v3362_v4 = vld [vmem:[%s5681_s0 + $0x100] sm:$0xff] }
 0x1d8   :  { %3812 = vtanh.f32 %v1510_v7  ;;  %2611 = vst.msk [vmem:[%s5682_s2 + $0x7c0] sm:$0xff] %vm2362_vm1, %v3805_v9 }
 0x1d9   :  { %3256 = vmatmul.msk.bf16.gmra.mxu1 %vm984_vm0, %v3393_v1  ;;  %3291 = vmatmul.msk.bf16.gmra.mxu2 %vm984_vm0, %v3428_v2  ;;  %v834_v1 = vunpack.c.l.b16 %v284_v60 }
 0x1da   :  { %3222 = vmatmul.msk.bf16.gmra.mxu0 %vm984_vm0, %v3359_v6  ;;  %3326 = vmatmul.msk.bf16.gmra.mxu3 %vm984_vm0, %v3463_v8 }
 0x1db   :  { %v3807_v10 = vpop.eup %3806  ;;  %v971_v6 = vpack.c.b16 %v834_v1, %v834_v1 }
 0x1dc   :  { %v3809_v11 = vpop.eup %3808  ;;  %2542 = vst.msk [vmem:[%s5682_s2 + $0x598] sm:$0xff] %vm2362_vm1, %v3807_v10  ;;  %v1855_v12 = vpop.f32.mrf.mxu2 }
 0x1dd   :  { %v3811_v13 = vpop.eup %3810  ;;  %3814 = vtanh.f32 %v1855_v12  ;;  %2612 = vst.msk [vmem:[%s5682_s2 + $0x7c8] sm:$0xff] %vm2362_vm1, %v3809_v11  ;;  %v2030_v14 = vpop.f32.mrf.mxu3 }
 0x1de   :  { %v3813_v15 = vpop.eup %3812  ;;  %2473 = vst.msk [vmem:[%s5682_s2 + $0x370] sm:$0xff] %vm2362_vm1, %v3811_v13  ;;  %v1682_v16 = vpop.f32.mrf.mxu1 }
 0x1df   :  { %3816 = vtanh.f32 %v1682_v16  ;;  %2405 = vst.msk [vmem:[%s5682_s2 + $0x150] sm:$0xff] %vm2362_vm1, %v3813_v15  ;;  %v1512_v17 = vpop.f32.mrf.mxu0 }
 0x1e0   :  { %3818 = vtanh.f32 %v1512_v17 }
 0x1e1   :  { %3820 = vtanh.f32 %v2030_v14 }
 0x1e3   :  { %v3815_v18 = vpop.eup %3814 }
 0x1e4   :  { %2543 = vst.msk [vmem:[%s5682_s2 + $0x5a0] sm:$0xff] %vm2362_vm1, %v3815_v18  ;;  %v1857_v19 = vpop.f32.mrf.mxu2 }
 0x1e5   :  { %v3817_v20 = vpop.eup %3816  ;;  %3822 = vtanh.f32 %v1857_v19  ;;  %v2032_v23 = vpop.f32.mrf.mxu3  ;;  %v3397_v19 = vld [vmem:[%s5681_s0 + $0x218] sm:$0xff] }
 0x1e6   :  { %v3819_v24 = vpop.eup %3818  ;;  %2474 = vst.msk [vmem:[%s5682_s2 + $0x378] sm:$0xff] %vm2362_vm1, %v3817_v20  ;;  %v1685_v25 = vpop.f32.mrf.mxu1  ;;  %3824 = vtanh.f32 %v2032_v23  ;;  %v3432_v20 = vld [vmem:[%s5681_s0 + $0x330] sm:$0xff] }
 0x1e7   :  { %3826 = vtanh.f32 %v1685_v25  ;;  %2406 = vst.msk [vmem:[%s5682_s2 + $0x158] sm:$0xff] %vm2362_vm1, %v3819_v24  ;;  %v1515_v27 = vpop.f32.mrf.mxu0  ;;  %v3821_v29 = vpop.eup %3820  ;;  %v3363_v24 = vld [vmem:[%s5681_s0 + $0x108] sm:$0xff] }
 0x1e8   :  { %3828 = vtanh.f32 %v1515_v27  ;;  %2613 = vst.msk [vmem:[%s5682_s2 + $0x7d0] sm:$0xff] %vm2362_vm1, %v3821_v29 }
 0x1e9   :  { %3257 = vmatmul.msk.bf16.gmra.mxu1 %vm984_vm0, %v3394_v21  ;;  %3292 = vmatmul.msk.bf16.gmra.mxu2 %vm984_vm0, %v3429_v22 }
 0x1ea   :  { %3223 = vmatmul.msk.bf16.gmra.mxu0 %vm984_vm0, %v3360_v26  ;;  %3327 = vmatmul.msk.bf16.gmra.mxu3 %vm984_vm0, %v3464_v28 }
 0x1eb   :  { %v3823_v30 = vpop.eup %3822 }
 0x1ec   :  { %v3825_v31 = vpop.eup %3824  ;;  %2544 = vst.msk [vmem:[%s5682_s2 + $0x5a8] sm:$0xff] %vm2362_vm1, %v3823_v30  ;;  %v1860_v32 = vpop.f32.mrf.mxu2 }
 0x1ed   :  { %v3827_v33 = vpop.eup %3826  ;;  %3830 = vtanh.f32 %v1860_v32  ;;  %2614 = vst.msk [vmem:[%s5682_s2 + $0x7d8] sm:$0xff] %vm2362_vm1, %v3825_v31  ;;  %v2035_v34 = vpop.f32.mrf.mxu3 }
 0x1ee   :  { %v3829_v35 = vpop.eup %3828  ;;  %2475 = vst.msk [vmem:[%s5682_s2 + $0x380] sm:$0xff] %vm2362_vm1, %v3827_v33  ;;  %v1687_v36 = vpop.f32.mrf.mxu1 }
 0x1ef   :  { %3832 = vtanh.f32 %v1687_v36  ;;  %2407 = vst.msk [vmem:[%s5682_s2 + $0x160] sm:$0xff] %vm2362_vm1, %v3829_v35  ;;  %v1517_v37 = vpop.f32.mrf.mxu0 }
 0x1f0   :  { %3834 = vtanh.f32 %v1517_v37 }
 0x1f1   :  { %3836 = vtanh.f32 %v2035_v34 }
 0x1f3   :  { %v3831_v38 = vpop.eup %3830 }
 0x1f4   :  { %2545 = vst.msk [vmem:[%s5682_s2 + $0x5b0] sm:$0xff] %vm2362_vm1, %v3831_v38  ;;  %v1862_v39 = vpop.f32.mrf.mxu2  ;;  %v3398_v38 = vld [vmem:[%s5681_s0 + $0x220] sm:$0xff] }
 0x1f5   :  { %v3833_v40 = vpop.eup %3832  ;;  %3838 = vtanh.f32 %v1862_v39  ;;  %v2037_v43 = vpop.f32.mrf.mxu3  ;;  %v3433_v39 = vld [vmem:[%s5681_s0 + $0x338] sm:$0xff] }
 0x1f6   :  { %v3835_v44 = vpop.eup %3834  ;;  %2476 = vst.msk [vmem:[%s5682_s2 + $0x388] sm:$0xff] %vm2362_vm1, %v3833_v40  ;;  %v1690_v45 = vpop.f32.mrf.mxu1  ;;  %3840 = vtanh.f32 %v2037_v43 }
 0x1f7   :  { %3842 = vtanh.f32 %v1690_v45  ;;  %2408 = vst.msk [vmem:[%s5682_s2 + $0x168] sm:$0xff] %vm2362_vm1, %v3835_v44  ;;  %v1520_v47 = vpop.f32.mrf.mxu0  ;;  %v3837_v49 = vpop.eup %3836 }
 0x1f8   :  { %3844 = vtanh.f32 %v1520_v47  ;;  %2615 = vst.msk [vmem:[%s5682_s2 + $0x7e0] sm:$0xff] %vm2362_vm1, %v3837_v49 }
 0x1f9   :  { %3258 = vmatmul.msk.bf16.gmra.mxu1 %vm984_vm0, %v3395_v41  ;;  %3293 = vmatmul.msk.bf16.gmra.mxu2 %vm984_vm0, %v3430_v42 }
 0x1fa   :  { %3224 = vmatmul.msk.bf16.gmra.mxu0 %vm984_vm0, %v3361_v46  ;;  %3328 = vmatmul.msk.bf16.gmra.mxu3 %vm984_vm0, %v3465_v48 }
 0x1fb   :  { %v3839_v50 = vpop.eup %3838 }
 0x1fc   :  { %v3841_v51 = vpop.eup %3840  ;;  %2546 = vst.msk [vmem:[%s5682_s2 + $0x5b8] sm:$0xff] %vm2362_vm1, %v3839_v50  ;;  %v1865_v52 = vpop.f32.mrf.mxu2 }
 0x1fd   :  { %v3843_v53 = vpop.eup %3842  ;;  %3846 = vtanh.f32 %v1865_v52  ;;  %2616 = vst.msk [vmem:[%s5682_s2 + $0x7e8] sm:$0xff] %vm2362_vm1, %v3841_v51  ;;  %v2040_v54 = vpop.f32.mrf.mxu3 }
 0x1fe   :  { %v3845_v55 = vpop.eup %3844  ;;  %2477 = vst.msk [vmem:[%s5682_s2 + $0x390] sm:$0xff] %vm2362_vm1, %v3843_v53  ;;  %v1692_v56 = vpop.f32.mrf.mxu1 }
 0x1ff   :  { %3848 = vtanh.f32 %v1692_v56  ;;  %2409 = vst.msk [vmem:[%s5682_s2 + $0x170] sm:$0xff] %vm2362_vm1, %v3845_v55  ;;  %v1522_v57 = vpop.f32.mrf.mxu0 }
 0x200   :  { %3850 = vtanh.f32 %v1522_v57 }
 0x201   :  { %3852 = vtanh.f32 %v2040_v54 }
 0x203   :  { %v3847_v58 = vpop.eup %3846 }
 0x204   :  { %2547 = vst.msk [vmem:[%s5682_s2 + $0x5c0] sm:$0xff] %vm2362_vm1, %v3847_v58  ;;  %v1867_v59 = vpop.f32.mrf.mxu2 }
 0x205   :  { %v3849_v61 = vpop.eup %3848  ;;  %3854 = vtanh.f32 %v1867_v59  ;;  %v2042_v0 = vpop.f32.mrf.mxu3 }
 0x206   :  { %v3851_v2 = vpop.eup %3850  ;;  %2478 = vst.msk [vmem:[%s5682_s2 + $0x398] sm:$0xff] %vm2362_vm1, %v3849_v61  ;;  %v1695_v3 = vpop.f32.mrf.mxu1  ;;  %3856 = vtanh.f32 %v2042_v0 }
 0x207   :  { %3858 = vtanh.f32 %v1695_v3  ;;  %2410 = vst.msk [vmem:[%s5682_s2 + $0x178] sm:$0xff] %vm2362_vm1, %v3851_v2  ;;  %v1525_v5 = vpop.f32.mrf.mxu0  ;;  %v3853_v7 = vpop.eup %3852 }
 0x208   :  { %3860 = vtanh.f32 %v1525_v5  ;;  %2617 = vst.msk [vmem:[%s5682_s2 + $0x7f0] sm:$0xff] %vm2362_vm1, %v3853_v7 }
 0x209   :  { %3259 = vmatmul.msk.bf16.gmra.mxu1 %vm984_vm0, %v3396_v62  ;;  %3294 = vmatmul.msk.bf16.gmra.mxu2 %vm984_vm0, %v3431_v63 }
 0x20a   :  { %3225 = vmatmul.msk.bf16.gmra.mxu0 %vm984_vm0, %v3362_v4  ;;  %3329 = vmatmul.msk.bf16.gmra.mxu3 %vm984_vm0, %v971_v6 }
 0x20b   :  { %v3855_v8 = vpop.eup %3854 }
 0x20c   :  { %v3857_v9 = vpop.eup %3856  ;;  %2548 = vst.msk [vmem:[%s5682_s2 + $0x5c8] sm:$0xff] %vm2362_vm1, %v3855_v8  ;;  %v1870_v10 = vpop.f32.mrf.mxu2 }
 0x20d   :  { %v3859_v11 = vpop.eup %3858  ;;  %3862 = vtanh.f32 %v1870_v10  ;;  %2618 = vst.msk [vmem:[%s5682_s2 + $0x7f8] sm:$0xff] %vm2362_vm1, %v3857_v9  ;;  %v2045_v12 = vpop.f32.mrf.mxu3 }
 0x20e   :  { %v3861_v13 = vpop.eup %3860  ;;  %2479 = vst.msk [vmem:[%s5682_s2 + $0x3a0] sm:$0xff] %vm2362_vm1, %v3859_v11  ;;  %v1697_v14 = vpop.f32.mrf.mxu1 }
 0x20f   :  { %3864 = vtanh.f32 %v1697_v14  ;;  %2411 = vst.msk [vmem:[%s5682_s2 + $0x180] sm:$0xff] %vm2362_vm1, %v3861_v13  ;;  %v1527_v15 = vpop.f32.mrf.mxu0 }
 0x210   :  { %3866 = vtanh.f32 %v1527_v15 }
 0x211   :  { %3868 = vtanh.f32 %v2045_v12 }
 0x213   :  { %v3863_v16 = vpop.eup %3862 }
 0x214   :  { %2549 = vst.msk [vmem:[%s5682_s2 + $0x5d0] sm:$0xff] %vm2362_vm1, %v3863_v16  ;;  %v1872_v17 = vpop.f32.mrf.mxu2 }
 0x215   :  { %v3865_v18 = vpop.eup %3864  ;;  %3870 = vtanh.f32 %v1872_v17  ;;  %v2047_v21 = vpop.f32.mrf.mxu3 }
 0x216   :  { %v3867_v22 = vpop.eup %3866  ;;  %2480 = vst.msk [vmem:[%s5682_s2 + $0x3a8] sm:$0xff] %vm2362_vm1, %v3865_v18  ;;  %v1700_v23 = vpop.f32.mrf.mxu1  ;;  %3872 = vtanh.f32 %v2047_v21 }
 0x217   :  { %3874 = vtanh.f32 %v1700_v23  ;;  %2412 = vst.msk [vmem:[%s5682_s2 + $0x188] sm:$0xff] %vm2362_vm1, %v3867_v22  ;;  %v1530_v25 = vpop.f32.mrf.mxu0  ;;  %v3869_v26 = vpop.eup %3868 }
 0x218   :  { %3876 = vtanh.f32 %v1530_v25  ;;  %2619 = vst.msk [vmem:[%s5682_s2 + $0x800] sm:$0xff] %vm2362_vm1, %v3869_v26 }
 0x219   :  { %3260 = vmatmul.msk.bf16.gmra.mxu1 %vm984_vm0, %v3397_v19  ;;  %3295 = vmatmul.msk.bf16.gmra.mxu2 %vm984_vm0, %v3432_v20 }
 0x21a   :  { %3226 = vmatmul.msk.bf16.gmra.mxu0 %vm984_vm0, %v3363_v24 }
 0x21b   :  { %v3871_v27 = vpop.eup %3870 }
 0x21c   :  { %v3873_v28 = vpop.eup %3872  ;;  %2550 = vst.msk [vmem:[%s5682_s2 + $0x5d8] sm:$0xff] %vm2362_vm1, %v3871_v27  ;;  %v1875_v29 = vpop.f32.mrf.mxu2 }
 0x21d   :  { %v3875_v30 = vpop.eup %3874  ;;  %3878 = vtanh.f32 %v1875_v29  ;;  %2620 = vst.msk [vmem:[%s5682_s2 + $0x808] sm:$0xff] %vm2362_vm1, %v3873_v28  ;;  %v2050_v31 = vpop.f32.mrf.mxu3 }
 0x21e   :  { %v3877_v32 = vpop.eup %3876  ;;  %2481 = vst.msk [vmem:[%s5682_s2 + $0x3b0] sm:$0xff] %vm2362_vm1, %v3875_v30  ;;  %v1702_v33 = vpop.f32.mrf.mxu1 }
 0x21f   :  { %3880 = vtanh.f32 %v1702_v33  ;;  %2413 = vst.msk [vmem:[%s5682_s2 + $0x190] sm:$0xff] %vm2362_vm1, %v3877_v32  ;;  %v1532_v34 = vpop.f32.mrf.mxu0 }
 0x220   :  { %3882 = vtanh.f32 %v1532_v34 }
 0x221   :  { %3884 = vtanh.f32 %v2050_v31 }
 0x223   :  { %v3879_v35 = vpop.eup %3878 }
 0x224   :  { %2551 = vst.msk [vmem:[%s5682_s2 + $0x5e0] sm:$0xff] %vm2362_vm1, %v3879_v35  ;;  %v1877_v36 = vpop.f32.mrf.mxu2 }
 0x225   :  { %v3881_v37 = vpop.eup %3880  ;;  %3886 = vtanh.f32 %v1877_v36  ;;  %v2052_v40 = vpop.f32.mrf.mxu3 }
 0x226   :  { %v3883_v41 = vpop.eup %3882  ;;  %2482 = vst.msk [vmem:[%s5682_s2 + $0x3b8] sm:$0xff] %vm2362_vm1, %v3881_v37  ;;  %v1705_v42 = vpop.f32.mrf.mxu1  ;;  %3888 = vtanh.f32 %v2052_v40 }
 0x227   :  { %3890 = vtanh.f32 %v1705_v42  ;;  %2414 = vst.msk [vmem:[%s5682_s2 + $0x198] sm:$0xff] %vm2362_vm1, %v3883_v41  ;;  %v1535_v43 = vpop.f32.mrf.mxu0  ;;  %v3885_v44 = vpop.eup %3884 }
 0x228   :  { %3892 = vtanh.f32 %v1535_v43  ;;  %2621 = vst.msk [vmem:[%s5682_s2 + $0x810] sm:$0xff] %vm2362_vm1, %v3885_v44 }
 0x229   :  { %3261 = vmatmul.msk.bf16.gmra.mxu1 %vm984_vm0, %v3398_v38  ;;  %3296 = vmatmul.msk.bf16.gmra.mxu2 %vm984_vm0, %v3433_v39 }
 0x22b   :  { %v3887_v45 = vpop.eup %3886 }
 0x22c   :  { %v3889_v46 = vpop.eup %3888  ;;  %2552 = vst.msk [vmem:[%s5682_s2 + $0x5e8] sm:$0xff] %vm2362_vm1, %v3887_v45  ;;  %v1880_v47 = vpop.f32.mrf.mxu2 }
 0x22d   :  { %v3891_v48 = vpop.eup %3890  ;;  %3894 = vtanh.f32 %v1880_v47  ;;  %2622 = vst.msk [vmem:[%s5682_s2 + $0x818] sm:$0xff] %vm2362_vm1, %v3889_v46  ;;  %v2055_v49 = vpop.f32.mrf.mxu3 }
 0x22e   :  { %v3893_v50 = vpop.eup %3892  ;;  %2483 = vst.msk [vmem:[%s5682_s2 + $0x3c0] sm:$0xff] %vm2362_vm1, %v3891_v48  ;;  %v1707_v51 = vpop.f32.mrf.mxu1 }
 0x22f   :  { %3896 = vtanh.f32 %v1707_v51  ;;  %2415 = vst.msk [vmem:[%s5682_s2 + $0x1a0] sm:$0xff] %vm2362_vm1, %v3893_v50  ;;  %v1537_v52 = vpop.f32.mrf.mxu0 }
 0x230   :  { %3898 = vtanh.f32 %v1537_v52 }
 0x231   :  { %3900 = vtanh.f32 %v2055_v49 }
 0x233   :  { %v3895_v53 = vpop.eup %3894 }
 0x234   :  { %2553 = vst.msk [vmem:[%s5682_s2 + $0x5f0] sm:$0xff] %vm2362_vm1, %v3895_v53  ;;  %v1882_v54 = vpop.f32.mrf.mxu2 }
 0x235   :  { %v3897_v55 = vpop.eup %3896  ;;  %3902 = vtanh.f32 %v1882_v54  ;;  %v2057_v56 = vpop.f32.mrf.mxu3 }
 0x236   :  { %v3899_v57 = vpop.eup %3898  ;;  %2484 = vst.msk [vmem:[%s5682_s2 + $0x3c8] sm:$0xff] %vm2362_vm1, %v3897_v55  ;;  %v1710_v58 = vpop.f32.mrf.mxu1  ;;  %3904 = vtanh.f32 %v2057_v56 }
 0x237   :  { %3906 = vtanh.f32 %v1710_v58  ;;  %2416 = vst.msk [vmem:[%s5682_s2 + $0x1a8] sm:$0xff] %vm2362_vm1, %v3899_v57  ;;  %v1540_v59 = vpop.f32.mrf.mxu0  ;;  %v3901_v60 = vpop.eup %3900 }
 0x238   :  { %3908 = vtanh.f32 %v1540_v59  ;;  %2623 = vst.msk [vmem:[%s5682_s2 + $0x820] sm:$0xff] %vm2362_vm1, %v3901_v60 }
 0x23b   :  { %v3903_v61 = vpop.eup %3902 }
 0x23c   :  { %v3905_v62 = vpop.eup %3904  ;;  %2554 = vst.msk [vmem:[%s5682_s2 + $0x5f8] sm:$0xff] %vm2362_vm1, %v3903_v61  ;;  %v1885_v63 = vpop.f32.mrf.mxu2 }
 0x23d   :  { %v3907_v0 = vpop.eup %3906  ;;  %3910 = vtanh.f32 %v1885_v63  ;;  %2624 = vst.msk [vmem:[%s5682_s2 + $0x828] sm:$0xff] %vm2362_vm1, %v3905_v62  ;;  %v2060_v1 = vpop.f32.mrf.mxu3 }
 0x23e   :  { %v3909_v2 = vpop.eup %3908  ;;  %2485 = vst.msk [vmem:[%s5682_s2 + $0x3d0] sm:$0xff] %vm2362_vm1, %v3907_v0  ;;  %v1712_v3 = vpop.f32.mrf.mxu1 }
 0x23f   :  { %3912 = vtanh.f32 %v1712_v3  ;;  %2417 = vst.msk [vmem:[%s5682_s2 + $0x1b0] sm:$0xff] %vm2362_vm1, %v3909_v2  ;;  %v1542_v4 = vpop.f32.mrf.mxu0 }
 0x240   :  { %3914 = vtanh.f32 %v1542_v4 }
 0x241   :  { %3916 = vtanh.f32 %v2060_v1 }
 0x243   :  { %v3911_v5 = vpop.eup %3910 }
 0x244   :  { %2555 = vst.msk [vmem:[%s5682_s2 + $0x600] sm:$0xff] %vm2362_vm1, %v3911_v5  ;;  %v1887_v6 = vpop.f32.mrf.mxu2 }
 0x245   :  { %v3913_v7 = vpop.eup %3912  ;;  %3918 = vtanh.f32 %v1887_v6  ;;  %v2062_v8 = vpop.f32.mrf.mxu3 }
 0x246   :  { %v3915_v9 = vpop.eup %3914  ;;  %2486 = vst.msk [vmem:[%s5682_s2 + $0x3d8] sm:$0xff] %vm2362_vm1, %v3913_v7  ;;  %v1715_v10 = vpop.f32.mrf.mxu1  ;;  %3920 = vtanh.f32 %v2062_v8 }
 0x247   :  { %3922 = vtanh.f32 %v1715_v10  ;;  %2418 = vst.msk [vmem:[%s5682_s2 + $0x1b8] sm:$0xff] %vm2362_vm1, %v3915_v9  ;;  %v1545_v11 = vpop.f32.mrf.mxu0  ;;  %v3917_v12 = vpop.eup %3916 }
 0x248   :  { %3924 = vtanh.f32 %v1545_v11  ;;  %2625 = vst.msk [vmem:[%s5682_s2 + $0x830] sm:$0xff] %vm2362_vm1, %v3917_v12 }
 0x24b   :  { %v3919_v13 = vpop.eup %3918 }
 0x24c   :  { %v3921_v14 = vpop.eup %3920  ;;  %2556 = vst.msk [vmem:[%s5682_s2 + $0x608] sm:$0xff] %vm2362_vm1, %v3919_v13  ;;  %v1890_v15 = vpop.f32.mrf.mxu2 }
 0x24d   :  { %v3923_v16 = vpop.eup %3922  ;;  %3926 = vtanh.f32 %v1890_v15  ;;  %2626 = vst.msk [vmem:[%s5682_s2 + $0x838] sm:$0xff] %vm2362_vm1, %v3921_v14  ;;  %v2065_v17 = vpop.f32.mrf.mxu3 }
 0x24e   :  { %v3925_v18 = vpop.eup %3924  ;;  %2487 = vst.msk [vmem:[%s5682_s2 + $0x3e0] sm:$0xff] %vm2362_vm1, %v3923_v16  ;;  %v1717_v19 = vpop.f32.mrf.mxu1 }
 0x24f   :  { %3928 = vtanh.f32 %v1717_v19  ;;  %2419 = vst.msk [vmem:[%s5682_s2 + $0x1c0] sm:$0xff] %vm2362_vm1, %v3925_v18  ;;  %v1547_v20 = vpop.f32.mrf.mxu0 }
 0x250   :  { %3930 = vtanh.f32 %v1547_v20 }
 0x251   :  { %3932 = vtanh.f32 %v2065_v17 }
 0x253   :  { %v3927_v21 = vpop.eup %3926 }
 0x254   :  { %2557 = vst.msk [vmem:[%s5682_s2 + $0x610] sm:$0xff] %vm2362_vm1, %v3927_v21  ;;  %v1892_v22 = vpop.f32.mrf.mxu2 }
 0x255   :  { %v3929_v23 = vpop.eup %3928  ;;  %3934 = vtanh.f32 %v1892_v22  ;;  %v2067_v24 = vpop.f32.mrf.mxu3 }
 0x256   :  { %v3931_v25 = vpop.eup %3930  ;;  %2488 = vst.msk [vmem:[%s5682_s2 + $0x3e8] sm:$0xff] %vm2362_vm1, %v3929_v23  ;;  %v1720_v26 = vpop.f32.mrf.mxu1  ;;  %3936 = vtanh.f32 %v2067_v24 }
 0x257   :  { %3938 = vtanh.f32 %v1720_v26  ;;  %2420 = vst.msk [vmem:[%s5682_s2 + $0x1c8] sm:$0xff] %vm2362_vm1, %v3931_v25  ;;  %v1550_v27 = vpop.f32.mrf.mxu0  ;;  %v3933_v28 = vpop.eup %3932 }
 0x258   :  { %3940 = vtanh.f32 %v1550_v27  ;;  %2627 = vst.msk [vmem:[%s5682_s2 + $0x840] sm:$0xff] %vm2362_vm1, %v3933_v28 }
 0x25b   :  { %v3935_v29 = vpop.eup %3934 }
 0x25c   :  { %v3937_v30 = vpop.eup %3936  ;;  %2558 = vst.msk [vmem:[%s5682_s2 + $0x618] sm:$0xff] %vm2362_vm1, %v3935_v29  ;;  %v1895_v31 = vpop.f32.mrf.mxu2 }
 0x25d   :  { %v3939_v32 = vpop.eup %3938  ;;  %3942 = vtanh.f32 %v1895_v31  ;;  %2628 = vst.msk [vmem:[%s5682_s2 + $0x848] sm:$0xff] %vm2362_vm1, %v3937_v30  ;;  %v2070_v33 = vpop.f32.mrf.mxu3 }
 0x25e   :  { %v3941_v34 = vpop.eup %3940  ;;  %2489 = vst.msk [vmem:[%s5682_s2 + $0x3f0] sm:$0xff] %vm2362_vm1, %v3939_v32  ;;  %v1722_v35 = vpop.f32.mrf.mxu1 }
 0x25f   :  { %3944 = vtanh.f32 %v1722_v35  ;;  %2421 = vst.msk [vmem:[%s5682_s2 + $0x1d0] sm:$0xff] %vm2362_vm1, %v3941_v34  ;;  %v1552_v36 = vpop.f32.mrf.mxu0 }
 0x260   :  { %3946 = vtanh.f32 %v1552_v36 }
 0x261   :  { %3948 = vtanh.f32 %v2070_v33 }
 0x263   :  { %v3943_v37 = vpop.eup %3942 }
 0x264   :  { %2559 = vst.msk [vmem:[%s5682_s2 + $0x620] sm:$0xff] %vm2362_vm1, %v3943_v37  ;;  %v1897_v38 = vpop.f32.mrf.mxu2 }
 0x265   :  { %v3945_v39 = vpop.eup %3944  ;;  %3950 = vtanh.f32 %v1897_v38  ;;  %v2072_v40 = vpop.f32.mrf.mxu3 }
 0x266   :  { %v3947_v41 = vpop.eup %3946  ;;  %2490 = vst.msk [vmem:[%s5682_s2 + $0x3f8] sm:$0xff] %vm2362_vm1, %v3945_v39  ;;  %v1725_v42 = vpop.f32.mrf.mxu1  ;;  %3952 = vtanh.f32 %v2072_v40 }
 0x267   :  { %3954 = vtanh.f32 %v1725_v42  ;;  %2422 = vst.msk [vmem:[%s5682_s2 + $0x1d8] sm:$0xff] %vm2362_vm1, %v3947_v41  ;;  %v1555_v43 = vpop.f32.mrf.mxu0  ;;  %v3949_v44 = vpop.eup %3948 }
 0x268   :  { %3956 = vtanh.f32 %v1555_v43  ;;  %2629 = vst.msk [vmem:[%s5682_s2 + $0x850] sm:$0xff] %vm2362_vm1, %v3949_v44 }
 0x26b   :  { %v3951_v45 = vpop.eup %3950 }
 0x26c   :  { %v3953_v46 = vpop.eup %3952  ;;  %2560 = vst.msk [vmem:[%s5682_s2 + $0x628] sm:$0xff] %vm2362_vm1, %v3951_v45  ;;  %v1900_v47 = vpop.f32.mrf.mxu2 }
 0x26d   :  { %v3955_v48 = vpop.eup %3954  ;;  %3958 = vtanh.f32 %v1900_v47  ;;  %2630 = vst.msk [vmem:[%s5682_s2 + $0x858] sm:$0xff] %vm2362_vm1, %v3953_v46  ;;  %v2075_v49 = vpop.f32.mrf.mxu3 }
 0x26e   :  { %v3957_v50 = vpop.eup %3956  ;;  %2491 = vst.msk [vmem:[%s5682_s2 + $0x400] sm:$0xff] %vm2362_vm1, %v3955_v48  ;;  %v1727_v51 = vpop.f32.mrf.mxu1 }
 0x26f   :  { %3960 = vtanh.f32 %v1727_v51  ;;  %2423 = vst.msk [vmem:[%s5682_s2 + $0x1e0] sm:$0xff] %vm2362_vm1, %v3957_v50  ;;  %v1557_v52 = vpop.f32.mrf.mxu0 }
 0x270   :  { %3962 = vtanh.f32 %v1557_v52 }
 0x271   :  { %3964 = vtanh.f32 %v2075_v49 }
 0x273   :  { %v3959_v53 = vpop.eup %3958 }
 0x274   :  { %2561 = vst.msk [vmem:[%s5682_s2 + $0x630] sm:$0xff] %vm2362_vm1, %v3959_v53  ;;  %v1902_v54 = vpop.f32.mrf.mxu2 }
 0x275   :  { %v3961_v55 = vpop.eup %3960  ;;  %3966 = vtanh.f32 %v1902_v54  ;;  %v2077_v56 = vpop.f32.mrf.mxu3 }
 0x276   :  { %v3963_v57 = vpop.eup %3962  ;;  %2492 = vst.msk [vmem:[%s5682_s2 + $0x408] sm:$0xff] %vm2362_vm1, %v3961_v55  ;;  %v1730_v58 = vpop.f32.mrf.mxu1  ;;  %3968 = vtanh.f32 %v2077_v56 }
 0x277   :  { %3970 = vtanh.f32 %v1730_v58  ;;  %2424 = vst.msk [vmem:[%s5682_s2 + $0x1e8] sm:$0xff] %vm2362_vm1, %v3963_v57  ;;  %v1560_v59 = vpop.f32.mrf.mxu0  ;;  %v3965_v60 = vpop.eup %3964 }
 0x278   :  { %3972 = vtanh.f32 %v1560_v59  ;;  %2631 = vst.msk [vmem:[%s5682_s2 + $0x860] sm:$0xff] %vm2362_vm1, %v3965_v60 }
 0x27b   :  { %v3967_v61 = vpop.eup %3966 }
 0x27c   :  { %v3969_v62 = vpop.eup %3968  ;;  %2562 = vst.msk [vmem:[%s5682_s2 + $0x638] sm:$0xff] %vm2362_vm1, %v3967_v61  ;;  %v1905_v63 = vpop.f32.mrf.mxu2 }
 0x27d   :  { %v3971_v0 = vpop.eup %3970  ;;  %3974 = vtanh.f32 %v1905_v63  ;;  %2632 = vst.msk [vmem:[%s5682_s2 + $0x868] sm:$0xff] %vm2362_vm1, %v3969_v62  ;;  %v2080_v1 = vpop.f32.mrf.mxu3 }
 0x27e   :  { %v3973_v2 = vpop.eup %3972  ;;  %2493 = vst.msk [vmem:[%s5682_s2 + $0x410] sm:$0xff] %vm2362_vm1, %v3971_v0  ;;  %v1732_v3 = vpop.f32.mrf.mxu1 }
 0x27f   :  { %3976 = vtanh.f32 %v1732_v3  ;;  %2425 = vst.msk [vmem:[%s5682_s2 + $0x1f0] sm:$0xff] %vm2362_vm1, %v3973_v2  ;;  %v1562_v4 = vpop.f32.mrf.mxu0 }
 0x280   :  { %3978 = vtanh.f32 %v1562_v4 }
 0x281   :  { %3980 = vtanh.f32 %v2080_v1 }
 0x283   :  { %v3975_v5 = vpop.eup %3974 }
 0x284   :  { %2563 = vst.msk [vmem:[%s5682_s2 + $0x640] sm:$0xff] %vm2362_vm1, %v3975_v5  ;;  %v1907_v6 = vpop.f32.mrf.mxu2 }
 0x285   :  { %v3977_v7 = vpop.eup %3976  ;;  %3982 = vtanh.f32 %v1907_v6  ;;  %v2082_v8 = vpop.f32.mrf.mxu3 }
 0x286   :  { %v3979_v9 = vpop.eup %3978  ;;  %2494 = vst.msk [vmem:[%s5682_s2 + $0x418] sm:$0xff] %vm2362_vm1, %v3977_v7  ;;  %v1735_v10 = vpop.f32.mrf.mxu1  ;;  %3984 = vtanh.f32 %v2082_v8 }
 0x287   :  { %3986 = vtanh.f32 %v1735_v10  ;;  %2426 = vst.msk [vmem:[%s5682_s2 + $0x1f8] sm:$0xff] %vm2362_vm1, %v3979_v9  ;;  %v1565_v11 = vpop.f32.mrf.mxu0  ;;  %v3981_v12 = vpop.eup %3980 }
 0x288   :  { %3988 = vtanh.f32 %v1565_v11  ;;  %2633 = vst.msk [vmem:[%s5682_s2 + $0x870] sm:$0xff] %vm2362_vm1, %v3981_v12 }
 0x28b   :  { %v3983_v13 = vpop.eup %3982 }
 0x28c   :  { %v3985_v14 = vpop.eup %3984  ;;  %2564 = vst.msk [vmem:[%s5682_s2 + $0x648] sm:$0xff] %vm2362_vm1, %v3983_v13  ;;  %v1910_v15 = vpop.f32.mrf.mxu2 }
 0x28d   :  { %v3987_v16 = vpop.eup %3986  ;;  %3990 = vtanh.f32 %v1910_v15  ;;  %2634 = vst.msk [vmem:[%s5682_s2 + $0x878] sm:$0xff] %vm2362_vm1, %v3985_v14  ;;  %v2085_v17 = vpop.f32.mrf.mxu3 }
 0x28e   :  { %v3989_v18 = vpop.eup %3988  ;;  %2495 = vst.msk [vmem:[%s5682_s2 + $0x420] sm:$0xff] %vm2362_vm1, %v3987_v16  ;;  %v1737_v19 = vpop.f32.mrf.mxu1 }
 0x28f   :  { %3992 = vtanh.f32 %v1737_v19  ;;  %2427 = vst.msk [vmem:[%s5682_s2 + $0x200] sm:$0xff] %vm2362_vm1, %v3989_v18  ;;  %v1567_v20 = vpop.f32.mrf.mxu0 }
 0x290   :  { %3994 = vtanh.f32 %v1567_v20 }
 0x291   :  { %3996 = vtanh.f32 %v2085_v17 }
 0x293   :  { %v3991_v21 = vpop.eup %3990 }
 0x294   :  { %2565 = vst.msk [vmem:[%s5682_s2 + $0x650] sm:$0xff] %vm2362_vm1, %v3991_v21  ;;  %v1912_v22 = vpop.f32.mrf.mxu2 }
 0x295   :  { %v3993_v23 = vpop.eup %3992  ;;  %3998 = vtanh.f32 %v1912_v22  ;;  %v2087_v24 = vpop.f32.mrf.mxu3 }
 0x296   :  { %v3995_v25 = vpop.eup %3994  ;;  %2496 = vst.msk [vmem:[%s5682_s2 + $0x428] sm:$0xff] %vm2362_vm1, %v3993_v23  ;;  %v1740_v26 = vpop.f32.mrf.mxu1 }
 0x297   :  { %4000 = vtanh.f32 %v1740_v26  ;;  %2428 = vst.msk [vmem:[%s5682_s2 + $0x208] sm:$0xff] %vm2362_vm1, %v3995_v25  ;;  %v1570_v27 = vpop.f32.mrf.mxu0  ;;  %v3997_v28 = vpop.eup %3996 }
 0x298   :  { %4002 = vtanh.f32 %v1570_v27  ;;  %2636 = vst.msk [vmem:[%s5682_s2 + $0x880] sm:$0x3] %vm2635_vm2, %v3997_v28 }
 0x29b   :  { %v3999_v29 = vpop.eup %3998 }
 0x29c   :  { %2566 = vst.msk [vmem:[%s5682_s2 + $0x658] sm:$0xff] %vm2362_vm1, %v3999_v29  ;;  %v1915_v30 = vpop.f32.mrf.mxu2 }
 0x29d   :  { %v4001_v31 = vpop.eup %4000  ;;  %4004 = vtanh.f32 %v1915_v30 }
 0x29e   :  { %v4003_v32 = vpop.eup %4002  ;;  %2497 = vst.msk [vmem:[%s5682_s2 + $0x430] sm:$0xff] %vm2362_vm1, %v4001_v31  ;;  %v1742_v33 = vpop.f32.mrf.mxu1 }
 0x29f   :  { %4006 = vtanh.f32 %v1742_v33  ;;  %2429 = vst.msk [vmem:[%s5682_s2 + $0x210] sm:$0xff] %vm2362_vm1, %v4003_v32  ;;  %v1572_v34 = vpop.f32.mrf.mxu0 }
 0x2a0   :  { %4008 = vtanh.f32 %v1572_v34 }
 0x2a3   :  { %v4005_v35 = vpop.eup %4004 }
 0x2a4   :  { %2567 = vst.msk [vmem:[%s5682_s2 + $0x660] sm:$0xff] %vm2362_vm1, %v4005_v35  ;;  %v1917_v36 = vpop.f32.mrf.mxu2 }
 0x2a5   :  { %v4007_v37 = vpop.eup %4006  ;;  %4010 = vtanh.f32 %v1917_v36 }
 0x2a6   :  { %v4009_v38 = vpop.eup %4008  ;;  %2498 = vst.msk [vmem:[%s5682_s2 + $0x438] sm:$0xff] %vm2362_vm1, %v4007_v37  ;;  %v1745_v39 = vpop.f32.mrf.mxu1 }
 0x2a7   :  { %4012 = vtanh.f32 %v1745_v39  ;;  %2430 = vst.msk [vmem:[%s5682_s2 + $0x218] sm:$0xff] %vm2362_vm1, %v4009_v38 }
 0x2ab   :  { %v4011_v40 = vpop.eup %4010 }
 0x2ac   :  { %2568 = vst.msk [vmem:[%s5682_s2 + $0x668] sm:$0xff] %vm2362_vm1, %v4011_v40  ;;  %v1920_v41 = vpop.f32.mrf.mxu2 }
 0x2ad   :  { %v4013_v42 = vpop.eup %4012  ;;  %4014 = vtanh.f32 %v1920_v41 }
 0x2ae   :  { %2499 = vst.msk [vmem:[%s5682_s2 + $0x440] sm:$0xff] %vm2362_vm1, %v4013_v42  ;;  %v1747_v43 = vpop.f32.mrf.mxu1 }
 0x2af   :  { %4016 = vtanh.f32 %v1747_v43 }
 0x2b3   :  { %v4015_v44 = vpop.eup %4014 }
 0x2b4   :  { %2569 = vst.msk [vmem:[%s5682_s2 + $0x670] sm:$0xff] %vm2362_vm1, %v4015_v44  ;;  %v1922_v45 = vpop.f32.mrf.mxu2 }
 0x2b5   :  { %v4017_v46 = vpop.eup %4016  ;;  %4018 = vtanh.f32 %v1922_v45 }
 0x2b6   :  { %2500 = vst.msk [vmem:[%s5682_s2 + $0x448] sm:$0xff] %vm2362_vm1, %v4017_v46 }
 0x2bb   :  { %v4019_v47 = vpop.eup %4018 }
 0x2bc   :  { %2570 = vst.msk [vmem:[%s5682_s2 + $0x678] sm:$0xff] %vm2362_vm1, %v4019_v47 }

</bundles_post_ra>
